<compile_context>
chip_gen: v7x
topology: tpu7x:2x2x1
jax: 0.10.0
libtpu: 0.0.40
codegen_flags: <defaults>
</compile_context>

<pallas_src>
import functools

import numpy as np
import jax
import jax.numpy as jnp
from jax.experimental import pallas as pl
from jax.experimental.pallas import tpu as pltpu

KS = 3            # deformable kernel size
LANE = 128        # lane-dense output width (round every matmul N up to this)
BN_EPS = 1e-5
VMEM_LIMIT = 32 * 1024 * 1024   # explicit, safe on v5e/v6e/v7x (tiles are tiny)


def _round_up(x, m):
    return ((x + m - 1) // m) * m


def _pad_rows(a, mp):
    m = a.shape[0]
    return a if m == mp else jnp.pad(a, ((0, mp - m), (0, 0)))


def _pad_last(a, n):
    c = a.shape[-1]
    if c == n:
        return a
    pad = [(0, 0)] * (a.ndim - 1) + [(0, n - c)]
    return jnp.pad(a, pad)


def _pick_tm(m):
    # Largest power-of-two row tile <= 512 that still leaves >= 2 grid steps
    # when the problem allows (keeps both v7x TensorCores busy).
    tm = 512
    while tm > 64 and m <= tm:
        tm //= 2
    return tm


# ----------------------------------------------------------------------------
# Pallas kernel 1: offset conv (3x3, pad=1, stride=1) with taps folded in VMEM
# ----------------------------------------------------------------------------
def _offset_conv_kernel(x_ref, w_ref, b_ref, o_ref, *, wp, ks):
    # x_ref: (1, Hp*Wp, C) flattened padded image; w_ref: (ks*ks, C, Lo);
    # b_ref: (1, Lo); o_ref: (1, R, Lo) with run row r = h*Wp + w.
    R = o_ref.shape[1]
    Lo = o_ref.shape[2]
    x = x_ref[0]                                   # (Hp*Wp, C)
    acc = jnp.zeros((R, Lo), jnp.float32)
    for t in range(ks * ks):                       # static unroll: 9 shifted dots
        ki, kj = t // ks, t % ks
        s = ki * wp + kj
        acc = acc + jnp.dot(x[s:s + R, :], w_ref[t],
                            preferred_element_type=jnp.float32)
    o_ref[0] = acc + b_ref[...]


def pallas_offset_conv(x_pad, w_taps, bias, H, W):
    """3x3 'same' conv of the already zero-padded NHWC input.

    No HBM im2col slab: the 9 taps are accumulated in VMEM as shifted-row
    matmuls of the flattened image.  Returns (B, H, W, Lo) f32, lane-dense.
    """
    B, Hp, Wp, C = x_pad.shape
    Lo = w_taps.shape[-1]
    R = (H - 1) * Wp + W                           # contiguous-run length
    x_lin = x_pad.reshape(B, Hp * Wp, C)           # free reshape (row-major)
    kern = functools.partial(_offset_conv_kernel, wp=Wp, ks=KS)
    out = pl.pallas_call(
        kern,
        out_shape=jax.ShapeDtypeStruct((B, R, Lo), jnp.float32),
        grid=(B,),
        in_specs=[pl.BlockSpec((1, Hp * Wp, C), lambda b: (b, 0, 0)),
                  pl.BlockSpec((KS * KS, C, Lo), lambda b: (0, 0, 0)),
                  pl.BlockSpec((1, Lo), lambda b: (0, 0))],
        out_specs=pl.BlockSpec((1, R, Lo), lambda b: (b, 0, 0)),
        compiler_params=pltpu.CompilerParams(
            dimension_semantics=("parallel",), vmem_limit_bytes=VMEM_LIMIT),
        cost_estimate=pl.CostEstimate(
            flops=2 * B * R * C * Lo * KS * KS,
            transcendentals=0,
            bytes_accessed=int(x_lin.size * x_lin.dtype.itemsize
                               + w_taps.size * w_taps.dtype.itemsize
                               + B * R * Lo * 4)),
    )(x_lin, w_taps, bias)
    # Select the W valid columns of each Wp-stride run row (cheap XLA rearrange).
    out = jnp.pad(out, ((0, 0), (0, H * Wp - R), (0, 0)))
    return out.reshape(B, H, Wp, Lo)[:, :, :W, :]


# ----------------------------------------------------------------------------
# Pallas kernel 2: main-conv matmul with fused BatchNorm statistics epilogue
# ----------------------------------------------------------------------------
def _matmul_stats_kernel(a_ref, b_ref, o_ref, ps_ref, pq_ref):
    y = jnp.dot(a_ref[...], b_ref[...], preferred_element_type=jnp.float32)
    o_ref[...] = y
    # BN statistics ride in otherwise-idle VPU/XLU slots under the MXU.
    ps_ref[...] = jnp.sum(y, axis=0)[None, None, :]
    pq_ref[...] = jnp.sum(y * y, axis=0)[None, None, :]


def pallas_matmul_stats(a, b):
    """(M, K) @ (K, Np) with fused per-channel sum / sum-of-squares.

    No bias input: zero-padded rows therefore produce exactly zero output and
    cannot perturb the statistics.  Returns (y:(Mp, Np) f32, sum, sumsq).
    """
    M, K = a.shape
    Np = b.shape[1]
    tm = _pick_tm(M)
    # Cap the tile footprint so large 9C never blows v7x's smaller VMEM.
    # TODO(synk): switch to a K grid axis + f32 accumulator scratch (P3) for
    # very large 9C instead of shrinking tm.
    while tm > 64 and 2 * tm * (K * a.dtype.itemsize + Np * 4) > (8 << 20):
        tm //= 2
    Mp = _round_up(M, tm)
    G = Mp // tm
    a_p = _pad_rows(a, Mp)
    ce = pl.CostEstimate(
        flops=2 * Mp * K * Np,
        transcendentals=0,
        bytes_accessed=int(a_p.size * a_p.dtype.itemsize
                           + b.size * b.dtype.itemsize + Mp * Np * 4))
    y, ps, pq = pl.pallas_call(
        _matmul_stats_kernel,
        out_shape=(jax.ShapeDtypeStruct((Mp, Np), jnp.float32),
                   jax.ShapeDtypeStruct((G, 1, Np), jnp.float32),
                   jax.ShapeDtypeStruct((G, 1, Np), jnp.float32)),
        grid=(G,),
        in_specs=[pl.BlockSpec((tm, K), lambda i: (i, 0)),
                  pl.BlockSpec((K, Np), lambda i: (0, 0))],
        out_specs=(pl.BlockSpec((tm, Np), lambda i: (i, 0)),
                   pl.BlockSpec((1, 1, Np), lambda i: (i, 0, 0)),
                   pl.BlockSpec((1, 1, Np), lambda i: (i, 0, 0))),
        compiler_params=pltpu.CompilerParams(
            dimension_semantics=("parallel",), vmem_limit_bytes=VMEM_LIMIT),
        cost_estimate=ce,
    )(a_p, b)
    return y, jnp.sum(ps, axis=(0, 1)), jnp.sum(pq, axis=(0, 1))


# ----------------------------------------------------------------------------
# Pallas kernel 3: fused scale/shift (BatchNorm affine) + ReLU
# ----------------------------------------------------------------------------
def _scale_shift_relu_kernel(y_ref, scale_ref, shift_ref, o_ref):
    o_ref[...] = jnp.maximum(
        y_ref[...] * scale_ref[...] + shift_ref[...], 0.0).astype(o_ref.dtype)


def pallas_scale_shift_relu(y, scale, shift, out_dtype):
    """y:(Mp, Np) row-padded, Np lane-dense.  Output dtype selectable (bf16
    between layers, f32 for the block output)."""
    Mp, Np = y.shape
    tm = _pick_tm(Mp)
    while Mp % tm:
        tm //= 2
    out_bytes = np.dtype(out_dtype).itemsize
    return pl.pallas_call(
        _scale_shift_relu_kernel,
        out_shape=jax.ShapeDtypeStruct((Mp, Np), out_dtype),
        grid=(Mp // tm,),
        in_specs=[pl.BlockSpec((tm, Np), lambda i: (i, 0)),
                  pl.BlockSpec((1, Np), lambda i: (0, 0)),
                  pl.BlockSpec((1, Np), lambda i: (0, 0))],
        out_specs=pl.BlockSpec((tm, Np), lambda i: (i, 0)),
        compiler_params=pltpu.CompilerParams(
            dimension_semantics=("parallel",), vmem_limit_bytes=VMEM_LIMIT),
        cost_estimate=pl.CostEstimate(
            flops=2 * Mp * Np, transcendentals=0,
            bytes_accessed=Mp * Np * (4 + out_bytes)),
    )(y, scale, shift)
    # TODO(synk): sweep pipeline_mode=pl.Buffered(3) on the y stream (v6e).


# ----------------------------------------------------------------------------
# Bilinear sampling (XLA glue): 2 contiguous-run gathers, exact clamp semantics
# ----------------------------------------------------------------------------
def _bilinear_sample(x_pad, offset, ks, stride, out_dtype):
    """x_pad:(B,Hp,Wp,C); offset:(B,H,W,2N) f32 -> x_off:(B, H*W*N, C)."""
    B, Hp, Wp, C = x_pad.shape
    H, W = offset.shape[1], offset.shape[2]
    N = ks * ks

    rng = jnp.arange(-(ks - 1) // 2, (ks - 1) // 2 + 1, dtype=jnp.float32)
    p_n_x = jnp.repeat(rng, ks)
    p_n_y = jnp.tile(rng, ks)
    base_x = jnp.arange(1, H * stride + 1, stride, dtype=jnp.float32)
    base_y = jnp.arange(1, W * stride + 1, stride, dtype=jnp.float32)
    px = base_x[None, :, None, None] + p_n_x[None, None, None, :] + offset[..., :N]
    py = base_y[None, None, :, None] + p_n_y[None, None, None, :] + offset[..., N:]

    fx = jnp.floor(px)
    fy = jnp.floor(py)
    r_top = jnp.clip(fx, 0, Hp - 1)          # == reference q_lt (row)
    r_bot = jnp.clip(fx + 1, 0, Hp - 1)      # == reference q_rb (row)
    c_lt = jnp.clip(fy, 0, Wp - 1)
    c_rb = jnp.clip(fy + 1, 0, Wp - 1)
    cb = jnp.clip(fy, 0, Wp - 2)             # base column of the 2C run
    pcx = jnp.clip(px, 0, Hp - 1)
    pcy = jnp.clip(py, 0, Wp - 1)

    gx_top = 1.0 + (r_top - pcx)
    gx_bot = 1.0 - (r_bot - pcx)
    gy_l = 1.0 + (c_lt - pcy)
    gy_r = 1.0 - (c_rb - pcy)

    # Map the reference's clamped lt/rb columns onto the 2C run (exact match,
    # including the double-count at the borders that the PyTorch code produces).
    sel_hi = fy >= (Wp - 1)
    sel_lo = fy <= -1.0
    cy0 = jnp.where(sel_hi, 0.0, gy_l) + jnp.where(sel_lo, gy_r, 0.0)
    cy1 = (gy_l + gy_r) - cy0

    w_t0 = (gx_top * cy0).reshape(B, -1, 1)
    w_t1 = (gx_top * cy1).reshape(B, -1, 1)
    w_b0 = (gx_bot * cy0).reshape(B, -1, 1)
    w_b1 = (gx_bot * cy1).reshape(B, -1, 1)

    # Two gathers of contiguous 2C runs; indices stay (B, H*W*N) scalars.
    # TODO(synk): a Pallas manual-DMA gather (pl.ANY + make_async_copy) could
    # feed the matmul without writing x_off to HBM at all.
    r_top_i = r_top.astype(jnp.int32)
    r_bot_i = r_bot.astype(jnp.int32)
    cb_i = cb.astype(jnp.int32)
    start_top = ((r_top_i * Wp + cb_i) * C).reshape(B, -1)
    start_bot = ((r_bot_i * Wp + cb_i) * C).reshape(B, -1)
    x_lin = x_pad.reshape(B, Hp * Wp * C)

    gather_run = jax.vmap(jax.vmap(
        lambda v, s: jax.lax.dynamic_slice(v, (s,), (2 * C,)),
        in_axes=(None, 0)), in_axes=(0, 0))
    top = gather_run(x_lin, start_top)        # (B, HWN, 2C)
    bot = gather_run(x_lin, start_bot)

    x_off = (w_t0 * top[..., :C] + w_t1 * top[..., C:] +
             w_b0 * bot[..., :C] + w_b1 * bot[..., C:])
    return x_off.astype(out_dtype)            # bf16 cast fused into the combine


# ----------------------------------------------------------------------------
# DeformConv2d forward (Pallas conv/matmuls; gather glue in XLA)
# ----------------------------------------------------------------------------
def deform_conv2d(x_pad, H, W, p, ks=KS, stride=1):
    """x_pad: zero-padded NHWC activation.  Returns (y:(Mp,Np) f32, sum, sumsq)."""
    B, Hp, Wp, C = x_pad.shape
    N = ks * ks
    M = B * H * W
    dt = x_pad.dtype

    # 1) offset = p_conv(x): Pallas 3x3 conv, no im2col slab.
    Lo = _round_up(2 * N, LANE)
    w_taps = jnp.transpose(p["p_w"], (2, 3, 1, 0)).reshape(N, C, 2 * N)
    w_taps = _pad_last(w_taps, Lo).astype(dt)
    p_bias = _pad_last(p["p_b"], Lo).astype(jnp.float32)[None, :]
    off = pallas_offset_conv(x_pad, w_taps, p_bias, H, W)[..., :2 * N]  # f32

    # 2+3) bilinear sampling -> bf16 A operand (two contiguous-run gathers)
    x_off = _bilinear_sample(x_pad, off, ks, stride, jnp.bfloat16)      # (B,HWN,C)
    a = x_off.reshape(M, N * C)

    # 4) main conv (kernel=ks, stride=ks on the expanded grid) == one matmul,
    #    bf16 MXU operands, f32 accumulate, fused BN statistics, no bias.
    outc = p["c_w"].shape[0]
    Np = _round_up(outc, LANE)   # TODO(synk): round to 256 when outc > 128 (v6e/v7x MXU)
    wc = jnp.transpose(p["c_w"], (0, 2, 3, 1)).reshape(outc, N * C).T
    wc = _pad_last(wc, Np).astype(jnp.bfloat16)
    return pallas_matmul_stats(a, wc)


def batchnorm_relu(y_pad, s, q, m_rows, gamma, beta, out_dtype, eps=BN_EPS):
    """Training-mode BatchNorm2d (batch stats, biased var) + ReLU on (Mp, Np)."""
    # TODO(synk): a per-tile Welford combine would be safer than E[x^2]-E[x]^2
    # for activations with large mean/spread ratio; the clamp only prevents NaN.
    mean = s / m_rows
    var = jnp.maximum(q / m_rows - mean * mean, 0.0)
    npad = s.shape[0]
    scale = _pad_last(gamma, npad) * jax.lax.rsqrt(var + eps)
    shift = _pad_last(beta, npad) - mean * scale
    return pallas_scale_shift_relu(y_pad, scale[None, :], shift[None, :], out_dtype)


def conv_block_deformconv(x, params):
    """x: (B, ch_in, H, W) -> (B, ch_out, H, W)."""
    B, _, H, W = x.shape
    M = B * H * W
    x_nhwc = jnp.transpose(x, (0, 2, 3, 1))

    # ---- layer 1 ----
    x_pad = jnp.pad(x_nhwc, ((0, 0), (1, 1), (1, 1), (0, 0)))
    y, s, q = deform_conv2d(x_pad, H, W, params["d1"])
    c1 = params["bn1_g"].shape[0]
    y1 = batchnorm_relu(y, s, q, M, params["bn1_g"], params["bn1_b"], jnp.bfloat16)

    # ---- layer 2 (channel slice folded into the zero-pad producer) ----
    x1_pad = jnp.pad(y1[:M].reshape(B, H, W, -1)[..., :c1],
                     ((0, 0), (1, 1), (1, 1), (0, 0)))
    y, s, q = deform_conv2d(x1_pad, H, W, params["d2"])
    c2 = params["bn2_g"].shape[0]
    y2 = batchnorm_relu(y, s, q, M, params["bn2_g"], params["bn2_b"], jnp.float32)
    return jnp.transpose(y2[:M, :c2].reshape(B, H, W, c2), (0, 3, 1, 2))


# ----------------------------------------------------------------------------
# Pure-JAX f32 reference (faithful port of the PyTorch module, no Pallas/bf16)
# ----------------------------------------------------------------------------
def _ref_conv3x3(x, w, b):
    y = jax.lax.conv_general_dilated(
        x, w, (1, 1), ((1, 1), (1, 1)),
        dimension_numbers=("NCHW", "OIHW", "NCHW"),
        precision=jax.lax.Precision.HIGHEST)
    return y + b[None, :, None, None]


def _ref_deform_conv(x, p, ks=KS, pad=1, stride=1):
    B, C, H, W = x.shape
    N = ks * ks
    offset = _ref_conv3x3(x, p["p_w"], p["p_b"])                 # (B, 2N, H, W)
    xp = jnp.pad(x, ((0, 0), (0, 0), (pad, pad), (pad, pad)))
    Hp, Wp = H + 2 * pad, W + 2 * pad
    rng = jnp.arange(-(ks - 1) // 2, (ks - 1) // 2 + 1, dtype=jnp.float32)
    p_n = jnp.concatenate([jnp.repeat(rng, ks), jnp.tile(rng, ks)])
    bx = jnp.arange(1, H * stride + 1, stride, dtype=jnp.float32)
    by = jnp.arange(1, W * stride + 1, stride, dtype=jnp.float32)
    p0 = jnp.concatenate([jnp.broadcast_to(bx[:, None, None], (H, W, N)),
                          jnp.broadcast_to(by[None, :, None], (H, W, N))], -1)
    pos = p0[None] + p_n[None, None, None, :] + jnp.transpose(offset, (0, 2, 3, 1))
    q_lt = jnp.floor(pos)
    q_rb = q_lt + 1
    clip2 = lambda t: jnp.concatenate([jnp.clip(t[..., :N], 0, Hp - 1),
                                       jnp.clip(t[..., N:], 0, Wp - 1)], -1)
    q_lt = clip2(q_lt)
    q_rb = clip2(q_rb)
    q_lb = jnp.concatenate([q_lt[..., :N], q_rb[..., N:]], -1)
    q_rt = jnp.concatenate([q_rb[..., :N], q_lt[..., N:]], -1)
    pc = clip2(pos)
    g = lambda qq, sx, sy: ((1 + sx * (qq[..., :N] - pc[..., :N])) *
                            (1 + sy * (qq[..., N:] - pc[..., N:])))
    g_lt, g_rb = g(q_lt, 1, 1), g(q_rb, -1, -1)
    g_lb, g_rt = g(q_lb, 1, -1), g(q_rt, -1, 1)
    xf = xp.reshape(B, C, Hp * Wp)

    def xq(qq):
        idx = (qq[..., :N] * Wp + qq[..., N:]).astype(jnp.int32).reshape(B, 1, -1)
        idx = jnp.broadcast_to(idx, (B, C, idx.shape[-1]))
        return jnp.take_along_axis(xf, idx, axis=2).reshape(B, C, H, W, N)

    xo = (g_lt[:, None] * xq(q_lt) + g_rb[:, None] * xq(q_rb) +
          g_lb[:, None] * xq(q_lb) + g_rt[:, None] * xq(q_rt))
    return jnp.einsum("bchwn,ocn->bohw", xo, p["c_w"].reshape(-1, C, N),
                      precision=jax.lax.Precision.HIGHEST)


def _ref_bn_relu(x, g, b, eps=BN_EPS):
    mean = x.mean(axis=(0, 2, 3), keepdims=True)
    var = x.var(axis=(0, 2, 3), keepdims=True)      # biased, training mode
    y = (x - mean) / jnp.sqrt(var + eps) * g[None, :, None, None] + b[None, :, None, None]
    return jnp.maximum(y, 0.0)


def _ref_block(x, params):
    y = _ref_bn_relu(_ref_deform_conv(x, params["d1"]),
                     params["bn1_g"], params["bn1_b"])
    y = _ref_bn_relu(_ref_deform_conv(y, params["d2"]),
                     params["bn2_g"], params["bn2_b"])
    return y


# ----------------------------------------------------------------------------
# Deterministic parameter init (mirrors module __init__ shapes / constants)
# ----------------------------------------------------------------------------
def make_deform_params(key, inc, outc, ks=KS):
    k1, k2 = jax.random.split(key)
    fan_in = inc * ks * ks
    bound = 1.0 / jnp.sqrt(fan_in)
    return dict(
        # p_conv: weight constant-initialized to 0, bias uniform (default)
        p_w=jnp.zeros((2 * ks * ks, inc, ks, ks), jnp.float32),
        p_b=jax.random.uniform(k1, (2 * ks * ks,), jnp.float32, -bound, bound),
        # main conv: kaiming-uniform-like, bias=None
        c_w=jax.random.uniform(k2, (outc, inc, ks, ks), jnp.float32, -bound, bound),
    )


def make_block_params(key, ch_in, ch_out):
    k1, k2 = jax.random.split(key)
    return dict(
        d1=make_deform_params(k1, ch_in, ch_out),
        bn1_g=jnp.ones((ch_out,), jnp.float32),
        bn1_b=jnp.zeros((ch_out,), jnp.float32),
        d2=make_deform_params(k2, ch_out, ch_out),
        bn2_g=jnp.ones((ch_out,), jnp.float32),
        bn2_b=jnp.zeros((ch_out,), jnp.float32),
    )


# ----------------------------------------------------------------------------
if __name__ == "__main__":
    key = jax.random.PRNGKey(0)
    kx, kp = jax.random.split(key)

    B, ch_in, ch_out, H, W = 2, 4, 8, 16, 16
    x = jax.random.normal(kx, (B, ch_in, H, W), jnp.float32)
    params = make_block_params(kp, ch_in, ch_out)

    out = jax.block_until_ready(jax.jit(conv_block_deformconv)(x, params))
    ref = jax.block_until_ready(jax.jit(_ref_block)(x, params))

    assert out.shape == (B, ch_out, H, W), out.shape
    assert bool(jnp.all(jnp.isfinite(out)))
    max_err = float(jnp.max(jnp.abs(out - ref)))
    assert jnp.allclose(out, ref, atol=3e-2, rtol=3e-2), max_err

    print("KERNEL_OK")
</pallas_src>

<mosaic_0001>
module attributes {stable_mosaic.version = 11 : i64} {
  func.func @_offset_conv_kernel(%arg0: i32, %arg1: memref<1x324x4xf32, #tpu.memory_space<vmem>>, %arg2: memref<9x4x128xf32, #tpu.memory_space<vmem>>, %arg3: memref<1x128xf32, #tpu.memory_space<vmem>>, %arg4: memref<1x286x128xf32, #tpu.memory_space<vmem>>) attributes {dimension_semantics = [#tpu.dimension_semantics<parallel>], iteration_bounds = array<i64: 2>, scalar_prefetch = 0 : i64, scratch_operands = 0 : i64, tpu.core_type = #tpu.core_type<tc>, window_params = [{transform_indices = @transform_0, window_bounds = array<i64: 1, 324, 4>}, {pipeline_mode = #tpu.pipeline_mode<synchronous>, transform_indices = @transform_1, window_bounds = array<i64: 9, 4, 128>}, {pipeline_mode = #tpu.pipeline_mode<synchronous>, transform_indices = @transform_2, window_bounds = array<i64: 1, 128>}, {transform_indices = @transform_3, window_bounds = array<i64: 1, 286, 128>}]} {
    %c0 = arith.constant 0 : index
    %c0_0 = arith.constant 0 : index
    %c0_1 = arith.constant 0 : index
    %0 = vector.load %arg1[%c0, %c0_0, %c0_1] : memref<1x324x4xf32, #tpu.memory_space<vmem>>, vector<1x324x4xf32>
    %1 = vector.shape_cast %0 : vector<1x324x4xf32> to vector<324x4xf32>
    %cst = arith.constant 0.000000e+00 : f32
    %2 = vector.broadcast %cst : f32 to vector<286x128xf32>
    %3 = vector.extract_strided_slice %1 {offsets = [0, 0], sizes = [286, 4], strides = [1, 1]} : vector<324x4xf32> to vector<286x4xf32>
    %c0_2 = arith.constant 0 : index
    %c0_3 = arith.constant 0 : index
    %c0_4 = arith.constant 0 : index
    %4 = vector.load %arg2[%c0_2, %c0_3, %c0_4] : memref<9x4x128xf32, #tpu.memory_space<vmem>>, vector<1x4x128xf32>
    %5 = vector.shape_cast %4 : vector<1x4x128xf32> to vector<4x128xf32>
    %cst_5 = arith.constant dense<0.000000e+00> : vector<286x128xf32>
    %6 = tpu.matmul %3, %5, %cst_5 {dimension_numbers = #tpu.dot_dimension_numbers<[1], [0], [0], [1], [0, 0, 1, 1], [], []>} : vector<286x4xf32>, vector<4x128xf32>, vector<286x128xf32> -> vector<286x128xf32>
    %7 = arith.addf %2, %6 : vector<286x128xf32>
    %8 = vector.extract_strided_slice %1 {offsets = [1, 0], sizes = [286, 4], strides = [1, 1]} : vector<324x4xf32> to vector<286x4xf32>
    %c1 = arith.constant 1 : index
    %c0_6 = arith.constant 0 : index
    %c0_7 = arith.constant 0 : index
    %9 = vector.load %arg2[%c1, %c0_6, %c0_7] : memref<9x4x128xf32, #tpu.memory_space<vmem>>, vector<1x4x128xf32>
    %10 = vector.shape_cast %9 : vector<1x4x128xf32> to vector<4x128xf32>
    %cst_8 = arith.constant dense<0.000000e+00> : vector<286x128xf32>
    %11 = tpu.matmul %8, %10, %cst_8 {dimension_numbers = #tpu.dot_dimension_numbers<[1], [0], [0], [1], [0, 0, 1, 1], [], []>} : vector<286x4xf32>, vector<4x128xf32>, vector<286x128xf32> -> vector<286x128xf32>
    %12 = arith.addf %7, %11 : vector<286x128xf32>
    %13 = vector.extract_strided_slice %1 {offsets = [2, 0], sizes = [286, 4], strides = [1, 1]} : vector<324x4xf32> to vector<286x4xf32>
    %c2 = arith.constant 2 : index
    %c0_9 = arith.constant 0 : index
    %c0_10 = arith.constant 0 : index
    %14 = vector.load %arg2[%c2, %c0_9, %c0_10] : memref<9x4x128xf32, #tpu.memory_space<vmem>>, vector<1x4x128xf32>
    %15 = vector.shape_cast %14 : vector<1x4x128xf32> to vector<4x128xf32>
    %cst_11 = arith.constant dense<0.000000e+00> : vector<286x128xf32>
    %16 = tpu.matmul %13, %15, %cst_11 {dimension_numbers = #tpu.dot_dimension_numbers<[1], [0], [0], [1], [0, 0, 1, 1], [], []>} : vector<286x4xf32>, vector<4x128xf32>, vector<286x128xf32> -> vector<286x128xf32>
    %17 = arith.addf %12, %16 : vector<286x128xf32>
    %18 = vector.extract_strided_slice %1 {offsets = [18, 0], sizes = [286, 4], strides = [1, 1]} : vector<324x4xf32> to vector<286x4xf32>
    %c3 = arith.constant 3 : index
    %c0_12 = arith.constant 0 : index
    %c0_13 = arith.constant 0 : index
    %19 = vector.load %arg2[%c3, %c0_12, %c0_13] : memref<9x4x128xf32, #tpu.memory_space<vmem>>, vector<1x4x128xf32>
    %20 = vector.shape_cast %19 : vector<1x4x128xf32> to vector<4x128xf32>
    %cst_14 = arith.constant dense<0.000000e+00> : vector<286x128xf32>
    %21 = tpu.matmul %18, %20, %cst_14 {dimension_numbers = #tpu.dot_dimension_numbers<[1], [0], [0], [1], [0, 0, 1, 1], [], []>} : vector<286x4xf32>, vector<4x128xf32>, vector<286x128xf32> -> vector<286x128xf32>
    %22 = arith.addf %17, %21 : vector<286x128xf32>
    %23 = vector.extract_strided_slice %1 {offsets = [19, 0], sizes = [286, 4], strides = [1, 1]} : vector<324x4xf32> to vector<286x4xf32>
    %c4 = arith.constant 4 : index
    %c0_15 = arith.constant 0 : index
    %c0_16 = arith.constant 0 : index
    %24 = vector.load %arg2[%c4, %c0_15, %c0_16] : memref<9x4x128xf32, #tpu.memory_space<vmem>>, vector<1x4x128xf32>
    %25 = vector.shape_cast %24 : vector<1x4x128xf32> to vector<4x128xf32>
    %cst_17 = arith.constant dense<0.000000e+00> : vector<286x128xf32>
    %26 = tpu.matmul %23, %25, %cst_17 {dimension_numbers = #tpu.dot_dimension_numbers<[1], [0], [0], [1], [0, 0, 1, 1], [], []>} : vector<286x4xf32>, vector<4x128xf32>, vector<286x128xf32> -> vector<286x128xf32>
    %27 = arith.addf %22, %26 : vector<286x128xf32>
    %28 = vector.extract_strided_slice %1 {offsets = [20, 0], sizes = [286, 4], strides = [1, 1]} : vector<324x4xf32> to vector<286x4xf32>
    %c5 = arith.constant 5 : index
    %c0_18 = arith.constant 0 : index
    %c0_19 = arith.constant 0 : index
    %29 = vector.load %arg2[%c5, %c0_18, %c0_19] : memref<9x4x128xf32, #tpu.memory_space<vmem>>, vector<1x4x128xf32>
    %30 = vector.shape_cast %29 : vector<1x4x128xf32> to vector<4x128xf32>
    %cst_20 = arith.constant dense<0.000000e+00> : vector<286x128xf32>
    %31 = tpu.matmul %28, %30, %cst_20 {dimension_numbers = #tpu.dot_dimension_numbers<[1], [0], [0], [1], [0, 0, 1, 1], [], []>} : vector<286x4xf32>, vector<4x128xf32>, vector<286x128xf32> -> vector<286x128xf32>
    %32 = arith.addf %27, %31 : vector<286x128xf32>
    %33 = vector.extract_strided_slice %1 {offsets = [36, 0], sizes = [286, 4], strides = [1, 1]} : vector<324x4xf32> to vector<286x4xf32>
    %c6 = arith.constant 6 : index
    %c0_21 = arith.constant 0 : index
    %c0_22 = arith.constant 0 : index
    %34 = vector.load %arg2[%c6, %c0_21, %c0_22] : memref<9x4x128xf32, #tpu.memory_space<vmem>>, vector<1x4x128xf32>
    %35 = vector.shape_cast %34 : vector<1x4x128xf32> to vector<4x128xf32>
    %cst_23 = arith.constant dense<0.000000e+00> : vector<286x128xf32>
    %36 = tpu.matmul %33, %35, %cst_23 {dimension_numbers = #tpu.dot_dimension_numbers<[1], [0], [0], [1], [0, 0, 1, 1], [], []>} : vector<286x4xf32>, vector<4x128xf32>, vector<286x128xf32> -> vector<286x128xf32>
    %37 = arith.addf %32, %36 : vector<286x128xf32>
    %38 = vector.extract_strided_slice %1 {offsets = [37, 0], sizes = [286, 4], strides = [1, 1]} : vector<324x4xf32> to vector<286x4xf32>
    %c7 = arith.constant 7 : index
    %c0_24 = arith.constant 0 : index
    %c0_25 = arith.constant 0 : index
    %39 = vector.load %arg2[%c7, %c0_24, %c0_25] : memref<9x4x128xf32, #tpu.memory_space<vmem>>, vector<1x4x128xf32>
    %40 = vector.shape_cast %39 : vector<1x4x128xf32> to vector<4x128xf32>
    %cst_26 = arith.constant dense<0.000000e+00> : vector<286x128xf32>
    %41 = tpu.matmul %38, %40, %cst_26 {dimension_numbers = #tpu.dot_dimension_numbers<[1], [0], [0], [1], [0, 0, 1, 1], [], []>} : vector<286x4xf32>, vector<4x128xf32>, vector<286x128xf32> -> vector<286x128xf32>
    %42 = arith.addf %37, %41 : vector<286x128xf32>
    %43 = vector.extract_strided_slice %1 {offsets = [38, 0], sizes = [286, 4], strides = [1, 1]} : vector<324x4xf32> to vector<286x4xf32>
    %c8 = arith.constant 8 : index
    %c0_27 = arith.constant 0 : index
    %c0_28 = arith.constant 0 : index
    %44 = vector.load %arg2[%c8, %c0_27, %c0_28] : memref<9x4x128xf32, #tpu.memory_space<vmem>>, vector<1x4x128xf32>
    %45 = vector.shape_cast %44 : vector<1x4x128xf32> to vector<4x128xf32>
    %cst_29 = arith.constant dense<0.000000e+00> : vector<286x128xf32>
    %46 = tpu.matmul %43, %45, %cst_29 {dimension_numbers = #tpu.dot_dimension_numbers<[1], [0], [0], [1], [0, 0, 1, 1], [], []>} : vector<286x4xf32>, vector<4x128xf32>, vector<286x128xf32> -> vector<286x128xf32>
    %47 = arith.addf %42, %46 : vector<286x128xf32>
    %c0_30 = arith.constant 0 : index
    %c0_31 = arith.constant 0 : index
    %48 = vector.load %arg3[%c0_30, %c0_31] : memref<1x128xf32, #tpu.memory_space<vmem>>, vector<1x128xf32>
    %49 = vector.broadcast %48 : vector<1x128xf32> to vector<286x128xf32>
    %50 = arith.addf %47, %49 : vector<286x128xf32>
    %c0_32 = arith.constant 0 : index
    %c0_33 = arith.constant 0 : index
    %c0_34 = arith.constant 0 : index
    %51 = vector.load %arg4[%c0_32, %c0_33, %c0_34] : memref<1x286x128xf32, #tpu.memory_space<vmem>>, vector<1x286x128xf32>
    %52 = vector.shape_cast %51 : vector<1x286x128xf32> to vector<286x128xf32>
    %53 = vector.shape_cast %50 : vector<286x128xf32> to vector<1x286x128xf32>
    tpu.vector_store %arg4[%c0_32, %c0_33, %c0_34], %53 {strides = array<i32>} : memref<1x286x128xf32, #tpu.memory_space<vmem>>, vector<1x286x128xf32>,
    return
  }
  func.func @transform_0(%arg0: i32) -> (i32, i32, i32) {
    %c0_i32 = arith.constant 0 : i32
    %c0_i32_0 = arith.constant 0 : i32
    %c0_i32_1 = arith.constant 0 : i32
    return %arg0, %c0_i32, %c0_i32_0 : i32, i32, i32
  }
  func.func @transform_1(%arg0: i32) -> (i32, i32, i32) {
    %c0_i32 = arith.constant 0 : i32
    %c0_i32_0 = arith.constant 0 : i32
    %c0_i32_1 = arith.constant 0 : i32
    %c0_i32_2 = arith.constant 0 : i32
    return %c0_i32, %c0_i32_0, %c0_i32_1 : i32, i32, i32
  }
  func.func @transform_2(%arg0: i32) -> (i32, i32) {
    %c0_i32 = arith.constant 0 : i32
    %c0_i32_0 = arith.constant 0 : i32
    %c0_i32_1 = arith.constant 0 : i32
    return %c0_i32, %c0_i32_0 : i32, i32
  }
  func.func @transform_3(%arg0: i32) -> (i32, i32, i32) {
    %c0_i32 = arith.constant 0 : i32
    %c0_i32_0 = arith.constant 0 : i32
    %c0_i32_1 = arith.constant 0 : i32
    return %arg0, %c0_i32, %c0_i32_0 : i32, i32, i32
  }
}

module attributes {stable_mosaic.version = 11 : i64} {
  func.func @_matmul_stats_kernel(%arg0: i32, %arg1: memref<256x36xbf16, #tpu.memory_space<vmem>>, %arg2: memref<36x128xbf16, #tpu.memory_space<vmem>>, %arg3: memref<256x128xf32, #tpu.memory_space<vmem>>, %arg4: memref<1x1x128xf32, #tpu.memory_space<vmem>>, %arg5: memref<1x1x128xf32, #tpu.memory_space<vmem>>) attributes {dimension_semantics = [#tpu.dimension_semantics<parallel>], iteration_bounds = array<i64: 2>, scalar_prefetch = 0 : i64, scratch_operands = 0 : i64, tpu.core_type = #tpu.core_type<tc>, window_params = [{transform_indices = @transform_0, window_bounds = array<i64: 256, 36>}, {pipeline_mode = #tpu.pipeline_mode<synchronous>, transform_indices = @transform_1, window_bounds = array<i64: 36, 128>}, {transform_indices = @transform_2, window_bounds = array<i64: 256, 128>}, {transform_indices = @transform_3, window_bounds = array<i64: 1, 1, 128>}, {transform_indices = @transform_4, window_bounds = array<i64: 1, 1, 128>}]} {
    %c0 = arith.constant 0 : index
    %c0_0 = arith.constant 0 : index
    %0 = vector.load %arg1[%c0, %c0_0] : memref<256x36xbf16, #tpu.memory_space<vmem>>, vector<256x36xbf16>
    %c0_1 = arith.constant 0 : index
    %c0_2 = arith.constant 0 : index
    %1 = vector.load %arg2[%c0_1, %c0_2] : memref<36x128xbf16, #tpu.memory_space<vmem>>, vector<36x128xbf16>
    %cst = arith.constant dense<0.000000e+00> : vector<256x128xf32>
    %2 = tpu.matmul %0, %1, %cst {dimension_numbers = #tpu.dot_dimension_numbers<[1], [0], [0], [1], [0, 0, 1, 1], [], []>} : vector<256x36xbf16>, vector<36x128xbf16>, vector<256x128xf32> -> vector<256x128xf32>
    %c0_3 = arith.constant 0 : index
    %c0_4 = arith.constant 0 : index
    %3 = vector.load %arg3[%c0_3, %c0_4] : memref<256x128xf32, #tpu.memory_space<vmem>>, vector<256x128xf32>
    tpu.vector_store %arg3[%c0_3, %c0_4], %2 {strides = array<i32>} : memref<256x128xf32, #tpu.memory_space<vmem>>, vector<256x128xf32>,
    %cst_5 = arith.constant dense<0.000000e+00> : vector<128xf32>
    %4 = vector.multi_reduction <add>, %2, %cst_5 [0] : vector<256x128xf32> to vector<128xf32>
    %5 = vector.shape_cast %4 : vector<128xf32> to vector<1x1x128xf32>
    %c0_6 = arith.constant 0 : index
    %c0_7 = arith.constant 0 : index
    %c0_8 = arith.constant 0 : index
    %6 = vector.load %arg4[%c0_6, %c0_7, %c0_8] : memref<1x1x128xf32, #tpu.memory_space<vmem>>, vector<1x1x128xf32>
    tpu.vector_store %arg4[%c0_6, %c0_7, %c0_8], %5 {strides = array<i32>} : memref<1x1x128xf32, #tpu.memory_space<vmem>>, vector<1x1x128xf32>,
    %7 = arith.mulf %2, %2 : vector<256x128xf32>
    %cst_9 = arith.constant dense<0.000000e+00> : vector<128xf32>
    %8 = vector.multi_reduction <add>, %7, %cst_9 [0] : vector<256x128xf32> to vector<128xf32>
    %9 = vector.shape_cast %8 : vector<128xf32> to vector<1x1x128xf32>
    %c0_10 = arith.constant 0 : index
    %c0_11 = arith.constant 0 : index
    %c0_12 = arith.constant 0 : index
    %10 = vector.load %arg5[%c0_10, %c0_11, %c0_12] : memref<1x1x128xf32, #tpu.memory_space<vmem>>, vector<1x1x128xf32>
    tpu.vector_store %arg5[%c0_10, %c0_11, %c0_12], %9 {strides = array<i32>} : memref<1x1x128xf32, #tpu.memory_space<vmem>>, vector<1x1x128xf32>,
    return
  }
  func.func @transform_0(%arg0: i32) -> (i32, i32) {
    %c0_i32 = arith.constant 0 : i32
    %c0_i32_0 = arith.constant 0 : i32
    return %arg0, %c0_i32 : i32, i32
  }
  func.func @transform_1(%arg0: i32) -> (i32, i32) {
    %c0_i32 = arith.constant 0 : i32
    %c0_i32_0 = arith.constant 0 : i32
    %c0_i32_1 = arith.constant 0 : i32
    return %c0_i32, %c0_i32_0 : i32, i32
  }
  func.func @transform_2(%arg0: i32) -> (i32, i32) {
    %c0_i32 = arith.constant 0 : i32
    %c0_i32_0 = arith.constant 0 : i32
    return %arg0, %c0_i32 : i32, i32
  }
  func.func @transform_3(%arg0: i32) -> (i32, i32, i32) {
    %c0_i32 = arith.constant 0 : i32
    %c0_i32_0 = arith.constant 0 : i32
    %c0_i32_1 = arith.constant 0 : i32
    return %arg0, %c0_i32, %c0_i32_0 : i32, i32, i32
  }
  func.func @transform_4(%arg0: i32) -> (i32, i32, i32) {
    %c0_i32 = arith.constant 0 : i32
    %c0_i32_0 = arith.constant 0 : i32
    %c0_i32_1 = arith.constant 0 : i32
    return %arg0, %c0_i32, %c0_i32_0 : i32, i32, i32
  }
}

module attributes {stable_mosaic.version = 11 : i64} {
  func.func @_scale_shift_relu_kernel(%arg0: i32, %arg1: memref<256x128xf32, #tpu.memory_space<vmem>>, %arg2: memref<1x128xf32, #tpu.memory_space<vmem>>, %arg3: memref<1x128xf32, #tpu.memory_space<vmem>>, %arg4: memref<256x128xbf16, #tpu.memory_space<vmem>>) attributes {dimension_semantics = [#tpu.dimension_semantics<parallel>], iteration_bounds = array<i64: 2>, scalar_prefetch = 0 : i64, scratch_operands = 0 : i64, tpu.core_type = #tpu.core_type<tc>, window_params = [{transform_indices = @transform_0, window_bounds = array<i64: 256, 128>}, {pipeline_mode = #tpu.pipeline_mode<synchronous>, transform_indices = @transform_1, window_bounds = array<i64: 1, 128>}, {pipeline_mode = #tpu.pipeline_mode<synchronous>, transform_indices = @transform_2, window_bounds = array<i64: 1, 128>}, {transform_indices = @transform_3, window_bounds = array<i64: 256, 128>}]} {
    %c0 = arith.constant 0 : index
    %c0_0 = arith.constant 0 : index
    %0 = vector.load %arg1[%c0, %c0_0] : memref<256x128xf32, #tpu.memory_space<vmem>>, vector<256x128xf32>
    %c0_1 = arith.constant 0 : index
    %c0_2 = arith.constant 0 : index
    %1 = vector.load %arg2[%c0_1, %c0_2] : memref<1x128xf32, #tpu.memory_space<vmem>>, vector<1x128xf32>
    %2 = vector.broadcast %1 : vector<1x128xf32> to vector<256x128xf32>
    %3 = arith.mulf %0, %2 : vector<256x128xf32>
    %c0_3 = arith.constant 0 : index
    %c0_4 = arith.constant 0 : index
    %4 = vector.load %arg3[%c0_3, %c0_4] : memref<1x128xf32, #tpu.memory_space<vmem>>, vector<1x128xf32>
    %5 = vector.broadcast %4 : vector<1x128xf32> to vector<256x128xf32>
    %6 = arith.addf %3, %5 : vector<256x128xf32>
    %cst = arith.constant 0.000000e+00 : f32
    %7 = vector.broadcast %cst : f32 to vector<256x128xf32>
    %8 = arith.maximumf %6, %7 : vector<256x128xf32>
    %9 = arith.truncf %8 : vector<256x128xf32> to vector<256x128xbf16>
    %c0_5 = arith.constant 0 : index
    %c0_6 = arith.constant 0 : index
    %10 = vector.load %arg4[%c0_5, %c0_6] : memref<256x128xbf16, #tpu.memory_space<vmem>>, vector<256x128xbf16>
    tpu.vector_store %arg4[%c0_5, %c0_6], %9 {strides = array<i32>} : memref<256x128xbf16, #tpu.memory_space<vmem>>, vector<256x128xbf16>,
    return
  }
  func.func @transform_0(%arg0: i32) -> (i32, i32) {
    %c0_i32 = arith.constant 0 : i32
    %c0_i32_0 = arith.constant 0 : i32
    return %arg0, %c0_i32 : i32, i32
  }
  func.func @transform_1(%arg0: i32) -> (i32, i32) {
    %c0_i32 = arith.constant 0 : i32
    %c0_i32_0 = arith.constant 0 : i32
    %c0_i32_1 = arith.constant 0 : i32
    return %c0_i32, %c0_i32_0 : i32, i32
  }
  func.func @transform_2(%arg0: i32) -> (i32, i32) {
    %c0_i32 = arith.constant 0 : i32
    %c0_i32_0 = arith.constant 0 : i32
    %c0_i32_1 = arith.constant 0 : i32
    return %c0_i32, %c0_i32_0 : i32, i32
  }
  func.func @transform_3(%arg0: i32) -> (i32, i32) {
    %c0_i32 = arith.constant 0 : i32
    %c0_i32_0 = arith.constant 0 : i32
    return %arg0, %c0_i32 : i32, i32
  }
}

module attributes {stable_mosaic.version = 11 : i64} {
  func.func @_offset_conv_kernel(%arg0: i32, %arg1: memref<1x324x8xbf16, #tpu.memory_space<vmem>>, %arg2: memref<9x8x128xbf16, #tpu.memory_space<vmem>>, %arg3: memref<1x128xf32, #tpu.memory_space<vmem>>, %arg4: memref<1x286x128xf32, #tpu.memory_space<vmem>>) attributes {dimension_semantics = [#tpu.dimension_semantics<parallel>], iteration_bounds = array<i64: 2>, scalar_prefetch = 0 : i64, scratch_operands = 0 : i64, tpu.core_type = #tpu.core_type<tc>, window_params = [{transform_indices = @transform_0, window_bounds = array<i64: 1, 324, 8>}, {pipeline_mode = #tpu.pipeline_mode<synchronous>, transform_indices = @transform_1, window_bounds = array<i64: 9, 8, 128>}, {pipeline_mode = #tpu.pipeline_mode<synchronous>, transform_indices = @transform_2, window_bounds = array<i64: 1, 128>}, {transform_indices = @transform_3, window_bounds = array<i64: 1, 286, 128>}]} {
    %c0 = arith.constant 0 : index
    %c0_0 = arith.constant 0 : index
    %c0_1 = arith.constant 0 : index
    %0 = vector.load %arg1[%c0, %c0_0, %c0_1] : memref<1x324x8xbf16, #tpu.memory_space<vmem>>, vector<1x324x8xbf16>
    %1 = vector.shape_cast %0 : vector<1x324x8xbf16> to vector<324x8xbf16>
    %cst = arith.constant 0.000000e+00 : f32
    %2 = vector.broadcast %cst : f32 to vector<286x128xf32>
    %3 = vector.extract_strided_slice %1 {offsets = [0, 0], sizes = [286, 8], strides = [1, 1]} : vector<324x8xbf16> to vector<286x8xbf16>
    %c0_2 = arith.constant 0 : index
    %c0_3 = arith.constant 0 : index
    %c0_4 = arith.constant 0 : index
    %4 = vector.load %arg2[%c0_2, %c0_3, %c0_4] : memref<9x8x128xbf16, #tpu.memory_space<vmem>>, vector<1x8x128xbf16>
    %5 = vector.shape_cast %4 : vector<1x8x128xbf16> to vector<8x128xbf16>
    %cst_5 = arith.constant dense<0.000000e+00> : vector<286x128xf32>
    %6 = tpu.matmul %3, %5, %cst_5 {dimension_numbers = #tpu.dot_dimension_numbers<[1], [0], [0], [1], [0, 0, 1, 1], [], []>} : vector<286x8xbf16>, vector<8x128xbf16>, vector<286x128xf32> -> vector<286x128xf32>
    %7 = arith.addf %2, %6 : vector<286x128xf32>
    %8 = vector.extract_strided_slice %1 {offsets = [1, 0], sizes = [286, 8], strides = [1, 1]} : vector<324x8xbf16> to vector<286x8xbf16>
    %c1 = arith.constant 1 : index
    %c0_6 = arith.constant 0 : index
    %c0_7 = arith.constant 0 : index
    %9 = vector.load %arg2[%c1, %c0_6, %c0_7] : memref<9x8x128xbf16, #tpu.memory_space<vmem>>, vector<1x8x128xbf16>
    %10 = vector.shape_cast %9 : vector<1x8x128xbf16> to vector<8x128xbf16>
    %cst_8 = arith.constant dense<0.000000e+00> : vector<286x128xf32>
    %11 = tpu.matmul %8, %10, %cst_8 {dimension_numbers = #tpu.dot_dimension_numbers<[1], [0], [0], [1], [0, 0, 1, 1], [], []>} : vector<286x8xbf16>, vector<8x128xbf16>, vector<286x128xf32> -> vector<286x128xf32>
    %12 = arith.addf %7, %11 : vector<286x128xf32>
    %13 = vector.extract_strided_slice %1 {offsets = [2, 0], sizes = [286, 8], strides = [1, 1]} : vector<324x8xbf16> to vector<286x8xbf16>
    %c2 = arith.constant 2 : index
    %c0_9 = arith.constant 0 : index
    %c0_10 = arith.constant 0 : index
    %14 = vector.load %arg2[%c2, %c0_9, %c0_10] : memref<9x8x128xbf16, #tpu.memory_space<vmem>>, vector<1x8x128xbf16>
    %15 = vector.shape_cast %14 : vector<1x8x128xbf16> to vector<8x128xbf16>
    %cst_11 = arith.constant dense<0.000000e+00> : vector<286x128xf32>
    %16 = tpu.matmul %13, %15, %cst_11 {dimension_numbers = #tpu.dot_dimension_numbers<[1], [0], [0], [1], [0, 0, 1, 1], [], []>} : vector<286x8xbf16>, vector<8x128xbf16>, vector<286x128xf32> -> vector<286x128xf32>
    %17 = arith.addf %12, %16 : vector<286x128xf32>
    %18 = vector.extract_strided_slice %1 {offsets = [18, 0], sizes = [286, 8], strides = [1, 1]} : vector<324x8xbf16> to vector<286x8xbf16>
    %c3 = arith.constant 3 : index
    %c0_12 = arith.constant 0 : index
    %c0_13 = arith.constant 0 : index
    %19 = vector.load %arg2[%c3, %c0_12, %c0_13] : memref<9x8x128xbf16, #tpu.memory_space<vmem>>, vector<1x8x128xbf16>
    %20 = vector.shape_cast %19 : vector<1x8x128xbf16> to vector<8x128xbf16>
    %cst_14 = arith.constant dense<0.000000e+00> : vector<286x128xf32>
    %21 = tpu.matmul %18, %20, %cst_14 {dimension_numbers = #tpu.dot_dimension_numbers<[1], [0], [0], [1], [0, 0, 1, 1], [], []>} : vector<286x8xbf16>, vector<8x128xbf16>, vector<286x128xf32> -> vector<286x128xf32>
    %22 = arith.addf %17, %21 : vector<286x128xf32>
    %23 = vector.extract_strided_slice %1 {offsets = [19, 0], sizes = [286, 8], strides = [1, 1]} : vector<324x8xbf16> to vector<286x8xbf16>
    %c4 = arith.constant 4 : index
    %c0_15 = arith.constant 0 : index
    %c0_16 = arith.constant 0 : index
    %24 = vector.load %arg2[%c4, %c0_15, %c0_16] : memref<9x8x128xbf16, #tpu.memory_space<vmem>>, vector<1x8x128xbf16>
    %25 = vector.shape_cast %24 : vector<1x8x128xbf16> to vector<8x128xbf16>
    %cst_17 = arith.constant dense<0.000000e+00> : vector<286x128xf32>
    %26 = tpu.matmul %23, %25, %cst_17 {dimension_numbers = #tpu.dot_dimension_numbers<[1], [0], [0], [1], [0, 0, 1, 1], [], []>} : vector<286x8xbf16>, vector<8x128xbf16>, vector<286x128xf32> -> vector<286x128xf32>
    %27 = arith.addf %22, %26 : vector<286x128xf32>
    %28 = vector.extract_strided_slice %1 {offsets = [20, 0], sizes = [286, 8], strides = [1, 1]} : vector<324x8xbf16> to vector<286x8xbf16>
    %c5 = arith.constant 5 : index
    %c0_18 = arith.constant 0 : index
    %c0_19 = arith.constant 0 : index
    %29 = vector.load %arg2[%c5, %c0_18, %c0_19] : memref<9x8x128xbf16, #tpu.memory_space<vmem>>, vector<1x8x128xbf16>
    %30 = vector.shape_cast %29 : vector<1x8x128xbf16> to vector<8x128xbf16>
    %cst_20 = arith.constant dense<0.000000e+00> : vector<286x128xf32>
    %31 = tpu.matmul %28, %30, %cst_20 {dimension_numbers = #tpu.dot_dimension_numbers<[1], [0], [0], [1], [0, 0, 1, 1], [], []>} : vector<286x8xbf16>, vector<8x128xbf16>, vector<286x128xf32> -> vector<286x128xf32>
    %32 = arith.addf %27, %31 : vector<286x128xf32>
    %33 = vector.extract_strided_slice %1 {offsets = [36, 0], sizes = [286, 8], strides = [1, 1]} : vector<324x8xbf16> to vector<286x8xbf16>
    %c6 = arith.constant 6 : index
    %c0_21 = arith.constant 0 : index
    %c0_22 = arith.constant 0 : index
    %34 = vector.load %arg2[%c6, %c0_21, %c0_22] : memref<9x8x128xbf16, #tpu.memory_space<vmem>>, vector<1x8x128xbf16>
    %35 = vector.shape_cast %34 : vector<1x8x128xbf16> to vector<8x128xbf16>
    %cst_23 = arith.constant dense<0.000000e+00> : vector<286x128xf32>
    %36 = tpu.matmul %33, %35, %cst_23 {dimension_numbers = #tpu.dot_dimension_numbers<[1], [0], [0], [1], [0, 0, 1, 1], [], []>} : vector<286x8xbf16>, vector<8x128xbf16>, vector<286x128xf32> -> vector<286x128xf32>
    %37 = arith.addf %32, %36 : vector<286x128xf32>
    %38 = vector.extract_strided_slice %1 {offsets = [37, 0], sizes = [286, 8], strides = [1, 1]} : vector<324x8xbf16> to vector<286x8xbf16>
    %c7 = arith.constant 7 : index
    %c0_24 = arith.constant 0 : index
    %c0_25 = arith.constant 0 : index
    %39 = vector.load %arg2[%c7, %c0_24, %c0_25] : memref<9x8x128xbf16, #tpu.memory_space<vmem>>, vector<1x8x128xbf16>
    %40 = vector.shape_cast %39 : vector<1x8x128xbf16> to vector<8x128xbf16>
    %cst_26 = arith.constant dense<0.000000e+00> : vector<286x128xf32>
    %41 = tpu.matmul %38, %40, %cst_26 {dimension_numbers = #tpu.dot_dimension_numbers<[1], [0], [0], [1], [0, 0, 1, 1], [], []>} : vector<286x8xbf16>, vector<8x128xbf16>, vector<286x128xf32> -> vector<286x128xf32>
    %42 = arith.addf %37, %41 : vector<286x128xf32>
    %43 = vector.extract_strided_slice %1 {offsets = [38, 0], sizes = [286, 8], strides = [1, 1]} : vector<324x8xbf16> to vector<286x8xbf16>
    %c8 = arith.constant 8 : index
    %c0_27 = arith.constant 0 : index
    %c0_28 = arith.constant 0 : index
    %44 = vector.load %arg2[%c8, %c0_27, %c0_28] : memref<9x8x128xbf16, #tpu.memory_space<vmem>>, vector<1x8x128xbf16>
    %45 = vector.shape_cast %44 : vector<1x8x128xbf16> to vector<8x128xbf16>
    %cst_29 = arith.constant dense<0.000000e+00> : vector<286x128xf32>
    %46 = tpu.matmul %43, %45, %cst_29 {dimension_numbers = #tpu.dot_dimension_numbers<[1], [0], [0], [1], [0, 0, 1, 1], [], []>} : vector<286x8xbf16>, vector<8x128xbf16>, vector<286x128xf32> -> vector<286x128xf32>
    %47 = arith.addf %42, %46 : vector<286x128xf32>
    %c0_30 = arith.constant 0 : index
    %c0_31 = arith.constant 0 : index
    %48 = vector.load %arg3[%c0_30, %c0_31] : memref<1x128xf32, #tpu.memory_space<vmem>>, vector<1x128xf32>
    %49 = vector.broadcast %48 : vector<1x128xf32> to vector<286x128xf32>
    %50 = arith.addf %47, %49 : vector<286x128xf32>
    %c0_32 = arith.constant 0 : index
    %c0_33 = arith.constant 0 : index
    %c0_34 = arith.constant 0 : index
    %51 = vector.load %arg4[%c0_32, %c0_33, %c0_34] : memref<1x286x128xf32, #tpu.memory_space<vmem>>, vector<1x286x128xf32>
    %52 = vector.shape_cast %51 : vector<1x286x128xf32> to vector<286x128xf32>
    %53 = vector.shape_cast %50 : vector<286x128xf32> to vector<1x286x128xf32>
    tpu.vector_store %arg4[%c0_32, %c0_33, %c0_34], %53 {strides = array<i32>} : memref<1x286x128xf32, #tpu.memory_space<vmem>>, vector<1x286x128xf32>,
    return
  }
  func.func @transform_0(%arg0: i32) -> (i32, i32, i32) {
    %c0_i32 = arith.constant 0 : i32
    %c0_i32_0 = arith.constant 0 : i32
    %c0_i32_1 = arith.constant 0 : i32
    return %arg0, %c0_i32, %c0_i32_0 : i32, i32, i32
  }
  func.func @transform_1(%arg0: i32) -> (i32, i32, i32) {
    %c0_i32 = arith.constant 0 : i32
    %c0_i32_0 = arith.constant 0 : i32
    %c0_i32_1 = arith.constant 0 : i32
    %c0_i32_2 = arith.constant 0 : i32
    return %c0_i32, %c0_i32_0, %c0_i32_1 : i32, i32, i32
  }
  func.func @transform_2(%arg0: i32) -> (i32, i32) {
    %c0_i32 = arith.constant 0 : i32
    %c0_i32_0 = arith.constant 0 : i32
    %c0_i32_1 = arith.constant 0 : i32
    return %c0_i32, %c0_i32_0 : i32, i32
  }
  func.func @transform_3(%arg0: i32) -> (i32, i32, i32) {
    %c0_i32 = arith.constant 0 : i32
    %c0_i32_0 = arith.constant 0 : i32
    %c0_i32_1 = arith.constant 0 : i32
    return %arg0, %c0_i32, %c0_i32_0 : i32, i32, i32
  }
}

module attributes {stable_mosaic.version = 11 : i64} {
  func.func @_matmul_stats_kernel(%arg0: i32, %arg1: memref<256x72xbf16, #tpu.memory_space<vmem>>, %arg2: memref<72x128xbf16, #tpu.memory_space<vmem>>, %arg3: memref<256x128xf32, #tpu.memory_space<vmem>>, %arg4: memref<1x1x128xf32, #tpu.memory_space<vmem>>, %arg5: memref<1x1x128xf32, #tpu.memory_space<vmem>>) attributes {dimension_semantics = [#tpu.dimension_semantics<parallel>], iteration_bounds = array<i64: 2>, scalar_prefetch = 0 : i64, scratch_operands = 0 : i64, tpu.core_type = #tpu.core_type<tc>, window_params = [{transform_indices = @transform_0, window_bounds = array<i64: 256, 72>}, {pipeline_mode = #tpu.pipeline_mode<synchronous>, transform_indices = @transform_1, window_bounds = array<i64: 72, 128>}, {transform_indices = @transform_2, window_bounds = array<i64: 256, 128>}, {transform_indices = @transform_3, window_bounds = array<i64: 1, 1, 128>}, {transform_indices = @transform_4, window_bounds = array<i64: 1, 1, 128>}]} {
    %c0 = arith.constant 0 : index
    %c0_0 = arith.constant 0 : index
    %0 = vector.load %arg1[%c0, %c0_0] : memref<256x72xbf16, #tpu.memory_space<vmem>>, vector<256x72xbf16>
    %c0_1 = arith.constant 0 : index
    %c0_2 = arith.constant 0 : index
    %1 = vector.load %arg2[%c0_1, %c0_2] : memref<72x128xbf16, #tpu.memory_space<vmem>>, vector<72x128xbf16>
    %cst = arith.constant dense<0.000000e+00> : vector<256x128xf32>
    %2 = tpu.matmul %0, %1, %cst {dimension_numbers = #tpu.dot_dimension_numbers<[1], [0], [0], [1], [0, 0, 1, 1], [], []>} : vector<256x72xbf16>, vector<72x128xbf16>, vector<256x128xf32> -> vector<256x128xf32>
    %c0_3 = arith.constant 0 : index
    %c0_4 = arith.constant 0 : index
    %3 = vector.load %arg3[%c0_3, %c0_4] : memref<256x128xf32, #tpu.memory_space<vmem>>, vector<256x128xf32>
    tpu.vector_store %arg3[%c0_3, %c0_4], %2 {strides = array<i32>} : memref<256x128xf32, #tpu.memory_space<vmem>>, vector<256x128xf32>,
    %cst_5 = arith.constant dense<0.000000e+00> : vector<128xf32>
    %4 = vector.multi_reduction <add>, %2, %cst_5 [0] : vector<256x128xf32> to vector<128xf32>
    %5 = vector.shape_cast %4 : vector<128xf32> to vector<1x1x128xf32>
    %c0_6 = arith.constant 0 : index
    %c0_7 = arith.constant 0 : index
    %c0_8 = arith.constant 0 : index
    %6 = vector.load %arg4[%c0_6, %c0_7, %c0_8] : memref<1x1x128xf32, #tpu.memory_space<vmem>>, vector<1x1x128xf32>
    tpu.vector_store %arg4[%c0_6, %c0_7, %c0_8], %5 {strides = array<i32>} : memref<1x1x128xf32, #tpu.memory_space<vmem>>, vector<1x1x128xf32>,
    %7 = arith.mulf %2, %2 : vector<256x128xf32>
    %cst_9 = arith.constant dense<0.000000e+00> : vector<128xf32>
    %8 = vector.multi_reduction <add>, %7, %cst_9 [0] : vector<256x128xf32> to vector<128xf32>
    %9 = vector.shape_cast %8 : vector<128xf32> to vector<1x1x128xf32>
    %c0_10 = arith.constant 0 : index
    %c0_11 = arith.constant 0 : index
    %c0_12 = arith.constant 0 : index
    %10 = vector.load %arg5[%c0_10, %c0_11, %c0_12] : memref<1x1x128xf32, #tpu.memory_space<vmem>>, vector<1x1x128xf32>
    tpu.vector_store %arg5[%c0_10, %c0_11, %c0_12], %9 {strides = array<i32>} : memref<1x1x128xf32, #tpu.memory_space<vmem>>, vector<1x1x128xf32>,
    return
  }
  func.func @transform_0(%arg0: i32) -> (i32, i32) {
    %c0_i32 = arith.constant 0 : i32
    %c0_i32_0 = arith.constant 0 : i32
    return %arg0, %c0_i32 : i32, i32
  }
  func.func @transform_1(%arg0: i32) -> (i32, i32) {
    %c0_i32 = arith.constant 0 : i32
    %c0_i32_0 = arith.constant 0 : i32
    %c0_i32_1 = arith.constant 0 : i32
    return %c0_i32, %c0_i32_0 : i32, i32
  }
  func.func @transform_2(%arg0: i32) -> (i32, i32) {
    %c0_i32 = arith.constant 0 : i32
    %c0_i32_0 = arith.constant 0 : i32
    return %arg0, %c0_i32 : i32, i32
  }
  func.func @transform_3(%arg0: i32) -> (i32, i32, i32) {
    %c0_i32 = arith.constant 0 : i32
    %c0_i32_0 = arith.constant 0 : i32
    %c0_i32_1 = arith.constant 0 : i32
    return %arg0, %c0_i32, %c0_i32_0 : i32, i32, i32
  }
  func.func @transform_4(%arg0: i32) -> (i32, i32, i32) {
    %c0_i32 = arith.constant 0 : i32
    %c0_i32_0 = arith.constant 0 : i32
    %c0_i32_1 = arith.constant 0 : i32
    return %arg0, %c0_i32, %c0_i32_0 : i32, i32, i32
  }
}

module attributes {stable_mosaic.version = 11 : i64} {
  func.func @_scale_shift_relu_kernel(%arg0: i32, %arg1: memref<256x128xf32, #tpu.memory_space<vmem>>, %arg2: memref<1x128xf32, #tpu.memory_space<vmem>>, %arg3: memref<1x128xf32, #tpu.memory_space<vmem>>, %arg4: memref<256x128xf32, #tpu.memory_space<vmem>>) attributes {dimension_semantics = [#tpu.dimension_semantics<parallel>], iteration_bounds = array<i64: 2>, scalar_prefetch = 0 : i64, scratch_operands = 0 : i64, tpu.core_type = #tpu.core_type<tc>, window_params = [{transform_indices = @transform_0, window_bounds = array<i64: 256, 128>}, {pipeline_mode = #tpu.pipeline_mode<synchronous>, transform_indices = @transform_1, window_bounds = array<i64: 1, 128>}, {pipeline_mode = #tpu.pipeline_mode<synchronous>, transform_indices = @transform_2, window_bounds = array<i64: 1, 128>}, {transform_indices = @transform_3, window_bounds = array<i64: 256, 128>}]} {
    %c0 = arith.constant 0 : index
    %c0_0 = arith.constant 0 : index
    %0 = vector.load %arg1[%c0, %c0_0] : memref<256x128xf32, #tpu.memory_space<vmem>>, vector<256x128xf32>
    %c0_1 = arith.constant 0 : index
    %c0_2 = arith.constant 0 : index
    %1 = vector.load %arg2[%c0_1, %c0_2] : memref<1x128xf32, #tpu.memory_space<vmem>>, vector<1x128xf32>
    %2 = vector.broadcast %1 : vector<1x128xf32> to vector<256x128xf32>
    %3 = arith.mulf %0, %2 : vector<256x128xf32>
    %c0_3 = arith.constant 0 : index
    %c0_4 = arith.constant 0 : index
    %4 = vector.load %arg3[%c0_3, %c0_4] : memref<1x128xf32, #tpu.memory_space<vmem>>, vector<1x128xf32>
    %5 = vector.broadcast %4 : vector<1x128xf32> to vector<256x128xf32>
    %6 = arith.addf %3, %5 : vector<256x128xf32>
    %cst = arith.constant 0.000000e+00 : f32
    %7 = vector.broadcast %cst : f32 to vector<256x128xf32>
    %8 = arith.maximumf %6, %7 : vector<256x128xf32>
    %c0_5 = arith.constant 0 : index
    %c0_6 = arith.constant 0 : index
    %9 = vector.load %arg4[%c0_5, %c0_6] : memref<256x128xf32, #tpu.memory_space<vmem>>, vector<256x128xf32>
    tpu.vector_store %arg4[%c0_5, %c0_6], %8 {strides = array<i32>} : memref<256x128xf32, #tpu.memory_space<vmem>>, vector<256x128xf32>,
    return
  }
  func.func @transform_0(%arg0: i32) -> (i32, i32) {
    %c0_i32 = arith.constant 0 : i32
    %c0_i32_0 = arith.constant 0 : i32
    return %arg0, %c0_i32 : i32, i32
  }
  func.func @transform_1(%arg0: i32) -> (i32, i32) {
    %c0_i32 = arith.constant 0 : i32
    %c0_i32_0 = arith.constant 0 : i32
    %c0_i32_1 = arith.constant 0 : i32
    return %c0_i32, %c0_i32_0 : i32, i32
  }
  func.func @transform_2(%arg0: i32) -> (i32, i32) {
    %c0_i32 = arith.constant 0 : i32
    %c0_i32_0 = arith.constant 0 : i32
    %c0_i32_1 = arith.constant 0 : i32
    return %c0_i32, %c0_i32_0 : i32, i32
  }
  func.func @transform_3(%arg0: i32) -> (i32, i32) {
    %c0_i32 = arith.constant 0 : i32
    %c0_i32_0 = arith.constant 0 : i32
    return %arg0, %c0_i32 : i32, i32
  }
}

</mosaic_0001>

<bundles_post_ra>
// kernel: tile.13
= control target key start
LH: loop header
LB: loop body
LE: loop exit
PB: predicated region body
PF: predicated region fallthrough
CT: control target
= control target key end

     0   :  { %s22_s0 = inlined_call_operand.vmem [shape: f32[3], index: 0, kind: input, shape index: {}]   ;;  %s23_s1 = inlined_call_operand.vmem [shape: f32[3,3], index: 1, kind: output, shape index: {}]  }
   0x1   :  { %v4_v0 = vld [vmem:[%s22_s0] ss:$0 sm:$0xff] }
   0x2   :  { %5 = vst [vmem:[%s23_s1] sm:$0xf] %v4_v0 }

// kernel: conv_block_deformconv.6
= control target key start
LH: loop header
LB: loop body
LE: loop exit
PB: predicated region body
PF: predicated region fallthrough
CT: control target
= control target key end

     0   :  { %s5400_s12 = smov 0   ;;  %s6780_s0 = inlined_call_operand.vmem [shape: f32[2,324,4], index: 0, kind: input, shape index: {}]   ;;  %s6781_s1 = inlined_call_operand.vmem [shape: f32[9,4,128], index: 1, kind: input, shape index: {}]   ;;  %s6782_s2 = inlined_call_operand.vmem [shape: f32[1,128], index: 2, kind: input, shape index: {}]   ;;  %s6783_s3 = inlined_call_operand.vmem [shape: f32[2,286,128], index: 3, kind: output, shape index: {}]  }
   0x1 LB: > { %s3851_s13 = sadd.s32 4294967295, %s5378_s12   ;;  %p3855_p0 = scmp.ge.s32.totalorder %s5378_s12, 1  ;;  %s5378_s12 = sphi %s5400_s12, %s13_s12  }
   0x2   : > { %p137_p1 = scmp.lt.s32.totalorder %s5378_s12, 3 }
   0x4   : > { %p138_p2 = pnand %p3855_p0, %p137_p1 }
   0x6   : > { %141 = sbr.rel (%p138_p2) target bundleno = 563 (0x233), region = 32 }
   0xd   : > { %v3858_v0 = vld [vmem:[%s6781_s1 + $0x4] sm:$0xf]  ;;  %vm396_vm0 = vcmask 1043456   ;;  %v5414_v1 = vld [vmem:[%s6781_s1 + $0x10] sm:$0xf]  ;;  %p161_p3 = scmp.lt.s32.totalorder %s3851_s13, 1 }
   0xe   : > { %6807 = vst [vmem:[#allocation2_spill] sm:$0xff] %v5414_v1  ;;  %4535 = vmatprep.subr.msk.mxu1 %vm396_vm0, %v3858_v0  ;;  %4759 = vmatprep.subr.msk.mxu0 %vm396_vm0, %v5414_v1  ;;  %v212_v2 = vld [vmem:[%s6781_s1] sm:$0xf]  ;;  %v4047_v3 = vld [vmem:[%s6781_s1 + $0x14] sm:$0xf]  ;;  %vm251_vm1 = vcmask 1046528  }
   0xf   : > { %4536 = vmatpush3.msk.msra.mxu1 %vm396_vm0, %v3858_v0  ;;  %4760 = vmatpush3.msk.msra.mxu0 %vm396_vm0, %v5414_v1  ;;  %s6843_s13 = smov (!%p161_p3, %s3851_s13), 1  ;;  %vm323_vm2 = vcmask 31744   ;;  %vm1696_vm3 = vcmask 1044480   ;;  %v5496_v34 = vld [vmem:[%s6781_s1 + $0x18] sm:$0xf]  ;;  %vm967_vm4 = vcmask 1045504  }
  0x10   : > { %4591 = vmatprep.subr.msk.mxu1 %vm396_vm0, %v212_v2  ;;  %4815 = vmatprep.subr.msk.mxu0 %vm396_vm0, %v4047_v3  ;;  %s5329_s22 = smul.u32 328, %s6843_s13  ;;  %v5513_v42 = vld [vmem:[%s6781_s1 + $0x8] sm:$0xf]  ;;  %vm2855_vm5 = vcmask 1042432   ;;  %vm3287_vm6 = vcmask 1041408  }
  0x11   : > { %s5330_s11 = smul.u32 288, %s6843_s13 }
  0x12   : > { %s5436_s25 = scalar_lea.vmem %s6780_s0, %s5329_s22 }
  0x13   : > { %v5439_v4 = vld [vmem:[%s5436_s25] sm:$0xff]  ;;  %v5442_v5 = vld [vmem:[%s5436_s25 + $0x8] sm:$0xff]  ;;  %v5445_v6 = vld [vmem:[%s5436_s25 + $0x10] sm:$0xff]  ;;  %s6699_s18 = scalar_lea.vmem %s6783_s3, %s5330_s11 }
  0x14   : > { %v252_v7 = vrot.slane %v5439_v4, 1  ;;  %v253_v8 = vrot.slane %v5442_v5, 1  ;;  %v5450_v9 = vld [vmem:[%s5436_s25 + $0x18] sm:$0xff]  ;;  %v1697_v10 = vrot.slane %v5445_v6, 3  ;;  %v255_v11 = vrot.slane %v5445_v6, 1  ;;  %v5455_v12 = vld [vmem:[%s5436_s25 + $0x20] sm:$0xff] }
  0x15   : > { %v1698_v13 = vrot.slane %v5450_v9, 3  ;;  %v1700_v14 = vrot.slane %v5455_v12, 3  ;;  %v257_v15 = vrot.slane %v5450_v9, 1  ;;  %v5461_v16 = vld [vmem:[%s5436_s25 + $0x28] sm:$0xff]  ;;  %v259_v17 = vrot.slane %v5455_v12, 1  ;;  %v5465_v18 = vld [vmem:[%s5436_s25 + $0x30] sm:$0xff] }
  0x16   : > { %v254_v19 = vsel %vm251_vm1, %v252_v7, %v253_v8  ;;  %v256_v20 = vsel %vm251_vm1, %v253_v8, %v255_v11  ;;  %v1702_v21 = vrot.slane %v5461_v16, 3  ;;  %v1704_v22 = vrot.slane %v5465_v18, 3  ;;  %v5472_v23 = vld [vmem:[%s5436_s25 + $0x38] sm:$0xff]  ;;  %v5479_v27 = vld [vmem:[%s5436_s25 + $0x40] sm:$0xff]  ;;  %v5487_v31 = vld [vmem:[%s5436_s25 + $0x48] sm:$0xff] }
  0x17   : > { %4537 = vmatprep.mubr.msk.f32.mxu1 %vm323_vm2, %v254_v19  ;;  %v1699_v24 = vsel %vm1696_vm3, %v1697_v10, %v1698_v13  ;;  %v1701_v25 = vsel %vm1696_vm3, %v1698_v13, %v1700_v14  ;;  %v258_v26 = vsel %vm251_vm1, %v255_v11, %v257_v15  ;;  %v261_v29 = vrot.slane %v5461_v16, 1  ;;  %6808 = vst [vmem:[#allocation3_spill] sm:$0xff] %v5487_v31  ;;  %v5508_v41 = vld [vmem:[%s5436_s25 + $0x50] sm:$0xff]  ;;  %v5517_v43 = vld [vmem:[%s5436_s25 + $0x58] sm:$0xff]  ;;  %v5535_v52 = vld [vmem:[%s5436_s25 + $0x60] sm:$0xff] }
  0x18   : > { %4761 = vmatprep.mubr.msk.f32.mxu0 %vm323_vm2, %v1699_v24  ;;  %4538 = vmatmul.mubr.msk.f32.vlgmr.msra.gmra.mrb[0].mxu1 %vm323_vm2, %v256_v20  ;;  %v1703_v28 = vsel %vm1696_vm3, %v1700_v14, %v1702_v21  ;;  %v1706_v30 = vrot.slane %v5472_v23, 3  ;;  %v260_v32 = vsel %vm251_vm1, %v257_v15, %v259_v17  ;;  %v263_v33 = vrot.slane %v5465_v18, 1  ;;  %6809 = vst [vmem:[#allocation4_spill] sm:$0xff] %v5508_v41  ;;  %v5539_v53 = vld [vmem:[%s5436_s25 + $0x68] sm:$0xff]  ;;  %v5553_v62 = vld [vmem:[%s5436_s25 + $0x70] sm:$0xff]  ;;  %v5557_v63 = vld [vmem:[%s5436_s25 + $0x78] sm:$0xff] }
  0x19   : > { %4592 = vmatpush3.msk.msra.mxu1 %vm396_vm0, %v212_v2  ;;  %4762 = vmatmul.mubr.msk.f32.vlgmr.msra.gmra.mrb[0].mxu0 %vm323_vm2, %v1701_v25  ;;  %v1705_v35 = vsel %vm1696_vm3, %v1702_v21, %v1704_v22  ;;  %v262_v36 = vsel %vm251_vm1, %v259_v17, %v261_v29  ;;  %v1708_v37 = vrot.slane %v5479_v27, 3  ;;  %v265_v38 = vrot.slane %v5472_v23, 1  ;;  %6810 = vst [vmem:[#allocation5_spill] sm:$0xff] %v5517_v43  ;;  %v5571_v14 = vld [vmem:[%s5436_s25 + $0x80] sm:$0xff]  ;;  %v5575_v15 = vld [vmem:[%s5436_s25 + $0x88] sm:$0xff] }
  0x1a   : > { %4816 = vmatpush3.msk.msra.mxu0 %vm396_vm0, %v4047_v3  ;;  %4540 = vmatprep.mubr.msk.f32.mxu1 %vm323_vm2, %v258_v26  ;;  %v1707_v39 = vsel %vm1696_vm3, %v1704_v22, %v1706_v30  ;;  %v1710_v40 = vrot.slane %v5487_v31, 3  ;;  %v264_v44 = vsel %vm251_vm1, %v261_v29, %v263_v33  ;;  %v267_v45 = vrot.slane %v5479_v27, 1  ;;  %v5593_v29 = vld [vmem:[%s5436_s25 + $0x98] sm:$0xff] }
  0x1b   : > { %4764 = vmatprep.mubr.msk.f32.mxu0 %vm323_vm2, %v1703_v28  ;;  %4871 = vmatprep.subr.msk.mxu0 %vm396_vm0, %v5496_v34  ;;  %v1709_v46 = vsel %vm1696_vm3, %v1706_v30, %v1708_v37  ;;  %v266_v47 = vsel %vm251_vm1, %v263_v33, %v265_v38  ;;  %v1712_v48 = vrot.slane %v5508_v41, 3  ;;  %v269_v49 = vrot.slane %v5487_v31, 1  ;;  %v5589_v28 = vld [vmem:[%s5436_s25 + $0x90] sm:$0xff] }
  0x1c   : > { %4541 = vmatmul.mubr.msk.f32.gmra.mrb[2].mxu1 %vm323_vm2, %v260_v32  ;;  %4647 = vmatprep.subr.msk.mxu1 %vm396_vm0, %v5513_v42  ;;  %v1711_v50 = vsel %vm1696_vm3, %v1708_v37, %v1710_v40  ;;  %v1714_v51 = vrot.slane %v5517_v43, 3  ;;  %v268_v54 = vsel %vm251_vm1, %v265_v38, %v267_v45  ;;  %v271_v55 = vrot.slane %v5508_v41, 1 }
  0x1d   : > { %4765 = vmatmul.mubr.msk.f32.gmra.mrb[2].mxu0 %vm323_vm2, %v1705_v35  ;;  %4543 = vmatprep.mubr.msk.f32.mxu1 %vm323_vm2, %v262_v36  ;;  %v1713_v56 = vsel %vm1696_vm3, %v1710_v40, %v1712_v48  ;;  %v270_v57 = vsel %vm251_vm1, %v267_v45, %v269_v49  ;;  %v1716_v58 = vrot.slane %v5535_v52, 3  ;;  %v273_v59 = vrot.slane %v5517_v43, 1  ;;  %v5607_v40 = vld [vmem:[%s5436_s25 + $0xa0] sm:$0xff] }
  0x1e   : > { %4767 = vmatprep.mubr.msk.f32.mxu0 %vm323_vm2, %v1707_v39  ;;  %v1715_v60 = vsel %vm1696_vm3, %v1712_v48, %v1714_v51  ;;  %v1718_v61 = vrot.slane %v5539_v53, 3  ;;  %v272_v0 = vsel %vm251_vm1, %v269_v49, %v271_v55  ;;  %v275_v2 = vrot.slane %v5535_v52, 1 }
  0x1f   : > { %v1717_v3 = vsel %vm1696_vm3, %v1714_v51, %v1716_v58  ;;  %v274_v7 = vsel %vm251_vm1, %v271_v55, %v273_v59  ;;  %v1720_v8 = vrot.slane %v5553_v62, 3  ;;  %v277_v10 = vrot.slane %v5539_v53, 1  ;;  %v5623_v55 = vld [vmem:[%s5436_s25 + $0xa8] sm:$0xff] }
  0x20   : > { %4544 = vmatmul.mubr.msk.f32.gmra.mrb[4].mxu1 %vm323_vm2, %v264_v44  ;;  %v1719_v11 = vsel %vm1696_vm3, %v1716_v58, %v1718_v61  ;;  %v1722_v13 = vrot.slane %v5557_v63, 3  ;;  %v276_v17 = vsel %vm251_vm1, %v273_v59, %v275_v2  ;;  %v279_v19 = vrot.slane %v5553_v62, 1 }
  0x21   : > { %4768 = vmatmul.mubr.msk.f32.gmra.mrb[4].mxu0 %vm323_vm2, %v1709_v46  ;;  %4546 = vmatprep.mubr.msk.f32.mxu1 %vm323_vm2, %v266_v47  ;;  %v1721_v20 = vsel %vm1696_vm3, %v1718_v61, %v1720_v8  ;;  %v278_v21 = vsel %vm251_vm1, %v275_v2, %v277_v10  ;;  %v1724_v22 = vrot.slane %v5571_v14, 3  ;;  %v281_v24 = vrot.slane %v5557_v63, 1 }
  0x22   : > { %4770 = vmatprep.mubr.msk.f32.mxu0 %vm323_vm2, %v1711_v50  ;;  %v1723_v25 = vsel %vm1696_vm3, %v1720_v8, %v1722_v13  ;;  %v1726_v26 = vrot.slane %v5575_v15, 3  ;;  %v280_v30 = vsel %vm251_vm1, %v277_v10, %v279_v19  ;;  %v283_v32 = vrot.slane %v5571_v14, 1 }
  0x23   : > { %v1725_v33 = vsel %vm1696_vm3, %v1722_v13, %v1724_v22  ;;  %v282_v35 = vsel %vm251_vm1, %v279_v19, %v281_v24  ;;  %v1728_v36 = vrot.slane %v5589_v28, 3  ;;  %v285_v37 = vrot.slane %v5575_v15, 1 }
  0x24   : > { %4547 = vmatmul.mubr.msk.f32.gmra.mrb[6].mxu1 %vm323_vm2, %v268_v54  ;;  %v1727_v38 = vsel %vm1696_vm3, %v1724_v22, %v1726_v26  ;;  %v1730_v39 = vrot.slane %v5593_v29, 3  ;;  %v284_v44 = vsel %vm251_vm1, %v281_v24, %v283_v32  ;;  %v287_v45 = vrot.slane %v5589_v28, 1  ;;  %v5663_v24 = vld [vmem:[%s5436_s25 + $0xc8] sm:$0xff] }
  0x25   : > { %4771 = vmatmul.mubr.msk.f32.gmra.mrb[6].mxu0 %vm323_vm2, %v1713_v56  ;;  %4549 = vmatprep.mubr.msk.f32.mxu1 %vm323_vm2, %v270_v57  ;;  %v1729_v46 = vsel %vm1696_vm3, %v1726_v26, %v1728_v36  ;;  %v286_v47 = vsel %vm251_vm1, %v283_v32, %v285_v37  ;;  %v6784_v48 = vrot.slane %v5607_v40, 3  ;;  %v289_v49 = vrot.slane %v5593_v29, 1 }
  0x26   : > { %4773 = vmatprep.mubr.msk.f32.mxu0 %vm323_vm2, %v1715_v60  ;;  %v1731_v50 = vsel %vm1696_vm3, %v1728_v36, %v1730_v39  ;;  %v2128_v51 = vrot.slane %v5445_v6, 4  ;;  %v2129_v54 = vrot.slane %v5450_v9, 4  ;;  %v288_v56 = vsel %vm251_vm1, %v285_v37, %v287_v45  ;;  %v5686_v37 = vld [vmem:[%s5436_s25 + $0xd0] sm:$0xff] }
  0x27   : > { %v291_v57 = vrot.slane %v5607_v40, 1  ;;  %v1733_v58 = vsel %vm1696_vm3, %v1730_v39, %v6784_v48  ;;  %v290_v59 = vsel %vm251_vm1, %v287_v45, %v289_v49  ;;  %v2131_v60 = vrot.slane %v5455_v12, 4  ;;  %v5693_v39 = vld [vmem:[%s5436_s25 + $0xd8] sm:$0xff] }
  0x28   : > { %4550 = vmatmul.mubr.msk.f32.gmra.mrb[8].mxu1 %vm323_vm2, %v272_v0  ;;  %v293_v61 = vrot.slane %v5623_v55, 1  ;;  %v5638_v0 = vld [vmem:[%s5436_s25 + $0xb0] sm:$0xff]  ;;  %v2130_v2 = vsel %vm396_vm0, %v2128_v51, %v2129_v54  ;;  %v2137_v22 = vrot.slane %v5472_v23, 4  ;;  %v301_v36 = vrot.slane %v5663_v24, 1  ;;  %v5712_v51 = vld [vmem:[%s5436_s25 + $0xe0] sm:$0xff] }
  0x29   : > { %4774 = vmatmul.mubr.msk.f32.gmra.mrb[8].mxu0 %vm323_vm2, %v1717_v3  ;;  %4552 = vmatprep.mubr.msk.f32.mxu1 %vm323_vm2, %v274_v7  ;;  %v2133_v3 = vrot.slane %v5461_v16, 4  ;;  %v5643_v7 = vld [vmem:[%s5436_s25 + $0xb8] sm:$0xff]  ;;  %v292_v8 = vsel %vm251_vm1, %v289_v49, %v291_v57  ;;  %v295_v10 = vrot.slane %v5638_v0, 1  ;;  %v303_v45 = vrot.slane %v5686_v37, 1 }
  0x2a   : > { %4776 = vmatprep.mubr.msk.f32.mxu0 %vm323_vm2, %v1719_v11  ;;  %v2132_v11 = vsel %vm396_vm0, %v2129_v54, %v2131_v60  ;;  %v294_v13 = vsel %vm251_vm1, %v291_v57, %v293_v61  ;;  %v297_v19 = vrot.slane %v5643_v7, 1  ;;  %v2143_v49 = vrot.slane %v5508_v41, 4  ;;  %v5719_v57 = vld [vmem:[%s5436_s25 + $0xe8] sm:$0xff] }
  0x2b   : > { %v296_v26 = vsel %vm251_vm1, %v293_v61, %v295_v10 }
  0x2c   : > { %4553 = vmatmul.mubr.msk.f32.gmra.mrb[10].mxu1 %vm323_vm2, %v276_v17  ;;  %v2135_v17 = vrot.slane %v5465_v18, 4 }
  0x2d   : > { %4777 = vmatmul.mubr.msk.f32.gmra.mrb[10].mxu0 %vm323_vm2, %v1721_v20  ;;  %4555 = vmatprep.mubr.msk.f32.mxu1 %vm323_vm2, %v278_v21  ;;  %v5656_v20 = vld [vmem:[%s5436_s25 + $0xc0] sm:$0xff]  ;;  %v5659_v21 = vsel %vm396_vm0, %v2131_v60, %v2133_v3 }
  0x2e   : > { %4779 = vmatprep.mubr.msk.f32.mxu0 %vm323_vm2, %v1723_v25  ;;  %v5669_v25 = vld [vmem:[%s6781_s1 + $0x1c] sm:$0xf]  ;;  %v5680_v32 = vsel %vm396_vm0, %v2133_v3, %v2135_v17  ;;  %v309_v3 = vrot.slane %v5719_v57, 1 }
  0x30   : > { %4556 = vmatmul.mubr.msk.f32.gmra.mrb[12].mxu1 %vm323_vm2, %v280_v30  ;;  %v299_v30 = vrot.slane %v5656_v20, 1 }
  0x31   : > { %4780 = vmatmul.mubr.msk.f32.gmra.mrb[12].mxu0 %vm323_vm2, %v1725_v33  ;;  %4558 = vmatprep.mubr.msk.f32.mxu1 %vm323_vm2, %v282_v35  ;;  %v298_v33 = vsel %vm251_vm1, %v295_v10, %v297_v19  ;;  %v2139_v35 = vrot.slane %v5479_v27, 4 }
  0x32   : > { %4782 = vmatprep.mubr.msk.f32.mxu0 %vm323_vm2, %v1727_v38  ;;  %v5689_v38 = vsel %vm396_vm0, %v2135_v17, %v2137_v22 }
  0x34   : > { %4559 = vmatmul.mubr.msk.f32.gmra.mrb[14].mxu1 %vm323_vm2, %v284_v44  ;;  %v300_v44 = vsel %vm251_vm1, %v297_v19, %v299_v30 }
  0x35   : > { %4783 = vmatmul.mubr.msk.f32.gmra.mrb[14].mxu0 %vm323_vm2, %v1729_v46  ;;  %4561 = vmatprep.mubr.msk.f32.mxu1 %vm323_vm2, %v286_v47  ;;  %v5706_v46 = vsel %vm396_vm0, %v2137_v22, %v2139_v35  ;;  %v302_v47 = vsel %vm251_vm1, %v299_v30, %v301_v36  ;;  %v2151_v30 = vrot.slane %v5553_v62, 4 }
  0x36   : > { %4785 = vmatprep.mubr.msk.f32.mxu0 %vm323_vm2, %v1731_v50  ;;  %v305_v50 = vrot.slane %v5693_v39, 1 }
  0x38   : > { %4562 = vmatmul.mubr.msk.f32.gmra.mrb[16].mxu1 %vm323_vm2, %v288_v56  ;;  %v2145_v56 = vrot.slane %v5517_v43, 4  ;;  %v306_v61 = vsel %vm251_vm1, %v303_v45, %v305_v50 }
  0x39   : > { %4786 = vmatmul.mubr.msk.f32.gmra.mrb[16].mxu0 %vm323_vm2, %v1733_v58  ;;  %4564 = vmatprep.mubr.msk.f32.mxu1 %vm323_vm2, %v290_v59  ;;  %v304_v58 = vsel %vm251_vm1, %v301_v36, %v303_v45  ;;  %v307_v59 = vrot.slane %v5712_v51, 1 }
  0x3a   : > { %4817 = vmatprep.mubr.msk.f32.mxu0 %vm323_vm2, %v2130_v2  ;;  %v2147_v2 = vrot.slane %v5535_v52, 4  ;;  %v5739_v10 = vsel %vm396_vm0, %v2143_v49, %v2145_v56 }
  0x3b   : > { %v308_v17 = vsel %vm251_vm1, %v305_v50, %v307_v59 }
  0x3c   : > { %4565 = vmatmul.mubr.msk.f32.gmra.mrb[18].mxu1 %vm323_vm2, %v292_v8  ;;  %v5736_v8 = vld [vmem:[%s5436_s25 + $0xf0] sm:$0xff]  ;;  %v5754_v22 = vsel %vm396_vm0, %v2145_v56, %v2147_v2  ;;  %v2155_v56 = vrot.slane %v5571_v14, 4 }
  0x3d   : > { %4818 = vmatmul.mubr.msk.f32.vlgmr.msra.gmra.mrb[0].mxu0 %vm323_vm2, %v2132_v11  ;;  %4567 = vmatprep.mubr.msk.f32.mxu1 %vm323_vm2, %v294_v13  ;;  %v2149_v11 = vrot.slane %v5539_v53, 4  ;;  %v5743_v13 = vld [vmem:[%s5436_s25 + $0xf8] sm:$0xff]  ;;  %v311_v19 = vrot.slane %v5736_v8, 1 }
  0x3e   : > { %4872 = vmatpush3.msk.msra.mxu0 %vm396_vm0, %v5496_v34  ;;  %4820 = vmatprep.mubr.msk.f32.mxu0 %vm323_vm2, %v5659_v21  ;;  %v2141_v34 = vrot.slane %v5487_v31, 4 }
  0x3f   : > { %4927 = vmatprep.subr.msk.mxu0 %vm396_vm0, %v5669_v25  ;;  %v5763_v36 = vsel %vm396_vm0, %v2147_v2, %v2149_v11  ;;  %v312_v45 = vsel %vm251_vm1, %v309_v3, %v311_v19  ;;  %v2157_v2 = vrot.slane %v5575_v15, 4 }
  0x40   : > { %4568 = vmatmul.mubr.msk.f32.gmra.mrb[20].mxu1 %vm323_vm2, %v296_v26  ;;  %v5715_v54 = vsel %vm396_vm0, %v2139_v35, %v2141_v34  ;;  %v5730_v60 = vsel %vm396_vm0, %v2141_v34, %v2143_v49  ;;  %v310_v26 = vsel %vm251_vm1, %v307_v59, %v309_v3  ;;  %v5760_v35 = vld [vmem:[%s5436_s25 + $0x100] sm:$0xff]  ;;  %v2153_v34 = vrot.slane %v5557_v63, 4  ;;  %v5784_v59 = vld [vmem:[%s5436_s25 + $0x110] sm:$0xff]  ;;  %v5791_v3 = vld [vmem:[%s5436_s25 + $0x118] sm:$0xff] }
  0x41   : > { %4821 = vmatmul.mubr.msk.f32.gmra.mrb[2].mxu0 %vm323_vm2, %v5680_v32  ;;  %4570 = vmatprep.mubr.msk.f32.mxu1 %vm323_vm2, %v298_v33  ;;  %v313_v33 = vrot.slane %v5743_v13, 1  ;;  %v5778_v49 = vsel %vm396_vm0, %v2149_v11, %v2151_v30  ;;  %v5808_v48 = vsel %vm396_vm0, %v2155_v56, %v2157_v2 }
  0x42   : > { %4823 = vmatprep.mubr.msk.f32.mxu0 %vm323_vm2, %v5689_v38 }
  0x43   : > { %v314_v50 = vsel %vm251_vm1, %v311_v19, %v313_v33  ;;  %v5802_v19 = vsel %vm396_vm0, %v2153_v34, %v2155_v56  ;;  %v2163_v56 = vrot.slane %v5607_v40, 4 }
  0x44   : > { %4571 = vmatmul.mubr.msk.f32.gmra.mrb[22].mxu1 %vm323_vm2, %v300_v44  ;;  %v5767_v44 = vld [vmem:[%s5436_s25 + $0x108] sm:$0xff] }
  0x45   : > { %4824 = vmatmul.mubr.msk.f32.gmra.mrb[4].mxu0 %vm323_vm2, %v5706_v46  ;;  %4573 = vmatprep.mubr.msk.f32.mxu1 %vm323_vm2, %v302_v47  ;;  %v315_v47 = vrot.slane %v5760_v35, 1 }
  0x46   : > { %4826 = vmatprep.mubr.msk.f32.mxu0 %vm323_vm2, %v5715_v54 }
  0x47   : > { %v316_v11 = vsel %vm251_vm1, %v313_v33, %v315_v47 }
  0x48   : > { %4574 = vmatmul.mubr.msk.f32.gmra.mrb[24].mxu1 %vm323_vm2, %v304_v58  ;;  %v317_v58 = vrot.slane %v5767_v44, 1 }
  0x49   : > { %4827 = vmatmul.mubr.msk.f32.gmra.mrb[6].mxu0 %vm323_vm2, %v5730_v60  ;;  %4576 = vmatprep.mubr.msk.f32.mxu1 %vm323_vm2, %v306_v61  ;;  %v5787_v61 = vsel %vm396_vm0, %v2151_v30, %v2153_v34  ;;  %v2159_v30 = vrot.slane %v5589_v28, 4 }
  0x4a   : > { %4829 = vmatprep.mubr.msk.f32.mxu0 %vm323_vm2, %v5739_v10 }
  0x4b   : > { %v5819_v34 = vsel %vm396_vm0, %v2157_v2, %v2159_v30  ;;  %v2167_v2 = vrot.slane %v5638_v0, 4 }
  0x4c   : > { %4577 = vmatmul.mubr.msk.f32.gmra.mrb[26].mxu1 %vm323_vm2, %v308_v17  ;;  %v319_v17 = vrot.slane %v5784_v59, 1 }
  0x4d   : > { %4830 = vmatmul.mubr.msk.f32.gmra.mrb[8].mxu0 %vm323_vm2, %v5754_v22  ;;  %4579 = vmatprep.mubr.msk.f32.mxu1 %vm323_vm2, %v310_v26  ;;  %v318_v26 = vsel %vm251_vm1, %v315_v47, %v317_v58 }
  0x4e   : > { %4832 = vmatprep.mubr.msk.f32.mxu0 %vm323_vm2, %v5763_v36  ;;  %v320_v33 = vsel %vm251_vm1, %v317_v58, %v319_v17 }
  0x50   : > { %4580 = vmatmul.mubr.msk.f32.gmra.mrb[28].mxu1 %vm323_vm2, %v312_v45  ;;  %v321_v45 = vrot.slane %v5791_v3, 1 }
  0x51   : > { %4833 = vmatmul.mubr.msk.f32.gmra.mrb[10].mxu0 %vm323_vm2, %v5778_v49  ;;  %4582 = vmatprep.mubr.msk.f32.mxu1 %vm323_vm2, %v314_v50  ;;  %v2161_v50 = vrot.slane %v5593_v29, 4 }
  0x52   : > { %4835 = vmatprep.mubr.msk.f32.mxu0 %vm323_vm2, %v5787_v61  ;;  %v322_v47 = vsel %vm251_vm1, %v319_v17, %v321_v45 }
  0x53   : > { %v5824_v1 = vsel %vm396_vm0, %v2159_v30, %v2161_v50  ;;  %v5834_v58 = vsel %vm396_vm0, %v2161_v50, %v2163_v56  ;;  %v2171_v50 = vrot.slane %v5656_v20, 4 }
  0x54   : > { %4583 = vmatmul.mubr.msk.f32.gmra.mrb[30].mxu1 %vm323_vm2, %v316_v11  ;;  %v2165_v11 = vrot.slane %v5623_v55, 4 }
  0x55   : > { %4836 = vmatmul.mubr.msk.f32.gmra.mrb[12].mxu0 %vm323_vm2, %v5802_v19  ;;  %4585 = vmatprep.mubr.msk.f32.mxu1 %vm323_vm2, %v318_v26  ;;  %v2169_v26 = vrot.slane %v5643_v7, 4 }
  0x56   : > { %4838 = vmatprep.mubr.msk.f32.mxu0 %vm323_vm2, %v5808_v48  ;;  %v5838_v17 = vsel %vm396_vm0, %v2163_v56, %v2165_v11  ;;  %v5849_v30 = vsel %vm396_vm0, %v2165_v11, %v2167_v2  ;;  %v2175_v11 = vrot.slane %v5686_v37, 4 }
  0x57   : > { %6811 = vst [vmem:[#allocation6_spill] sm:$0xff] %v5838_v17  ;;  %v5872_v56 = vsel %vm396_vm0, %v2169_v26, %v2171_v50 }
  0x58   : > { %4586 = vmatmul.mubr.msk.f32.gmra.mrb[32].mxu1 %vm323_vm2, %v320_v33  ;;  %v5853_v33 = vsel %vm396_vm0, %v2167_v2, %v2169_v26  ;;  %6813 = vst [vmem:[#allocation8_spill] sm:$0xff] %v5872_v56  ;;  %v2179_v26 = vrot.slane %v5712_v51, 4 }
  0x59   : > { %4839 = vmatmul.mubr.msk.f32.gmra.mrb[14].mxu0 %vm323_vm2, %v5819_v34  ;;  %4588 = vmatprep.mubr.msk.f32.mxu1 %vm323_vm2, %v322_v47  ;;  %v2173_v47 = vrot.slane %v5663_v24, 4 }
  0x5a   : > { %4841 = vmatprep.mubr.msk.f32.mxu0 %vm323_vm2, %v5824_v1 }
  0x5b   : > { %v5876_v2 = vsel %vm396_vm0, %v2171_v50, %v2173_v47 }
  0x5c   : > { %4589 = vmatmul.mubr.msk.f32.gmra.mrb[34].mxu1 %vm323_vm2, %v321_v45  ;;  %v5861_v45 = vld [vmem:[%s6781_s1 + $0xc] sm:$0xf]  ;;  %6814 = vst [vmem:[#allocation9_spill] sm:$0xff] %v5876_v2 }
  0x5d   : > { %4842 = vmatmul.mubr.msk.f32.gmra.mrb[16].mxu0 %vm323_vm2, %v5834_v58  ;;  %4593 = vmatprep.mubr.msk.f32.mxu1 %vm323_vm2, %v5439_v4  ;;  %6812 = vst [vmem:[#allocation7_spill] sm:$0xff] %v5861_v45 }
  0x5e   : > { %4844 = vmatprep.mubr.msk.f32.mxu0 %vm323_vm2, %v5838_v17  ;;  %v2177_v17 = vrot.slane %v5693_v39, 4 }
  0x60   : > { %4594 = vmatmul.mubr.msk.f32.vlgmr.msra.gmra.mrb[0].mxu1 %vm323_vm2, %v5442_v5  ;;  %v5894_v50 = vsel %vm396_vm0, %v2175_v11, %v2177_v17 }
  0x61   : > { %4648 = vmatpush3.msk.msra.mxu1 %vm396_vm0, %v5513_v42  ;;  %4845 = vmatmul.mubr.msk.f32.gmra.mrb[18].mxu0 %vm323_vm2, %v5849_v30  ;;  %v5890_v42 = vsel %vm396_vm0, %v2173_v47, %v2175_v11  ;;  %6816 = vst [vmem:[#allocation11_spill] sm:$0xff] %v5894_v50  ;;  %v5906_v47 = vsel %vm396_vm0, %v2177_v17, %v2179_v26  ;;  %v2183_v11 = vrot.slane %v5736_v8, 4 }
  0x62   : > { %4596 = vmatprep.mubr.msk.f32.mxu1 %vm323_vm2, %v5445_v6  ;;  %4847 = vmatprep.mubr.msk.f32.mxu0 %vm323_vm2, %v5853_v33  ;;  %6815 = vst [vmem:[#allocation10_spill] sm:$0xff] %v5890_v42  ;;  %6817 = vst [vmem:[#allocation12_spill] sm:$0xff] %v5906_v47 }
  0x63   : > { %4703 = vmatprep.subr.msk.mxu1 %vm396_vm0, %v5861_v45  ;;  %v2181_v45 = vrot.slane %v5719_v57, 4 }
  0x64   : > { %4597 = vmatmul.mubr.msk.f32.gmra.mrb[2].mxu1 %vm323_vm2, %v5450_v9 }
  0x65   : > { %4848 = vmatmul.mubr.msk.f32.gmra.mrb[20].mxu0 %vm323_vm2, %v5872_v56  ;;  %4599 = vmatprep.mubr.msk.f32.mxu1 %vm323_vm2, %v5455_v12  ;;  %v2185_v56 = vrot.slane %v5743_v13, 4  ;;  %v5922_v17 = vsel %vm396_vm0, %v2181_v45, %v2183_v11 }
  0x66   : > { %4850 = vmatprep.mubr.msk.f32.mxu0 %vm323_vm2, %v5876_v2  ;;  %v5910_v2 = vsel %vm396_vm0, %v2179_v26, %v2181_v45  ;;  %6819 = vst [vmem:[#allocation14_spill] sm:$0xff] %v5922_v17  ;;  %v2187_v26 = vrot.slane %v5760_v35, 4 }
  0x67   : > { %6818 = vst [vmem:[#allocation13_spill] sm:$0xff] %v5910_v2 }
  0x68   : > { %4600 = vmatmul.mubr.msk.f32.gmra.mrb[4].mxu1 %vm323_vm2, %v5461_v16  ;;  %v5938_v45 = vsel %vm396_vm0, %v2185_v56, %v2187_v26 }
  0x69   : > { %4851 = vmatmul.mubr.msk.f32.gmra.mrb[22].mxu0 %vm323_vm2, %v5890_v42  ;;  %4602 = vmatprep.mubr.msk.f32.mxu1 %vm323_vm2, %v5465_v18  ;;  %v2189_v42 = vrot.slane %v5767_v44, 4 }
  0x6a   : > { %4853 = vmatprep.mubr.msk.f32.mxu0 %vm323_vm2, %v5894_v50  ;;  %v5926_v50 = vsel %vm396_vm0, %v2183_v11, %v2185_v56  ;;  %v2191_v11 = vrot.slane %v5784_v59, 4 }
  0x6b   : > { %6820 = vst [vmem:[#allocation15_spill] sm:$0xff] %v5926_v50 }
  0x6c   : > { %4603 = vmatmul.mubr.msk.f32.gmra.mrb[6].mxu1 %vm323_vm2, %v5472_v23  ;;  %v5960_v56 = vsel %vm396_vm0, %v2189_v42, %v2191_v11 }
  0x6d   : > { %4854 = vmatmul.mubr.msk.f32.gmra.mrb[24].mxu0 %vm323_vm2, %v5906_v47  ;;  %4605 = vmatprep.mubr.msk.f32.mxu1 %vm323_vm2, %v5479_v27  ;;  %v2193_v47 = vrot.slane %v5791_v3, 4 }
  0x6e   : > { %4856 = vmatprep.mubr.msk.f32.mxu0 %vm323_vm2, %v5910_v2  ;;  %v5942_v2 = vsel %vm396_vm0, %v2187_v26, %v2189_v42 }
  0x70   : > { %4606 = vmatmul.mubr.msk.f32.gmra.mrb[8].mxu1 %vm323_vm2, %v5487_v31  ;;  %v5946_v31 = vld [vmem:[%s5436_s25 + $0x120] sm:$0xff] }
  0x71   : > { %4857 = vmatmul.mubr.msk.f32.gmra.mrb[26].mxu0 %vm323_vm2, %v5922_v17  ;;  %4608 = vmatprep.mubr.msk.f32.mxu1 %vm323_vm2, %v5508_v41  ;;  %v5951_v17 = vld [vmem:[%s5436_s25 + $0x128] sm:$0xff]  ;;  %v2195_v26 = vrot.slane %v5946_v31, 4  ;;  %v5968_v41 = vld [vmem:[%s5436_s25 + $0x130] sm:$0xff] }
  0x72   : > { %4859 = vmatprep.mubr.msk.f32.mxu0 %vm323_vm2, %v5926_v50  ;;  %6821 = vst [vmem:[#allocation16_spill] sm:$0xff] %v5951_v17  ;;  %v5964_v50 = vsel %vm396_vm0, %v2191_v11, %v2193_v47  ;;  %v2199_v11 = vrot.slane %v5968_v41, 4 }
  0x73   : > { %v5979_v42 = vsel %vm396_vm0, %v2193_v47, %v2195_v26 }
  0x74   : > { %4609 = vmatmul.mubr.msk.f32.gmra.mrb[10].mxu1 %vm323_vm2, %v5517_v43  ;;  %v2197_v43 = vrot.slane %v5951_v17, 4 }
  0x75   : > { %4860 = vmatmul.mubr.msk.f32.gmra.mrb[28].mxu0 %vm323_vm2, %v5938_v45  ;;  %4611 = vmatprep.mubr.msk.f32.mxu1 %vm323_vm2, %v5535_v52 }
  0x76   : > { %4862 = vmatprep.mubr.msk.f32.mxu0 %vm323_vm2, %v5942_v2  ;;  %v5983_v17 = vsel %vm396_vm0, %v2195_v26, %v2197_v43  ;;  %v5996_v47 = vsel %vm396_vm0, %v2197_v43, %v2199_v11  ;;  %v6011_v43 = vld [vmem:[%s6781_s1 + $0x20] sm:$0xf]  ;;  %v6829_v26 = vld [vmem:[#allocation3_spill] sm:$0xff] }
  0x78   : > { %4612 = vmatmul.mubr.msk.f32.gmra.mrb[12].mxu1 %vm323_vm2, %v5539_v53 }
  0x79   : > { %4863 = vmatmul.mubr.msk.f32.gmra.mrb[30].mxu0 %vm323_vm2, %v5960_v56  ;;  %4614 = vmatprep.mubr.msk.f32.mxu1 %vm323_vm2, %v5553_v62 }
  0x7a   : > { %4865 = vmatprep.mubr.msk.f32.mxu0 %vm323_vm2, %v5964_v50 }
  0x7c   : > { %4615 = vmatmul.mubr.msk.f32.gmra.mrb[14].mxu1 %vm323_vm2, %v5557_v63 }
  0x7d   : > { %4866 = vmatmul.mubr.msk.f32.gmra.mrb[32].mxu0 %vm323_vm2, %v5979_v42  ;;  %4617 = vmatprep.mubr.msk.f32.mxu1 %vm323_vm2, %v5571_v14 }
  0x7e   : > { %4868 = vmatprep.mubr.msk.f32.mxu0 %vm323_vm2, %v5983_v17 }
  0x80   : > { %4618 = vmatmul.mubr.msk.f32.gmra.mrb[16].mxu1 %vm323_vm2, %v5575_v15 }
  0x81   : > { %4869 = vmatmul.mubr.msk.f32.gmra.mrb[34].mxu0 %vm323_vm2, %v5996_v47  ;;  %4620 = vmatprep.mubr.msk.f32.mxu1 %vm323_vm2, %v5589_v28 }
  0x82   : > { %4873 = vmatprep.mubr.msk.f32.mxu0 %vm323_vm2, %v5659_v21  ;;  %v968_v21 = vrot.slane %v5439_v4, 2  ;;  %v973_v4 = vrot.slane %v5450_v9, 2  ;;  %v6823_v9 = vld [vmem:[#allocation7_spill] sm:$0xff] }
  0x84   : > { %4621 = vmatmul.mubr.msk.f32.gmra.mrb[18].mxu1 %vm323_vm2, %v5593_v29 }
  0x85   : > { %4874 = vmatmul.mubr.msk.f32.vlgmr.msra.gmra.mrb[0].mxu0 %vm323_vm2, %v5680_v32  ;;  %4623 = vmatprep.mubr.msk.f32.mxu1 %vm323_vm2, %v5607_v40  ;;  %v6822_v32 = vld [vmem:[#allocation6_spill] sm:$0xff] }
  0x86   : > { %4928 = vmatpush3.msk.msra.mxu0 %vm396_vm0, %v5669_v25  ;;  %4876 = vmatprep.mubr.msk.f32.mxu0 %vm323_vm2, %v5689_v38  ;;  %v969_v25 = vrot.slane %v5442_v5, 2  ;;  %v975_v38 = vrot.slane %v5455_v12, 2 }
  0x87   : > { %4983 = vmatprep.subr.msk.mxu0 %vm396_vm0, %v6011_v43 }
  0x88   : > { %4624 = vmatmul.mubr.msk.f32.gmra.mrb[20].mxu1 %vm323_vm2, %v5623_v55 }
  0x89   : > { %4877 = vmatmul.mubr.msk.f32.gmra.mrb[2].mxu0 %vm323_vm2, %v5706_v46  ;;  %4626 = vmatprep.mubr.msk.f32.mxu1 %vm323_vm2, %v5638_v0 }
  0x8a   : > { %4879 = vmatprep.mubr.msk.f32.mxu0 %vm323_vm2, %v5715_v54  ;;  %v6824_v54 = vld [vmem:[#allocation8_spill] sm:$0xff] }
  0x8c   : > { %4627 = vmatmul.mubr.msk.f32.gmra.mrb[22].mxu1 %vm323_vm2, %v5643_v7 }
  0x8d   : > { %4880 = vmatmul.mubr.msk.f32.gmra.mrb[4].mxu0 %vm323_vm2, %v5730_v60  ;;  %4629 = vmatprep.mubr.msk.f32.mxu1 %vm323_vm2, %v5656_v20  ;;  %v6103_v60 = vsel %vm967_vm4, %v973_v4, %v975_v38 }
  0x8e   : > { %4882 = vmatprep.mubr.msk.f32.mxu0 %vm323_vm2, %v5739_v10  ;;  %v979_v10 = vrot.slane %v5465_v18, 2 }
  0x90   : > { %4630 = vmatmul.mubr.msk.f32.gmra.mrb[24].mxu1 %vm323_vm2, %v5663_v24 }
  0x91   : > { %4883 = vmatmul.mubr.msk.f32.gmra.mrb[6].mxu0 %vm323_vm2, %v5754_v22  ;;  %4632 = vmatprep.mubr.msk.f32.mxu1 %vm323_vm2, %v5686_v37  ;;  %v6825_v22 = vld [vmem:[#allocation9_spill] sm:$0xff] }
  0x92   : > { %4885 = vmatprep.mubr.msk.f32.mxu0 %vm323_vm2, %v5763_v36 }
  0x94   : > { %4633 = vmatmul.mubr.msk.f32.gmra.mrb[26].mxu1 %vm323_vm2, %v5693_v39 }
  0x95   : > { %4886 = vmatmul.mubr.msk.f32.gmra.mrb[8].mxu0 %vm323_vm2, %v5778_v49  ;;  %4635 = vmatprep.mubr.msk.f32.mxu1 %vm323_vm2, %v5712_v51  ;;  %v981_v49 = vrot.slane %v5472_v23, 2 }
  0x96   : > { %4888 = vmatprep.mubr.msk.f32.mxu0 %vm323_vm2, %v5787_v61  ;;  %v6826_v61 = vld [vmem:[#allocation2_spill] sm:$0xff] }
  0x98   : > { %4636 = vmatmul.mubr.msk.f32.gmra.mrb[28].mxu1 %vm323_vm2, %v5719_v57 }
  0x99   : > { %4889 = vmatmul.mubr.msk.f32.gmra.mrb[10].mxu0 %vm323_vm2, %v5802_v19  ;;  %4638 = vmatprep.mubr.msk.f32.mxu1 %vm323_vm2, %v5736_v8  ;;  %v6827_v19 = vld [vmem:[#allocation10_spill] sm:$0xff] }
  0x9a   : > { %4891 = vmatprep.mubr.msk.f32.mxu0 %vm323_vm2, %v5808_v48  ;;  %v971_v48 = vrot.slane %v5445_v6, 2  ;;  %v977_v6 = vrot.slane %v5461_v16, 2 }
  0x9c   : > { %4639 = vmatmul.mubr.msk.f32.gmra.mrb[30].mxu1 %vm323_vm2, %v5743_v13  ;;  %v972_v5 = vsel %vm967_vm4, %v969_v25, %v971_v48  ;;  %v6095_v46 = vsel %vm967_vm4, %v971_v48, %v973_v4  ;;  %v6111_v36 = vsel %vm967_vm4, %v975_v38, %v977_v6  ;;  %v6832_v4 = vld [vmem:[#allocation13_spill] sm:$0xff] }
  0x9d   : > { %4892 = vmatmul.mubr.msk.f32.gmra.mrb[12].mxu0 %vm323_vm2, %v5819_v34  ;;  %4641 = vmatprep.mubr.msk.f32.mxu1 %vm323_vm2, %v5760_v35  ;;  %v6123_v34 = vsel %vm967_vm4, %v977_v6, %v979_v10  ;;  %v6833_v38 = vld [vmem:[#allocation5_spill] sm:$0xff] }
  0x9e   : > { %4894 = vmatprep.mubr.msk.f32.mxu0 %vm323_vm2, %v5824_v1  ;;  %v970_v1 = vsel %vm967_vm4, %v968_v21, %v969_v25  ;;  %v985_v21 = vrot.slane %v6829_v26, 2  ;;  %v6830_v25 = vld [vmem:[#allocation12_spill] sm:$0xff]  ;;  %v989_v6 = vrot.slane %v6833_v38, 2 }
  0xa0   : > { %4642 = vmatmul.mubr.msk.f32.gmra.mrb[32].mxu1 %vm323_vm2, %v5767_v44 }
  0xa1   : > { %4895 = vmatmul.mubr.msk.f32.gmra.mrb[14].mxu0 %vm323_vm2, %v5834_v58  ;;  %4644 = vmatprep.mubr.msk.f32.mxu1 %vm323_vm2, %v5784_v59  ;;  %v983_v58 = vrot.slane %v5479_v27, 2 }
  0xa2   : > { %4897 = vmatprep.mubr.msk.f32.mxu0 %vm323_vm2, %v6822_v32  ;;  %v6831_v32 = vld [vmem:[#allocation4_spill] sm:$0xff] }
  0xa3   : > { %v6139_v48 = vsel %vm967_vm4, %v981_v49, %v983_v58 }
  0xa4   : > { %4645 = vmatmul.mubr.msk.f32.gmra.mrb[34].mxu1 %vm323_vm2, %v5791_v3 }
  0xa5   : > { %4898 = vmatmul.mubr.msk.f32.gmra.mrb[16].mxu0 %vm323_vm2, %v5849_v30  ;;  %4649 = vmatprep.mubr.msk.f32.mxu1 %vm323_vm2, %v970_v1  ;;  %v6828_v30 = vld [vmem:[#allocation11_spill] sm:$0xff]  ;;  %v987_v1 = vrot.slane %v6831_v32, 2 }
  0xa6   : > { %4900 = vmatprep.mubr.msk.f32.mxu0 %vm323_vm2, %v5853_v33  ;;  %v6129_v33 = vsel %vm967_vm4, %v979_v10, %v981_v49  ;;  %v991_v10 = vrot.slane %v5535_v52, 2 }
  0xa7   : > { %v6161_v49 = vsel %vm967_vm4, %v987_v1, %v989_v6 }
  0xa8   : > { %4650 = vmatmul.mubr.msk.f32.vlgmr.msra.gmra.mrb[0].mxu1 %vm323_vm2, %v972_v5  ;;  %v6145_v5 = vsel %vm967_vm4, %v983_v58, %v985_v21  ;;  %v995_v58 = vrot.slane %v5553_v62, 2 }
  0xa9   : > { %4704 = vmatpush3.msk.msra.mxu1 %vm396_vm0, %v6823_v9  ;;  %4901 = vmatmul.mubr.msk.f32.gmra.mrb[18].mxu0 %vm323_vm2, %v6824_v54  ;;  %v6834_v9 = vld [vmem:[#allocation14_spill] sm:$0xff]  ;;  %v6155_v54 = vsel %vm967_vm4, %v985_v21, %v987_v1  ;;  %v997_v21 = vrot.slane %v5557_v63, 2 }
  0xaa   : > { %4652 = vmatprep.mubr.msk.f32.mxu1 %vm323_vm2, %v6095_v46  ;;  %4903 = vmatprep.mubr.msk.f32.mxu0 %vm323_vm2, %v6825_v22  ;;  %v6835_v22 = vld [vmem:[#allocation15_spill] sm:$0xff] }
  0xab   : > { %5039 = vmatprep.subr.msk.mxu1 %vm396_vm0, %v6826_v61  ;;  %v993_v61 = vrot.slane %v5539_v53, 2  ;;  %v6196_v1 = vsel %vm967_vm4, %v995_v58, %v997_v21 }
  0xac   : > { %4653 = vmatmul.mubr.msk.f32.gmra.mrb[2].mxu1 %vm323_vm2, %v6103_v60 }
  0xad   : > { %4904 = vmatmul.mubr.msk.f32.gmra.mrb[20].mxu0 %vm323_vm2, %v6827_v19  ;;  %4655 = vmatprep.mubr.msk.f32.mxu1 %vm323_vm2, %v6111_v36  ;;  %v6171_v19 = vsel %vm967_vm4, %v989_v6, %v991_v10 }
  0xae   : > { %4906 = vmatprep.mubr.msk.f32.mxu0 %vm323_vm2, %v6828_v30  ;;  %v6177_v30 = vsel %vm967_vm4, %v991_v10, %v993_v61 }
  0xb0   : > { %4656 = vmatmul.mubr.msk.f32.gmra.mrb[4].mxu1 %vm323_vm2, %v6123_v34 }
  0xb1   : > { %4907 = vmatmul.mubr.msk.f32.gmra.mrb[22].mxu0 %vm323_vm2, %v6830_v25  ;;  %4658 = vmatprep.mubr.msk.f32.mxu1 %vm323_vm2, %v6129_v33  ;;  %v6190_v25 = vsel %vm967_vm4, %v993_v61, %v995_v58  ;;  %v1005_v61 = vrot.slane %v5593_v29, 2  ;;  %v2856_v58 = vrot.slane %v5455_v12, 5 }
  0xb2   : > { %4909 = vmatprep.mubr.msk.f32.mxu0 %vm323_vm2, %v6832_v4  ;;  %v1001_v4 = vrot.slane %v5575_v15, 2 }
  0xb4   : > { %4659 = vmatmul.mubr.msk.f32.gmra.mrb[6].mxu1 %vm323_vm2, %v6139_v48 }
  0xb5   : > { %4910 = vmatmul.mubr.msk.f32.gmra.mrb[24].mxu0 %vm323_vm2, %v6834_v9  ;;  %4661 = vmatprep.mubr.msk.f32.mxu1 %vm323_vm2, %v6145_v5  ;;  %v6201_v9 = vld [vmem:[%s5436_s25 + $0x140] sm:$0xf] }
  0xb6   : > { %4912 = vmatprep.mubr.msk.f32.mxu0 %vm323_vm2, %v6835_v22  ;;  %6836 = vst [vmem:[#allocation6_spill] sm:$0xff] %v6201_v9  ;;  %v2563_v22 = vrot.slane %v6201_v9, 4  ;;  %v1009_v9 = vrot.slane %v5623_v55, 2 }
  0xb8   : > { %4662 = vmatmul.mubr.msk.f32.gmra.mrb[8].mxu1 %vm323_vm2, %v6155_v54 }
  0xb9   : > { %4913 = vmatmul.mubr.msk.f32.gmra.mrb[26].mxu0 %vm323_vm2, %v5938_v45  ;;  %4664 = vmatprep.mubr.msk.f32.mxu1 %vm323_vm2, %v6161_v49  ;;  %v6183_v45 = vld [vmem:[%s5436_s25 + $0x138] sm:$0xff] }
  0xba   : > { %4915 = vmatprep.mubr.msk.f32.mxu0 %vm323_vm2, %v5942_v2  ;;  %v999_v2 = vrot.slane %v5571_v14, 2  ;;  %v2561_v6 = vrot.slane %v6183_v45, 4 }
  0xbc   : > { %4665 = vmatmul.mubr.msk.f32.gmra.mrb[10].mxu1 %vm323_vm2, %v6171_v19  ;;  %v6216_v10 = vsel %vm967_vm4, %v999_v2, %v1001_v4  ;;  %v2564_v12 = vsel %vm396_vm0, %v2561_v6, %v2563_v22  ;;  %v1013_v22 = vrot.slane %v5643_v7, 2 }
  0xbd   : > { %4916 = vmatmul.mubr.msk.f32.gmra.mrb[28].mxu0 %vm323_vm2, %v5960_v56  ;;  %4667 = vmatprep.mubr.msk.f32.mxu1 %vm323_vm2, %v6177_v30  ;;  %v1003_v56 = vrot.slane %v5589_v28, 2  ;;  %6837 = vst [vmem:[#allocation7_spill] sm:$0xff] %v6216_v10 }
  0xbe   : > { %4918 = vmatprep.mubr.msk.f32.mxu0 %vm323_vm2, %v5964_v50  ;;  %v6210_v50 = vsel %vm967_vm4, %v997_v21, %v999_v2  ;;  %v2857_v21 = vrot.slane %v5461_v16, 5  ;;  %v1007_v2 = vrot.slane %v5607_v40, 2 }
  0xbf   : > { %v6238_v16 = vsel %vm967_vm4, %v1003_v56, %v1005_v61 }
  0xc0   : > { %4668 = vmatmul.mubr.msk.f32.gmra.mrb[12].mxu1 %vm323_vm2, %v6190_v25 }
  0xc1   : > { %4919 = vmatmul.mubr.msk.f32.gmra.mrb[30].mxu0 %vm323_vm2, %v5979_v42  ;;  %4670 = vmatprep.mubr.msk.f32.mxu1 %vm323_vm2, %v6196_v1  ;;  %v2562_v42 = vsel %vm396_vm0, %v2199_v11, %v2561_v6  ;;  %v2859_v11 = vrot.slane %v5465_v18, 5  ;;  %v1011_v6 = vrot.slane %v5638_v0, 2 }
  0xc2   : > { %4921 = vmatprep.mubr.msk.f32.mxu0 %vm323_vm2, %v5983_v17  ;;  %v6232_v17 = vsel %vm967_vm4, %v1001_v4, %v1003_v56  ;;  %v6250_v4 = vsel %vm967_vm4, %v1005_v61, %v1007_v2  ;;  %v6256_v56 = vsel %vm967_vm4, %v1007_v2, %v1009_v9  ;;  %v2867_v2 = vrot.slane %v6831_v32, 5 }
  0xc3   : > { %v2860_v18 = vsel %vm2855_vm5, %v2857_v21, %v2859_v11  ;;  %v6268_v61 = vsel %vm967_vm4, %v1009_v9, %v1011_v6  ;;  %v2869_v9 = vrot.slane %v6833_v38, 5  ;;  %v2871_v38 = vrot.slane %v5535_v52, 5 }
  0xc4   : > { %4671 = vmatmul.mubr.msk.f32.gmra.mrb[14].mxu1 %vm323_vm2, %v6210_v50 }
  0xc5   : > { %4922 = vmatmul.mubr.msk.f32.gmra.mrb[32].mxu0 %vm323_vm2, %v5996_v47  ;;  %4673 = vmatprep.mubr.msk.f32.mxu1 %vm323_vm2, %v6216_v10  ;;  %v2858_v47 = vsel %vm2855_vm5, %v2856_v58, %v2857_v21  ;;  %v2861_v10 = vrot.slane %v5472_v23, 5  ;;  %v2863_v23 = vrot.slane %v5479_v27, 5  ;;  %v2865_v58 = vrot.slane %v6829_v26, 5 }
  0xc6   : > { %4924 = vmatprep.mubr.msk.f32.mxu0 %vm323_vm2, %v2562_v42  ;;  %v1015_v21 = vrot.slane %v5656_v20, 2  ;;  %v6276_v26 = vsel %vm967_vm4, %v1011_v6, %v1013_v22  ;;  %v1021_v6 = vrot.slane %v5693_v39, 2  ;;  %v2872_v52 = vsel %vm2855_vm5, %v2869_v9, %v2871_v38 }
  0xc7   : > { %v2862_v42 = vsel %vm2855_vm5, %v2859_v11, %v2861_v10  ;;  %v2864_v27 = vsel %vm2855_vm5, %v2861_v10, %v2863_v23  ;;  %v2866_v11 = vsel %vm2855_vm5, %v2863_v23, %v2865_v58  ;;  %v1019_v10 = vrot.slane %v5686_v37, 2 }
  0xc8   : > { %4674 = vmatmul.mubr.msk.f32.gmra.mrb[16].mxu1 %vm323_vm2, %v6232_v17  ;;  %v2868_v32 = vsel %vm2855_vm5, %v2865_v58, %v2867_v2  ;;  %v2873_v23 = vrot.slane %v5539_v53, 5  ;;  %v2875_v53 = vrot.slane %v5553_v62, 5 }
  0xc9   : > { %4925 = vmatmul.mubr.msk.f32.gmra.mrb[34].mxu0 %vm323_vm2, %v2564_v12  ;;  %4676 = vmatprep.mubr.msk.f32.mxu1 %vm323_vm2, %v6238_v16  ;;  %v1017_v12 = vrot.slane %v5663_v24, 2  ;;  %v6312_v58 = vsel %vm967_vm4, %v1019_v10, %v1021_v6 }
  0xca   : > { %4929 = vmatprep.mubr.msk.f32.mxu0 %vm323_vm2, %v2858_v47  ;;  %v2876_v62 = vsel %vm2855_vm5, %v2873_v23, %v2875_v53 }
  0xcb   : > { %v6294_v47 = vsel %vm967_vm4, %v1015_v21, %v1017_v12 }
  0xcc   : > { %4677 = vmatmul.mubr.msk.f32.gmra.mrb[18].mxu1 %vm323_vm2, %v6250_v4 }
  0xcd   : > { %4930 = vmatmul.mubr.msk.f32.vlgmr.msra.gmra.mrb[0].mxu0 %vm323_vm2, %v2860_v18  ;;  %4679 = vmatprep.mubr.msk.f32.mxu1 %vm323_vm2, %v6256_v56  ;;  %v2870_v18 = vsel %vm2855_vm5, %v2867_v2, %v2869_v9  ;;  %v2877_v2 = vrot.slane %v5557_v63, 5  ;;  %v2879_v63 = vrot.slane %v5571_v14, 5 }
  0xce   : > { %4984 = vmatpush3.msk.msra.mxu0 %vm396_vm0, %v6011_v43  ;;  %4932 = vmatprep.mubr.msk.f32.mxu0 %vm323_vm2, %v2862_v42  ;;  %v6288_v43 = vsel %vm967_vm4, %v1013_v22, %v1015_v21  ;;  %v6306_v22 = vsel %vm967_vm4, %v1017_v12, %v1019_v10  ;;  %v1023_v42 = vrot.slane %v5712_v51, 2  ;;  %v1025_v21 = vrot.slane %v5719_v57, 2 }
  0xcf   : > { %v1029_v10 = vrot.slane %v5743_v13, 2  ;;  %v2880_v14 = vsel %vm2855_vm5, %v2877_v2, %v2879_v63 }
  0xd0   : > { %4680 = vmatmul.mubr.msk.f32.gmra.mrb[20].mxu1 %vm323_vm2, %v6268_v61  ;;  %v6324_v12 = vsel %vm967_vm4, %v1021_v6, %v1023_v42  ;;  %v6330_v9 = vsel %vm967_vm4, %v1023_v42, %v1025_v21  ;;  %v1033_v42 = vrot.slane %v5767_v44, 2 }
  0xd1   : > { %4933 = vmatmul.mubr.msk.f32.gmra.mrb[2].mxu0 %vm323_vm2, %v2864_v27  ;;  %4682 = vmatprep.mubr.msk.f32.mxu1 %vm323_vm2, %v6276_v26  ;;  %v2874_v27 = vsel %vm2855_vm5, %v2871_v38, %v2873_v23  ;;  %v2881_v38 = vrot.slane %v5575_v15, 5  ;;  %v2883_v15 = vrot.slane %v5589_v28, 5 }
  0xd2   : > { %4935 = vmatprep.mubr.msk.f32.mxu0 %vm323_vm2, %v2866_v11  ;;  %v1027_v11 = vrot.slane %v5736_v8, 2 }
  0xd3   : > { %v2884_v28 = vsel %vm2855_vm5, %v2881_v38, %v2883_v15 }
  0xd4   : > { %4683 = vmatmul.mubr.msk.f32.gmra.mrb[22].mxu1 %vm323_vm2, %v6288_v43  ;;  %v6342_v6 = vsel %vm967_vm4, %v1025_v21, %v1027_v11  ;;  %v6348_v23 = vsel %vm967_vm4, %v1027_v11, %v1029_v10  ;;  %v6370_v11 = vrot.slane %v5791_v3, 2 }
  0xd5   : > { %4936 = vmatmul.mubr.msk.f32.gmra.mrb[4].mxu0 %vm323_vm2, %v2868_v32  ;;  %4685 = vmatprep.mubr.msk.f32.mxu1 %vm323_vm2, %v6294_v47  ;;  %v2878_v32 = vsel %vm2855_vm5, %v2875_v53, %v2877_v2  ;;  %v2885_v53 = vrot.slane %v5593_v29, 5  ;;  %v2887_v29 = vrot.slane %v5607_v40, 5 }
  0xd6   : > { %4938 = vmatprep.mubr.msk.f32.mxu0 %vm323_vm2, %v2870_v18  ;;  %v1031_v18 = vrot.slane %v5760_v35, 2 }
  0xd8   : > { %4686 = vmatmul.mubr.msk.f32.gmra.mrb[24].mxu1 %vm323_vm2, %v6306_v22  ;;  %v6360_v21 = vsel %vm967_vm4, %v1029_v10, %v1031_v18  ;;  %v6366_v2 = vsel %vm967_vm4, %v1031_v18, %v1033_v42 }
  0xd9   : > { %4939 = vmatmul.mubr.msk.f32.gmra.mrb[6].mxu0 %vm323_vm2, %v2872_v52  ;;  %4688 = vmatprep.mubr.msk.f32.mxu1 %vm323_vm2, %v6312_v58  ;;  %v2882_v52 = vsel %vm2855_vm5, %v2879_v63, %v2881_v38  ;;  %v2889_v63 = vrot.slane %v5623_v55, 5  ;;  %v2891_v55 = vrot.slane %v5638_v0, 5 }
  0xda   : > { %4941 = vmatprep.mubr.msk.f32.mxu0 %vm323_vm2, %v2874_v27  ;;  %v1035_v27 = vrot.slane %v5784_v59, 2 }
  0xdb   : > { %v2890_v18 = vsel %vm2855_vm5, %v2887_v29, %v2889_v63 }
  0xdc   : > { %4689 = vmatmul.mubr.msk.f32.gmra.mrb[26].mxu1 %vm323_vm2, %v6324_v12  ;;  %v6380_v10 = vsel %vm967_vm4, %v1033_v42, %v1035_v27  ;;  %v6386_v38 = vsel %vm967_vm4, %v1035_v27, %v6370_v11  ;;  %v2895_v42 = vrot.slane %v5656_v20, 5  ;;  %v2901_v27 = vrot.slane %v5693_v39, 5 }
  0xdd   : > { %4942 = vmatmul.mubr.msk.f32.gmra.mrb[8].mxu0 %vm323_vm2, %v2876_v62  ;;  %4691 = vmatprep.mubr.msk.f32.mxu1 %vm323_vm2, %v6330_v9  ;;  %v2886_v62 = vsel %vm2855_vm5, %v2883_v15, %v2885_v53  ;;  %v2892_v15 = vsel %vm2855_vm5, %v2889_v63, %v2891_v55  ;;  %v2903_v39 = vrot.slane %v5712_v51, 5  ;;  %v2925_v63 = vrot.slane %v6183_v45, 5 }
  0xde   : > { %4944 = vmatprep.mubr.msk.f32.mxu0 %vm323_vm2, %v2878_v32  ;;  %v2888_v32 = vsel %vm2855_vm5, %v2885_v53, %v2887_v29  ;;  %v2899_v53 = vrot.slane %v5686_v37, 5  ;;  %v2909_v29 = vrot.slane %v5743_v13, 5 }
  0xe0   : > { %4692 = vmatmul.mubr.msk.f32.gmra.mrb[28].mxu1 %vm323_vm2, %v6342_v6 }
  0xe1   : > { %4945 = vmatmul.mubr.msk.f32.gmra.mrb[10].mxu0 %vm323_vm2, %v2880_v14  ;;  %4694 = vmatprep.mubr.msk.f32.mxu1 %vm323_vm2, %v6348_v23  ;;  %v2893_v14 = vrot.slane %v5643_v7, 5 }
  0xe2   : > { %4947 = vmatprep.mubr.msk.f32.mxu0 %vm323_vm2, %v2882_v52  ;;  %v2897_v52 = vrot.slane %v5663_v24, 5  ;;  %v5339_v24 = vld [vmem:[%s6781_s1 + $0x10] sm:$0xf] }
  0xe3   : > { %v2894_v0 = vsel %vm2855_vm5, %v2891_v55, %v2893_v14  ;;  %v2896_v7 = vsel %vm2855_vm5, %v2893_v14, %v2895_v42  ;;  %v5340_v14 = vld [vmem:[%s5436_s25 + $0x20] sm:$0xff] }
  0xe4   : > { %4695 = vmatmul.mubr.msk.f32.gmra.mrb[30].mxu1 %vm323_vm2, %v6360_v21  ;;  %v2898_v20 = vsel %vm2855_vm5, %v2895_v42, %v2897_v52  ;;  %v2900_v37 = vsel %vm2855_vm5, %v2897_v52, %v2899_v53  ;;  %v5341_v42 = vld [vmem:[%s5436_s25 + $0x28] sm:$0xff]  ;;  %v5342_v52 = vld [vmem:[%s5436_s25 + $0x30] sm:$0xff] }
  0xe5   : > { %4948 = vmatmul.mubr.msk.f32.gmra.mrb[12].mxu0 %vm323_vm2, %v2884_v28  ;;  %4697 = vmatprep.mubr.msk.f32.mxu1 %vm323_vm2, %v6366_v2  ;;  %v2907_v28 = vrot.slane %v5736_v8, 5 }
  0xe6   : > { %4950 = vmatprep.mubr.msk.f32.mxu0 %vm323_vm2, %v2886_v62 }
  0xe7   : > { %v2910_v8 = vsel %vm2855_vm5, %v2907_v28, %v2909_v29 }
  0xe8   : > { %4698 = vmatmul.mubr.msk.f32.gmra.mrb[32].mxu1 %vm323_vm2, %v6380_v10 }
  0xe9   : > { %4951 = vmatmul.mubr.msk.f32.gmra.mrb[14].mxu0 %vm323_vm2, %v2888_v32  ;;  %4700 = vmatprep.mubr.msk.f32.mxu1 %vm323_vm2, %v6386_v38  ;;  %v6840_v32 = vld [vmem:[#allocation6_spill] sm:$0xff] }
  0xea   : > { %4953 = vmatprep.mubr.msk.f32.mxu0 %vm323_vm2, %v2890_v18  ;;  %v2927_v55 = vrot.slane %v6840_v32, 5 }
  0xec   : > { %4701 = vmatmul.mubr.msk.f32.gmra.mrb[34].mxu1 %vm323_vm2, %v6370_v11 }
  0xed   : > { %4954 = vmatmul.mubr.msk.f32.gmra.mrb[16].mxu0 %vm323_vm2, %v2892_v15  ;;  %4705 = vmatprep.mubr.msk.f32.mxu1 %vm323_vm2, %v6095_v46  ;;  %v2902_v46 = vsel %vm2855_vm5, %v2899_v53, %v2901_v27  ;;  %v3288_v15 = vrot.slane %v5340_v14, 6 }
  0xee   : > { %4956 = vmatprep.mubr.msk.f32.mxu0 %vm323_vm2, %v2894_v0  ;;  %v3289_v0 = vrot.slane %v5341_v42, 6  ;;  %v5358_v42 = vld [vmem:[%s5436_s25 + $0xb0] sm:$0xff] }
  0xf0   : > { %4706 = vmatmul.mubr.msk.f32.vlgmr.msra.gmra.mrb[0].mxu1 %vm323_vm2, %v6103_v60  ;;  %v2905_v60 = vrot.slane %v5719_v57, 5  ;;  %v3290_v53 = vsel %vm3287_vm6, %v3288_v15, %v3289_v0 }
  0xf1   : > { %5040 = vmatpush3.msk.msra.mxu1 %vm396_vm0, %v5339_v24  ;;  %4957 = vmatmul.mubr.msk.f32.gmra.mrb[18].mxu0 %vm323_vm2, %v2896_v7  ;;  %v3291_v7 = vrot.slane %v5342_v52, 6  ;;  %v5359_v52 = vld [vmem:[%s5436_s25 + $0xb8] sm:$0xff] }
  0xf2   : > { %4708 = vmatprep.mubr.msk.f32.mxu1 %vm323_vm2, %v6111_v36  ;;  %4959 = vmatprep.mubr.msk.f32.mxu0 %vm323_vm2, %v2898_v20  ;;  %v2904_v36 = vsel %vm2855_vm5, %v2901_v27, %v2903_v39  ;;  %v2906_v51 = vsel %vm2855_vm5, %v2903_v39, %v2905_v60  ;;  %v2908_v57 = vsel %vm2855_vm5, %v2905_v60, %v2907_v28  ;;  %v5343_v20 = vld [vmem:[%s5436_s25 + $0x38] sm:$0xff]  ;;  %v5345_v39 = vld [vmem:[%s5436_s25 + $0x48] sm:$0xff] }
  0xf3   : > { %v3293_v27 = vrot.slane %v5343_v20, 6  ;;  %v5347_v28 = vld [vmem:[%s5436_s25 + $0x58] sm:$0xff] }
  0xf4   : > { %4709 = vmatmul.mubr.msk.f32.gmra.mrb[2].mxu1 %vm323_vm2, %v6123_v34  ;;  %v2911_v34 = vrot.slane %v5760_v35, 5 }
  0xf5   : > { %4960 = vmatmul.mubr.msk.f32.gmra.mrb[20].mxu0 %vm323_vm2, %v2900_v37  ;;  %4711 = vmatprep.mubr.msk.f32.mxu1 %vm323_vm2, %v6129_v33  ;;  %v2913_v33 = vrot.slane %v5767_v44, 5  ;;  %v3294_v37 = vsel %vm3287_vm6, %v3291_v7, %v3293_v27 }
  0xf6   : > { %4962 = vmatprep.mubr.msk.f32.mxu0 %vm323_vm2, %v2902_v46  ;;  %v2912_v13 = vsel %vm2855_vm5, %v2909_v29, %v2911_v34  ;;  %v3297_v46 = vrot.slane %v5345_v39, 6 }
  0xf7   : > { %v2914_v35 = vsel %vm2855_vm5, %v2911_v34, %v2913_v33  ;;  %v5349_v34 = vld [vmem:[%s5436_s25 + $0x68] sm:$0xff] }
  0xf8   : > { %4712 = vmatmul.mubr.msk.f32.gmra.mrb[4].mxu1 %vm323_vm2, %v6139_v48  ;;  %v2915_v48 = vrot.slane %v5784_v59, 5 }
  0xf9   : > { %4963 = vmatmul.mubr.msk.f32.gmra.mrb[22].mxu0 %vm323_vm2, %v2904_v36  ;;  %4714 = vmatprep.mubr.msk.f32.mxu1 %vm323_vm2, %v6145_v5  ;;  %v2917_v5 = vrot.slane %v5791_v3, 5 }
  0xfa   : > { %4965 = vmatprep.mubr.msk.f32.mxu0 %vm323_vm2, %v2906_v51  ;;  %v2916_v44 = vsel %vm2855_vm5, %v2913_v33, %v2915_v48  ;;  %v3301_v51 = vrot.slane %v5347_v28, 6 }
  0xfb   : > { %v2918_v59 = vsel %vm2855_vm5, %v2915_v48, %v2917_v5  ;;  %v5351_v48 = vld [vmem:[%s5436_s25 + $0x78] sm:$0xff] }
  0xfc   : > { %4715 = vmatmul.mubr.msk.f32.gmra.mrb[6].mxu1 %vm323_vm2, %v6155_v54  ;;  %v2919_v54 = vrot.slane %v5946_v31, 5 }
  0xfd   : > { %4966 = vmatmul.mubr.msk.f32.gmra.mrb[24].mxu0 %vm323_vm2, %v2908_v57  ;;  %4717 = vmatprep.mubr.msk.f32.mxu1 %vm323_vm2, %v6161_v49  ;;  %v6838_v49 = vld [vmem:[#allocation16_spill] sm:$0xff] }
  0xfe   : > { %4968 = vmatprep.mubr.msk.f32.mxu0 %vm323_vm2, %v2910_v8  ;;  %v2921_v62 = vrot.slane %v6838_v49, 5  ;;  %v2920_v3 = vsel %vm2855_vm5, %v2917_v5, %v2919_v54  ;;  %v3305_v8 = vrot.slane %v5349_v34, 6 }
 0x100   : > { %4718 = vmatmul.mubr.msk.f32.gmra.mrb[8].mxu1 %vm323_vm2, %v6171_v19  ;;  %v2923_v19 = vrot.slane %v5968_v41, 5 }
 0x101   : > { %4969 = vmatmul.mubr.msk.f32.gmra.mrb[26].mxu0 %vm323_vm2, %v2912_v13  ;;  %4720 = vmatprep.mubr.msk.f32.mxu1 %vm323_vm2, %v6177_v30  ;;  %v2922_v30 = vsel %vm2855_vm5, %v2919_v54, %v2921_v62  ;;  %v5353_v54 = vld [vmem:[%s5436_s25 + $0x88] sm:$0xff] }
 0x102   : > { %4971 = vmatprep.mubr.msk.f32.mxu0 %vm323_vm2, %v2914_v35  ;;  %v2926_v18 = vsel %vm2855_vm5, %v2923_v19, %v2925_v63  ;;  %v3309_v35 = vrot.slane %v5351_v48, 6  ;;  %v5365_v48 = vld [vmem:[%s5436_s25 + $0xe8] sm:$0xff] }
 0x104   : > { %4721 = vmatmul.mubr.msk.f32.gmra.mrb[10].mxu1 %vm323_vm2, %v6190_v25  ;;  %v6839_v25 = vld [vmem:[#allocation7_spill] sm:$0xff] }
 0x105   : > { %4972 = vmatmul.mubr.msk.f32.gmra.mrb[28].mxu0 %vm323_vm2, %v2916_v44  ;;  %4723 = vmatprep.mubr.msk.f32.mxu1 %vm323_vm2, %v6196_v1  ;;  %v2924_v1 = vsel %vm2855_vm5, %v2921_v62, %v2923_v19  ;;  %v5355_v19 = vld [vmem:[%s5436_s25 + $0x98] sm:$0xff] }
 0x106   : > { %4974 = vmatprep.mubr.msk.f32.mxu0 %vm323_vm2, %v2918_v59  ;;  %v3313_v59 = vrot.slane %v5353_v54, 6  ;;  %v5366_v54 = vld [vmem:[%s5436_s25 + $0xf0] sm:$0xff] }
 0x108   : > { %4724 = vmatmul.mubr.msk.f32.gmra.mrb[12].mxu1 %vm323_vm2, %v6210_v50  ;;  %v2928_v50 = vsel %vm2855_vm5, %v2925_v63, %v2927_v55  ;;  %v5356_v63 = vld [vmem:[%s5436_s25 + $0xa0] sm:$0xff] }
 0x109   : > { %4975 = vmatmul.mubr.msk.f32.gmra.mrb[30].mxu0 %vm323_vm2, %v2920_v3  ;;  %4726 = vmatprep.mubr.msk.f32.mxu1 %vm323_vm2, %v6839_v25  ;;  %v3319_v25 = vrot.slane %v5356_v63, 6  ;;  %v5368_v63 = vld [vmem:[%s5436_s25 + $0x100] sm:$0xff] }
 0x10a   : > { %4977 = vmatprep.mubr.msk.f32.mxu0 %vm323_vm2, %v2922_v30  ;;  %v3317_v30 = vrot.slane %v5355_v19, 6 }
 0x10c   : > { %4727 = vmatmul.mubr.msk.f32.gmra.mrb[14].mxu1 %vm323_vm2, %v6232_v17  ;;  %v3292_v17 = vsel %vm3287_vm6, %v3289_v0, %v3291_v7  ;;  %v3320_v14 = vsel %vm3287_vm6, %v3317_v30, %v3319_v25  ;;  %v3323_v0 = vrot.slane %v5358_v42, 6  ;;  %v3325_v7 = vrot.slane %v5359_v52, 6 }
 0x10d   : > { %4978 = vmatmul.mubr.msk.f32.gmra.mrb[32].mxu0 %vm323_vm2, %v2924_v1  ;;  %4729 = vmatprep.mubr.msk.f32.mxu1 %vm323_vm2, %v6238_v16  ;;  %v5344_v16 = vld [vmem:[%s5436_s25 + $0x40] sm:$0xff]  ;;  %v1401_v1 = vrot.slane %v6838_v49, 2 }
 0x10e   : > { %4980 = vmatprep.mubr.msk.f32.mxu0 %vm323_vm2, %v2926_v18  ;;  %v3295_v24 = vrot.slane %v5344_v16, 6  ;;  %v1738_v16 = vrot.slane %v5359_v52, 3 }
 0x110   : > { %4730 = vmatmul.mubr.msk.f32.gmra.mrb[16].mxu1 %vm323_vm2, %v6250_v4  ;;  %v3296_v4 = vsel %vm3287_vm6, %v3293_v27, %v3295_v24  ;;  %v3298_v36 = vsel %vm3287_vm6, %v3295_v24, %v3297_v46  ;;  %v5360_v27 = vld [vmem:[%s5436_s25 + $0xc0] sm:$0xff]  ;;  %v3326_v24 = vsel %vm3287_vm6, %v3323_v0, %v3325_v7 }
 0x111   : > { %4981 = vmatmul.mubr.msk.f32.gmra.mrb[34].mxu0 %vm323_vm2, %v2928_v50  ;;  %4732 = vmatprep.mubr.msk.f32.mxu1 %vm323_vm2, %v6256_v56  ;;  %v5346_v56 = vld [vmem:[%s5436_s25 + $0x50] sm:$0xff] }
 0x112   : > { %4985 = vmatprep.mubr.msk.f32.mxu0 %vm323_vm2, %v3290_v53  ;;  %v3299_v60 = vrot.slane %v5346_v56, 6  ;;  %v6841_v53 = vrot.slane %v5607_v40, 3  ;;  %v1740_v40 = vrot.slane %v5360_v27, 3 }
 0x114   : > { %4733 = vmatmul.mubr.msk.f32.gmra.mrb[18].mxu1 %vm323_vm2, %v6268_v61  ;;  %v3300_v61 = vsel %vm3287_vm6, %v3297_v46, %v3299_v60  ;;  %v3302_v57 = vsel %vm3287_vm6, %v3299_v60, %v3301_v51  ;;  %v5362_v60 = vld [vmem:[%s5436_s25 + $0xd0] sm:$0xff] }
 0x115   : > { %4986 = vmatmul.mubr.msk.f32.vlgmr.msra.gmra.mrb[0].mxu0 %vm323_vm2, %v3292_v17  ;;  %4735 = vmatprep.mubr.msk.f32.mxu1 %vm323_vm2, %v6276_v26  ;;  %v5348_v26 = vld [vmem:[%s5436_s25 + $0x60] sm:$0xff]  ;;  %v3327_v17 = vrot.slane %v5360_v27, 6 }
 0x116   : > { %4988 = vmatprep.mubr.msk.f32.mxu0 %vm323_vm2, %v3294_v37  ;;  %v3303_v29 = vrot.slane %v5348_v26, 6  ;;  %v5361_v37 = vld [vmem:[%s5436_s25 + $0xc8] sm:$0xff] }
 0x117   : > { %v3329_v39 = vrot.slane %v5361_v37, 6  ;;  %v1742_v28 = vrot.slane %v5361_v37, 3  ;;  %v3353_v37 = vrot.slane %v6838_v49, 6 }
 0x118   : > { %4736 = vmatmul.mubr.msk.f32.gmra.mrb[20].mxu1 %vm323_vm2, %v6288_v43  ;;  %v3304_v43 = vsel %vm3287_vm6, %v3301_v51, %v3303_v29  ;;  %v3306_v13 = vsel %vm3287_vm6, %v3303_v29, %v3305_v8  ;;  %v1741_v29 = vsel %vm1696_vm3, %v1738_v16, %v1740_v40 }
 0x119   : > { %4989 = vmatmul.mubr.msk.f32.gmra.mrb[2].mxu0 %vm323_vm2, %v3296_v4  ;;  %4738 = vmatprep.mubr.msk.f32.mxu1 %vm323_vm2, %v6294_v47  ;;  %v5350_v47 = vld [vmem:[%s5436_s25 + $0x70] sm:$0xff]  ;;  %v3328_v4 = vsel %vm3287_vm6, %v3325_v7, %v3327_v17  ;;  %v3330_v51 = vsel %vm3287_vm6, %v3327_v17, %v3329_v39  ;;  %v5371_v7 = vld [vmem:[%s5436_s25 + $0x118] sm:$0xff]  ;;  %v3351_v17 = vrot.slane %v5946_v31, 6 }
 0x11a   : > { %4991 = vmatprep.mubr.msk.f32.mxu0 %vm323_vm2, %v3298_v36  ;;  %v3307_v33 = vrot.slane %v5350_v47, 6  ;;  %v3331_v36 = vrot.slane %v5362_v60, 6 }
 0x11c   : > { %4739 = vmatmul.mubr.msk.f32.gmra.mrb[22].mxu1 %vm323_vm2, %v6306_v22  ;;  %v3308_v22 = vsel %vm3287_vm6, %v3305_v8, %v3307_v33  ;;  %v3310_v44 = vsel %vm3287_vm6, %v3307_v33, %v3309_v35  ;;  %v3332_v34 = vsel %vm3287_vm6, %v3329_v39, %v3331_v36  ;;  %v1743_v8 = vsel %vm1696_vm3, %v1740_v40, %v1742_v28 }
 0x11d   : > { %4992 = vmatmul.mubr.msk.f32.gmra.mrb[4].mxu0 %vm323_vm2, %v3300_v61  ;;  %4741 = vmatprep.mubr.msk.f32.mxu1 %vm323_vm2, %v6312_v58  ;;  %v5352_v58 = vld [vmem:[%s5436_s25 + $0x80] sm:$0xff]  ;;  %v5363_v61 = vld [vmem:[%s5436_s25 + $0xd8] sm:$0xff] }
 0x11e   : > { %4994 = vmatprep.mubr.msk.f32.mxu0 %vm323_vm2, %v3302_v57  ;;  %v3311_v5 = vrot.slane %v5352_v58, 6  ;;  %v3333_v26 = vrot.slane %v5363_v61, 6  ;;  %v1744_v57 = vrot.slane %v5362_v60, 3  ;;  %v1746_v33 = vrot.slane %v5363_v61, 3 }
 0x11f   : > { %v1766_v60 = vrot.slane %v6838_v49, 3 }
 0x120   : > { %4742 = vmatmul.mubr.msk.f32.gmra.mrb[24].mxu1 %vm323_vm2, %v6324_v12  ;;  %v3312_v12 = vsel %vm3287_vm6, %v3309_v35, %v3311_v5  ;;  %v3314_v3 = vsel %vm3287_vm6, %v3311_v5, %v3313_v59  ;;  %v3337_v35 = vrot.slane %v5365_v48, 6 }
 0x121   : > { %4995 = vmatmul.mubr.msk.f32.gmra.mrb[6].mxu0 %vm323_vm2, %v3304_v43  ;;  %4744 = vmatprep.mubr.msk.f32.mxu1 %vm323_vm2, %v6330_v9  ;;  %v5354_v9 = vld [vmem:[%s5436_s25 + $0x90] sm:$0xff]  ;;  %v5364_v43 = vld [vmem:[%s5436_s25 + $0xe0] sm:$0xff] }
 0x122   : > { %4997 = vmatprep.mubr.msk.f32.mxu0 %vm323_vm2, %v3306_v13  ;;  %v3315_v62 = vrot.slane %v5354_v9, 6  ;;  %v3335_v47 = vrot.slane %v5364_v43, 6  ;;  %v3334_v13 = vsel %vm3287_vm6, %v3331_v36, %v3333_v26  ;;  %v1748_v58 = vrot.slane %v5364_v43, 3 }
 0x123   : > { %v3354_v36 = vsel %vm3287_vm6, %v3351_v17, %v3353_v37 }
 0x124   : > { %4745 = vmatmul.mubr.msk.f32.gmra.mrb[26].mxu1 %vm323_vm2, %v6342_v6  ;;  %v1399_v6 = vrot.slane %v5946_v31, 2  ;;  %v3318_v55 = vsel %vm3287_vm6, %v3315_v62, %v3317_v30  ;;  %v3336_v5 = vsel %vm3287_vm6, %v3333_v26, %v3335_v47  ;;  %v3338_v9 = vsel %vm3287_vm6, %v3335_v47, %v3337_v35 }
 0x125   : > { %4998 = vmatmul.mubr.msk.f32.gmra.mrb[8].mxu0 %vm323_vm2, %v3308_v22  ;;  %4747 = vmatprep.mubr.msk.f32.mxu1 %vm323_vm2, %v6348_v23  ;;  %v3316_v23 = vsel %vm3287_vm6, %v3313_v59, %v3315_v62  ;;  %v1745_v22 = vsel %vm1696_vm3, %v1742_v28, %v1744_v57  ;;  %v3339_v59 = vrot.slane %v5366_v54, 6  ;;  %v5367_v62 = vld [vmem:[%s5436_s25 + $0xf8] sm:$0xff]  ;;  %v1749_v19 = vsel %vm1696_vm3, %v1746_v33, %v1748_v58 }
 0x126   : > { %5000 = vmatprep.mubr.msk.f32.mxu0 %vm323_vm2, %v3310_v44  ;;  %v1402_v15 = vsel %vm967_vm4, %v1399_v6, %v1401_v1  ;;  %v1747_v44 = vsel %vm1696_vm3, %v1744_v57, %v1746_v33  ;;  %v1752_v30 = vrot.slane %v5366_v54, 3  ;;  %v3357_v28 = vrot.slane %v6183_v45, 6 }
 0x127   : > { %v3359_v26 = vrot.slane %v6840_v32, 6 }
 0x128   : > { %4748 = vmatmul.mubr.msk.f32.gmra.mrb[28].mxu1 %vm323_vm2, %v6360_v21  ;;  %v5357_v21 = vld [vmem:[%s5436_s25 + $0xa8] sm:$0xff] }
 0x129   : > { %5001 = vmatmul.mubr.msk.f32.gmra.mrb[10].mxu0 %vm323_vm2, %v3312_v12  ;;  %4750 = vmatprep.mubr.msk.f32.mxu1 %vm323_vm2, %v6366_v2  ;;  %v3321_v18 = vrot.slane %v5357_v21, 6  ;;  %v1400_v2 = vsel %vm967_vm4, %v6370_v11, %v1399_v6  ;;  %v1734_v50 = vrot.slane %v5357_v21, 3  ;;  %v1736_v11 = vrot.slane %v5358_v42, 3  ;;  %v5369_v21 = vld [vmem:[%s5436_s25 + $0x108] sm:$0xff] }
 0x12a   : > { %5003 = vmatprep.mubr.msk.f32.mxu0 %vm323_vm2, %v3314_v3  ;;  %v1750_v12 = vrot.slane %v5365_v48, 3  ;;  %v3341_v3 = vrot.slane %v5367_v62, 6  ;;  %v3340_v6 = vsel %vm3287_vm6, %v3337_v35, %v3339_v59 }
 0x12b   : > { %v1735_v20 = vsel %vm1696_vm3, %v6841_v53, %v1734_v50  ;;  %v1737_v46 = vsel %vm1696_vm3, %v1734_v50, %v1736_v11  ;;  %v1739_v56 = vsel %vm1696_vm3, %v1736_v11, %v1738_v16  ;;  %v3349_v11 = vrot.slane %v5371_v7, 6 }
 0x12c   : > { %4751 = vmatmul.mubr.msk.f32.gmra.mrb[30].mxu1 %vm323_vm2, %v6380_v10  ;;  %v3322_v10 = vsel %vm3287_vm6, %v3319_v25, %v3321_v18  ;;  %v3343_v25 = vrot.slane %v5368_v63, 6  ;;  %v1762_v16 = vrot.slane %v5371_v7, 3 }
 0x12d   : > { %5004 = vmatmul.mubr.msk.f32.gmra.mrb[12].mxu0 %vm323_vm2, %v3316_v23  ;;  %4753 = vmatprep.mubr.msk.f32.mxu1 %vm323_vm2, %v6386_v38  ;;  %v3324_v38 = vsel %vm3287_vm6, %v3321_v18, %v3323_v0  ;;  %v1751_v23 = vsel %vm1696_vm3, %v1748_v58, %v1750_v12  ;;  %v3345_v18 = vrot.slane %v5369_v21, 6  ;;  %v5370_v0 = vld [vmem:[%s5436_s25 + $0x110] sm:$0xff]  ;;  %v3352_v40 = vsel %vm3287_vm6, %v3349_v11, %v3351_v17 }
 0x12e   : > { %5006 = vmatprep.mubr.msk.f32.mxu0 %vm323_vm2, %v3318_v55  ;;  %v3342_v55 = vsel %vm3287_vm6, %v3339_v59, %v3341_v3  ;;  %v3347_v50 = vrot.slane %v5370_v0, 6  ;;  %v1760_v53 = vrot.slane %v5370_v0, 3 }
 0x12f   : > { %v3346_v52 = vsel %vm3287_vm6, %v3343_v25, %v3345_v18 }
 0x130   : > { %4754 = vmatmul.mubr.msk.f32.gmra.mrb[32].mxu1 %vm323_vm2, %v1400_v2  ;;  %v1753_v2 = vsel %vm1696_vm3, %v1750_v12, %v1752_v30 }
 0x131   : > { %5007 = vmatmul.mubr.msk.f32.gmra.mrb[14].mxu0 %vm323_vm2, %v3320_v14  ;;  %4756 = vmatprep.mubr.msk.f32.mxu1 %vm323_vm2, %v1402_v15  ;;  %v1756_v14 = vrot.slane %v5368_v63, 3  ;;  %v3344_v15 = vsel %vm3287_vm6, %v3341_v3, %v3343_v25  ;;  %v6694_v3 = vld [vmem:[%s6782_s2] ss:$0 sm:$0xff] }
 0x132   : > { %5009 = vmatprep.mubr.msk.f32.mxu0 %vm323_vm2, %v3322_v10  ;;  %v1758_v10 = vrot.slane %v5369_v21, 3 }
 0x134   : > { %4757 = vmatmul.mubr.msk.f32.gmra.mrb[34].mxu1 %vm323_vm2, %v1401_v1  ;;  %v1754_v1 = vrot.slane %v5367_v62, 3  ;;  %v1759_v27 = vsel %vm1696_vm3, %v1756_v14, %v1758_v10  ;;  %v1761_v39 = vsel %vm1696_vm3, %v1758_v10, %v1760_v53 }
 0x135   : > { %5010 = vmatmul.mubr.msk.f32.gmra.mrb[16].mxu0 %vm323_vm2, %v3324_v38  ;;  %4788 = vmatprep.mubr.msk.f32.mxu1 %vm323_vm2, %v1735_v20  ;;  %v3348_v20 = vsel %vm3287_vm6, %v3345_v18, %v3347_v50 }
 0x136   : > { %5012 = vmatprep.mubr.msk.f32.mxu0 %vm323_vm2, %v3326_v24  ;;  %v1755_v42 = vsel %vm1696_vm3, %v1752_v30, %v1754_v1  ;;  %v1757_v38 = vsel %vm1696_vm3, %v1754_v1, %v1756_v14  ;;  %v3350_v24 = vsel %vm3287_vm6, %v3347_v50, %v3349_v11 }
 0x138   : > { %4789 = vmatmul.mubr.msk.f32.vlgmr.msra.gmra.mrb[18].mxu1 %vm323_vm2, %v1737_v46  ;;  %v1764_v46 = vrot.slane %v5946_v31, 3 }
 0x139   : > { %5013 = vmatmul.mubr.msk.f32.gmra.mrb[18].mxu0 %vm323_vm2, %v3328_v4  ;;  %4791 = vmatprep.mubr.msk.f32.mxu1 %vm323_vm2, %v1739_v56  ;;  %v1763_v4 = vsel %vm1696_vm3, %v1760_v53, %v1762_v16  ;;  %v3355_v56 = vrot.slane %v5968_v41, 6 }
 0x13a   : > { %5015 = vmatprep.mubr.msk.f32.mxu0 %vm323_vm2, %v3330_v51  ;;  %v1765_v31 = vsel %vm1696_vm3, %v1762_v16, %v1764_v46  ;;  %v1768_v51 = vrot.slane %v5968_v41, 3  ;;  %v1767_v49 = vsel %vm1696_vm3, %v1764_v46, %v1766_v60  ;;  %v3360_v41 = vsel %vm3287_vm6, %v3357_v28, %v3359_v26 }
 0x13b   : > { %v3356_v61 = vsel %vm3287_vm6, %v3353_v37, %v3355_v56  ;;  %v3358_v45 = vsel %vm3287_vm6, %v3355_v56, %v3357_v28 }
 0x13c   : > { %4792 = vmatmul.mubr.msk.f32.gmra.mrb[20].mxu1 %vm323_vm2, %v1741_v29  ;;  %v1769_v29 = vsel %vm1696_vm3, %v1766_v60, %v1768_v51 }
 0x13d   : > { %5016 = vmatmul.mubr.msk.f32.gmra.mrb[20].mxu0 %vm323_vm2, %v3332_v34  ;;  %4794 = vmatprep.mubr.msk.f32.mxu1 %vm323_vm2, %v1743_v8 }
 0x13e   : > { %5018 = vmatprep.mubr.msk.f32.mxu0 %vm323_vm2, %v3334_v13 }
 0x140   : > { %4795 = vmatmul.mubr.msk.f32.gmra.mrb[22].mxu1 %vm323_vm2, %v1745_v22 }
 0x141   : > { %5019 = vmatmul.mubr.msk.f32.gmra.mrb[22].mxu0 %vm323_vm2, %v3336_v5  ;;  %4797 = vmatprep.mubr.msk.f32.mxu1 %vm323_vm2, %v1747_v44 }
 0x142   : > { %5021 = vmatprep.mubr.msk.f32.mxu0 %vm323_vm2, %v3338_v9 }
 0x144   : > { %4798 = vmatmul.mubr.msk.f32.gmra.mrb[24].mxu1 %vm323_vm2, %v1749_v19 }
 0x145   : > { %5022 = vmatmul.mubr.msk.f32.gmra.mrb[24].mxu0 %vm323_vm2, %v3340_v6  ;;  %4800 = vmatprep.mubr.msk.f32.mxu1 %vm323_vm2, %v1751_v23 }
 0x146   : > { %5024 = vmatprep.mubr.msk.f32.mxu0 %vm323_vm2, %v3342_v55 }
 0x148   : > { %4801 = vmatmul.mubr.msk.f32.gmra.mrb[26].mxu1 %vm323_vm2, %v1753_v2 }
 0x149   : > { %5025 = vmatmul.mubr.msk.f32.gmra.mrb[26].mxu0 %vm323_vm2, %v3344_v15  ;;  %4803 = vmatprep.mubr.msk.f32.mxu1 %vm323_vm2, %v1755_v42 }
 0x14a   : > { %5027 = vmatprep.mubr.msk.f32.mxu0 %vm323_vm2, %v3346_v52 }
 0x14c   : > { %4804 = vmatmul.mubr.msk.f32.gmra.mrb[28].mxu1 %vm323_vm2, %v1757_v38 }
 0x14d   : > { %5028 = vmatmul.mubr.msk.f32.gmra.mrb[28].mxu0 %vm323_vm2, %v3348_v20  ;;  %4806 = vmatprep.mubr.msk.f32.mxu1 %vm323_vm2, %v1759_v27 }
 0x14e   : > { %5030 = vmatprep.mubr.msk.f32.mxu0 %vm323_vm2, %v3350_v24 }
 0x150   : > { %4807 = vmatmul.mubr.msk.f32.gmra.mrb[30].mxu1 %vm323_vm2, %v1761_v39 }
 0x151   : > { %5031 = vmatmul.mubr.msk.f32.gmra.mrb[30].mxu0 %vm323_vm2, %v3352_v40  ;;  %4809 = vmatprep.mubr.msk.f32.mxu1 %vm323_vm2, %v1763_v4 }
 0x152   : > { %5033 = vmatprep.mubr.msk.f32.mxu0 %vm323_vm2, %v3354_v36 }
 0x154   : > { %4810 = vmatmul.mubr.msk.f32.gmra.mrb[32].mxu1 %vm323_vm2, %v1765_v31 }
 0x155   : > { %5034 = vmatmul.mubr.msk.f32.gmra.mrb[32].mxu0 %vm323_vm2, %v3356_v61  ;;  %4812 = vmatprep.mubr.msk.f32.mxu1 %vm323_vm2, %v1767_v49 }
 0x156   : > { %5036 = vmatprep.mubr.msk.f32.mxu0 %vm323_vm2, %v3358_v45 }
 0x158   : > { %4813 = vmatmul.mubr.msk.f32.gmra.mrb[34].mxu1 %vm323_vm2, %v1769_v29 }
 0x159   : > { %5037 = vmatmul.mubr.msk.f32.gmra.mrb[34].mxu0 %vm323_vm2, %v3360_v41 }
 0x1c3   : > { %v4707_v57 = vpop.f32.mrb[0].mxu1 }
 0x1c4   : > { %v1478_v32 = vpop.f32.mrb[1].mxu1 }
 0x1c7   : > { %v4710_v34 = vpop.f32.mrb[2].mxu1 }
 0x1c8   : > { %v1488_v8 = vpop.f32.mrb[3].mxu1 }
 0x1cb   : > { %v4713_v43 = vpop.f32.mrb[4].mxu1 }
 0x1cc   : > { %v1498_v47 = vpop.f32.mrb[5].mxu1 }
 0x1cf   : > { %v4716_v33 = vpop.f32.mrb[6].mxu1 }
 0x1d0   : > { %v1508_v13 = vpop.f32.mrb[7].mxu1 }
 0x1d3   : > { %v4719_v48 = vpop.f32.mrb[8].mxu1 }
 0x1d4   : > { %v1518_v35 = vpop.f32.mrb[9].mxu1 }
 0x1d7   : > { %v4722_v22 = vpop.f32.mrb[10].mxu1 }
 0x1d8   : > { %v1528_v58 = vpop.f32.mrb[11].mxu1 }
 0x1db   : > { %v4725_v5 = vpop.f32.mrb[12].mxu1 }
 0x1dc   : > { %v1538_v44 = vpop.f32.mrb[13].mxu1 }
 0x1df   : > { %v6682_v54 = vpop.f32.mrb[14].mxu1 }
 0x1e0   : > { %v6684_v59 = vpop.f32.mrb[15].mxu1 }
 0x1e3   : > { %v6686_v12 = vpop.f32.mrb[16].mxu1 }
 0x1e4   : > { %v6688_v9 = vpop.f32.mrb[17].mxu1 }
 0x1e8   : > { %v4987_v62 = vpop.f32.mrb[0].mxu0 }
 0x1e9   : > { %v5041_v19 = vadd.f32 %v4987_v62, %v4707_v57  ;;  %v3502_v30 = vpop.f32.mrb[1].mxu0 }
 0x1ea   : > { %v5042_v6 = vadd.f32 %v3502_v30, %v1478_v32 }
 0x1eb   : > { %v3725_v23 = vadd.f32 %v5041_v19, %v6694_v3 }
 0x1ec   : > { %v3724_v63 = vadd.f32 %v5042_v6, %v6694_v3  ;;  %v4990_v25 = vpop.f32.mrb[2].mxu0 }
 0x1ed   : > { %3761 = vst [vmem:[%s6699_s18 + $0x8] sm:$0xff] %v3725_v23  ;;  %v5043_v1 = vadd.f32 %v4990_v25, %v4710_v34  ;;  %v3512_v55 = vpop.f32.mrb[3].mxu0 }
 0x1ee   : > { %3760 = vst [vmem:[%s6699_s18] sm:$0xff] %v3724_v63  ;;  %v5044_v21 = vadd.f32 %v3512_v55, %v1488_v8 }
 0x1ef   : > { %v3727_v18 = vadd.f32 %v5043_v1, %v6694_v3 }
 0x1f0   : > { %v3726_v2 = vadd.f32 %v5044_v21, %v6694_v3  ;;  %v4993_v14 = vpop.f32.mrb[4].mxu0 }
 0x1f1   : > { %3763 = vst [vmem:[%s6699_s18 + $0x18] sm:$0xff] %v3727_v18  ;;  %v5045_v15 = vadd.f32 %v4993_v14, %v4713_v43  ;;  %v3522_v42 = vpop.f32.mrb[5].mxu0 }
 0x1f2   : > { %3762 = vst [vmem:[%s6699_s18 + $0x10] sm:$0xff] %v3726_v2  ;;  %v5046_v0 = vadd.f32 %v3522_v42, %v1498_v47 }
 0x1f3   : > { %v3729_v50 = vadd.f32 %v5045_v15, %v6694_v3 }
 0x1f4   : > { %v3728_v10 = vadd.f32 %v5046_v0, %v6694_v3  ;;  %v4996_v52 = vpop.f32.mrb[6].mxu0 }
 0x1f5   : > { %3765 = vst [vmem:[%s6699_s18 + $0x28] sm:$0xff] %v3729_v50  ;;  %v5047_v7 = vadd.f32 %v4996_v52, %v4716_v33  ;;  %v3532_v11 = vpop.f32.mrb[7].mxu0 }
 0x1f6   : > { %3764 = vst [vmem:[%s6699_s18 + $0x20] sm:$0xff] %v3728_v10  ;;  %v5048_v38 = vadd.f32 %v3532_v11, %v1508_v13 }
 0x1f7   : > { %v3731_v53 = vadd.f32 %v5047_v7, %v6694_v3 }
 0x1f8   : > { %v3730_v20 = vadd.f32 %v5048_v38, %v6694_v3  ;;  %v4999_v27 = vpop.f32.mrb[8].mxu0 }
 0x1f9   : > { %3767 = vst [vmem:[%s6699_s18 + $0x38] sm:$0xff] %v3731_v53  ;;  %v5049_v17 = vadd.f32 %v4999_v27, %v4719_v48  ;;  %v3542_v16 = vpop.f32.mrb[9].mxu0 }
 0x1fa   : > { %3766 = vst [vmem:[%s6699_s18 + $0x30] sm:$0xff] %v3730_v20  ;;  %v5050_v24 = vadd.f32 %v3542_v16, %v1518_v35 }
 0x1fb   : > { %v3733_v37 = vadd.f32 %v5049_v17, %v6694_v3 }
 0x1fc   : > { %v3732_v39 = vadd.f32 %v5050_v24, %v6694_v3  ;;  %v5002_v46 = vpop.f32.mrb[10].mxu0 }
 0x1fd   : > { %3769 = vst [vmem:[%s6699_s18 + $0x48] sm:$0xff] %v3733_v37  ;;  %v5051_v40 = vadd.f32 %v5002_v46, %v4722_v22  ;;  %v3552_v4 = vpop.f32.mrb[11].mxu0 }
 0x1fe   : > { %3768 = vst [vmem:[%s6699_s18 + $0x40] sm:$0xff] %v3732_v39  ;;  %v5052_v56 = vadd.f32 %v3552_v4, %v1528_v58 }
 0x1ff   : > { %v3735_v60 = vadd.f32 %v5051_v40, %v6694_v3 }
 0x200   : > { %v3734_v36 = vadd.f32 %v5052_v56, %v6694_v3  ;;  %v5005_v28 = vpop.f32.mrb[12].mxu0 }
 0x201   : > { %3771 = vst [vmem:[%s6699_s18 + $0x58] sm:$0xff] %v3735_v60  ;;  %v5053_v31 = vadd.f32 %v5005_v28, %v4725_v5  ;;  %v3562_v51 = vpop.f32.mrb[13].mxu0 }
 0x202   : > { %3770 = vst [vmem:[%s6699_s18 + $0x50] sm:$0xff] %v3734_v36  ;;  %v5054_v61 = vadd.f32 %v3562_v51, %v1538_v44 }
 0x203   : > { %v3737_v49 = vadd.f32 %v5053_v31, %v6694_v3 }
 0x204   : > { %v3736_v26 = vadd.f32 %v5054_v61, %v6694_v3  ;;  %v5008_v45 = vpop.f32.mrb[14].mxu0 }
 0x205   : > { %3773 = vst [vmem:[%s6699_s18 + $0x68] sm:$0xff] %v3737_v49  ;;  %v5055_v29 = vadd.f32 %v5008_v45, %v6682_v54  ;;  %v3572_v41 = vpop.f32.mrb[15].mxu0 }
 0x206   : > { %3772 = vst [vmem:[%s6699_s18 + $0x60] sm:$0xff] %v3736_v26  ;;  %v5056_v57 = vadd.f32 %v3572_v41, %v6684_v59 }
 0x207   : > { %v3739_v32 = vadd.f32 %v5055_v29, %v6694_v3 }
 0x208   : > { %v3738_v34 = vadd.f32 %v5056_v57, %v6694_v3  ;;  %v5011_v8 = vpop.f32.mrb[16].mxu0 }
 0x209   : > { %3775 = vst [vmem:[%s6699_s18 + $0x78] sm:$0xff] %v3739_v32  ;;  %v5057_v43 = vadd.f32 %v5011_v8, %v6686_v12  ;;  %v3582_v47 = vpop.f32.mrb[17].mxu0 }
 0x20a   : > { %3774 = vst [vmem:[%s6699_s18 + $0x70] sm:$0xff] %v3738_v34  ;;  %v5058_v33 = vadd.f32 %v3582_v47, %v6688_v9 }
 0x20b   : > { %v3741_v13 = vadd.f32 %v5057_v43, %v6694_v3  ;;  %v4790_v48 = vpop.f32.mrb[18].mxu1 }
 0x20c   : > { %v3740_v35 = vadd.f32 %v5058_v33, %v6694_v3  ;;  %v5014_v22 = vpop.f32.mrb[18].mxu0  ;;  %v2001_v58 = vpop.f32.mrb[19].mxu1 }
 0x20d   : > { %3777 = vst [vmem:[%s6699_s18 + $0x88] sm:$0xff] %v3741_v13  ;;  %v5059_v5 = vadd.f32 %v5014_v22, %v4790_v48  ;;  %v3592_v44 = vpop.f32.mrb[19].mxu0 }
 0x20e   : > { %3776 = vst [vmem:[%s6699_s18 + $0x80] sm:$0xff] %v3740_v35  ;;  %v5060_v54 = vadd.f32 %v3592_v44, %v2001_v58 }
 0x20f   : > { %v3743_v59 = vadd.f32 %v5059_v5, %v6694_v3  ;;  %v4793_v12 = vpop.f32.mrb[20].mxu1 }
 0x210   : > { %v3742_v9 = vadd.f32 %v5060_v54, %v6694_v3  ;;  %v5017_v62 = vpop.f32.mrb[20].mxu0  ;;  %v2011_v19 = vpop.f32.mrb[21].mxu1 }
 0x211   : > { %3779 = vst [vmem:[%s6699_s18 + $0x98] sm:$0xff] %v3743_v59  ;;  %v5061_v30 = vadd.f32 %v5017_v62, %v4793_v12  ;;  %v3602_v6 = vpop.f32.mrb[21].mxu0 }
 0x212   : > { %3778 = vst [vmem:[%s6699_s18 + $0x90] sm:$0xff] %v3742_v9  ;;  %v5062_v23 = vadd.f32 %v3602_v6, %v2011_v19 }
 0x213   : > { %v3745_v63 = vadd.f32 %v5061_v30, %v6694_v3  ;;  %v4796_v25 = vpop.f32.mrb[22].mxu1 }
 0x214   : > { %v3744_v1 = vadd.f32 %v5062_v23, %v6694_v3  ;;  %v5020_v55 = vpop.f32.mrb[22].mxu0  ;;  %v2021_v21 = vpop.f32.mrb[23].mxu1 }
 0x215   : > { %3781 = vst [vmem:[%s6699_s18 + $0xa8] sm:$0xff] %v3745_v63  ;;  %v5063_v18 = vadd.f32 %v5020_v55, %v4796_v25  ;;  %v3612_v2 = vpop.f32.mrb[23].mxu0 }
 0x216   : > { %3780 = vst [vmem:[%s6699_s18 + $0xa0] sm:$0xff] %v3744_v1  ;;  %v5064_v14 = vadd.f32 %v3612_v2, %v2021_v21 }
 0x217   : > { %v3747_v15 = vadd.f32 %v5063_v18, %v6694_v3  ;;  %v4799_v42 = vpop.f32.mrb[24].mxu1 }
 0x218   : > { %v3746_v0 = vadd.f32 %v5064_v14, %v6694_v3  ;;  %v5023_v50 = vpop.f32.mrb[24].mxu0  ;;  %v2031_v10 = vpop.f32.mrb[25].mxu1 }
 0x219   : > { %3783 = vst [vmem:[%s6699_s18 + $0xb8] sm:$0xff] %v3747_v15  ;;  %v5065_v52 = vadd.f32 %v5023_v50, %v4799_v42  ;;  %v3622_v7 = vpop.f32.mrb[25].mxu0 }
 0x21a   : > { %3782 = vst [vmem:[%s6699_s18 + $0xb0] sm:$0xff] %v3746_v0  ;;  %v5066_v11 = vadd.f32 %v3622_v7, %v2031_v10 }
 0x21b   : > { %v3749_v38 = vadd.f32 %v5065_v52, %v6694_v3  ;;  %v4802_v53 = vpop.f32.mrb[26].mxu1 }
 0x21c   : > { %v3748_v20 = vadd.f32 %v5066_v11, %v6694_v3  ;;  %v5026_v27 = vpop.f32.mrb[26].mxu0  ;;  %v2041_v17 = vpop.f32.mrb[27].mxu1 }
 0x21d   : > { %3785 = vst [vmem:[%s6699_s18 + $0xc8] sm:$0xff] %v3749_v38  ;;  %v5067_v16 = vadd.f32 %v5026_v27, %v4802_v53  ;;  %v3632_v24 = vpop.f32.mrb[27].mxu0 }
 0x21e   : > { %3784 = vst [vmem:[%s6699_s18 + $0xc0] sm:$0xff] %v3748_v20  ;;  %v5068_v37 = vadd.f32 %v3632_v24, %v2041_v17 }
 0x21f   : > { %v3751_v39 = vadd.f32 %v5067_v16, %v6694_v3  ;;  %v4805_v46 = vpop.f32.mrb[28].mxu1 }
 0x220   : > { %v3750_v40 = vadd.f32 %v5068_v37, %v6694_v3  ;;  %v5029_v4 = vpop.f32.mrb[28].mxu0  ;;  %v2051_v56 = vpop.f32.mrb[29].mxu1 }
 0x221   : > { %3787 = vst [vmem:[%s6699_s18 + $0xd8] sm:$0xff] %v3751_v39  ;;  %v5069_v60 = vadd.f32 %v5029_v4, %v4805_v46  ;;  %v3642_v36 = vpop.f32.mrb[29].mxu0 }
 0x222   : > { %3786 = vst [vmem:[%s6699_s18 + $0xd0] sm:$0xff] %v3750_v40  ;;  %v5070_v28 = vadd.f32 %v3642_v36, %v2051_v56 }
 0x223   : > { %v3753_v31 = vadd.f32 %v5069_v60, %v6694_v3  ;;  %v4808_v51 = vpop.f32.mrb[30].mxu1 }
 0x224   : > { %v3752_v61 = vadd.f32 %v5070_v28, %v6694_v3  ;;  %v5032_v49 = vpop.f32.mrb[30].mxu0  ;;  %v2061_v26 = vpop.f32.mrb[31].mxu1 }
 0x225   : > { %3789 = vst [vmem:[%s6699_s18 + $0xe8] sm:$0xff] %v3753_v31  ;;  %v5071_v45 = vadd.f32 %v5032_v49, %v4808_v51  ;;  %v3652_v29 = vpop.f32.mrb[31].mxu0 }
 0x226   : > { %3788 = vst [vmem:[%s6699_s18 + $0xe0] sm:$0xff] %v3752_v61  ;;  %v5072_v41 = vadd.f32 %v3652_v29, %v2061_v26 }
 0x227   : > { %v3755_v57 = vadd.f32 %v5071_v45, %v6694_v3  ;;  %v4811_v32 = vpop.f32.mrb[32].mxu1 }
 0x228   : > { %v3754_v34 = vadd.f32 %v5072_v41, %v6694_v3  ;;  %v5035_v8 = vpop.f32.mrb[32].mxu0  ;;  %v2071_v43 = vpop.f32.mrb[33].mxu1 }
 0x229   : > { %3791 = vst [vmem:[%s6699_s18 + $0xf8] sm:$0xff] %v3755_v57  ;;  %v5073_v47 = vadd.f32 %v5035_v8, %v4811_v32  ;;  %v3662_v33 = vpop.f32.mrb[33].mxu0 }
 0x22a   : > { %3790 = vst [vmem:[%s6699_s18 + $0xf0] sm:$0xff] %v3754_v34  ;;  %v5074_v13 = vadd.f32 %v3662_v33, %v2071_v43 }
 0x22b   : > { %v3757_v48 = vadd.f32 %v5073_v47, %v6694_v3  ;;  %v4814_v35 = vpop.f32.mrb[34].mxu1 }
 0x22c   : > { %v3756_v22 = vadd.f32 %v5074_v13, %v6694_v3  ;;  %v5038_v58 = vpop.f32.mrb[34].mxu0  ;;  %v2081_v5 = vpop.f32.mrb[35].mxu1 }
 0x22d   : > { %3793 = vst [vmem:[%s6699_s18 + $0x108] sm:$0xff] %v3757_v48  ;;  %v5075_v44 = vadd.f32 %v5038_v58, %v4814_v35  ;;  %v3672_v54 = vpop.f32.mrb[35].mxu0 }
 0x22e   : > { %3792 = vst [vmem:[%s6699_s18 + $0x100] sm:$0xff] %v3756_v22  ;;  %v5076_v59 = vadd.f32 %v3672_v54, %v2081_v5 }
 0x22f   : > { %v3759_v12 = vadd.f32 %v5075_v44, %v6694_v3 }
 0x230   : > { %v3758_v9 = vadd.f32 %v5076_v59, %v6694_v3 }
 0x231   : > { %3795 = vst [vmem:[%s6699_s18 + $0x118] sm:$0x3f] %v3759_v12 }
 0x232   : > { %3794 = vst [vmem:[%s6699_s18 + $0x110] sm:$0xff] %v3758_v9 }
 0x233 PF: > { %s13_s12 = sadd.s32 1, %s5378_s12  }
 0x234   : > { %p10_p4 = scmp.ge.s32.totalorder %s13_s12, 4  }
 0x236   :  { %12 = sbr.rel (!%p10_p4) target bundleno = 1 (0x1), region = 70 }

// kernel: mul.63
= control target key start
LH: loop header
LB: loop body
LE: loop exit
PB: predicated region body
PF: predicated region fallthrough
CT: control target
= control target key end

     0   :  { %vm5_vm0 = vcmask 1041409   ;;  %vm9_vm1 = vcmask 1042434   ;;  %vm13_vm2 = vcmask 1043459   ;;  %vm47_vm3 = vcmask 7168   ;;  %s3650_s11 = smov 127   ;;  %s3651_s28 = smov 125   ;;  %s6037_s0 = inlined_call_operand.vmem [shape: f32[2,16,16,9], index: 0, kind: input, shape index: {}]   ;;  %s6038_s1 = inlined_call_operand.vmem [shape: f32[2,2304], index: 1, kind: output, shape index: {}]  }
   0x1   :  { %v2966_v0 = vld [vmem:[%s6037_s0 + $0x47] sm:$0x1]   ;;  %v2982_v11 = vld [vmem:[%s6037_s0 + $0x55] sm:$0x1]   ;;  %vm130_vm4 = vcmask 23552   ;;  %vm89_vm5 = vcmask 15360  }
   0x2   :  { %v2967_v1 = vld [vmem:[%s6037_s0 + $0x146] sm:$0x2]   ;;  %v2983_v14 = vld [vmem:[%s6037_s0 + $0x154] sm:$0x2]   ;;  %v2974_v26 = vld [vmem:[%s6037_s0 + $0xe] sm:$0x1]  }
   0x3   :  { %v2968_v2 = vld [vmem:[%s6037_s0 + $0xc5] sm:$0x4]   ;;  %v24_v4 = vsel %vm5_vm0, %v2967_v1, %v2966_v0  ;;  %v2984_v15 = vld [vmem:[%s6037_s0 + $0xd3] sm:$0x4]   ;;  %v107_v18 = vsel %vm5_vm0, %v2983_v14, %v2982_v11  ;;  %v2975_v29 = vld [vmem:[%s6037_s0 + $0x10d] sm:$0x2]  }
   0x4   :  { %v2969_v3 = vld [vmem:[%s6037_s0 + $0x1c4] sm:$0x8]   ;;  %v28_v8 = vsel %vm9_vm1, %v2968_v2, %v24_v4  ;;  %v2985_v16 = vld [vmem:[%s6037_s0 + $0x1d2] sm:$0x8]   ;;  %v111_v23 = vsel %vm9_vm1, %v2984_v15, %v107_v18  ;;  %v2976_v30 = vld [vmem:[%s6037_s0 + $0x8c] sm:$0x4]   ;;  %v66_v33 = vsel %vm5_vm0, %v2975_v29, %v2974_v26 }
   0x5   :  { %v2970_v5 = vld [vmem:[%s6037_s0 + $0x47] sm:$0x1]   ;;  %v32_v12 = vsel %vm13_vm2, %v2969_v3, %v28_v8  ;;  %v2986_v19 = vld [vmem:[%s6037_s0 + $0x55] sm:$0x1]   ;;  %v115_v27 = vsel %vm13_vm2, %v2985_v16, %v111_v23  ;;  %v2977_v31 = vld [vmem:[%s6037_s0 + $0x18b] sm:$0x8]   ;;  %v70_v38 = vsel %vm9_vm1, %v2976_v30, %v66_v33 }
   0x6   :  { %v2971_v6 = vld [vmem:[%s6037_s0 + $0x146] sm:$0x2]   ;;  %v2987_v20 = vld [vmem:[%s6037_s0 + $0x154] sm:$0x2]   ;;  %v2978_v34 = vld [vmem:[%s6037_s0 + $0xe] sm:$0x1]   ;;  %v74_v42 = vsel %vm13_vm2, %v2977_v31, %v70_v38 }
   0x7   :  { %v2972_v7 = vld [vmem:[%s6037_s0 + $0xc5] sm:$0x4]   ;;  %v38_v9 = vsel %vm5_vm0, %v2971_v6, %v2970_v5  ;;  %v2988_v21 = vld [vmem:[%s6037_s0 + $0xd3] sm:$0x4]   ;;  %v121_v24 = vsel %vm5_vm0, %v2987_v20, %v2986_v19  ;;  %v2979_v35 = vld [vmem:[%s6037_s0 + $0x10d] sm:$0x2]  }
   0x8   :  { %v2973_v10 = vld [vmem:[%s6037_s0 + $0x1c4] sm:$0x8]   ;;  %v42_v13 = vsel %vm9_vm1, %v2972_v7, %v38_v9  ;;  %v2989_v25 = vld [vmem:[%s6037_s0 + $0x1d2] sm:$0x8]   ;;  %v125_v28 = vsel %vm9_vm1, %v2988_v21, %v121_v24  ;;  %v2980_v36 = vld [vmem:[%s6037_s0 + $0x8c] sm:$0x4]   ;;  %v80_v39 = vsel %vm5_vm0, %v2979_v35, %v2978_v34 }
   0x9   :  { %v46_v17 = vsel %vm13_vm2, %v2973_v10, %v42_v13  ;;  %v129_v32 = vsel %vm13_vm2, %v2989_v25, %v125_v28  ;;  %v2981_v40 = vld [vmem:[%s6037_s0 + $0x18b] sm:$0x8]   ;;  %v2990_v41 = vld [vmem:[%s6037_s0 + $0x1c] sm:$0x1]   ;;  %v84_v43 = vsel %vm9_vm1, %v2980_v36, %v80_v39  ;;  %vm172_vm6 = vcmask 31744   ;;  %s3652_s16 = smov 126  }
   0xa   :  { %v48_v22 = vsel %vm47_vm3, %v46_v17, %v32_v12  ;;  %v131_v37 = vsel %vm130_vm4, %v129_v32, %v115_v27  ;;  %v2991_v44 = vld [vmem:[%s6037_s0 + $0x11b] sm:$0x2]   ;;  %v88_v47 = vsel %vm13_vm2, %v2981_v40, %v84_v43  ;;  %v2998_v56 = vld [vmem:[%s6037_s0 + $0xe3] sm:$0x1]   ;;  %vm176_vm7 = vcmask 39936   ;;  %s3653_s2 = smov 124  }
   0xb   :  { %49 = vrot.lane.b32.xlu0 %v48_v22, %s3650_s11  ;;  %132 = vrot.lane.b32.xlu1 %v131_v37, %s3651_s28  ;;  %v2992_v45 = vld [vmem:[%s6037_s0 + $0x9a] sm:$0x4]   ;;  %v149_v48 = vsel %vm5_vm0, %v2991_v44, %v2990_v41  ;;  %v90_v52 = vsel %vm89_vm5, %v88_v47, %v74_v42  ;;  %v2999_v59 = vld [vmem:[%s6037_s0 + $0x1e2] sm:$0x2]   ;;  %vm134_vm8 = vcmask 48128   ;;  %vm93_vm9 = vcmask 56320  }
   0xc   :  { %v2993_v46 = vld [vmem:[%s6037_s0 + $0x199] sm:$0x8]   ;;  %v153_v53 = vsel %vm9_vm1, %v2992_v45, %v149_v48  ;;  %v3000_v60 = vld [vmem:[%s6037_s0 + $0x61] sm:$0x4]   ;;  %v191_v62 = vsel %vm5_vm0, %v2999_v59, %v2998_v56  ;;  %v3006_v9 = vld [vmem:[%s6037_s0 + $0xaa] sm:$0x1]  }
   0xd   :  { %v2994_v49 = vld [vmem:[%s6037_s0 + $0x1c] sm:$0x1]   ;;  %v157_v57 = vsel %vm13_vm2, %v2993_v46, %v153_v53  ;;  %v3001_v63 = vld [vmem:[%s6037_s0 + $0x160] sm:$0x8]   ;;  %v195_v3 = vsel %vm9_vm1, %v3000_v60, %v191_v62  ;;  %v3007_v10 = vld [vmem:[%s6037_s0 + $0x1a9] sm:$0x2]  }
   0xe   :  { %v2995_v50 = vld [vmem:[%s6037_s0 + $0x11b] sm:$0x2]   ;;  %v3002_v0 = vld [vmem:[%s6037_s0 + $0x63] sm:$0x1]   ;;  %v199_v7 = vsel %vm13_vm2, %v3001_v63, %v195_v3  ;;  %v3008_v11 = vld [vmem:[%s6037_s0 + $0x28] sm:$0x4]   ;;  %v233_v13 = vsel %vm5_vm0, %v3007_v10, %v3006_v9 }
   0xf   :  { %v2996_v51 = vld [vmem:[%s6037_s0 + $0x9a] sm:$0x4]   ;;  %v163_v54 = vsel %vm5_vm0, %v2995_v50, %v2994_v49  ;;  %91 = vrot.lane.b32.xlu0 %v90_v52, %s3652_s16  ;;  %v3003_v1 = vld [vmem:[%s6037_s0 + $0x162] sm:$0x2]   ;;  %v3009_v14 = vld [vmem:[%s6037_s0 + $0x127] sm:$0x8]   ;;  %v237_v18 = vsel %vm9_vm1, %v3008_v11, %v233_v13 }
  0x10   :  { %v2997_v55 = vld [vmem:[%s6037_s0 + $0x199] sm:$0x8]   ;;  %v167_v58 = vsel %vm9_vm1, %v2996_v51, %v163_v54  ;;  %v205_v4 = vsel %vm5_vm0, %v3003_v1, %v3002_v0  ;;  %v3004_v5 = vld [vmem:[%s6037_s0 + $0xe1] sm:$0x4]   ;;  %v3010_v15 = vld [vmem:[%s6037_s0 + $0x2a] sm:$0x1]   ;;  %v241_v22 = vsel %vm13_vm2, %v3009_v14, %v237_v18 }
  0x11   :  { %v171_v61 = vsel %vm13_vm2, %v2997_v55, %v167_v58  ;;  %v3005_v6 = vld [vmem:[%s6037_s0 + $0x1e0] sm:$0x8]   ;;  %v209_v8 = vsel %vm9_vm1, %v3004_v5, %v205_v4  ;;  %v3011_v16 = vld [vmem:[%s6037_s0 + $0x129] sm:$0x2]   ;;  %s3654_s19 = smov 123   ;;  %vm51_vm10 = vcmask 64512  }
  0x12   :  { %v173_v2 = vsel %vm172_vm6, %v171_v61, %v157_v57  ;;  %v213_v12 = vsel %vm13_vm2, %v3005_v6, %v209_v8  ;;  %v247_v19 = vsel %vm5_vm0, %v3011_v16, %v3010_v15  ;;  %v3012_v20 = vld [vmem:[%s6037_s0 + $0xa8] sm:$0x4]   ;;  %v3014_v24 = vld [vmem:[%s6037_s0 + $0x71] sm:$0x1]   ;;  %s3655_s7 = smov 122   ;;  %s3656_s26 = smov 121  }
  0x13   :  { %174 = vrot.lane.b32.xlu1 %v173_v2, %s3653_s2  ;;  %v215_v17 = vsel %vm176_vm7, %v213_v12, %v199_v7  ;;  %v3013_v21 = vld [vmem:[%s6037_s0 + $0x1a7] sm:$0x8]   ;;  %v251_v23 = vsel %vm9_vm1, %v3012_v20, %v247_v19  ;;  %v3015_v25 = vld [vmem:[%s6037_s0 + $0x170] sm:$0x2]   ;;  %v3022_v39 = vld [vmem:[%s6037_s0 + $0x38] sm:$0x1]  }
  0x14   :  { %216 = vrot.lane.b32.xlu0 %v215_v17, %s3654_s19  ;;  %v3016_v26 = vld [vmem:[%s6037_s0 + $0xef] sm:$0x4]   ;;  %v255_v27 = vsel %vm13_vm2, %v3013_v21, %v251_v23  ;;  %v275_v28 = vsel %vm5_vm0, %v3015_v25, %v3014_v24  ;;  %v3023_v40 = vld [vmem:[%s6037_s0 + $0x137] sm:$0x2]   ;;  %v3030_v52 = vld [vmem:[%s6037_s0 + $0x7f] sm:$0x1]  }
  0x15   :  { %v3017_v29 = vld [vmem:[%s6037_s0 + $0x1ee] sm:$0x8]   ;;  %v257_v32 = vsel %vm134_vm8, %v255_v27, %v241_v22  ;;  %v279_v33 = vsel %vm9_vm1, %v3016_v26, %v275_v28  ;;  %v3024_v41 = vld [vmem:[%s6037_s0 + $0xb6] sm:$0x4]   ;;  %v317_v43 = vsel %vm5_vm0, %v3023_v40, %v3022_v39  ;;  %v3031_v55 = vld [vmem:[%s6037_s0 + $0x17e] sm:$0x2]  }
  0x16   :  { %v3018_v30 = vld [vmem:[%s6037_s0 + $0xf1] sm:$0x1]   ;;  %v283_v37 = vsel %vm13_vm2, %v3017_v29, %v279_v33  ;;  %v3025_v44 = vld [vmem:[%s6037_s0 + $0x1b5] sm:$0x8]   ;;  %v321_v48 = vsel %vm9_vm1, %v3024_v41, %v317_v43  ;;  %v3032_v56 = vld [vmem:[%s6037_s0 + $0xfd] sm:$0x4]   ;;  %v359_v59 = vsel %vm5_vm0, %v3031_v55, %v3030_v52 }
  0x17   :  { %v3019_v31 = vld [vmem:[%s6037_s0 + $0x1f0] sm:$0x2]   ;;  %258 = vrot.lane.b32.xlu1 %v257_v32, %s3655_s7  ;;  %v3026_v45 = vld [vmem:[%s6037_s0 + $0xb8] sm:$0x1]   ;;  %v325_v53 = vsel %vm13_vm2, %v3025_v44, %v321_v48  ;;  %v3033_v57 = vld [vmem:[%s6037_s0 + $0x1fc] sm:$0x8]   ;;  %v363_v63 = vsel %vm9_vm1, %v3032_v56, %v359_v59 }
  0x18   :  { %v289_v34 = vsel %vm5_vm0, %v3019_v31, %v3018_v30  ;;  %v3020_v35 = vld [vmem:[%s6037_s0 + $0x6f] sm:$0x4]   ;;  %v3027_v46 = vld [vmem:[%s6037_s0 + $0x1b7] sm:$0x2]   ;;  %v3034_v60 = vld [vmem:[%s6037_s0 + $0x46] sm:$0x1]   ;;  %v367_v4 = vsel %vm13_vm2, %v3033_v57, %v363_v63 }
  0x19   :  { %v3021_v36 = vld [vmem:[%s6037_s0 + $0x16e] sm:$0x8]   ;;  %v293_v38 = vsel %vm9_vm1, %v3020_v35, %v289_v34  ;;  %v331_v49 = vsel %vm5_vm0, %v3027_v46, %v3026_v45  ;;  %v3028_v50 = vld [vmem:[%s6037_s0 + $0x36] sm:$0x4]   ;;  %v3035_v61 = vld [vmem:[%s6037_s0 + $0x145] sm:$0x2]  }
  0x1a   :  { %v297_v42 = vsel %vm13_vm2, %v3021_v36, %v293_v38  ;;  %v3029_v51 = vld [vmem:[%s6037_s0 + $0x135] sm:$0x8]   ;;  %v335_v54 = vsel %vm9_vm1, %v3028_v50, %v331_v49  ;;  %v380_v0 = vsel %vm5_vm0, %v3035_v61, %v3034_v60  ;;  %v3036_v1 = vld [vmem:[%s6037_s0 + $0xc4] sm:$0x4]   ;;  %v3038_v3 = vld [vmem:[%s6037_s0 + $0xd] sm:$0x1]  }
  0x1b   :  { %v299_v47 = vsel %vm93_vm9, %v297_v42, %v283_v37  ;;  %v339_v58 = vsel %vm13_vm2, %v3029_v51, %v335_v54  ;;  %v3037_v2 = vld [vmem:[%s6037_s0 + $0x1c3] sm:$0x8]   ;;  %s3657_s14 = smov 120   ;;  %v384_v5 = vsel %vm9_vm1, %v3036_v1, %v380_v0  ;;  %v3039_v6 = vld [vmem:[%s6037_s0 + $0x10c] sm:$0x2]   ;;  %s3658_s21 = smov 119  }
  0x1c   :  { %300 = vrot.lane.b32.xlu0 %v299_v47, %s3656_s26  ;;  %v341_v62 = vsel %vm51_vm10, %v339_v58, %v325_v53  ;;  %v3040_v7 = vld [vmem:[%s6037_s0 + $0x8b] sm:$0x4]   ;;  %v388_v9 = vsel %vm13_vm2, %v3037_v2, %v384_v5  ;;  %v401_v10 = vsel %vm5_vm0, %v3039_v6, %v3038_v3  ;;  %v3042_v11 = vld [vmem:[%s6037_s0 + $0x54] sm:$0x1]   ;;  %v3046_v17 = vld [vmem:[%s6037_s0 + $0x1b] sm:$0x1]  }
  0x1d   :  { %342 = vrot.lane.b32.xlu1 %v341_v62, %s3657_s14  ;;  %v3041_v8 = vld [vmem:[%s6037_s0 + $0x18a] sm:$0x8]   ;;  %v3043_v12 = vld [vmem:[%s6037_s0 + $0x153] sm:$0x2]   ;;  %v405_v13 = vsel %vm9_vm1, %v3040_v7, %v401_v10  ;;  %v3047_v20 = vld [vmem:[%s6037_s0 + $0x11a] sm:$0x2]  }
  0x1e   :  { %v421_v14 = vsel %vm5_vm0, %v3043_v12, %v3042_v11  ;;  %v3044_v15 = vld [vmem:[%s6037_s0 + $0xd2] sm:$0x4]   ;;  %v409_v18 = vsel %vm13_vm2, %v3041_v8, %v405_v13  ;;  %v3048_v21 = vld [vmem:[%s6037_s0 + $0x99] sm:$0x4]   ;;  %s3659_s9 = smov 118   ;;  %v442_v23 = vsel %vm5_vm0, %v3047_v20, %v3046_v17  ;;  %s3660_s14 = smov 117  }
  0x1f   :  { %v3045_v16 = vld [vmem:[%s6037_s0 + $0x1d1] sm:$0x8]   ;;  %v425_v19 = vsel %vm9_vm1, %v3044_v15, %v421_v14  ;;  %v3049_v22 = vld [vmem:[%s6037_s0 + $0x198] sm:$0x8]   ;;  %v3050_v24 = vld [vmem:[%s6037_s0 + $0x62] sm:$0x1]   ;;  %v446_v27 = vsel %vm9_vm1, %v3048_v21, %v442_v23 }
  0x20   :  { %368 = vrot.lane.b32.xlu0 %v367_v4, %s3658_s21  ;;  %v3051_v25 = vld [vmem:[%s6037_s0 + $0x161] sm:$0x2]   ;;  %v429_v26 = vsel %vm13_vm2, %v3045_v16, %v425_v19  ;;  %v3054_v30 = vld [vmem:[%s6037_s0 + $0x29] sm:$0x1]   ;;  %v450_v31 = vsel %vm13_vm2, %v3049_v22, %v446_v27  ;;  %v3058_v38 = vld [vmem:[%s6037_s0 + $0xf0] sm:$0x1]  }
  0x21   :  { %389 = vrot.lane.b32.xlu1 %v388_v9, %s3659_s9  ;;  %v463_v28 = vsel %vm5_vm0, %v3051_v25, %v3050_v24  ;;  %v3052_v29 = vld [vmem:[%s6037_s0 + $0xe0] sm:$0x4]   ;;  %v3055_v34 = vld [vmem:[%s6037_s0 + $0x128] sm:$0x2]   ;;  %v3059_v39 = vld [vmem:[%s6037_s0 + $0x1ef] sm:$0x2]  }
  0x22   :  { %v467_v32 = vsel %vm9_vm1, %v3052_v29, %v463_v28  ;;  %v3053_v33 = vld [vmem:[%s6037_s0 + $0x1df] sm:$0x8]   ;;  %v3056_v35 = vld [vmem:[%s6037_s0 + $0xa7] sm:$0x4]   ;;  %v484_v36 = vsel %vm5_vm0, %v3055_v34, %v3054_v30  ;;  %s3661_s2 = smov 116   ;;  %v505_v41 = vsel %vm5_vm0, %v3059_v39, %v3058_v38  ;;  %s3662_s7 = smov 115  }
  0x23   :  { %v3057_v37 = vld [vmem:[%s6037_s0 + $0x1a6] sm:$0x8]   ;;  %v488_v40 = vsel %vm9_vm1, %v3056_v35, %v484_v36  ;;  %v3060_v42 = vld [vmem:[%s6037_s0 + $0x6e] sm:$0x4]   ;;  %v3062_v43 = vld [vmem:[%s6037_s0 + $0xb7] sm:$0x1]   ;;  %v471_v44 = vsel %vm13_vm2, %v3053_v33, %v467_v32 }
  0x24   :  { %410 = vrot.lane.b32.xlu0 %v409_v18, %s3660_s14  ;;  %v3063_v45 = vld [vmem:[%s6037_s0 + $0x1b6] sm:$0x2]   ;;  %v492_v47 = vsel %vm13_vm2, %v3057_v37, %v488_v40  ;;  %v509_v48 = vsel %vm9_vm1, %v3060_v42, %v505_v41  ;;  %v3061_v49 = vld [vmem:[%s6037_s0 + $0x16d] sm:$0x8]   ;;  %v3066_v51 = vld [vmem:[%s6037_s0 + $0x7e] sm:$0x1]  }
  0x25   :  { %430 = vrot.lane.b32.xlu1 %v429_v26, %s3661_s2  ;;  %v3064_v46 = vld [vmem:[%s6037_s0 + $0x35] sm:$0x4]   ;;  %v526_v50 = vsel %vm5_vm0, %v3063_v45, %v3062_v43  ;;  %v3067_v52 = vld [vmem:[%s6037_s0 + $0x17d] sm:$0x2]   ;;  %v3070_v57 = vld [vmem:[%s6037_s0 + $0x45] sm:$0x1]   ;;  %v513_v60 = vsel %vm13_vm2, %v3061_v49, %v509_v48 }
  0x26   :  { %v530_v53 = vsel %vm9_vm1, %v3064_v46, %v526_v50  ;;  %v3065_v54 = vld [vmem:[%s6037_s0 + $0x134] sm:$0x8]   ;;  %v547_v55 = vsel %vm5_vm0, %v3067_v52, %v3066_v51  ;;  %v3068_v56 = vld [vmem:[%s6037_s0 + $0xfc] sm:$0x4]   ;;  %s3663_s24 = smov 114   ;;  %s3664_s29 = smov 113  }
  0x27   :  { %v3071_v58 = vld [vmem:[%s6037_s0 + $0x144] sm:$0x2]   ;;  %v3074_v62 = vld [vmem:[%s6037_s0 + $0xc] sm:$0x1]   ;;  %v534_v0 = vsel %vm13_vm2, %v3065_v54, %v530_v53  ;;  %v551_v1 = vsel %vm9_vm1, %v3068_v56, %v547_v55  ;;  %v3069_v2 = vld [vmem:[%s6037_s0 + $0x1fb] sm:$0x8]  }
  0x28   :  { %451 = vrot.lane.b32.xlu0 %v450_v31, %s3662_s7  ;;  %v3072_v59 = vld [vmem:[%s6037_s0 + $0xc3] sm:$0x4]   ;;  %v568_v61 = vsel %vm5_vm0, %v3071_v58, %v3070_v57  ;;  %v3075_v63 = vld [vmem:[%s6037_s0 + $0x10b] sm:$0x2]   ;;  %v3078_v3 = vld [vmem:[%s6037_s0 + $0x53] sm:$0x1]   ;;  %v555_v13 = vsel %vm13_vm2, %v3069_v2, %v551_v1 }
  0x29   :  { %472 = vrot.lane.b32.xlu1 %v471_v44, %s3663_s24  ;;  %v572_v4 = vsel %vm9_vm1, %v3072_v59, %v568_v61  ;;  %v3073_v5 = vld [vmem:[%s6037_s0 + $0x1c2] sm:$0x8]   ;;  %v589_v6 = vsel %vm5_vm0, %v3075_v63, %v3074_v62  ;;  %v3076_v7 = vld [vmem:[%s6037_s0 + $0x8a] sm:$0x4]   ;;  %v3079_v8 = vld [vmem:[%s6037_s0 + $0x152] sm:$0x2]  }
  0x2a   :  { %s3665_s15 = smov 112   ;;  %v609_v9 = vsel %vm5_vm0, %v3079_v8, %v3078_v3  ;;  %v3080_v10 = vld [vmem:[%s6037_s0 + $0xd1] sm:$0x4]   ;;  %v3082_v11 = vld [vmem:[%s6037_s0 + $0x1a] sm:$0x1]   ;;  %s3666_s22 = smov 111   ;;  %v576_v15 = vsel %vm13_vm2, %v3073_v5, %v572_v4  ;;  %v593_v16 = vsel %vm9_vm1, %v3076_v7, %v589_v6 }
  0x2b   :  { %v3083_v12 = vld [vmem:[%s6037_s0 + $0x119] sm:$0x2]   ;;  %v3086_v14 = vld [vmem:[%s6037_s0 + $0x61] sm:$0x1]   ;;  %v3077_v17 = vld [vmem:[%s6037_s0 + $0x189] sm:$0x8]   ;;  %v613_v19 = vsel %vm9_vm1, %v3080_v10, %v609_v9 }
  0x2c   :  { %493 = vrot.lane.b32.xlu0 %v492_v47, %s3664_s29  ;;  %v3087_v18 = vld [vmem:[%s6037_s0 + $0x160] sm:$0x2]   ;;  %v3081_v20 = vld [vmem:[%s6037_s0 + $0x1d0] sm:$0x8]   ;;  %v630_v21 = vsel %vm5_vm0, %v3083_v12, %v3082_v11  ;;  %v3084_v22 = vld [vmem:[%s6037_s0 + $0x98] sm:$0x4]   ;;  %v597_v27 = vsel %vm13_vm2, %v3077_v17, %v593_v16 }
  0x2d   :  { %514 = vrot.lane.b32.xlu1 %v513_v60, %s3665_s15  ;;  %s3667_s4 = smov 110   ;;  %v651_v23 = vsel %vm5_vm0, %v3087_v18, %v3086_v14  ;;  %v3088_v24 = vld [vmem:[%s6037_s0 + $0xdf] sm:$0x4]   ;;  %v3090_v25 = vld [vmem:[%s6037_s0 + $0x28] sm:$0x1]   ;;  %s3668_s11 = smov 109   ;;  %v617_v30 = vsel %vm13_vm2, %v3081_v20, %v613_v19  ;;  %v634_v31 = vsel %vm9_vm1, %v3084_v22, %v630_v21 }
  0x2e   :  { %v3091_v26 = vld [vmem:[%s6037_s0 + $0x127] sm:$0x2]   ;;  %v3094_v28 = vld [vmem:[%s6037_s0 + $0xef] sm:$0x1]   ;;  %v3085_v32 = vld [vmem:[%s6037_s0 + $0x197] sm:$0x8]   ;;  %v655_v33 = vsel %vm9_vm1, %v3088_v24, %v651_v23 }
  0x2f   :  { %v3095_v29 = vld [vmem:[%s6037_s0 + $0x1ee] sm:$0x2]   ;;  %v3089_v34 = vld [vmem:[%s6037_s0 + $0x1de] sm:$0x8]   ;;  %v672_v35 = vsel %vm5_vm0, %v3091_v26, %v3090_v25  ;;  %v3092_v36 = vld [vmem:[%s6037_s0 + $0xa6] sm:$0x4]   ;;  %v638_v41 = vsel %vm13_vm2, %v3085_v32, %v634_v31 }
  0x30   :  { %535 = vrot.lane.b32.xlu0 %v534_v0, %s3666_s22  ;;  %s3669_s22 = smov 108   ;;  %v693_v37 = vsel %vm5_vm0, %v3095_v29, %v3094_v28  ;;  %v3096_v38 = vld [vmem:[%s6037_s0 + $0x6d] sm:$0x4]   ;;  %v3098_v39 = vld [vmem:[%s6037_s0 + $0xb6] sm:$0x1]   ;;  %s3670_s29 = smov 107   ;;  %v659_v44 = vsel %vm13_vm2, %v3089_v34, %v655_v33  ;;  %v676_v45 = vsel %vm9_vm1, %v3092_v36, %v672_v35 }
  0x31   :  { %556 = vrot.lane.b32.xlu1 %v555_v13, %s3667_s4  ;;  %v3099_v40 = vld [vmem:[%s6037_s0 + $0x1b5] sm:$0x2]   ;;  %v3102_v42 = vld [vmem:[%s6037_s0 + $0x7d] sm:$0x1]   ;;  %v3093_v46 = vld [vmem:[%s6037_s0 + $0x1a5] sm:$0x8]   ;;  %v697_v47 = vsel %vm9_vm1, %v3096_v38, %v693_v37 }
  0x32   :  { %v3103_v43 = vld [vmem:[%s6037_s0 + $0x17c] sm:$0x2]   ;;  %v3097_v48 = vld [vmem:[%s6037_s0 + $0x16c] sm:$0x8]   ;;  %v714_v49 = vsel %vm5_vm0, %v3099_v40, %v3098_v39  ;;  %v3100_v50 = vld [vmem:[%s6037_s0 + $0x34] sm:$0x4]   ;;  %v680_v55 = vsel %vm13_vm2, %v3093_v46, %v676_v45 }
  0x33   :  { %v735_v51 = vsel %vm5_vm0, %v3103_v43, %v3102_v42  ;;  %v3104_v52 = vld [vmem:[%s6037_s0 + $0xfb] sm:$0x4]   ;;  %v3106_v53 = vld [vmem:[%s6037_s0 + $0x44] sm:$0x1]   ;;  %s3672_s18 = smov 105   ;;  %v701_v58 = vsel %vm13_vm2, %v3097_v48, %v697_v47  ;;  %v718_v59 = vsel %vm9_vm1, %v3100_v50, %v714_v49  ;;  %s3674_s7 = smov 103  }
  0x34   :  { %577 = vrot.lane.b32.xlu0 %v576_v15, %s3668_s11  ;;  %s3671_s11 = smov 106   ;;  %v3107_v54 = vld [vmem:[%s6037_s0 + $0x143] sm:$0x2]   ;;  %v3110_v56 = vld [vmem:[%s6037_s0 + $0xb] sm:$0x1]   ;;  %v739_v61 = vsel %vm9_vm1, %v3104_v52, %v735_v51  ;;  %s3676_s25 = smov 101  }
  0x35   :  { %598 = vrot.lane.b32.xlu1 %v597_v27, %s3669_s22  ;;  %v3111_v57 = vld [vmem:[%s6037_s0 + $0x10a] sm:$0x2]   ;;  %v3101_v60 = vld [vmem:[%s6037_s0 + $0x133] sm:$0x8]   ;;  %v3105_v62 = vld [vmem:[%s6037_s0 + $0x1fa] sm:$0x8]   ;;  %v756_v63 = vsel %vm5_vm0, %v3107_v54, %v3106_v53 }
  0x36   :  { %v3108_v0 = vld [vmem:[%s6037_s0 + $0xc2] sm:$0x4]   ;;  %v777_v1 = vsel %vm5_vm0, %v3111_v57, %v3110_v56  ;;  %v3112_v2 = vld [vmem:[%s6037_s0 + $0x89] sm:$0x4]   ;;  %v3114_v3 = vld [vmem:[%s6037_s0 + $0x52] sm:$0x1]   ;;  %v722_v5 = vsel %vm13_vm2, %v3101_v60, %v718_v59  ;;  %v743_v8 = vsel %vm13_vm2, %v3105_v62, %v739_v61 }
  0x37   :  { %v3115_v4 = vld [vmem:[%s6037_s0 + $0x151] sm:$0x2]   ;;  %v3118_v6 = vld [vmem:[%s6037_s0 + $0x19] sm:$0x1]   ;;  %v760_v9 = vsel %vm9_vm1, %v3108_v0, %v756_v63  ;;  %v3109_v10 = vld [vmem:[%s6037_s0 + $0x1c1] sm:$0x8]   ;;  %v781_v11 = vsel %vm9_vm1, %v3112_v2, %v777_v1 }
  0x38   :  { %618 = vrot.lane.b32.xlu0 %v617_v30, %s3670_s29  ;;  %s3673_s29 = smov 104   ;;  %v3119_v7 = vld [vmem:[%s6037_s0 + $0x118] sm:$0x2]   ;;  %v3113_v12 = vld [vmem:[%s6037_s0 + $0x188] sm:$0x8]   ;;  %v797_v13 = vsel %vm5_vm0, %v3115_v4, %v3114_v3  ;;  %v764_v19 = vsel %vm13_vm2, %v3109_v10, %v760_v9  ;;  %s3678_s14 = smov 99  }
  0x39   :  { %639 = vrot.lane.b32.xlu1 %v638_v41, %s3671_s11  ;;  %v3116_v14 = vld [vmem:[%s6037_s0 + $0xd0] sm:$0x4]   ;;  %v818_v15 = vsel %vm5_vm0, %v3119_v7, %v3118_v6  ;;  %v3120_v16 = vld [vmem:[%s6037_s0 + $0x97] sm:$0x4]   ;;  %v3122_v17 = vld [vmem:[%s6037_s0 + $0x60] sm:$0x1]   ;;  %v785_v22 = vsel %vm13_vm2, %v3113_v12, %v781_v11 }
  0x3a   :  { %v3123_v18 = vld [vmem:[%s6037_s0 + $0x15f] sm:$0x2]   ;;  %v3126_v20 = vld [vmem:[%s6037_s0 + $0x27] sm:$0x1]   ;;  %v801_v23 = vsel %vm9_vm1, %v3116_v14, %v797_v13  ;;  %v3117_v24 = vld [vmem:[%s6037_s0 + $0x1cf] sm:$0x8]   ;;  %v822_v25 = vsel %vm9_vm1, %v3120_v16, %v818_v15 }
  0x3b   :  { %v3127_v21 = vld [vmem:[%s6037_s0 + $0x126] sm:$0x2]   ;;  %v3121_v26 = vld [vmem:[%s6037_s0 + $0x196] sm:$0x8]   ;;  %v839_v27 = vsel %vm5_vm0, %v3123_v18, %v3122_v17  ;;  %v3124_v28 = vld [vmem:[%s6037_s0 + $0xde] sm:$0x4]   ;;  %v805_v33 = vsel %vm13_vm2, %v3117_v24, %v801_v23 }
  0x3c   :  { %660 = vrot.lane.b32.xlu0 %v659_v44, %s3672_s18  ;;  %s3675_s18 = smov 102   ;;  %v860_v29 = vsel %vm5_vm0, %v3127_v21, %v3126_v20  ;;  %v3128_v30 = vld [vmem:[%s6037_s0 + $0xa5] sm:$0x4]   ;;  %v3130_v31 = vld [vmem:[%s6037_s0 + $0xee] sm:$0x1]   ;;  %v826_v36 = vsel %vm13_vm2, %v3121_v26, %v822_v25  ;;  %v843_v37 = vsel %vm9_vm1, %v3124_v28, %v839_v27  ;;  %s3680_s3 = smov 97  }
  0x3d   :  { %681 = vrot.lane.b32.xlu1 %v680_v55, %s3673_s29  ;;  %v3131_v32 = vld [vmem:[%s6037_s0 + $0x1ed] sm:$0x2]   ;;  %v3134_v34 = vld [vmem:[%s6037_s0 + $0xb5] sm:$0x1]   ;;  %v3125_v38 = vld [vmem:[%s6037_s0 + $0x1dd] sm:$0x8]   ;;  %v864_v39 = vsel %vm9_vm1, %v3128_v30, %v860_v29 }
  0x3e   :  { %v3135_v35 = vld [vmem:[%s6037_s0 + $0x1b4] sm:$0x2]   ;;  %v3129_v40 = vld [vmem:[%s6037_s0 + $0x1a4] sm:$0x8]   ;;  %v881_v41 = vsel %vm5_vm0, %v3131_v32, %v3130_v31  ;;  %v3132_v42 = vld [vmem:[%s6037_s0 + $0x6c] sm:$0x4]   ;;  %v847_v47 = vsel %vm13_vm2, %v3125_v38, %v843_v37 }
  0x3f   :  { %v902_v43 = vsel %vm5_vm0, %v3135_v35, %v3134_v34  ;;  %v3136_v44 = vld [vmem:[%s6037_s0 + $0x33] sm:$0x4]   ;;  %v3138_v45 = vld [vmem:[%s6037_s0 + $0x7c] sm:$0x1]   ;;  %v3142_v48 = vld [vmem:[%s6037_s0 + $0x43] sm:$0x1]   ;;  %v868_v50 = vsel %vm13_vm2, %v3129_v40, %v864_v39  ;;  %v885_v51 = vsel %vm9_vm1, %v3132_v42, %v881_v41 }
  0x40   :  { %702 = vrot.lane.b32.xlu0 %v701_v58, %s3674_s7  ;;  %s3677_s7 = smov 100   ;;  %v3139_v46 = vld [vmem:[%s6037_s0 + $0x17b] sm:$0x2]   ;;  %v3143_v49 = vld [vmem:[%s6037_s0 + $0x142] sm:$0x2]   ;;  %v906_v53 = vsel %vm9_vm1, %v3136_v44, %v902_v43  ;;  %s3682_s21 = smov 95  }
  0x41   :  { %723 = vrot.lane.b32.xlu1 %v722_v5, %s3675_s18  ;;  %v3133_v52 = vld [vmem:[%s6037_s0 + $0x16b] sm:$0x8]   ;;  %v3137_v54 = vld [vmem:[%s6037_s0 + $0x132] sm:$0x8]   ;;  %v923_v55 = vsel %vm5_vm0, %v3139_v46, %v3138_v45  ;;  %v3140_v56 = vld [vmem:[%s6037_s0 + $0xfa] sm:$0x4]   ;;  %v944_v57 = vsel %vm5_vm0, %v3143_v49, %v3142_v48 }
  0x42   :  { %v3144_v58 = vld [vmem:[%s6037_s0 + $0xc1] sm:$0x4]   ;;  %v3146_v59 = vld [vmem:[%s6037_s0 + $0xa] sm:$0x1]   ;;  %v889_v61 = vsel %vm13_vm2, %v3133_v52, %v885_v51  ;;  %v3150_v62 = vld [vmem:[%s6037_s0 + $0x51] sm:$0x1]   ;;  %v910_v0 = vsel %vm13_vm2, %v3137_v54, %v906_v53  ;;  %v927_v1 = vsel %vm9_vm1, %v3140_v56, %v923_v55 }
  0x43   :  { %v3147_v60 = vld [vmem:[%s6037_s0 + $0x109] sm:$0x2]   ;;  %v3151_v63 = vld [vmem:[%s6037_s0 + $0x150] sm:$0x2]   ;;  %v3141_v2 = vld [vmem:[%s6037_s0 + $0x1f9] sm:$0x8]   ;;  %v948_v3 = vsel %vm9_vm1, %v3144_v58, %v944_v57 }
  0x44   :  { %744 = vrot.lane.b32.xlu0 %v743_v8, %s3676_s25  ;;  %s3679_s25 = smov 98   ;;  %v3145_v4 = vld [vmem:[%s6037_s0 + $0x1c0] sm:$0x8]   ;;  %v965_v5 = vsel %vm5_vm0, %v3147_v60, %v3146_v59  ;;  %v3148_v6 = vld [vmem:[%s6037_s0 + $0x88] sm:$0x4]   ;;  %v985_v7 = vsel %vm5_vm0, %v3151_v63, %v3150_v62  ;;  %s3684_s10 = smov 93   ;;  %v931_v11 = vsel %vm13_vm2, %v3141_v2, %v927_v1 }
  0x45   :  { %765 = vrot.lane.b32.xlu1 %v764_v19, %s3677_s7  ;;  %v3152_v8 = vld [vmem:[%s6037_s0 + $0xcf] sm:$0x4]   ;;  %v3154_v9 = vld [vmem:[%s6037_s0 + $0x18] sm:$0x1]   ;;  %v3158_v12 = vld [vmem:[%s6037_s0 + $0x5f] sm:$0x1]   ;;  %v952_v14 = vsel %vm13_vm2, %v3145_v4, %v948_v3  ;;  %v969_v15 = vsel %vm9_vm1, %v3148_v6, %v965_v5 }
  0x46   :  { %v3155_v10 = vld [vmem:[%s6037_s0 + $0x117] sm:$0x2]   ;;  %v3159_v13 = vld [vmem:[%s6037_s0 + $0x15e] sm:$0x2]   ;;  %v3149_v16 = vld [vmem:[%s6037_s0 + $0x187] sm:$0x8]   ;;  %v989_v17 = vsel %vm9_vm1, %v3152_v8, %v985_v7 }
  0x47   :  { %v3153_v18 = vld [vmem:[%s6037_s0 + $0x1ce] sm:$0x8]   ;;  %v1006_v19 = vsel %vm5_vm0, %v3155_v10, %v3154_v9  ;;  %v3156_v20 = vld [vmem:[%s6037_s0 + $0x96] sm:$0x4]   ;;  %v1027_v21 = vsel %vm5_vm0, %v3159_v13, %v3158_v12  ;;  %v3162_v23 = vld [vmem:[%s6037_s0 + $0x26] sm:$0x1]   ;;  %v973_v25 = vsel %vm13_vm2, %v3149_v16, %v969_v15 }
  0x48   :  { %786 = vrot.lane.b32.xlu0 %v785_v22, %s3678_s14  ;;  %s3681_s14 = smov 96   ;;  %v3160_v22 = vld [vmem:[%s6037_s0 + $0xdd] sm:$0x4]   ;;  %v3163_v24 = vld [vmem:[%s6037_s0 + $0x125] sm:$0x2]   ;;  %s3686_s28 = smov 91   ;;  %v993_v28 = vsel %vm13_vm2, %v3153_v18, %v989_v17  ;;  %v1010_v29 = vsel %vm9_vm1, %v3156_v20, %v1006_v19 }
  0x49   :  { %806 = vrot.lane.b32.xlu1 %v805_v33, %s3679_s25  ;;  %v3166_v26 = vld [vmem:[%s6037_s0 + $0xed] sm:$0x1]   ;;  %v3157_v30 = vld [vmem:[%s6037_s0 + $0x195] sm:$0x8]   ;;  %v1031_v31 = vsel %vm9_vm1, %v3160_v22, %v1027_v21  ;;  %v3161_v32 = vld [vmem:[%s6037_s0 + $0x1dc] sm:$0x8]   ;;  %v1048_v33 = vsel %vm5_vm0, %v3163_v24, %v3162_v23 }
  0x4a   :  { %v3167_v27 = vld [vmem:[%s6037_s0 + $0x1ec] sm:$0x2]   ;;  %v3164_v34 = vld [vmem:[%s6037_s0 + $0xa4] sm:$0x4]   ;;  %v3170_v37 = vld [vmem:[%s6037_s0 + $0xb4] sm:$0x1]   ;;  %v1014_v39 = vsel %vm13_vm2, %v3157_v30, %v1010_v29  ;;  %v1035_v42 = vsel %vm13_vm2, %v3161_v32, %v1031_v31 }
  0x4b   :  { %v1069_v35 = vsel %vm5_vm0, %v3167_v27, %v3166_v26  ;;  %v3171_v38 = vld [vmem:[%s6037_s0 + $0x1b3] sm:$0x2]   ;;  %s3688_s17 = smov 89   ;;  %v3174_v40 = vld [vmem:[%s6037_s0 + $0x7b] sm:$0x1]   ;;  %v1052_v43 = vsel %vm9_vm1, %v3164_v34, %v1048_v33  ;;  %s3690_s6 = smov 87  }
  0x4c   :  { %827 = vrot.lane.b32.xlu0 %v826_v36, %s3680_s3  ;;  %s3683_s3 = smov 94   ;;  %v3168_v36 = vld [vmem:[%s6037_s0 + $0x6b] sm:$0x4]   ;;  %v3175_v41 = vld [vmem:[%s6037_s0 + $0x17a] sm:$0x2]   ;;  %s3692_s24 = smov 85  }
  0x4d   :  { %848 = vrot.lane.b32.xlu1 %v847_v47, %s3681_s14  ;;  %v3165_v44 = vld [vmem:[%s6037_s0 + $0x1a3] sm:$0x8]   ;;  %v1073_v45 = vsel %vm9_vm1, %v3168_v36, %v1069_v35  ;;  %v3169_v46 = vld [vmem:[%s6037_s0 + $0x16a] sm:$0x8]   ;;  %v1090_v47 = vsel %vm5_vm0, %v3171_v38, %v3170_v37  ;;  %v3172_v48 = vld [vmem:[%s6037_s0 + $0x32] sm:$0x4]   ;;  %v1111_v49 = vsel %vm5_vm0, %v3175_v41, %v3174_v40 }
  0x4e   :  { %v3178_v51 = vld [vmem:[%s6037_s0 + $0x42] sm:$0x1]   ;;  %v1056_v53 = vsel %vm13_vm2, %v3165_v44, %v1052_v43  ;;  %v3182_v54 = vld [vmem:[%s6037_s0 + $0x9] sm:$0x1]   ;;  %v1077_v56 = vsel %vm13_vm2, %v3169_v46, %v1073_v45  ;;  %v1094_v57 = vsel %vm9_vm1, %v3172_v48, %v1090_v47  ;;  %v3173_v58 = vld [vmem:[%s6037_s0 + $0x131] sm:$0x8]  }
  0x4f   :  { %v3179_v52 = vld [vmem:[%s6037_s0 + $0x141] sm:$0x2]   ;;  %v3183_v55 = vld [vmem:[%s6037_s0 + $0x108] sm:$0x2]   ;;  %v3177_v60 = vld [vmem:[%s6037_s0 + $0x1f8] sm:$0x8]   ;;  %v1098_v3 = vsel %vm13_vm2, %v3173_v58, %v1094_v57 }
  0x50   :  { %869 = vrot.lane.b32.xlu0 %v868_v50, %s3682_s21  ;;  %s3685_s21 = smov 92   ;;  %v3176_v50 = vld [vmem:[%s6037_s0 + $0xf9] sm:$0x4]   ;;  %v3180_v62 = vld [vmem:[%s6037_s0 + $0xc0] sm:$0x4]   ;;  %v1153_v63 = vsel %vm5_vm0, %v3183_v55, %v3182_v54  ;;  %s3694_s13 = smov 83  }
  0x51   :  { %890 = vrot.lane.b32.xlu1 %v889_v61, %s3683_s3  ;;  %v1115_v59 = vsel %vm9_vm1, %v3176_v50, %v1111_v49  ;;  %v1132_v61 = vsel %vm5_vm0, %v3179_v52, %v3178_v51  ;;  %v3186_v1 = vld [vmem:[%s6037_s0 + $0x50] sm:$0x1]   ;;  %v3190_v4 = vld [vmem:[%s6037_s0 + $0x17] sm:$0x1]   ;;  %v3181_v8 = vld [vmem:[%s6037_s0 + $0x1bf] sm:$0x8]  }
  0x52   :  { %v3187_v2 = vld [vmem:[%s6037_s0 + $0x14f] sm:$0x2]   ;;  %v3191_v5 = vld [vmem:[%s6037_s0 + $0x116] sm:$0x2]   ;;  %v1119_v6 = vsel %vm13_vm2, %v3177_v60, %v1115_v59  ;;  %v1136_v7 = vsel %vm9_vm1, %v3180_v62, %v1132_v61  ;;  %v3185_v10 = vld [vmem:[%s6037_s0 + $0x186] sm:$0x8]  }
  0x53   :  { %v3188_v12 = vld [vmem:[%s6037_s0 + $0xce] sm:$0x4]   ;;  %v1194_v13 = vsel %vm5_vm0, %v3191_v5, %v3190_v4  ;;  %v3194_v15 = vld [vmem:[%s6037_s0 + $0x5e] sm:$0x1]   ;;  %v1140_v17 = vsel %vm13_vm2, %v3181_v8, %v1136_v7  ;;  %v3198_v18 = vld [vmem:[%s6037_s0 + $0x25] sm:$0x1]  }
  0x54   :  { %911 = vrot.lane.b32.xlu0 %v910_v0, %s3684_s10  ;;  %s3687_s10 = smov 90   ;;  %v3184_v0 = vld [vmem:[%s6037_s0 + $0x87] sm:$0x4]   ;;  %v3195_v16 = vld [vmem:[%s6037_s0 + $0x15d] sm:$0x2]   ;;  %s3696_s2 = smov 81  }
  0x55   :  { %932 = vrot.lane.b32.xlu1 %v931_v11, %s3685_s21  ;;  %v1157_v9 = vsel %vm9_vm1, %v3184_v0, %v1153_v63  ;;  %v1173_v11 = vsel %vm5_vm0, %v3187_v2, %v3186_v1  ;;  %v3199_v19 = vld [vmem:[%s6037_s0 + $0x124] sm:$0x2]   ;;  %v3189_v22 = vld [vmem:[%s6037_s0 + $0x1cd] sm:$0x8]   ;;  %v3193_v24 = vld [vmem:[%s6037_s0 + $0x194] sm:$0x8]  }
  0x56   :  { %v1161_v20 = vsel %vm13_vm2, %v3185_v10, %v1157_v9  ;;  %v1177_v21 = vsel %vm9_vm1, %v3188_v12, %v1173_v11  ;;  %v3196_v26 = vld [vmem:[%s6037_s0 + $0xdc] sm:$0x4]   ;;  %v1236_v27 = vsel %vm5_vm0, %v3199_v19, %v3198_v18  ;;  %v3202_v29 = vld [vmem:[%s6037_s0 + $0xec] sm:$0x1]   ;;  %v3206_v32 = vld [vmem:[%s6037_s0 + $0xb3] sm:$0x1]  }
  0x57   :  { %v3203_v30 = vld [vmem:[%s6037_s0 + $0x1eb] sm:$0x2]   ;;  %v1181_v31 = vsel %vm13_vm2, %v3189_v22, %v1177_v21  ;;  %v3207_v33 = vld [vmem:[%s6037_s0 + $0x1b2] sm:$0x2]   ;;  %v3197_v36 = vld [vmem:[%s6037_s0 + $0x1db] sm:$0x8]  }
  0x58   :  { %953 = vrot.lane.b32.xlu0 %v952_v14, %s3686_s28  ;;  %s3689_s28 = smov 88   ;;  %v3192_v14 = vld [vmem:[%s6037_s0 + $0x95] sm:$0x4]   ;;  %v3201_v38 = vld [vmem:[%s6037_s0 + $0x1a2] sm:$0x8]   ;;  %v1278_v41 = vsel %vm5_vm0, %v3207_v33, %v3206_v32  ;;  %s3698_s20 = smov 79  }
  0x59   :  { %974 = vrot.lane.b32.xlu1 %v973_v25, %s3687_s10  ;;  %v1198_v23 = vsel %vm9_vm1, %v3192_v14, %v1194_v13  ;;  %v1215_v25 = vsel %vm5_vm0, %v3195_v16, %v3194_v15  ;;  %v3204_v40 = vld [vmem:[%s6037_s0 + $0x6a] sm:$0x4]   ;;  %v3210_v43 = vld [vmem:[%s6037_s0 + $0x7a] sm:$0x1]   ;;  %v3214_v46 = vld [vmem:[%s6037_s0 + $0x41] sm:$0x1]  }
  0x5a   :  { %v1202_v34 = vsel %vm13_vm2, %v3193_v24, %v1198_v23  ;;  %v1219_v35 = vsel %vm9_vm1, %v3196_v26, %v1215_v25  ;;  %v3211_v44 = vld [vmem:[%s6037_s0 + $0x179] sm:$0x2]   ;;  %v3215_v47 = vld [vmem:[%s6037_s0 + $0x140] sm:$0x2]   ;;  %v3205_v50 = vld [vmem:[%s6037_s0 + $0x169] sm:$0x8]  }
  0x5b   :  { %v1223_v45 = vsel %vm13_vm2, %v3197_v36, %v1219_v35  ;;  %v3209_v52 = vld [vmem:[%s6037_s0 + $0x130] sm:$0x8]   ;;  %v3212_v54 = vld [vmem:[%s6037_s0 + $0xf8] sm:$0x4]   ;;  %v3216_v57 = vld [vmem:[%s6037_s0 + $0xbf] sm:$0x4]  }
  0x5c   :  { %994 = vrot.lane.b32.xlu0 %v993_v28, %s3688_s17  ;;  %s3691_s17 = smov 86   ;;  %v3200_v28 = vld [vmem:[%s6037_s0 + $0xa3] sm:$0x4]   ;;  %v3213_v55 = vld [vmem:[%s6037_s0 + $0x1f7] sm:$0x8]   ;;  %s3700_s11 = smov 77  }
  0x5d   :  { %1015 = vrot.lane.b32.xlu1 %v1014_v39, %s3689_s28  ;;  %v1240_v37 = vsel %vm9_vm1, %v3200_v28, %v1236_v27  ;;  %v1257_v39 = vsel %vm5_vm0, %v3203_v30, %v3202_v29  ;;  %v3218_v58 = vld [vmem:[%s6037_s0 + $0x8] sm:$0x1]   ;;  %v3217_v61 = vld [vmem:[%s6037_s0 + $0x1be] sm:$0x8]   ;;  %v3222_v62 = vld [vmem:[%s6037_s0 + $0x4f] sm:$0x1]  }
  0x5e   :  { %v1244_v48 = vsel %vm13_vm2, %v3201_v38, %v1240_v37  ;;  %v1261_v49 = vsel %vm9_vm1, %v3204_v40, %v1257_v39  ;;  %v3219_v59 = vld [vmem:[%s6037_s0 + $0x107] sm:$0x2]   ;;  %v3223_v63 = vld [vmem:[%s6037_s0 + $0x14e] sm:$0x2]   ;;  %v2_v4 = vld [vmem:[%s6037_s0] sm:$0x1]  }
  0x5f   :  { %v1265_v60 = vsel %vm13_vm2, %v3205_v50, %v1261_v49  ;;  %v3220_v2 = vld [vmem:[%s6037_s0 + $0x86] sm:$0x4]   ;;  %v3224_v7 = vld [vmem:[%s6037_s0 + $0xcd] sm:$0x4]   ;;  %v2965_v8 = vld [vmem:[%s6037_s0 + $0x17d] sm:$0x8]   ;;  %v1361_v10 = vsel %vm5_vm0, %v3223_v63, %v3222_v62 }
  0x60   :  { %1036 = vrot.lane.b32.xlu0 %v1035_v42, %s3690_s6  ;;  %s3693_s6 = smov 84   ;;  %v3208_v42 = vld [vmem:[%s6037_s0 + $0x31] sm:$0x4]   ;;  %v2963_v9 = vld [vmem:[%s6037_s0 + $0x7f] sm:$0x2]   ;;  %s3701_s30 = smov 76   ;;  %v1365_v22 = vsel %vm9_vm1, %v3224_v7, %v1361_v10 }
  0x61   :  { %1057 = vrot.lane.b32.xlu1 %v1056_v53, %s3691_s17  ;;  %v1282_v51 = vsel %vm9_vm1, %v3208_v42, %v1278_v41  ;;  %v1299_v53 = vsel %vm5_vm0, %v3211_v44, %v3210_v43  ;;  %v3226_v11 = vld [vmem:[%s6037_s0 + $0x16] sm:$0x1]   ;;  %vm15_vm11 = vcmask 72704   ;;  %v6_v13 = vsel %vm5_vm0, %v2963_v9, %v2_v4  ;;  %v3230_v15 = vld [vmem:[%s6037_s0 + $0x5d] sm:$0x1]   ;;  %s3703_s17 = smov 74  }
  0x62   :  { %v1286_v0 = vsel %vm13_vm2, %v3209_v52, %v1282_v51  ;;  %v1303_v1 = vsel %vm9_vm1, %v3212_v54, %v1299_v53  ;;  %v3227_v12 = vld [vmem:[%s6037_s0 + $0x115] sm:$0x2]   ;;  %v3231_v16 = vld [vmem:[%s6037_s0 + $0x15c] sm:$0x2]   ;;  %vm56_vm12 = vcmask 1048568   ;;  %vm139_vm13 = vcmask 1048552  }
  0x63   :  { %v1307_v14 = vsel %vm13_vm2, %v3213_v55, %v1303_v1  ;;  %v3225_v23 = vld [vmem:[%s6037_s0 + $0x1cc] sm:$0x8]   ;;  %v1382_v24 = vsel %vm5_vm0, %v3227_v12, %v3226_v11  ;;  %v3228_v25 = vld [vmem:[%s6037_s0 + $0x94] sm:$0x4]   ;;  %v1403_v26 = vsel %vm5_vm0, %v3231_v16, %v3230_v15  ;;  %v3232_v27 = vld [vmem:[%s6037_s0 + $0xdb] sm:$0x4]  }
  0x64   :  { %1078 = vrot.lane.b32.xlu0 %v1077_v56, %s3692_s24  ;;  %s3695_s24 = smov 82   ;;  %v1320_v56 = vsel %vm5_vm0, %v3215_v47, %v3214_v46  ;;  %v3234_v28 = vld [vmem:[%s6037_s0 + $0x24] sm:$0x1]   ;;  %v3238_v32 = vld [vmem:[%s6037_s0 + $0xeb] sm:$0x1]   ;;  %v1386_v35 = vsel %vm9_vm1, %v3228_v25, %v1382_v24  ;;  %v1407_v37 = vsel %vm9_vm1, %v3232_v27, %v1403_v26  ;;  %vm98_vm14 = vcmask 1048560  }
  0x65   :  { %1099 = vrot.lane.b32.xlu1 %v1098_v3, %s3693_s6  ;;  %v2964_v3 = vld [vmem:[%s6037_s0 + $0xfe] sm:$0x4]   ;;  %v1324_v5 = vsel %vm9_vm1, %v3216_v57, %v1320_v56  ;;  %s3702_s6 = smov 75   ;;  %v3235_v29 = vld [vmem:[%s6037_s0 + $0x123] sm:$0x2]   ;;  %s3707_s26 = smov 70  }
  0x66   :  { %v1328_v18 = vsel %vm13_vm2, %v3217_v61, %v1324_v5  ;;  %v3239_v33 = vld [vmem:[%s6037_s0 + $0x1ea] sm:$0x2]   ;;  %v3229_v36 = vld [vmem:[%s6037_s0 + $0x193] sm:$0x8]   ;;  %v3233_v38 = vld [vmem:[%s6037_s0 + $0x1da] sm:$0x8]   ;;  %v1424_v39 = vsel %vm5_vm0, %v3235_v29, %v3234_v28 }
  0x67   :  { %v3236_v40 = vld [vmem:[%s6037_s0 + $0xa2] sm:$0x4]   ;;  %v1445_v42 = vsel %vm5_vm0, %v3239_v33, %v3238_v32  ;;  %v3240_v43 = vld [vmem:[%s6037_s0 + $0x69] sm:$0x4]   ;;  %v3242_v44 = vld [vmem:[%s6037_s0 + $0xb2] sm:$0x1]   ;;  %v1390_v46 = vsel %vm13_vm2, %v3229_v36, %v1386_v35  ;;  %v1411_v49 = vsel %vm13_vm2, %v3233_v38, %v1407_v37 }
  0x68   :  { %1120 = vrot.lane.b32.xlu0 %v1119_v6, %s3694_s13  ;;  %s3697_s13 = smov 80   ;;  %v1341_v6 = vsel %vm5_vm0, %v3219_v59, %v3218_v58  ;;  %v3246_v47 = vld [vmem:[%s6037_s0 + $0x79] sm:$0x1]   ;;  %v1428_v50 = vsel %vm9_vm1, %v3236_v40, %v1424_v39  ;;  %v3237_v51 = vld [vmem:[%s6037_s0 + $0x1a1] sm:$0x8]   ;;  %v1449_v53 = vsel %vm9_vm1, %v3240_v43, %v1445_v42  ;;  %vm181_vm15 = vcmask 1048544  }
  0x69   :  { %1141 = vrot.lane.b32.xlu1 %v1140_v17, %s3695_s24  ;;  %v10_v17 = vsel %vm9_vm1, %v2964_v3, %v6_v13  ;;  %v1345_v19 = vsel %vm9_vm1, %v3220_v2, %v1341_v6  ;;  %s3704_s24 = smov 73   ;;  %v3241_v54 = vld [vmem:[%s6037_s0 + $0x168] sm:$0x8]   ;;  %v3244_v56 = vld [vmem:[%s6037_s0 + $0x30] sm:$0x4]   ;;  %v1432_v61 = vsel %vm13_vm2, %v3237_v51, %v1428_v50  ;;  %s3712_s9 = smov 65  }
  0x6a   :  { %v14_v21 = vsel %vm13_vm2, %v2965_v8, %v10_v17  ;;  %v3248_v57 = vld [vmem:[%s6037_s0 + $0xf7] sm:$0x4]   ;;  %v3250_v59 = vld [vmem:[%s6037_s0 + $0x40] sm:$0x1]   ;;  %v3254_v62 = vld [vmem:[%s6037_s0 + $0x7] sm:$0x1]  }
  0x6b   :  { %16 = vst.msk [vmem:[#allocation0] ss:$72 sm:$0x3] %vm15_vm11, %v14_v21   ;;  %18 = vst.msk [vmem:[#allocation0 - $0x8f] ss:$72 sm:$0xc] %vm15_vm11, %v14_v21  }
  0x6c   :  { %1162 = vrot.lane.b32.xlu0 %v1161_v20, %s3696_s2  ;;  %s3699_s2 = smov 78   ;;  %v3221_v20 = vld [vmem:[%s6037_s0 + $0x185] sm:$0x8]   ;;  %v3255_v63 = vld [vmem:[%s6037_s0 + $0x106] sm:$0x2]   ;;  %s3713_s22 = smov 64  }
  0x6d   :  { %1182 = vrot.lane.b32.xlu1 %v1181_v31, %s3697_s13  ;;  %v1349_v30 = vsel %vm13_vm2, %v3221_v20, %v1345_v19  ;;  %s3706_s13 = smov 71   ;;  %v3245_v3 = vld [vmem:[%s6037_s0 + $0x12f] sm:$0x8]   ;;  %v3249_v5 = vld [vmem:[%s6037_s0 + $0x1f6] sm:$0x8]   ;;  %v1529_v8 = vsel %vm5_vm0, %v3255_v63, %v3254_v62  ;;  %s3714_s27 = smov 63  }
  0x6e   :  { %v3252_v7 = vld [vmem:[%s6037_s0 + $0xbe] sm:$0x4]   ;;  %v3256_v9 = vld [vmem:[%s6037_s0 + $0x85] sm:$0x4]   ;;  %v3258_v10 = vld [vmem:[%s6037_s0 + $0x4e] sm:$0x1]  }
  0x6f   :  { %v3259_v11 = vld [vmem:[%s6037_s0 + $0x14d] sm:$0x2]   ;;  %v3263_v15 = vld [vmem:[%s6037_s0 + $0x114] sm:$0x2]   ;;  %v1533_v19 = vsel %vm9_vm1, %v3256_v9, %v1529_v8  ;;  %v3257_v20 = vld [vmem:[%s6037_s0 + $0x184] sm:$0x8]  }
  0x70   :  { %1203 = vrot.lane.b32.xlu0 %v1202_v34, %s3698_s20  ;;  %v1369_v34 = vsel %vm13_vm2, %v3225_v23, %v1365_v22  ;;  %s3710_s20 = smov 67   ;;  %v1549_v21 = vsel %vm5_vm0, %v3259_v11, %v3258_v10  ;;  %v3260_v22 = vld [vmem:[%s6037_s0 + $0xcc] sm:$0x4]   ;;  %v3264_v25 = vld [vmem:[%s6037_s0 + $0x93] sm:$0x4]   ;;  %s3716_s16 = smov 61  }
  0x71   :  { %1224 = vrot.lane.b32.xlu1 %v1223_v45, %s3699_s2  ;;  %v3243_v45 = vld [vmem:[%s6037_s0 + $0x1b1] sm:$0x2]   ;;  %s3708_s2 = smov 69   ;;  %v3266_v26 = vld [vmem:[%s6037_s0 + $0x5c] sm:$0x1]   ;;  %v1553_v32 = vsel %vm9_vm1, %v3260_v22, %v1549_v21  ;;  %s3718_s5 = smov 59  }
  0x72   :  { %v1466_v55 = vsel %vm5_vm0, %v3243_v45, %v3242_v44  ;;  %v3267_v27 = vld [vmem:[%s6037_s0 + $0x15b] sm:$0x2]   ;;  %v3270_v29 = vld [vmem:[%s6037_s0 + $0x23] sm:$0x1]   ;;  %v3261_v33 = vld [vmem:[%s6037_s0 + $0x1cb] sm:$0x8]  }
  0x73   :  { %v1470_v2 = vsel %vm9_vm1, %v3244_v56, %v1466_v55  ;;  %v3265_v36 = vld [vmem:[%s6037_s0 + $0x192] sm:$0x8]   ;;  %v1591_v37 = vsel %vm5_vm0, %v3267_v27, %v3266_v26  ;;  %v3268_v38 = vld [vmem:[%s6037_s0 + $0xda] sm:$0x4]   ;;  %v3272_v39 = vld [vmem:[%s6037_s0 + $0xa1] sm:$0x4]   ;;  %v1557_v43 = vsel %vm13_vm2, %v3261_v33, %v1553_v32 }
  0x74   :  { %1245 = vrot.lane.b32.xlu0 %v1244_v48, %s3700_s11  ;;  %v3247_v48 = vld [vmem:[%s6037_s0 + $0x178] sm:$0x2]   ;;  %v1474_v13 = vsel %vm13_vm2, %v3245_v3, %v1470_v2  ;;  %v3275_v42 = vld [vmem:[%s6037_s0 + $0x1e9] sm:$0x2]   ;;  %v3278_v44 = vld [vmem:[%s6037_s0 + $0xb1] sm:$0x1]  }
  0x75   :  { %1266 = vrot.lane.b32.xlu1 %v1265_v60, %s3701_s30  ;;  %v1487_v58 = vsel %vm5_vm0, %v3247_v48, %v3246_v47  ;;  %v3251_v60 = vld [vmem:[%s6037_s0 + $0x13f] sm:$0x2]   ;;  %v3279_v45 = vld [vmem:[%s6037_s0 + $0x1b0] sm:$0x2]   ;;  %v1595_v48 = vsel %vm9_vm1, %v3268_v38, %v1591_v37  ;;  %v3288_v8 = vld [vmem:[%s6037_s0 + $0xbd] sm:$0x4]  }
  0x76   :  { %v1491_v4 = vsel %vm9_vm1, %v3248_v57, %v1487_v58  ;;  %v1508_v6 = vsel %vm5_vm0, %v3251_v60, %v3250_v59  ;;  %v1654_v55 = vsel %vm5_vm0, %v3279_v45, %v3278_v44  ;;  %v3280_v56 = vld [vmem:[%s6037_s0 + $0x2f] sm:$0x4]   ;;  %v3282_v57 = vld [vmem:[%s6037_s0 + $0x78] sm:$0x1]   ;;  %v3286_v60 = vld [vmem:[%s6037_s0 + $0x3f] sm:$0x1]  }
  0x77   :  { %v1495_v16 = vsel %vm13_vm2, %v3249_v5, %v1491_v4  ;;  %v1512_v17 = vsel %vm9_vm1, %v3252_v7, %v1508_v6  ;;  %v3283_v58 = vld [vmem:[%s6037_s0 + $0x177] sm:$0x2]   ;;  %v1658_v3 = vsel %vm9_vm1, %v3280_v56, %v1654_v55  ;;  %v3281_v4 = vld [vmem:[%s6037_s0 + $0x12e] sm:$0x8]   ;;  %v3290_v9 = vld [vmem:[%s6037_s0 + $0x6] sm:$0x1]  }
  0x78   :  { %1287 = vrot.lane.b32.xlu0 %v1286_v0, %s3702_s6  ;;  %s3705_s6 = smov 72   ;;  %v1453_v0 = vsel %vm13_vm2, %v3241_v54, %v1449_v53  ;;  %v3276_v54 = vld [vmem:[%s6037_s0 + $0x68] sm:$0x4]   ;;  %v1675_v5 = vsel %vm5_vm0, %v3283_v58, %v3282_v57  ;;  %v3284_v6 = vld [vmem:[%s6037_s0 + $0xf6] sm:$0x4]   ;;  %vm453_vm11 = vcmask 1015704  }
  0x79   :  { %1308 = vrot.lane.b32.xlu1 %v1307_v14, %s3703_s17  ;;  %v3262_v14 = vld [vmem:[%s6037_s0 + $0x15] sm:$0x1]   ;;  %v3291_v10 = vld [vmem:[%s6037_s0 + $0x105] sm:$0x2]   ;;  %v3299_v26 = vld [vmem:[%s6037_s0 + $0x113] sm:$0x2]  }
  0x7a   :  { %v1570_v24 = vsel %vm5_vm0, %v3263_v15, %v3262_v14  ;;  %v1662_v15 = vsel %vm13_vm2, %v3281_v4, %v1658_v3  ;;  %v1717_v21 = vsel %vm5_vm0, %v3291_v10, %v3290_v9  ;;  %v3292_v22 = vld [vmem:[%s6037_s0 + $0x84] sm:$0x4]   ;;  %s3720_s23 = smov 57   ;;  %v3300_v38 = vld [vmem:[%s6037_s0 + $0x92] sm:$0x4]   ;;  %s3722_s12 = smov 55  }
  0x7b   :  { %v1574_v35 = vsel %vm9_vm1, %v3264_v25, %v1570_v24  ;;  %v3296_v24 = vld [vmem:[%s6037_s0 + $0xcb] sm:$0x4]   ;;  %v3298_v25 = vld [vmem:[%s6037_s0 + $0x14] sm:$0x1]   ;;  %v1721_v32 = vsel %vm9_vm1, %v3292_v22, %v1717_v21  ;;  %v3293_v33 = vld [vmem:[%s6037_s0 + $0x183] sm:$0x8]  }
  0x7c   :  { %1329 = vrot.lane.b32.xlu0 %v1328_v18, %s3704_s24  ;;  %v3253_v18 = vld [vmem:[%s6037_s0 + $0x1bd] sm:$0x8]   ;;  %v1578_v47 = vsel %vm13_vm2, %v3265_v36, %v1574_v35  ;;  %v3297_v36 = vld [vmem:[%s6037_s0 + $0x1ca] sm:$0x8]   ;;  %v1758_v37 = vsel %vm5_vm0, %v3299_v26, %v3298_v25  ;;  %v3310_v44 = vld [vmem:[%s6037_s0 + $0xe9] sm:$0x1]  }
  0x7d   :  { %v50_v31 = vpop.permute.xlu0 %49   ;;  %1350 = vrot.lane.b32.xlu1 %v1349_v30, %s3705_s6  ;;  %v133_v41 = vpop.permute.xlu1 %132   ;;  %v1516_v28 = vsel %vm13_vm2, %v3253_v18, %v1512_v17  ;;  %v3271_v30 = vld [vmem:[%s6037_s0 + $0x122] sm:$0x2]   ;;  %v3285_v17 = vld [vmem:[%s6037_s0 + $0x1f5] sm:$0x8]   ;;  %v3311_v45 = vld [vmem:[%s6037_s0 + $0x1e8] sm:$0x2]  }
  0x7e   :  { %53 = vst.msk [vmem:[#allocation0 + $0x28] sm:$0x3] %vm51_vm10, %v50_v31   ;;  %55 = vst.msk [vmem:[#allocation0 + $0x6e] sm:$0xc] %vm51_vm10, %v50_v31   ;;  %v1612_v40 = vsel %vm5_vm0, %v3271_v30, %v3270_v29  ;;  %vm432_vm10 = vcmask 1023904   ;;  %v1821_v55 = vsel %vm5_vm0, %v3311_v45, %v3310_v44  ;;  %s3724_s30 = smov 53  }
  0x7f   :  { %58 = vst.msk [vmem:[#allocation0 + $0x20] sm:$0x3] %vm56_vm12, %v50_v31   ;;  %60 = vst.msk [vmem:[#allocation0 + $0x66] sm:$0xc] %vm56_vm12, %v50_v31   ;;  %v1537_v31 = vsel %vm13_vm2, %v3257_v20, %v1533_v19  ;;  %v1616_v51 = vsel %vm9_vm1, %v3272_v39, %v1612_v40  ;;  %vm474_vm12 = vcmask 1007504   ;;  %s3726_s19 = smov 51  }
  0x80   :  { %1370 = vrot.lane.b32.xlu0 %v1369_v34, %s3706_s13  ;;  %136 = vst.msk [vmem:[#allocation0 + $0x30] sm:$0x3] %vm134_vm8, %v133_v41   ;;  %138 = vst.msk [vmem:[#allocation0 + $0x76] sm:$0xc] %vm134_vm8, %v133_v41   ;;  %s3709_s13 = smov 68   ;;  %vm370_vm8 = vcmask 1048504  }
  0x81   :  { %141 = vst.msk [vmem:[#allocation0 + $0x28] sm:$0x3] %vm139_vm13, %v133_v41   ;;  %143 = vst.msk [vmem:[#allocation0 + $0x6e] sm:$0xc] %vm139_vm13, %v133_v41   ;;  %v92_v52 = vpop.permute.xlu0 %91   ;;  %1391 = vrot.lane.b32.xlu1 %v1390_v46, %s3707_s26  ;;  %v3274_v41 = vld [vmem:[%s6037_s0 + $0xea] sm:$0x1]  }
  0x82   :  { %95 = vst.msk [vmem:[#allocation0 + $0x8] sm:$0x3] %vm93_vm9, %v92_v52   ;;  %97 = vst.msk [vmem:[#allocation0 + $0x4e] sm:$0xc] %vm93_vm9, %v92_v52   ;;  %v1633_v53 = vsel %vm5_vm0, %v3275_v42, %v3274_v41  ;;  %vm412_vm9 = vcmask 1032104   ;;  %vm495_vm13 = vcmask 999304  }
  0x83   :  { %99 = vst.msk [vmem:[#allocation0] sm:$0x3] %vm98_vm14, %v92_v52   ;;  %101 = vst.msk [vmem:[#allocation0 + $0x46] sm:$0xc] %vm98_vm14, %v92_v52   ;;  %v3273_v52 = vld [vmem:[%s6037_s0 + $0x1a0] sm:$0x8]  }
  0x84   :  { %1412 = vrot.lane.b32.xlu0 %v1411_v49, %s3708_s2  ;;  %s3711_s2 = smov 66   ;;  %v3269_v49 = vld [vmem:[%s6037_s0 + $0x1d9] sm:$0x8]   ;;  %v1620_v63 = vsel %vm13_vm2, %v3273_v52, %v1616_v51  ;;  %v3289_v20 = vld [vmem:[%s6037_s0 + $0x1bc] sm:$0x8]   ;;  %vm516_vm14 = vcmask 991104  }
  0x85   :  { %v175_v1 = vpop.permute.xlu1 %174   ;;  %1433 = vrot.lane.b32.xlu1 %v1432_v61, %s3709_s13  ;;  %v1599_v59 = vsel %vm13_vm2, %v3269_v49, %v1595_v48  ;;  %v3287_v61 = vld [vmem:[%s6037_s0 + $0x13e] sm:$0x2]   ;;  %v3303_v29 = vld [vmem:[%s6037_s0 + $0x15a] sm:$0x2]   ;;  %v3306_v41 = vld [vmem:[%s6037_s0 + $0x22] sm:$0x1]   ;;  %v1762_v48 = vsel %vm9_vm1, %v3300_v38, %v1758_v37 }
  0x86   :  { %178 = vst.msk [vmem:[#allocation0 + $0x10] sm:$0x3] %vm176_vm7, %v175_v1   ;;  %180 = vst.msk [vmem:[#allocation0 + $0x56] sm:$0xc] %vm176_vm7, %v175_v1   ;;  %vm223_vm7 = vcmask 1048536   ;;  %v217_v12 = vpop.permute.xlu0 %216   ;;  %v1696_v7 = vsel %vm5_vm0, %v3287_v61, %v3286_v60  ;;  %s3728_s8 = smov 49  }
  0x87   :  { %183 = vst.msk [vmem:[#allocation0 + $0x8] sm:$0x3] %vm181_vm15, %v175_v1   ;;  %185 = vst.msk [vmem:[#allocation0 + $0x4e] sm:$0xc] %vm181_vm15, %v175_v1   ;;  %v3277_v1 = vld [vmem:[%s6037_s0 + $0x167] sm:$0x8]   ;;  %v1700_v19 = vsel %vm9_vm1, %v3288_v8, %v1696_v7 }
  0x88   :  { %1454 = vrot.lane.b32.xlu0 %v1453_v0, %s3710_s20  ;;  %220 = vst.msk [vmem:[#allocation0 + $0x80] sm:$0x3] %vm172_vm6, %v217_v12   ;;  %222 = vst.msk [vmem:[#allocation0 + $0x36] sm:$0xc] %vm172_vm6, %v217_v12   ;;  %vm265_vm6 = vcmask 1048528   ;;  %v1637_v0 = vsel %vm9_vm1, %v3276_v54, %v1633_v53  ;;  %vm537_vm15 = vcmask 982904  }
  0x89   :  { %225 = vst.msk [vmem:[#allocation0 + $0x30] sm:$0x3] %vm223_vm7, %v217_v12   ;;  %227 = vst.msk [vmem:[#allocation0 + $0x76] sm:$0xc] %vm223_vm7, %v217_v12   ;;  %1475 = vrot.lane.b32.xlu1 %v1474_v13, %s3711_s2  ;;  %v259_v23 = vpop.permute.xlu1 %258   ;;  %v1641_v11 = vsel %vm13_vm2, %v3277_v1, %v1637_v0  ;;  %v3294_v12 = vld [vmem:[%s6037_s0 + $0x4d] sm:$0x1]  }
  0x8a   :  { %262 = vst.msk [vmem:[#allocation0 + $0x60] sm:$0x3] %vm130_vm4, %v259_v23   ;;  %264 = vst.msk [vmem:[#allocation0 + $0x16] sm:$0xc] %vm130_vm4, %v259_v23   ;;  %vm307_vm4 = vcmask 1048520   ;;  %vm558_vm7 = vcmask 974704  }
  0x8b   :  { %267 = vst.msk [vmem:[#allocation0 + $0x10] sm:$0x3] %vm265_vm6, %v259_v23   ;;  %269 = vst.msk [vmem:[#allocation0 + $0x56] sm:$0xc] %vm265_vm6, %v259_v23   ;;  %v3295_v13 = vld [vmem:[%s6037_s0 + $0x14c] sm:$0x2]  }
  0x8c   :  { %1496 = vrot.lane.b32.xlu0 %v1495_v16, %s3712_s9  ;;  %s3715_s9 = smov 62   ;;  %v1679_v16 = vsel %vm9_vm1, %v3284_v6, %v1675_v5  ;;  %v1737_v23 = vsel %vm5_vm0, %v3295_v13, %v3294_v12  ;;  %v3304_v40 = vld [vmem:[%s6037_s0 + $0xd9] sm:$0x4]   ;;  %v3307_v42 = vld [vmem:[%s6037_s0 + $0x121] sm:$0x2]   ;;  %vm579_vm6 = vcmask 966504  }
  0x8d   :  { %1517 = vrot.lane.b32.xlu1 %v1516_v28, %s3713_s22  ;;  %v1683_v27 = vsel %vm13_vm2, %v3285_v17, %v1679_v16  ;;  %v3302_v28 = vld [vmem:[%s6037_s0 + $0x5b] sm:$0x1]   ;;  %v1741_v35 = vsel %vm9_vm1, %v3296_v24, %v1737_v23  ;;  %v3301_v49 = vld [vmem:[%s6037_s0 + $0x191] sm:$0x8]   ;;  %v1800_v53 = vsel %vm5_vm0, %v3307_v42, %v3306_v41  ;;  %v3308_v54 = vld [vmem:[%s6037_s0 + $0xa0] sm:$0x4]  }
  0x8e   :  { %v301_v34 = vpop.permute.xlu0 %300   ;;  %v1779_v39 = vsel %vm5_vm0, %v3303_v29, %v3302_v28  ;;  %v3305_v52 = vld [vmem:[%s6037_s0 + $0x1d8] sm:$0x8]   ;;  %v3312_v56 = vld [vmem:[%s6037_s0 + $0x67] sm:$0x4]   ;;  %v3314_v57 = vld [vmem:[%s6037_s0 + $0xb0] sm:$0x1]   ;;  %v1804_v0 = vsel %vm9_vm1, %v3308_v54, %v1800_v53 }
  0x8f   :  { %304 = vst.msk [vmem:[#allocation0 + $0x40] sm:$0x3] %vm89_vm5, %v301_v34   ;;  %306 = vst.msk [vmem:[#allocation0 + $0x86] sm:$0xc] %vm89_vm5, %v301_v34   ;;  %vm349_vm5 = vcmask 1048512   ;;  %v343_v46 = vpop.permute.xlu1 %342   ;;  %v1783_v51 = vsel %vm9_vm1, %v3304_v40, %v1779_v39  ;;  %v1825_v3 = vsel %vm9_vm1, %v3312_v56, %v1821_v55  ;;  %s3730_s26 = smov 47  }
  0x90   :  { %309 = vst.msk [vmem:[#allocation0 + $0x80] sm:$0x3] %vm307_vm4, %v301_v34   ;;  %311 = vst.msk [vmem:[#allocation0 + $0x36] sm:$0xc] %vm307_vm4, %v301_v34   ;;  %1538 = vrot.lane.b32.xlu0 %v1537_v31, %s3714_s27  ;;  %s3717_s27 = smov 60   ;;  %v1704_v31 = vsel %vm13_vm2, %v3289_v20, %v1700_v19  ;;  %vm600_vm4 = vcmask 958304  }
  0x91   :  { %346 = vst.msk [vmem:[#allocation0 + $0x20] sm:$0x3] %vm47_vm3, %v343_v46   ;;  %348 = vst.msk [vmem:[#allocation0 + $0x66] sm:$0xc] %vm47_vm3, %v343_v46   ;;  %vm391_vm3 = vcmask 1040304   ;;  %1558 = vrot.lane.b32.xlu1 %v1557_v43, %s3715_s9  ;;  %v1725_v43 = vsel %vm13_vm2, %v3293_v33, %v1721_v32  ;;  %s3732_s15 = smov 45  }
  0x92   :  { %v369_v50 = vpop.permute.xlu0 %368   ;;  %351 = vst.msk [vmem:[#allocation0 + $0x60] sm:$0x3] %vm349_vm5, %v343_v46   ;;  %353 = vst.msk [vmem:[#allocation0 + $0x16] sm:$0xc] %vm349_vm5, %v343_v46   ;;  %v3315_v58 = vld [vmem:[%s6037_s0 + $0x1af] sm:$0x2]  }
  0x93   :  { %372 = vst.msk [vmem:[#allocation0 + $0x40] sm:$0x3] %vm370_vm8, %v369_v50   ;;  %374 = vst.msk [vmem:[#allocation0 + $0x86] sm:$0xc] %vm370_vm8, %v369_v50   ;;  %v390_v62 = vpop.permute.xlu1 %389   ;;  %v3318_v60 = vld [vmem:[%s6037_s0 + $0x77] sm:$0x1]   ;;  %v1842_v5 = vsel %vm5_vm0, %v3315_v58, %v3314_v57 }
  0x94   :  { %1579 = vrot.lane.b32.xlu0 %v1578_v47, %s3716_s16  ;;  %393 = vst.msk [vmem:[#allocation0 + $0x20] sm:$0x3] %vm391_vm3, %v390_v62   ;;  %395 = vst.msk [vmem:[#allocation0 + $0x66] sm:$0xc] %vm391_vm3, %v390_v62   ;;  %s3719_s16 = smov 58   ;;  %v1745_v47 = vsel %vm13_vm2, %v3297_v36, %v1741_v35  ;;  %vm620_vm5 = vcmask 950104  }
  0x95   :  { %1600 = vrot.lane.b32.xlu1 %v1599_v59, %s3717_s27  ;;  %v1766_v59 = vsel %vm13_vm2, %v3301_v49, %v1762_v48  ;;  %v3319_v61 = vld [vmem:[%s6037_s0 + $0x176] sm:$0x2]   ;;  %v3309_v1 = vld [vmem:[%s6037_s0 + $0x19f] sm:$0x8]   ;;  %v3313_v4 = vld [vmem:[%s6037_s0 + $0x166] sm:$0x8]  }
  0x96   :  { %v411_v2 = vpop.permute.xlu0 %410   ;;  %v3316_v6 = vld [vmem:[%s6037_s0 + $0x2e] sm:$0x4]   ;;  %v1863_v7 = vsel %vm5_vm0, %v3319_v61, %v3318_v60  ;;  %v3320_v8 = vld [vmem:[%s6037_s0 + $0xf5] sm:$0x4]   ;;  %v3322_v9 = vld [vmem:[%s6037_s0 + $0x3e] sm:$0x1]  }
  0x97   :  { %413 = vst.msk [vmem:[#allocation0] sm:$0x3] %vm412_vm9, %v411_v2   ;;  %415 = vst.msk [vmem:[#allocation0 + $0x46] sm:$0xc] %vm412_vm9, %v411_v2   ;;  %v431_v14 = vpop.permute.xlu1 %430   ;;  %v3323_v10 = vld [vmem:[%s6037_s0 + $0x13d] sm:$0x2]   ;;  %v1846_v16 = vsel %vm9_vm1, %v3316_v6, %v1842_v5  ;;  %v1867_v19 = vsel %vm9_vm1, %v3320_v8, %v1863_v7 }
  0x98   :  { %1621 = vrot.lane.b32.xlu0 %v1620_v63, %s3718_s5  ;;  %434 = vst.msk [vmem:[#allocation0 + $0x28] sm:$0x3] %vm432_vm10, %v431_v14   ;;  %436 = vst.msk [vmem:[#allocation0 + $0x6e] sm:$0xc] %vm432_vm10, %v431_v14   ;;  %s3721_s5 = smov 56   ;;  %v1787_v63 = vsel %vm13_vm2, %v3305_v52, %v1783_v51  ;;  %vm641_vm8 = vcmask 941904   ;;  %v1884_v21 = vsel %vm5_vm0, %v3323_v10, %v3322_v9 }
  0x99   :  { %1642 = vrot.lane.b32.xlu1 %v1641_v11, %s3719_s16  ;;  %v1808_v11 = vsel %vm13_vm2, %v3309_v1, %v1804_v0  ;;  %v3326_v12 = vld [vmem:[%s6037_s0 + $0x5] sm:$0x1]   ;;  %v3317_v17 = vld [vmem:[%s6037_s0 + $0x12d] sm:$0x8]   ;;  %v3321_v20 = vld [vmem:[%s6037_s0 + $0x1f4] sm:$0x8]  }
  0x9a   :  { %v452_v18 = vpop.permute.xlu0 %451   ;;  %v3327_v13 = vld [vmem:[%s6037_s0 + $0x104] sm:$0x2]   ;;  %v3324_v22 = vld [vmem:[%s6037_s0 + $0xbc] sm:$0x4]   ;;  %v3330_v25 = vld [vmem:[%s6037_s0 + $0x4c] sm:$0x1]  }
  0x9b   :  { %455 = vst.msk [vmem:[#allocation0 + $0x8] sm:$0x3] %vm453_vm11, %v452_v18   ;;  %457 = vst.msk [vmem:[#allocation0 + $0x4e] sm:$0xc] %vm453_vm11, %v452_v18   ;;  %v473_v30 = vpop.permute.xlu1 %472   ;;  %v1905_v23 = vsel %vm5_vm0, %v3327_v13, %v3326_v12  ;;  %v3328_v24 = vld [vmem:[%s6037_s0 + $0x83] sm:$0x4]   ;;  %v1888_v32 = vsel %vm9_vm1, %v3324_v22, %v1884_v21 }
  0x9c   :  { %1663 = vrot.lane.b32.xlu0 %v1662_v15, %s3720_s23  ;;  %476 = vst.msk [vmem:[#allocation0 + $0x30] sm:$0x3] %vm474_vm12, %v473_v30   ;;  %478 = vst.msk [vmem:[#allocation0 + $0x76] sm:$0xc] %vm474_vm12, %v473_v30   ;;  %s3723_s23 = smov 54   ;;  %v1829_v15 = vsel %vm13_vm2, %v3313_v4, %v1825_v3  ;;  %vm662_vm3 = vcmask 933704   ;;  %v1909_v35 = vsel %vm9_vm1, %v3328_v24, %v1905_v23 }
  0x9d   :  { %1684 = vrot.lane.b32.xlu1 %v1683_v27, %s3721_s5  ;;  %v3331_v26 = vld [vmem:[%s6037_s0 + $0x14b] sm:$0x2]   ;;  %v1850_v27 = vsel %vm13_vm2, %v3317_v17, %v1846_v16  ;;  %v3334_v28 = vld [vmem:[%s6037_s0 + $0x13] sm:$0x1]   ;;  %v3325_v33 = vld [vmem:[%s6037_s0 + $0x1bb] sm:$0x8]  }
  0x9e   :  { %v494_v34 = vpop.permute.xlu0 %493   ;;  %v3335_v29 = vld [vmem:[%s6037_s0 + $0x112] sm:$0x2]   ;;  %vm683_vm9 = vcmask 925504   ;;  %v3329_v36 = vld [vmem:[%s6037_s0 + $0x182] sm:$0x8]   ;;  %v1925_v37 = vsel %vm5_vm0, %v3331_v26, %v3330_v25  ;;  %vm704_vm10 = vcmask 917304  }
  0x9f   :  { %497 = vst.msk [vmem:[#allocation0 + $0x10] sm:$0x3] %vm495_vm13, %v494_v34   ;;  %499 = vst.msk [vmem:[#allocation0 + $0x56] sm:$0xc] %vm495_vm13, %v494_v34   ;;  %v515_v46 = vpop.permute.xlu1 %514   ;;  %v3332_v38 = vld [vmem:[%s6037_s0 + $0xca] sm:$0x4]   ;;  %v1946_v39 = vsel %vm5_vm0, %v3335_v29, %v3334_v28 }
  0xa0   :  { %1705 = vrot.lane.b32.xlu0 %v1704_v31, %s3722_s12  ;;  %518 = vst.msk [vmem:[#allocation0 + $0x80] sm:$0x3] %vm516_vm14, %v515_v46   ;;  %520 = vst.msk [vmem:[#allocation0 + $0x36] sm:$0xc] %vm516_vm14, %v515_v46   ;;  %s3725_s12 = smov 52   ;;  %v1871_v31 = vsel %vm13_vm2, %v3321_v20, %v1867_v19  ;;  %v1929_v48 = vsel %vm9_vm1, %v3332_v38, %v1925_v37  ;;  %vm725_vm11 = vcmask 909104  }
  0xa1   :  { %1726 = vrot.lane.b32.xlu1 %v1725_v43, %s3723_s23  ;;  %v3336_v40 = vld [vmem:[%s6037_s0 + $0x91] sm:$0x4]   ;;  %v3338_v41 = vld [vmem:[%s6037_s0 + $0x5a] sm:$0x1]   ;;  %v1892_v43 = vsel %vm13_vm2, %v3325_v33, %v1888_v32  ;;  %v3342_v44 = vld [vmem:[%s6037_s0 + $0x21] sm:$0x1]  }
  0xa2   :  { %v536_v50 = vpop.permute.xlu0 %535   ;;  %v3339_v42 = vld [vmem:[%s6037_s0 + $0x159] sm:$0x2]   ;;  %v3343_v45 = vld [vmem:[%s6037_s0 + $0x120] sm:$0x2]   ;;  %v3333_v49 = vld [vmem:[%s6037_s0 + $0x1c9] sm:$0x8]   ;;  %v1950_v51 = vsel %vm9_vm1, %v3336_v40, %v1946_v39 }
  0xa3   :  { %539 = vst.msk [vmem:[#allocation0 + $0x60] sm:$0x3] %vm537_vm15, %v536_v50   ;;  %541 = vst.msk [vmem:[#allocation0 + $0x16] sm:$0xc] %vm537_vm15, %v536_v50   ;;  %v557_v62 = vpop.permute.xlu1 %556   ;;  %v3337_v52 = vld [vmem:[%s6037_s0 + $0x190] sm:$0x8]   ;;  %v1967_v53 = vsel %vm5_vm0, %v3339_v42, %v3338_v41  ;;  %v1988_v55 = vsel %vm5_vm0, %v3343_v45, %v3342_v44 }
  0xa4   :  { %1746 = vrot.lane.b32.xlu0 %v1745_v47, %s3724_s30  ;;  %560 = vst.msk [vmem:[#allocation0 + $0x40] sm:$0x3] %vm558_vm7, %v557_v62   ;;  %562 = vst.msk [vmem:[#allocation0 + $0x86] sm:$0xc] %vm558_vm7, %v557_v62   ;;  %s3727_s30 = smov 50   ;;  %v1913_v47 = vsel %vm13_vm2, %v3329_v36, %v1909_v35  ;;  %vm746_vm12 = vcmask 900904  }
  0xa5   :  { %1767 = vrot.lane.b32.xlu1 %v1766_v59, %s3725_s12  ;;  %v3340_v54 = vld [vmem:[%s6037_s0 + $0xd8] sm:$0x4]   ;;  %v3344_v56 = vld [vmem:[%s6037_s0 + $0x9f] sm:$0x4]   ;;  %v3346_v57 = vld [vmem:[%s6037_s0 + $0xe8] sm:$0x1]   ;;  %v1933_v59 = vsel %vm13_vm2, %v3333_v49, %v1929_v48 }
  0xa6   :  { %v578_v2 = vpop.permute.xlu0 %577   ;;  %v3347_v58 = vld [vmem:[%s6037_s0 + $0x1e7] sm:$0x2]   ;;  %v3350_v60 = vld [vmem:[%s6037_s0 + $0xaf] sm:$0x1]   ;;  %v1971_v0 = vsel %vm9_vm1, %v3340_v54, %v1967_v53  ;;  %v3341_v1 = vld [vmem:[%s6037_s0 + $0x1d7] sm:$0x8]   ;;  %v1992_v3 = vsel %vm9_vm1, %v3344_v56, %v1988_v55 }
  0xa7   :  { %581 = vst.msk [vmem:[#allocation0 + $0x20] sm:$0x3] %vm579_vm6, %v578_v2   ;;  %583 = vst.msk [vmem:[#allocation0 + $0x66] sm:$0xc] %vm579_vm6, %v578_v2   ;;  %v599_v14 = vpop.permute.xlu1 %598   ;;  %v3351_v61 = vld [vmem:[%s6037_s0 + $0x1ae] sm:$0x2]   ;;  %v2009_v5 = vsel %vm5_vm0, %v3347_v58, %v3346_v57 }
  0xa8   :  { %1788 = vrot.lane.b32.xlu0 %v1787_v63, %s3726_s19  ;;  %601 = vst.msk [vmem:[#allocation0] sm:$0x3] %vm600_vm4, %v599_v14   ;;  %603 = vst.msk [vmem:[#allocation0 + $0x46] sm:$0xc] %vm600_vm4, %v599_v14   ;;  %s3729_s19 = smov 48   ;;  %v1954_v63 = vsel %vm13_vm2, %v3337_v52, %v1950_v51  ;;  %vm767_vm13 = vcmask 892704   ;;  %v2030_v7 = vsel %vm5_vm0, %v3351_v61, %v3350_v60 }
  0xa9   :  { %1809 = vrot.lane.b32.xlu1 %v1808_v11, %s3727_s30  ;;  %v3345_v4 = vld [vmem:[%s6037_s0 + $0x19e] sm:$0x8]   ;;  %v3348_v6 = vld [vmem:[%s6037_s0 + $0x66] sm:$0x4]   ;;  %v3352_v8 = vld [vmem:[%s6037_s0 + $0x2d] sm:$0x4]   ;;  %v1975_v11 = vsel %vm13_vm2, %v3341_v1, %v1971_v0 }
  0xaa   :  { %v619_v18 = vpop.permute.xlu0 %618   ;;  %v3354_v9 = vld [vmem:[%s6037_s0 + $0x76] sm:$0x1]   ;;  %s3734_s4 = smov 43   ;;  %vm788_vm14 = vcmask 884504   ;;  %v3358_v12 = vld [vmem:[%s6037_s0 + $0x3d] sm:$0x1]   ;;  %v2013_v16 = vsel %vm9_vm1, %v3348_v6, %v2009_v5  ;;  %v2034_v19 = vsel %vm9_vm1, %v3352_v8, %v2030_v7 }
  0xab   :  { %622 = vst.msk [vmem:[#allocation0 + $0x28] sm:$0x3] %vm620_vm5, %v619_v18   ;;  %624 = vst.msk [vmem:[#allocation0 + $0x6e] sm:$0xc] %vm620_vm5, %v619_v18   ;;  %v640_v30 = vpop.permute.xlu1 %639   ;;  %v3355_v10 = vld [vmem:[%s6037_s0 + $0x175] sm:$0x2]  }
  0xac   :  { %1830 = vrot.lane.b32.xlu0 %v1829_v15, %s3728_s8  ;;  %643 = vst.msk [vmem:[#allocation0 + $0x8] sm:$0x3] %vm641_vm8, %v640_v30   ;;  %645 = vst.msk [vmem:[#allocation0 + $0x4e] sm:$0xc] %vm641_vm8, %v640_v30   ;;  %s3731_s8 = smov 46   ;;  %v1996_v15 = vsel %vm13_vm2, %v3345_v4, %v1992_v3  ;;  %vm808_vm15 = vcmask 876304   ;;  %v2051_v21 = vsel %vm5_vm0, %v3355_v10, %v3354_v9 }
  0xad   :  { %1851 = vrot.lane.b32.xlu1 %v1850_v27, %s3729_s19  ;;  %v3359_v13 = vld [vmem:[%s6037_s0 + $0x13c] sm:$0x2]   ;;  %v3349_v17 = vld [vmem:[%s6037_s0 + $0x165] sm:$0x8]   ;;  %v3353_v20 = vld [vmem:[%s6037_s0 + $0x12c] sm:$0x8]  }
  0xae   :  { %v661_v34 = vpop.permute.xlu0 %660   ;;  %v3356_v22 = vld [vmem:[%s6037_s0 + $0xf4] sm:$0x4]   ;;  %v2072_v23 = vsel %vm5_vm0, %v3359_v13, %v3358_v12  ;;  %v3360_v24 = vld [vmem:[%s6037_s0 + $0xbb] sm:$0x4]   ;;  %v3362_v25 = vld [vmem:[%s6037_s0 + $0x4] sm:$0x1]   ;;  %v2017_v27 = vsel %vm13_vm2, %v3349_v17, %v2013_v16 }
  0xaf   :  { %664 = vst.msk [vmem:[#allocation0 + $0x30] sm:$0x3] %vm662_vm3, %v661_v34   ;;  %666 = vst.msk [vmem:[#allocation0 + $0x76] sm:$0xc] %vm662_vm3, %v661_v34   ;;  %v682_v46 = vpop.permute.xlu1 %681   ;;  %v3363_v26 = vld [vmem:[%s6037_s0 + $0x103] sm:$0x2]   ;;  %v2055_v32 = vsel %vm9_vm1, %v3356_v22, %v2051_v21  ;;  %v2076_v35 = vsel %vm9_vm1, %v3360_v24, %v2072_v23 }
  0xb0   :  { %1872 = vrot.lane.b32.xlu0 %v1871_v31, %s3730_s26  ;;  %685 = vst.msk [vmem:[#allocation0 + $0x10] sm:$0x3] %vm683_vm9, %v682_v46   ;;  %687 = vst.msk [vmem:[#allocation0 + $0x56] sm:$0xc] %vm683_vm9, %v682_v46   ;;  %s3733_s26 = smov 44   ;;  %s3736_s22 = smov 41   ;;  %v2038_v31 = vsel %vm13_vm2, %v3353_v20, %v2034_v19  ;;  %v2093_v37 = vsel %vm5_vm0, %v3363_v26, %v3362_v25 }
  0xb1   :  { %1893 = vrot.lane.b32.xlu1 %v1892_v43, %s3731_s8  ;;  %vm829_vm7 = vcmask 868104   ;;  %v3366_v28 = vld [vmem:[%s6037_s0 + $0x4b] sm:$0x1]   ;;  %v3357_v33 = vld [vmem:[%s6037_s0 + $0x1f3] sm:$0x8]   ;;  %vm850_vm6 = vcmask 859904  }
  0xb2   :  { %v703_v50 = vpop.permute.xlu0 %702   ;;  %v3367_v29 = vld [vmem:[%s6037_s0 + $0x14a] sm:$0x2]   ;;  %v3361_v36 = vld [vmem:[%s6037_s0 + $0x1ba] sm:$0x8]   ;;  %v3364_v38 = vld [vmem:[%s6037_s0 + $0x82] sm:$0x4]   ;;  %v2059_v43 = vsel %vm13_vm2, %v3357_v33, %v2055_v32 }
  0xb3   :  { %706 = vst.msk [vmem:[#allocation0 + $0x80] sm:$0x3] %vm704_vm10, %v703_v50   ;;  %708 = vst.msk [vmem:[#allocation0 + $0x36] sm:$0xc] %vm704_vm10, %v703_v50   ;;  %v724_v62 = vpop.permute.xlu1 %723   ;;  %v2113_v39 = vsel %vm5_vm0, %v3367_v29, %v3366_v28  ;;  %v3368_v40 = vld [vmem:[%s6037_s0 + $0xc9] sm:$0x4]   ;;  %v2097_v48 = vsel %vm9_vm1, %v3364_v38, %v2093_v37 }
  0xb4   :  { %1914 = vrot.lane.b32.xlu0 %v1913_v47, %s3732_s15  ;;  %727 = vst.msk [vmem:[#allocation0 + $0x60] sm:$0x3] %vm725_vm11, %v724_v62   ;;  %729 = vst.msk [vmem:[#allocation0 + $0x16] sm:$0xc] %vm725_vm11, %v724_v62   ;;  %s3735_s15 = smov 42   ;;  %s3738_s11 = smov 39   ;;  %v2080_v47 = vsel %vm13_vm2, %v3361_v36, %v2076_v35  ;;  %v2117_v51 = vsel %vm9_vm1, %v3368_v40, %v2113_v39 }
  0xb5   :  { %1934 = vrot.lane.b32.xlu1 %v1933_v59, %s3733_s26  ;;  %v3370_v41 = vld [vmem:[%s6037_s0 + $0x12] sm:$0x1]   ;;  %vm871_vm4 = vcmask 851704   ;;  %v3374_v44 = vld [vmem:[%s6037_s0 + $0x59] sm:$0x1]   ;;  %vm892_vm5 = vcmask 843504  }
  0xb6   :  { %v745_v2 = vpop.permute.xlu0 %744   ;;  %v3371_v42 = vld [vmem:[%s6037_s0 + $0x111] sm:$0x2]   ;;  %v3375_v45 = vld [vmem:[%s6037_s0 + $0x158] sm:$0x2]   ;;  %v3365_v49 = vld [vmem:[%s6037_s0 + $0x181] sm:$0x8]  }
  0xb7   :  { %748 = vst.msk [vmem:[#allocation0 + $0x40] sm:$0x3] %vm746_vm12, %v745_v2   ;;  %750 = vst.msk [vmem:[#allocation0 + $0x86] sm:$0xc] %vm746_vm12, %v745_v2   ;;  %v766_v14 = vpop.permute.xlu1 %765   ;;  %v3369_v52 = vld [vmem:[%s6037_s0 + $0x1c8] sm:$0x8]   ;;  %v2134_v53 = vsel %vm5_vm0, %v3371_v42, %v3370_v41  ;;  %v2155_v55 = vsel %vm5_vm0, %v3375_v45, %v3374_v44  ;;  %v2101_v59 = vsel %vm13_vm2, %v3365_v49, %v2097_v48 }
  0xb8   :  { %1955 = vrot.lane.b32.xlu0 %v1954_v63, %s3734_s4  ;;  %769 = vst.msk [vmem:[#allocation0 + $0x20] sm:$0x3] %vm767_vm13, %v766_v14   ;;  %771 = vst.msk [vmem:[#allocation0 + $0x66] sm:$0xc] %vm767_vm13, %v766_v14   ;;  %s3737_s4 = smov 40   ;;  %s3740_s29 = smov 37   ;;  %v2121_v63 = vsel %vm13_vm2, %v3369_v52, %v2117_v51 }
  0xb9   :  { %1976 = vrot.lane.b32.xlu1 %v1975_v11, %s3735_s15  ;;  %v3372_v54 = vld [vmem:[%s6037_s0 + $0x90] sm:$0x4]   ;;  %v3376_v56 = vld [vmem:[%s6037_s0 + $0xd7] sm:$0x4]   ;;  %v3378_v57 = vld [vmem:[%s6037_s0 + $0x20] sm:$0x1]  }
  0xba   :  { %v787_v18 = vpop.permute.xlu0 %786   ;;  %v3379_v58 = vld [vmem:[%s6037_s0 + $0x11f] sm:$0x2]   ;;  %vm913_vm8 = vcmask 835304   ;;  %v3382_v60 = vld [vmem:[%s6037_s0 + $0xe7] sm:$0x1]   ;;  %v2138_v0 = vsel %vm9_vm1, %v3372_v54, %v2134_v53  ;;  %vm934_vm3 = vcmask 827104   ;;  %v2159_v3 = vsel %vm9_vm1, %v3376_v56, %v2155_v55 }
  0xbb   :  { %789 = vst.msk [vmem:[#allocation0] sm:$0x3] %vm788_vm14, %v787_v18   ;;  %791 = vst.msk [vmem:[#allocation0 + $0x46] sm:$0xc] %vm788_vm14, %v787_v18   ;;  %v807_v30 = vpop.permute.xlu1 %806   ;;  %v3383_v61 = vld [vmem:[%s6037_s0 + $0x1e6] sm:$0x2]   ;;  %v2176_v5 = vsel %vm5_vm0, %v3379_v58, %v3378_v57 }
  0xbc   :  { %1997 = vrot.lane.b32.xlu0 %v1996_v15, %s3736_s22  ;;  %810 = vst.msk [vmem:[#allocation0 + $0x28] sm:$0x3] %vm808_vm15, %v807_v30   ;;  %812 = vst.msk [vmem:[#allocation0 + $0x6e] sm:$0xc] %vm808_vm15, %v807_v30   ;;  %s3739_s22 = smov 38   ;;  %v2197_v7 = vsel %vm5_vm0, %v3383_v61, %v3382_v60  ;;  %s3742_s18 = smov 35  }
  0xbd   :  { %2018 = vrot.lane.b32.xlu1 %v2017_v27, %s3737_s4  ;;  %v3373_v1 = vld [vmem:[%s6037_s0 + $0x18f] sm:$0x8]   ;;  %v3377_v4 = vld [vmem:[%s6037_s0 + $0x1d6] sm:$0x8]   ;;  %v3380_v6 = vld [vmem:[%s6037_s0 + $0x9e] sm:$0x4]  }
  0xbe   :  { %v828_v34 = vpop.permute.xlu0 %827   ;;  %v3384_v8 = vld [vmem:[%s6037_s0 + $0x65] sm:$0x4]   ;;  %v3386_v9 = vld [vmem:[%s6037_s0 + $0xae] sm:$0x1]   ;;  %vm955_vm9 = vcmask 818904   ;;  %v2142_v11 = vsel %vm13_vm2, %v3373_v1, %v2138_v0  ;;  %v2163_v15 = vsel %vm13_vm2, %v3377_v4, %v2159_v3  ;;  %v2180_v16 = vsel %vm9_vm1, %v3380_v6, %v2176_v5  ;;  %s3744_s7 = smov 33  }
  0xbf   :  { %831 = vst.msk [vmem:[#allocation0 + $0x8] sm:$0x3] %vm829_vm7, %v828_v34   ;;  %833 = vst.msk [vmem:[#allocation0 + $0x4e] sm:$0xc] %vm829_vm7, %v828_v34   ;;  %v849_v46 = vpop.permute.xlu1 %848   ;;  %v3387_v10 = vld [vmem:[%s6037_s0 + $0x1ad] sm:$0x2]   ;;  %v2201_v19 = vsel %vm9_vm1, %v3384_v8, %v2197_v7 }
  0xc0   :  { %2039 = vrot.lane.b32.xlu0 %v2038_v31, %s3738_s11  ;;  %852 = vst.msk [vmem:[#allocation0 + $0x30] sm:$0x3] %vm850_vm6, %v849_v46   ;;  %854 = vst.msk [vmem:[#allocation0 + $0x76] sm:$0xc] %vm850_vm6, %v849_v46   ;;  %s3741_s11 = smov 36   ;;  %vm976_vm10 = vcmask 810704   ;;  %v2218_v21 = vsel %vm5_vm0, %v3387_v10, %v3386_v9 }
  0xc1   :  { %2060 = vrot.lane.b32.xlu1 %v2059_v43, %s3739_s22  ;;  %v3390_v12 = vld [vmem:[%s6037_s0 + $0x75] sm:$0x1]   ;;  %v3381_v17 = vld [vmem:[%s6037_s0 + $0x19d] sm:$0x8]   ;;  %v3385_v20 = vld [vmem:[%s6037_s0 + $0x164] sm:$0x8]  }
  0xc2   :  { %v870_v50 = vpop.permute.xlu0 %869   ;;  %v3391_v13 = vld [vmem:[%s6037_s0 + $0x174] sm:$0x2]   ;;  %v3388_v22 = vld [vmem:[%s6037_s0 + $0x2c] sm:$0x4]   ;;  %v3394_v25 = vld [vmem:[%s6037_s0 + $0x3c] sm:$0x1]   ;;  %v2184_v27 = vsel %vm13_vm2, %v3381_v17, %v2180_v16  ;;  %v2205_v31 = vsel %vm13_vm2, %v3385_v20, %v2201_v19 }
  0xc3   :  { %873 = vst.msk [vmem:[#allocation0 + $0x10] sm:$0x3] %vm871_vm4, %v870_v50   ;;  %875 = vst.msk [vmem:[#allocation0 + $0x56] sm:$0xc] %vm871_vm4, %v870_v50   ;;  %v891_v62 = vpop.permute.xlu1 %890   ;;  %v2239_v23 = vsel %vm5_vm0, %v3391_v13, %v3390_v12  ;;  %v3392_v24 = vld [vmem:[%s6037_s0 + $0xf3] sm:$0x4]   ;;  %v2222_v32 = vsel %vm9_vm1, %v3388_v22, %v2218_v21 }
  0xc4   :  { %2081 = vrot.lane.b32.xlu0 %v2080_v47, %s3740_s29  ;;  %894 = vst.msk [vmem:[#allocation0 + $0x80] sm:$0x3] %vm892_vm5, %v891_v62   ;;  %896 = vst.msk [vmem:[#allocation0 + $0x36] sm:$0xc] %vm892_vm5, %v891_v62   ;;  %s3743_s29 = smov 34   ;;  %vm996_vm11 = vcmask 802504   ;;  %v2243_v35 = vsel %vm9_vm1, %v3392_v24, %v2239_v23 }
  0xc5   :  { %2102 = vrot.lane.b32.xlu1 %v2101_v59, %s3741_s11  ;;  %v3395_v26 = vld [vmem:[%s6037_s0 + $0x13b] sm:$0x2]   ;;  %v3398_v28 = vld [vmem:[%s6037_s0 + $0x3] sm:$0x1]   ;;  %v3389_v33 = vld [vmem:[%s6037_s0 + $0x12b] sm:$0x8]  }
  0xc6   :  { %v912_v2 = vpop.permute.xlu0 %911   ;;  %v3399_v29 = vld [vmem:[%s6037_s0 + $0x102] sm:$0x2]   ;;  %vm1017_vm12 = vcmask 794304   ;;  %v3393_v36 = vld [vmem:[%s6037_s0 + $0x1f2] sm:$0x8]   ;;  %v2260_v37 = vsel %vm5_vm0, %v3395_v26, %v3394_v25  ;;  %s3746_s25 = smov 31   ;;  %v2226_v43 = vsel %vm13_vm2, %v3389_v33, %v2222_v32 }
  0xc7   :  { %915 = vst.msk [vmem:[#allocation0 + $0x60] sm:$0x3] %vm913_vm8, %v912_v2   ;;  %917 = vst.msk [vmem:[#allocation0 + $0x16] sm:$0xc] %vm913_vm8, %v912_v2   ;;  %v933_v14 = vpop.permute.xlu1 %932   ;;  %v3396_v38 = vld [vmem:[%s6037_s0 + $0xba] sm:$0x4]   ;;  %v2281_v39 = vsel %vm5_vm0, %v3399_v29, %v3398_v28  ;;  %v2247_v47 = vsel %vm13_vm2, %v3393_v36, %v2243_v35 }
  0xc8   :  { %2122 = vrot.lane.b32.xlu0 %v2121_v63, %s3742_s18  ;;  %936 = vst.msk [vmem:[#allocation0 + $0x40] sm:$0x3] %vm934_vm3, %v933_v14   ;;  %938 = vst.msk [vmem:[#allocation0 + $0x86] sm:$0xc] %vm934_vm3, %v933_v14   ;;  %s3745_s18 = smov 32   ;;  %vm1038_vm13 = vcmask 786104   ;;  %v2264_v48 = vsel %vm9_vm1, %v3396_v38, %v2260_v37 }
  0xc9   :  { %2143 = vrot.lane.b32.xlu1 %v2142_v11, %s3743_s29  ;;  %v3400_v40 = vld [vmem:[%s6037_s0 + $0x81] sm:$0x4]   ;;  %v3402_v41 = vld [vmem:[%s6037_s0 + $0x4a] sm:$0x1]   ;;  %v3406_v44 = vld [vmem:[%s6037_s0 + $0x11] sm:$0x1]  }
  0xca   :  { %v954_v18 = vpop.permute.xlu0 %953   ;;  %v3403_v42 = vld [vmem:[%s6037_s0 + $0x149] sm:$0x2]   ;;  %v3407_v45 = vld [vmem:[%s6037_s0 + $0x110] sm:$0x2]   ;;  %v3397_v49 = vld [vmem:[%s6037_s0 + $0x1b9] sm:$0x8]   ;;  %v2285_v51 = vsel %vm9_vm1, %v3400_v40, %v2281_v39 }
  0xcb   :  { %957 = vst.msk [vmem:[#allocation0 + $0x20] sm:$0x3] %vm955_vm9, %v954_v18   ;;  %959 = vst.msk [vmem:[#allocation0 + $0x66] sm:$0xc] %vm955_vm9, %v954_v18   ;;  %v975_v30 = vpop.permute.xlu1 %974   ;;  %vm1059_vm14 = vcmask 777904   ;;  %v2301_v53 = vsel %vm5_vm0, %v3403_v42, %v3402_v41  ;;  %v2322_v55 = vsel %vm5_vm0, %v3407_v45, %v3406_v44  ;;  %s3748_s14 = smov 29   ;;  %v2268_v59 = vsel %vm13_vm2, %v3397_v49, %v2264_v48 }
  0xcc   :  { %2164 = vrot.lane.b32.xlu0 %v2163_v15, %s3744_s7  ;;  %977 = vst.msk [vmem:[#allocation0] sm:$0x3] %vm976_vm10, %v975_v30   ;;  %979 = vst.msk [vmem:[#allocation0 + $0x46] sm:$0xc] %vm976_vm10, %v975_v30   ;;  %v3401_v52 = vld [vmem:[%s6037_s0 + $0x180] sm:$0x8]  }
  0xcd   :  { %2185 = vrot.lane.b32.xlu1 %v2184_v27, %s3745_s18  ;;  %v3404_v54 = vld [vmem:[%s6037_s0 + $0xc8] sm:$0x4]   ;;  %s3747_s7 = smov 30   ;;  %v3408_v56 = vld [vmem:[%s6037_s0 + $0x8f] sm:$0x4]   ;;  %vm1080_vm15 = vcmask 769704   ;;  %v2289_v63 = vsel %vm13_vm2, %v3401_v52, %v2285_v51 }
  0xce   :  { %v995_v34 = vpop.permute.xlu0 %994   ;;  %v3410_v57 = vld [vmem:[%s6037_s0 + $0x58] sm:$0x1]   ;;  %v3414_v60 = vld [vmem:[%s6037_s0 + $0x1f] sm:$0x1]   ;;  %v2305_v0 = vsel %vm9_vm1, %v3404_v54, %v2301_v53  ;;  %v3405_v1 = vld [vmem:[%s6037_s0 + $0x1c7] sm:$0x8]   ;;  %v2326_v3 = vsel %vm9_vm1, %v3408_v56, %v2322_v55 }
  0xcf   :  { %998 = vst.msk [vmem:[#allocation0 + $0x28] sm:$0x3] %vm996_vm11, %v995_v34   ;;  %1000 = vst.msk [vmem:[#allocation0 + $0x6e] sm:$0xc] %vm996_vm11, %v995_v34   ;;  %v1016_v46 = vpop.permute.xlu1 %1015   ;;  %v3411_v58 = vld [vmem:[%s6037_s0 + $0x157] sm:$0x2]   ;;  %v2309_v11 = vsel %vm13_vm2, %v3405_v1, %v2305_v0 }
  0xd0   :  { %2206 = vrot.lane.b32.xlu0 %v2205_v31, %s3746_s25  ;;  %1019 = vst.msk [vmem:[#allocation0 + $0x8] sm:$0x3] %vm1017_vm12, %v1016_v46   ;;  %1021 = vst.msk [vmem:[#allocation0 + $0x4e] sm:$0xc] %vm1017_vm12, %v1016_v46   ;;  %v3415_v61 = vld [vmem:[%s6037_s0 + $0x11e] sm:$0x2]   ;;  %v2343_v5 = vsel %vm5_vm0, %v3411_v58, %v3410_v57 }
  0xd1   :  { %2227 = vrot.lane.b32.xlu1 %v2226_v43, %s3747_s7  ;;  %vm1101_vm7 = vcmask 761504   ;;  %v3409_v4 = vld [vmem:[%s6037_s0 + $0x18e] sm:$0x8]   ;;  %v3412_v6 = vld [vmem:[%s6037_s0 + $0xd6] sm:$0x4]   ;;  %s3749_s25 = smov 28   ;;  %v2364_v7 = vsel %vm5_vm0, %v3415_v61, %v3414_v60 }
  0xd2   :  { %v1037_v50 = vpop.permute.xlu0 %1036   ;;  %v3416_v8 = vld [vmem:[%s6037_s0 + $0x9d] sm:$0x4]   ;;  %v3418_v9 = vld [vmem:[%s6037_s0 + $0xe6] sm:$0x1]   ;;  %s3750_s3 = smov 27   ;;  %vm1122_vm6 = vcmask 753304   ;;  %v2330_v15 = vsel %vm13_vm2, %v3409_v4, %v2326_v3  ;;  %v2347_v16 = vsel %vm9_vm1, %v3412_v6, %v2343_v5 }
  0xd3   :  { %1040 = vst.msk [vmem:[#allocation0 + $0x30] sm:$0x3] %vm1038_vm13, %v1037_v50   ;;  %1042 = vst.msk [vmem:[#allocation0 + $0x76] sm:$0xc] %vm1038_vm13, %v1037_v50   ;;  %v1058_v62 = vpop.permute.xlu1 %1057   ;;  %v3419_v10 = vld [vmem:[%s6037_s0 + $0x1e5] sm:$0x2]   ;;  %v2368_v19 = vsel %vm9_vm1, %v3416_v8, %v2364_v7 }
  0xd4   :  { %2248 = vrot.lane.b32.xlu0 %v2247_v47, %s3748_s14  ;;  %1061 = vst.msk [vmem:[#allocation0 + $0x10] sm:$0x3] %vm1059_vm14, %v1058_v62   ;;  %1063 = vst.msk [vmem:[#allocation0 + $0x56] sm:$0xc] %vm1059_vm14, %v1058_v62   ;;  %v3422_v12 = vld [vmem:[%s6037_s0 + $0xad] sm:$0x1]   ;;  %v2385_v21 = vsel %vm5_vm0, %v3419_v10, %v3418_v9 }
  0xd5   :  { %2269 = vrot.lane.b32.xlu1 %v2268_v59, %s3749_s25  ;;  %v3423_v13 = vld [vmem:[%s6037_s0 + $0x1ac] sm:$0x2]   ;;  %v3413_v17 = vld [vmem:[%s6037_s0 + $0x1d5] sm:$0x8]   ;;  %vm1143_vm4 = vcmask 745104   ;;  %s3751_s14 = smov 26  }
  0xd6   :  { %v1079_v2 = vpop.permute.xlu0 %1078   ;;  %v3417_v20 = vld [vmem:[%s6037_s0 + $0x19c] sm:$0x8]   ;;  %v3420_v22 = vld [vmem:[%s6037_s0 + $0x64] sm:$0x4]   ;;  %v2406_v23 = vsel %vm5_vm0, %v3423_v13, %v3422_v12  ;;  %v3424_v24 = vld [vmem:[%s6037_s0 + $0x2b] sm:$0x4]   ;;  %v2351_v27 = vsel %vm13_vm2, %v3413_v17, %v2347_v16 }
  0xd7   :  { %1082 = vst.msk [vmem:[#allocation0 + $0x80] sm:$0x3] %vm1080_vm15, %v1079_v2   ;;  %1084 = vst.msk [vmem:[#allocation0 + $0x36] sm:$0xc] %vm1080_vm15, %v1079_v2   ;;  %v1100_v14 = vpop.permute.xlu1 %1099   ;;  %v3426_v25 = vld [vmem:[%s6037_s0 + $0x74] sm:$0x1]   ;;  %v2372_v31 = vsel %vm13_vm2, %v3417_v20, %v2368_v19  ;;  %v2389_v32 = vsel %vm9_vm1, %v3420_v22, %v2385_v21  ;;  %v2410_v35 = vsel %vm9_vm1, %v3424_v24, %v2406_v23 }
  0xd8   :  { %2290 = vrot.lane.b32.xlu0 %v2289_v63, %s3750_s3  ;;  %1103 = vst.msk [vmem:[#allocation0 + $0x60] sm:$0x3] %vm1101_vm7, %v1100_v14   ;;  %1105 = vst.msk [vmem:[#allocation0 + $0x16] sm:$0xc] %vm1101_vm7, %v1100_v14   ;;  %v3427_v26 = vld [vmem:[%s6037_s0 + $0x173] sm:$0x2]  }
  0xd9   :  { %2310 = vrot.lane.b32.xlu1 %v2309_v11, %s3751_s14  ;;  %s3752_s21 = smov 25   ;;  %vm1164_vm5 = vcmask 736904   ;;  %v3430_v28 = vld [vmem:[%s6037_s0 + $0x3b] sm:$0x1]   ;;  %v3421_v33 = vld [vmem:[%s6037_s0 + $0x163] sm:$0x8]   ;;  %v2427_v37 = vsel %vm5_vm0, %v3427_v26, %v3426_v25 }
  0xda   :  { %v1121_v18 = vpop.permute.xlu0 %1120   ;;  %v3431_v29 = vld [vmem:[%s6037_s0 + $0x13a] sm:$0x2]   ;;  %vm1184_vm8 = vcmask 728704   ;;  %v3425_v36 = vld [vmem:[%s6037_s0 + $0x12a] sm:$0x8]   ;;  %s3753_s3 = smov 24   ;;  %v2393_v43 = vsel %vm13_vm2, %v3421_v33, %v2389_v32 }
  0xdb   :  { %1124 = vst.msk [vmem:[#allocation0 + $0x40] sm:$0x3] %vm1122_vm6, %v1121_v18   ;;  %1126 = vst.msk [vmem:[#allocation0 + $0x86] sm:$0xc] %vm1122_vm6, %v1121_v18   ;;  %v1142_v30 = vpop.permute.xlu1 %1141   ;;  %v3428_v38 = vld [vmem:[%s6037_s0 + $0xf2] sm:$0x4]   ;;  %v2448_v39 = vsel %vm5_vm0, %v3431_v29, %v3430_v28  ;;  %v2414_v47 = vsel %vm13_vm2, %v3425_v36, %v2410_v35 }
  0xdc   :  { %2331 = vrot.lane.b32.xlu0 %v2330_v15, %s3752_s21  ;;  %1145 = vst.msk [vmem:[#allocation0 + $0x20] sm:$0x3] %vm1143_vm4, %v1142_v30   ;;  %1147 = vst.msk [vmem:[#allocation0 + $0x66] sm:$0xc] %vm1143_vm4, %v1142_v30   ;;  %v3432_v40 = vld [vmem:[%s6037_s0 + $0xb9] sm:$0x4]   ;;  %v2431_v48 = vsel %vm9_vm1, %v3428_v38, %v2427_v37 }
  0xdd   :  { %2352 = vrot.lane.b32.xlu1 %v2351_v27, %s3753_s3  ;;  %v3434_v41 = vld [vmem:[%s6037_s0 + $0x2] sm:$0x1]   ;;  %s3754_s10 = smov 23   ;;  %vm1205_vm3 = vcmask 720504   ;;  %v3438_v44 = vld [vmem:[%s6037_s0 + $0x49] sm:$0x1]   ;;  %v2452_v51 = vsel %vm9_vm1, %v3432_v40, %v2448_v39 }
  0xde   :  { %v1163_v34 = vpop.permute.xlu0 %1162   ;;  %v3435_v42 = vld [vmem:[%s6037_s0 + $0x101] sm:$0x2]   ;;  %v3439_v45 = vld [vmem:[%s6037_s0 + $0x148] sm:$0x2]   ;;  %v3429_v49 = vld [vmem:[%s6037_s0 + $0x1f1] sm:$0x8]  }
  0xdf   :  { %1165 = vst.msk [vmem:[#allocation0] sm:$0x3] %vm1164_vm5, %v1163_v34   ;;  %1167 = vst.msk [vmem:[#allocation0 + $0x46] sm:$0xc] %vm1164_vm5, %v1163_v34   ;;  %v1183_v46 = vpop.permute.xlu1 %1182   ;;  %vm1226_vm9 = vcmask 712304   ;;  %v2469_v53 = vsel %vm5_vm0, %v3435_v42, %v3434_v41  ;;  %s3755_s21 = smov 22   ;;  %v2489_v55 = vsel %vm5_vm0, %v3439_v45, %v3438_v44  ;;  %v2435_v59 = vsel %vm13_vm2, %v3429_v49, %v2431_v48 }
  0xe0   :  { %2373 = vrot.lane.b32.xlu0 %v2372_v31, %s3754_s10  ;;  %1186 = vst.msk [vmem:[#allocation0 + $0x28] sm:$0x3] %vm1184_vm8, %v1183_v46   ;;  %1188 = vst.msk [vmem:[#allocation0 + $0x6e] sm:$0xc] %vm1184_vm8, %v1183_v46   ;;  %v3433_v52 = vld [vmem:[%s6037_s0 + $0x1b8] sm:$0x8]  }
  0xe1   :  { %v3436_v54 = vld [vmem:[%s6037_s0 + $0x80] sm:$0x4]   ;;  %2394 = vrot.lane.b32.xlu1 %v2393_v43, %s3755_s21  ;;  %v3440_v56 = vld [vmem:[%s6037_s0 + $0xc7] sm:$0x4]   ;;  %v3442_v57 = vld [vmem:[%s6037_s0 + $0x10] sm:$0x1]   ;;  %v2456_v63 = vsel %vm13_vm2, %v3433_v52, %v2452_v51 }
  0xe2   :  { %v1204_v50 = vpop.permute.xlu0 %1203   ;;  %v3443_v58 = vld [vmem:[%s6037_s0 + $0x10f] sm:$0x2]   ;;  %s3756_s28 = smov 21   ;;  %vm1247_vm10 = vcmask 704104   ;;  %v3446_v60 = vld [vmem:[%s6037_s0 + $0x57] sm:$0x1]   ;;  %v2473_v0 = vsel %vm9_vm1, %v3436_v54, %v2469_v53  ;;  %v2493_v3 = vsel %vm9_vm1, %v3440_v56, %v2489_v55 }
  0xe3   :  { %1207 = vst.msk [vmem:[#allocation0 + $0x8] sm:$0x3] %vm1205_vm3, %v1204_v50   ;;  %1209 = vst.msk [vmem:[#allocation0 + $0x4e] sm:$0xc] %vm1205_vm3, %v1204_v50   ;;  %v3447_v61 = vld [vmem:[%s6037_s0 + $0x156] sm:$0x2]   ;;  %v1225_v62 = vpop.permute.xlu1 %1224   ;;  %v2510_v5 = vsel %vm5_vm0, %v3443_v58, %v3442_v57 }
  0xe4   :  { %2415 = vrot.lane.b32.xlu0 %v2414_v47, %s3756_s28  ;;  %v3437_v1 = vld [vmem:[%s6037_s0 + $0x17f] sm:$0x8]   ;;  %1228 = vst.msk [vmem:[#allocation0 + $0x30] sm:$0x3] %vm1226_vm9, %v1225_v62   ;;  %1230 = vst.msk [vmem:[#allocation0 + $0x76] sm:$0xc] %vm1226_vm9, %v1225_v62   ;;  %v2531_v7 = vsel %vm5_vm0, %v3447_v61, %v3446_v60 }
  0xe5   :  { %vm1268_vm11 = vcmask 695904   ;;  %v3441_v4 = vld [vmem:[%s6037_s0 + $0x1c6] sm:$0x8]   ;;  %v3444_v6 = vld [vmem:[%s6037_s0 + $0x8e] sm:$0x4]   ;;  %s3757_s10 = smov 20   ;;  %v2477_v11 = vsel %vm13_vm2, %v3437_v1, %v2473_v0 }
  0xe6   :  { %v1246_v2 = vpop.permute.xlu0 %1245   ;;  %2436 = vrot.lane.b32.xlu1 %v2435_v59, %s3757_s10  ;;  %v3448_v8 = vld [vmem:[%s6037_s0 + $0xd5] sm:$0x4]   ;;  %v3450_v9 = vld [vmem:[%s6037_s0 + $0x1e] sm:$0x1]   ;;  %s3758_s17 = smov 19   ;;  %vm1289_vm12 = vcmask 687704   ;;  %v2497_v15 = vsel %vm13_vm2, %v3441_v4, %v2493_v3  ;;  %v2514_v16 = vsel %vm9_vm1, %v3444_v6, %v2510_v5 }
  0xe7   :  { %1249 = vst.msk [vmem:[#allocation0 + $0x10] sm:$0x3] %vm1247_vm10, %v1246_v2   ;;  %1251 = vst.msk [vmem:[#allocation0 + $0x56] sm:$0xc] %vm1247_vm10, %v1246_v2   ;;  %v3451_v10 = vld [vmem:[%s6037_s0 + $0x11d] sm:$0x2]   ;;  %v1267_v14 = vpop.permute.xlu1 %1266   ;;  %v2535_v19 = vsel %vm9_vm1, %v3448_v8, %v2531_v7 }
  0xe8   :  { %2457 = vrot.lane.b32.xlu0 %v2456_v63, %s3758_s17  ;;  %v3454_v12 = vld [vmem:[%s6037_s0 + $0xe5] sm:$0x1]   ;;  %v3445_v17 = vld [vmem:[%s6037_s0 + $0x18d] sm:$0x8]   ;;  %1270 = vst.msk [vmem:[#allocation0 + $0x80] sm:$0x3] %vm1268_vm11, %v1267_v14   ;;  %v2552_v21 = vsel %vm5_vm0, %v3451_v10, %v3450_v9 }
  0xe9   :  { %v3455_v13 = vld [vmem:[%s6037_s0 + $0x1e4] sm:$0x2]   ;;  %1272 = vst.msk [vmem:[#allocation0 + $0x36] sm:$0xc] %vm1268_vm11, %v1267_v14   ;;  %vm1310_vm13 = vcmask 679504   ;;  %s3759_s28 = smov 18   ;;  %v2518_v27 = vsel %vm13_vm2, %v3445_v17, %v2514_v16 }
  0xea   :  { %v1288_v18 = vpop.permute.xlu0 %1287   ;;  %v3449_v20 = vld [vmem:[%s6037_s0 + $0x1d4] sm:$0x8]   ;;  %v3452_v22 = vld [vmem:[%s6037_s0 + $0x9c] sm:$0x4]   ;;  %2478 = vrot.lane.b32.xlu1 %v2477_v11, %s3759_s28  ;;  %v2573_v23 = vsel %vm5_vm0, %v3455_v13, %v3454_v12  ;;  %v3456_v24 = vld [vmem:[%s6037_s0 + $0x63] sm:$0x4]  }
  0xeb   :  { %1291 = vst.msk [vmem:[#allocation0 + $0x60] sm:$0x3] %vm1289_vm12, %v1288_v18   ;;  %1293 = vst.msk [vmem:[#allocation0 + $0x16] sm:$0xc] %vm1289_vm12, %v1288_v18   ;;  %v3458_v25 = vld [vmem:[%s6037_s0 + $0xac] sm:$0x1]   ;;  %v1309_v30 = vpop.permute.xlu1 %1308   ;;  %v2539_v31 = vsel %vm13_vm2, %v3449_v20, %v2535_v19  ;;  %v2556_v32 = vsel %vm9_vm1, %v3452_v22, %v2552_v21  ;;  %v2577_v35 = vsel %vm9_vm1, %v3456_v24, %v2573_v23 }
  0xec   :  { %v3459_v26 = vld [vmem:[%s6037_s0 + $0x1ab] sm:$0x2]   ;;  %s3760_s6 = smov 17   ;;  %vm1331_vm14 = vcmask 671304   ;;  %v3462_v28 = vld [vmem:[%s6037_s0 + $0x73] sm:$0x1]  }
  0xed   :  { %2498 = vrot.lane.b32.xlu0 %v2497_v15, %s3760_s6  ;;  %v3463_v29 = vld [vmem:[%s6037_s0 + $0x172] sm:$0x2]   ;;  %v3453_v33 = vld [vmem:[%s6037_s0 + $0x19b] sm:$0x8]   ;;  %1312 = vst.msk [vmem:[#allocation0 + $0x40] sm:$0x3] %vm1310_vm13, %v1309_v30   ;;  %v2594_v37 = vsel %vm5_vm0, %v3459_v26, %v3458_v25 }
  0xee   :  { %1314 = vst.msk [vmem:[#allocation0 + $0x86] sm:$0xc] %vm1310_vm13, %v1309_v30   ;;  %v1330_v34 = vpop.permute.xlu0 %1329   ;;  %vm1352_vm15 = vcmask 663104   ;;  %v3457_v36 = vld [vmem:[%s6037_s0 + $0x162] sm:$0x8]   ;;  %s3761_s17 = smov 16   ;;  %v2615_v39 = vsel %vm5_vm0, %v3463_v29, %v3462_v28  ;;  %v2560_v43 = vsel %vm13_vm2, %v3453_v33, %v2556_v32 }
  0xef   :  { %v3460_v38 = vld [vmem:[%s6037_s0 + $0x2a] sm:$0x4]   ;;  %1333 = vst.msk [vmem:[#allocation0 + $0x20] sm:$0x3] %vm1331_vm14, %v1330_v34   ;;  %1335 = vst.msk [vmem:[#allocation0 + $0x66] sm:$0xc] %vm1331_vm14, %v1330_v34   ;;  %2519 = vrot.lane.b32.xlu1 %v2518_v27, %s3761_s17  ;;  %v1351_v46 = vpop.permute.xlu1 %1350   ;;  %v2581_v47 = vsel %vm13_vm2, %v3457_v36, %v2577_v35 }
  0xf0   :  { %v3464_v40 = vld [vmem:[%s6037_s0 + $0xf1] sm:$0x4]   ;;  %v3466_v41 = vld [vmem:[%s6037_s0 + $0x3a] sm:$0x1]   ;;  %s3762_s24 = smov 15   ;;  %vm1372_vm7 = vcmask 654904   ;;  %v2598_v48 = vsel %vm9_vm1, %v3460_v38, %v2594_v37 }
  0xf1   :  { %v3467_v42 = vld [vmem:[%s6037_s0 + $0x139] sm:$0x2]   ;;  %2540 = vrot.lane.b32.xlu0 %v2539_v31, %s3762_s24  ;;  %v3470_v44 = vld [vmem:[%s6037_s0 + $0x1] sm:$0x1]   ;;  %v3461_v49 = vld [vmem:[%s6037_s0 + $0x129] sm:$0x8]   ;;  %v2619_v51 = vsel %vm9_vm1, %v3464_v40, %v2615_v39 }
  0xf2   :  { %v3471_v45 = vld [vmem:[%s6037_s0 + $0x100] sm:$0x2]   ;;  %1353 = vst.msk [vmem:[#allocation0] sm:$0x3] %vm1352_vm15, %v1351_v46   ;;  %1355 = vst.msk [vmem:[#allocation0 + $0x46] sm:$0xc] %vm1352_vm15, %v1351_v46   ;;  %v1371_v50 = vpop.permute.xlu0 %1370   ;;  %v2636_v53 = vsel %vm5_vm0, %v3467_v42, %v3466_v41  ;;  %v2602_v59 = vsel %vm13_vm2, %v3461_v49, %v2598_v48 }
  0xf3   :  { %vm1393_vm6 = vcmask 646704   ;;  %v3465_v52 = vld [vmem:[%s6037_s0 + $0x1f0] sm:$0x8]   ;;  %v3468_v54 = vld [vmem:[%s6037_s0 + $0xb8] sm:$0x4]   ;;  %s3763_s6 = smov 14   ;;  %v2657_v55 = vsel %vm5_vm0, %v3471_v45, %v3470_v44  ;;  %v1392_v62 = vpop.permute.xlu1 %1391  }
  0xf4   :  { %1374 = vst.msk [vmem:[#allocation0 + $0x28] sm:$0x3] %vm1372_vm7, %v1371_v50   ;;  %1376 = vst.msk [vmem:[#allocation0 + $0x6e] sm:$0xc] %vm1372_vm7, %v1371_v50   ;;  %2561 = vrot.lane.b32.xlu1 %v2560_v43, %s3763_s6  ;;  %v3472_v56 = vld [vmem:[%s6037_s0 + $0x7f] sm:$0x4]   ;;  %v2623_v63 = vsel %vm13_vm2, %v3465_v52, %v2619_v51  ;;  %v2640_v0 = vsel %vm9_vm1, %v3468_v54, %v2636_v53 }
  0xf5   :  { %v3474_v57 = vld [vmem:[%s6037_s0 + $0x48] sm:$0x1]   ;;  %s3764_s13 = smov 13   ;;  %vm1414_vm4 = vcmask 638504   ;;  %v3478_v60 = vld [vmem:[%s6037_s0 + $0xf] sm:$0x1]   ;;  %v2661_v3 = vsel %vm9_vm1, %v3472_v56, %v2657_v55 }
  0xf6   :  { %v3475_v58 = vld [vmem:[%s6037_s0 + $0x147] sm:$0x2]   ;;  %2582 = vrot.lane.b32.xlu0 %v2581_v47, %s3764_s13  ;;  %v3479_v61 = vld [vmem:[%s6037_s0 + $0x10e] sm:$0x2]   ;;  %v3469_v1 = vld [vmem:[%s6037_s0 + $0x1b7] sm:$0x8]   ;;  %v1413_v2 = vpop.permute.xlu0 %1412  }
  0xf7   :  { %1395 = vst.msk [vmem:[#allocation0 + $0x8] sm:$0x3] %vm1393_vm6, %v1392_v62   ;;  %1397 = vst.msk [vmem:[#allocation0 + $0x4e] sm:$0xc] %vm1393_vm6, %v1392_v62   ;;  %vm1435_vm5 = vcmask 630304   ;;  %v2677_v5 = vsel %vm5_vm0, %v3475_v58, %v3474_v57  ;;  %s3765_s24 = smov 12   ;;  %v2698_v7 = vsel %vm5_vm0, %v3479_v61, %v3478_v60  ;;  %v2644_v11 = vsel %vm13_vm2, %v3469_v1, %v2640_v0  ;;  %v1434_v14 = vpop.permute.xlu1 %1433  }
  0xf8   :  { %v3473_v4 = vld [vmem:[%s6037_s0 + $0x17e] sm:$0x8]   ;;  %v3476_v6 = vld [vmem:[%s6037_s0 + $0xc6] sm:$0x4]   ;;  %1416 = vst.msk [vmem:[#allocation0 + $0x30] sm:$0x3] %vm1414_vm4, %v1413_v2   ;;  %2603 = vrot.lane.b32.xlu1 %v2602_v59, %s3765_s24 }
  0xf9   :  { %1418 = vst.msk [vmem:[#allocation0 + $0x76] sm:$0xc] %vm1414_vm4, %v1413_v2   ;;  %v3480_v8 = vld [vmem:[%s6037_s0 + $0x8d] sm:$0x4]   ;;  %v3482_v9 = vld [vmem:[%s6037_s0 + $0x56] sm:$0x1]   ;;  %v2665_v15 = vsel %vm13_vm2, %v3473_v4, %v2661_v3  ;;  %v2681_v16 = vsel %vm9_vm1, %v3476_v6, %v2677_v5 }
  0xfa   :  { %v3483_v10 = vld [vmem:[%s6037_s0 + $0x155] sm:$0x2]   ;;  %s3766_s2 = smov 11   ;;  %vm1456_vm8 = vcmask 622104   ;;  %v3486_v12 = vld [vmem:[%s6037_s0 + $0x1d] sm:$0x1]   ;;  %v1455_v18 = vpop.permute.xlu0 %1454   ;;  %v2702_v19 = vsel %vm9_vm1, %v3480_v8, %v2698_v7 }
  0xfb   :  { %2624 = vrot.lane.b32.xlu0 %v2623_v63, %s3766_s2  ;;  %v3487_v13 = vld [vmem:[%s6037_s0 + $0x11c] sm:$0x2]   ;;  %v3477_v17 = vld [vmem:[%s6037_s0 + $0x1c5] sm:$0x8]   ;;  %1437 = vst.msk [vmem:[#allocation0 + $0x10] sm:$0x3] %vm1435_vm5, %v1434_v14   ;;  %v2719_v21 = vsel %vm5_vm0, %v3483_v10, %v3482_v9  ;;  %v1476_v30 = vpop.permute.xlu1 %1475  }
  0xfc   :  { %1439 = vst.msk [vmem:[#allocation0 + $0x56] sm:$0xc] %vm1435_vm5, %v1434_v14   ;;  %vm1477_vm3 = vcmask 613904   ;;  %v3481_v20 = vld [vmem:[%s6037_s0 + $0x18c] sm:$0x8]   ;;  %s3767_s13 = smov 10   ;;  %v2740_v23 = vsel %vm5_vm0, %v3487_v13, %v3486_v12  ;;  %v2685_v27 = vsel %vm13_vm2, %v3477_v17, %v2681_v16 }
  0xfd   :  { %v3484_v22 = vld [vmem:[%s6037_s0 + $0xd4] sm:$0x4]   ;;  %1458 = vst.msk [vmem:[#allocation0 + $0x80] sm:$0x3] %vm1456_vm8, %v1455_v18   ;;  %1460 = vst.msk [vmem:[#allocation0 + $0x36] sm:$0xc] %vm1456_vm8, %v1455_v18   ;;  %2645 = vrot.lane.b32.xlu1 %v2644_v11, %s3767_s13  ;;  %v2706_v31 = vsel %vm13_vm2, %v3481_v20, %v2702_v19 }
  0xfe   :  { %v3488_v24 = vld [vmem:[%s6037_s0 + $0x9b] sm:$0x4]   ;;  %v3490_v25 = vld [vmem:[%s6037_s0 + $0xe4] sm:$0x1]   ;;  %s3768_s20 = smov 9   ;;  %vm1498_vm9 = vcmask 605704   ;;  %v2723_v32 = vsel %vm9_vm1, %v3484_v22, %v2719_v21  ;;  %v1497_v34 = vpop.permute.xlu0 %1496  }
  0xff   :  { %v3491_v26 = vld [vmem:[%s6037_s0 + $0x1e3] sm:$0x2]   ;;  %2666 = vrot.lane.b32.xlu0 %v2665_v15, %s3768_s20  ;;  %v3494_v28 = vld [vmem:[%s6037_s0 + $0xab] sm:$0x1]   ;;  %v3485_v33 = vld [vmem:[%s6037_s0 + $0x1d3] sm:$0x8]   ;;  %v2744_v35 = vsel %vm9_vm1, %v3488_v24, %v2740_v23  ;;  %v1518_v46 = vpop.permute.xlu1 %1517  }
 0x100   :  { %v3495_v29 = vld [vmem:[%s6037_s0 + $0x1aa] sm:$0x2]   ;;  %1479 = vst.msk [vmem:[#allocation0 + $0x60] sm:$0x3] %vm1477_vm3, %v1476_v30   ;;  %1481 = vst.msk [vmem:[#allocation0 + $0x16] sm:$0xc] %vm1477_vm3, %v1476_v30   ;;  %v2761_v37 = vsel %vm5_vm0, %v3491_v26, %v3490_v25  ;;  %v2727_v43 = vsel %vm13_vm2, %v3485_v33, %v2723_v32 }
 0x101   :  { %vm1519_vm10 = vcmask 597504   ;;  %v3489_v36 = vld [vmem:[%s6037_s0 + $0x19a] sm:$0x8]   ;;  %v3492_v38 = vld [vmem:[%s6037_s0 + $0x62] sm:$0x4]   ;;  %s3769_s2 = smov 8   ;;  %v2782_v39 = vsel %vm5_vm0, %v3495_v29, %v3494_v28 }
 0x102   :  { %1500 = vst.msk [vmem:[#allocation0 + $0x40] sm:$0x3] %vm1498_vm9, %v1497_v34   ;;  %1502 = vst.msk [vmem:[#allocation0 + $0x86] sm:$0xc] %vm1498_vm9, %v1497_v34   ;;  %2686 = vrot.lane.b32.xlu1 %v2685_v27, %s3769_s2  ;;  %v3496_v40 = vld [vmem:[%s6037_s0 + $0x29] sm:$0x4]   ;;  %v2748_v47 = vsel %vm13_vm2, %v3489_v36, %v2744_v35  ;;  %v2765_v48 = vsel %vm9_vm1, %v3492_v38, %v2761_v37  ;;  %v1539_v50 = vpop.permute.xlu0 %1538  }
 0x103   :  { %v3498_v41 = vld [vmem:[%s6037_s0 + $0x72] sm:$0x1]   ;;  %s3770_s9 = smov 7   ;;  %vm1540_vm11 = vcmask 589304   ;;  %v3502_v44 = vld [vmem:[%s6037_s0 + $0x39] sm:$0x1]   ;;  %v2786_v51 = vsel %vm9_vm1, %v3496_v40, %v2782_v39  ;;  %v1559_v58 = vpop.permute.xlu1 %1558  }
 0x104   :  { %v3499_v42 = vld [vmem:[%s6037_s0 + $0x171] sm:$0x2]   ;;  %2707 = vrot.lane.b32.xlu0 %v2706_v31, %s3770_s9  ;;  %v3503_v45 = vld [vmem:[%s6037_s0 + $0x138] sm:$0x2]   ;;  %v3493_v49 = vld [vmem:[%s6037_s0 + $0x161] sm:$0x8]  }
 0x105   :  { %1521 = vst.msk [vmem:[#allocation0 + $0x20] sm:$0x3] %vm1519_vm10, %v1518_v46   ;;  %1523 = vst.msk [vmem:[#allocation0 + $0x66] sm:$0xc] %vm1519_vm10, %v1518_v46   ;;  %v3497_v52 = vld [vmem:[%s6037_s0 + $0x128] sm:$0x8]   ;;  %v2803_v53 = vsel %vm5_vm0, %v3499_v42, %v3498_v41  ;;  %v2824_v55 = vsel %vm5_vm0, %v3503_v45, %v3502_v44  ;;  %v2769_v57 = vsel %vm13_vm2, %v3493_v49, %v2765_v48 }
 0x106   :  { %v3500_v54 = vld [vmem:[%s6037_s0 + $0xf0] sm:$0x4]   ;;  %1541 = vst.msk [vmem:[#allocation0] sm:$0x3] %vm1540_vm11, %v1539_v50   ;;  %1543 = vst.msk [vmem:[#allocation0 + $0x46] sm:$0xc] %vm1540_vm11, %v1539_v50   ;;  %v2790_v59 = vsel %vm13_vm2, %v3497_v52, %v2786_v51  ;;  %v1580_v62 = vpop.permute.xlu0 %1579  }
 0x107   :  { %s3771_s20 = smov 6   ;;  %vm1560_vm12 = vcmask 581104   ;;  %v3504_v56 = vld [vmem:[%s6037_s0 + $0xb7] sm:$0x4]   ;;  %s3772_s23 = smov 5   ;;  %vm1581_vm0 = vcmask 572904   ;;  %v2807_v60 = vsel %vm9_vm1, %v3500_v54, %v2803_v53  ;;  %v1601_v2 = vpop.permute.xlu1 %1600  }
 0x108   :  { %2728 = vrot.lane.b32.xlu1 %v2727_v43, %s3771_s20  ;;  %2749 = vrot.lane.b32.xlu0 %v2748_v47, %s3772_s23  ;;  %v3501_v61 = vld [vmem:[%s6037_s0 + $0x1ef] sm:$0x8]   ;;  %1562 = vst.msk [vmem:[#allocation0 + $0x28] sm:$0x3] %vm1560_vm12, %v1559_v58   ;;  %1564 = vst.msk [vmem:[#allocation0 + $0x6e] sm:$0xc] %vm1560_vm12, %v1559_v58   ;;  %v2828_v63 = vsel %vm9_vm1, %v3504_v56, %v2824_v55 }
 0x109   :  { %v3505_v0 = vld [vmem:[%s6037_s0 + $0x1b6] sm:$0x8]   ;;  %1583 = vst.msk [vmem:[#allocation0 + $0x8] sm:$0x3] %vm1581_vm0, %v1580_v62   ;;  %1585 = vst.msk [vmem:[#allocation0 + $0x4e] sm:$0xc] %vm1581_vm0, %v1580_v62   ;;  %v2811_v1 = vsel %vm13_vm2, %v3501_v61, %v2807_v60 }
 0x10a   :  { %s3773_s0 = smov 4   ;;  %vm1602_vm1 = vcmask 564704   ;;  %s3774_s28 = smov 3   ;;  %vm1623_vm13 = vcmask 556504   ;;  %v2832_v3 = vsel %vm13_vm2, %v3505_v0, %v2828_v63  ;;  %v1622_v4 = vpop.permute.xlu0 %1621   ;;  %vm1644_vm2 = vcmask 548304  }
 0x10b   :  { %1604 = vst.msk [vmem:[#allocation0 + $0x30] sm:$0x3] %vm1602_vm1, %v1601_v2   ;;  %1606 = vst.msk [vmem:[#allocation0 + $0x76] sm:$0xc] %vm1602_vm1, %v1601_v2   ;;  %s3775_s29 = smov 2   ;;  %s3776_s30 = smov 1   ;;  %v1643_v5 = vpop.permute.xlu1 %1642  }
 0x10c   :  { %2770 = vrot.lane.b32.xlu1 %v2769_v57, %s3773_s0  ;;  %2791 = vrot.lane.b32.xlu0 %v2790_v59, %s3774_s28  ;;  %1625 = vst.msk [vmem:[#allocation0 + $0x10] sm:$0x3] %vm1623_vm13, %v1622_v4   ;;  %1627 = vst.msk [vmem:[#allocation0 + $0x56] sm:$0xc] %vm1623_vm13, %v1622_v4   ;;  %vm1665_vm14 = vcmask 540104   ;;  %vm1686_vm15 = vcmask 531904  }
 0x10d   :  { %1646 = vst.msk [vmem:[#allocation0 + $0x80] sm:$0x3] %vm1644_vm2, %v1643_v5   ;;  %1648 = vst.msk [vmem:[#allocation0 + $0x36] sm:$0xc] %vm1644_vm2, %v1643_v5   ;;  %vm1707_vm7 = vcmask 523704   ;;  %vm1728_vm6 = vcmask 515504  }
 0x10e   :  { %v1664_v6 = vpop.permute.xlu0 %1663   ;;  %vm1748_vm4 = vcmask 507304   ;;  %vm1769_vm5 = vcmask 499104   ;;  %vm1790_vm8 = vcmask 490904   ;;  %vm1811_vm3 = vcmask 482704  }
 0x10f   :  { %1667 = vst.msk [vmem:[#allocation0 + $0x60] sm:$0x3] %vm1665_vm14, %v1664_v6   ;;  %1669 = vst.msk [vmem:[#allocation0 + $0x16] sm:$0xc] %vm1665_vm14, %v1664_v6   ;;  %v1685_v7 = vpop.permute.xlu1 %1684   ;;  %vm1832_vm9 = vcmask 474504   ;;  %vm1853_vm10 = vcmask 466304  }
 0x110   :  { %2812 = vrot.lane.b32.xlu1 %v2811_v1, %s3775_s29  ;;  %2833 = vrot.lane.b32.xlu0 %v2832_v3, %s3776_s30  ;;  %1688 = vst.msk [vmem:[#allocation0 + $0x40] sm:$0x3] %vm1686_vm15, %v1685_v7   ;;  %1690 = vst.msk [vmem:[#allocation0 + $0x86] sm:$0xc] %vm1686_vm15, %v1685_v7   ;;  %vm1874_vm11 = vcmask 458104   ;;  %vm1895_vm12 = vcmask 449904  }
 0x111   :  { %vm1916_vm0 = vcmask 441704   ;;  %vm1936_vm1 = vcmask 433504   ;;  %vm1957_vm13 = vcmask 425304   ;;  %vm1978_vm2 = vcmask 417104  }
 0x112   :  { %v1706_v8 = vpop.permute.xlu0 %1705   ;;  %vm1999_vm14 = vcmask 408904   ;;  %vm2020_vm15 = vcmask 400704  }
 0x113   :  { %1709 = vst.msk [vmem:[#allocation0 + $0x20] sm:$0x3] %vm1707_vm7, %v1706_v8   ;;  %1711 = vst.msk [vmem:[#allocation0 + $0x66] sm:$0xc] %vm1707_vm7, %v1706_v8   ;;  %v1727_v9 = vpop.permute.xlu1 %1726   ;;  %vm2041_vm7 = vcmask 392504  }
 0x114   :  { %1729 = vst.msk [vmem:[#allocation0] sm:$0x3] %vm1728_vm6, %v1727_v9   ;;  %1731 = vst.msk [vmem:[#allocation0 + $0x46] sm:$0xc] %vm1728_vm6, %v1727_v9   ;;  %vm2062_vm6 = vcmask 384304  }
 0x116   :  { %v1747_v10 = vpop.permute.xlu0 %1746  }
 0x117   :  { %1750 = vst.msk [vmem:[#allocation0 + $0x28] sm:$0x3] %vm1748_vm4, %v1747_v10   ;;  %1752 = vst.msk [vmem:[#allocation0 + $0x6e] sm:$0xc] %vm1748_vm4, %v1747_v10   ;;  %v1768_v11 = vpop.permute.xlu1 %1767   ;;  %vm2083_vm4 = vcmask 376104  }
 0x118   :  { %1771 = vst.msk [vmem:[#allocation0 + $0x8] sm:$0x3] %vm1769_vm5, %v1768_v11   ;;  %1773 = vst.msk [vmem:[#allocation0 + $0x4e] sm:$0xc] %vm1769_vm5, %v1768_v11   ;;  %vm2104_vm5 = vcmask 367904  }
 0x11a   :  { %v1789_v12 = vpop.permute.xlu0 %1788  }
 0x11b   :  { %1792 = vst.msk [vmem:[#allocation0 + $0x30] sm:$0x3] %vm1790_vm8, %v1789_v12   ;;  %1794 = vst.msk [vmem:[#allocation0 + $0x76] sm:$0xc] %vm1790_vm8, %v1789_v12   ;;  %v1810_v13 = vpop.permute.xlu1 %1809   ;;  %vm2124_vm8 = vcmask 359704  }
 0x11c   :  { %1813 = vst.msk [vmem:[#allocation0 + $0x10] sm:$0x3] %vm1811_vm3, %v1810_v13   ;;  %1815 = vst.msk [vmem:[#allocation0 + $0x56] sm:$0xc] %vm1811_vm3, %v1810_v13   ;;  %vm2145_vm3 = vcmask 351504  }
 0x11e   :  { %v1831_v14 = vpop.permute.xlu0 %1830  }
 0x11f   :  { %1834 = vst.msk [vmem:[#allocation0 + $0x80] sm:$0x3] %vm1832_vm9, %v1831_v14   ;;  %1836 = vst.msk [vmem:[#allocation0 + $0x36] sm:$0xc] %vm1832_vm9, %v1831_v14   ;;  %v1852_v15 = vpop.permute.xlu1 %1851   ;;  %vm2166_vm9 = vcmask 343304  }
 0x120   :  { %1855 = vst.msk [vmem:[#allocation0 + $0x60] sm:$0x3] %vm1853_vm10, %v1852_v15   ;;  %1857 = vst.msk [vmem:[#allocation0 + $0x16] sm:$0xc] %vm1853_vm10, %v1852_v15   ;;  %vm2187_vm10 = vcmask 335104  }
 0x122   :  { %v1873_v16 = vpop.permute.xlu0 %1872  }
 0x123   :  { %1876 = vst.msk [vmem:[#allocation0 + $0x40] sm:$0x3] %vm1874_vm11, %v1873_v16   ;;  %1878 = vst.msk [vmem:[#allocation0 + $0x86] sm:$0xc] %vm1874_vm11, %v1873_v16   ;;  %v1894_v17 = vpop.permute.xlu1 %1893   ;;  %vm2208_vm11 = vcmask 326904  }
 0x124   :  { %1897 = vst.msk [vmem:[#allocation0 + $0x20] sm:$0x3] %vm1895_vm12, %v1894_v17   ;;  %1899 = vst.msk [vmem:[#allocation0 + $0x66] sm:$0xc] %vm1895_vm12, %v1894_v17   ;;  %vm2229_vm12 = vcmask 318704  }
 0x126   :  { %v1915_v18 = vpop.permute.xlu0 %1914  }
 0x127   :  { %1917 = vst.msk [vmem:[#allocation0] sm:$0x3] %vm1916_vm0, %v1915_v18   ;;  %1919 = vst.msk [vmem:[#allocation0 + $0x46] sm:$0xc] %vm1916_vm0, %v1915_v18   ;;  %v1935_v19 = vpop.permute.xlu1 %1934   ;;  %vm2250_vm0 = vcmask 310504  }
 0x128   :  { %1938 = vst.msk [vmem:[#allocation0 + $0x28] sm:$0x3] %vm1936_vm1, %v1935_v19   ;;  %1940 = vst.msk [vmem:[#allocation0 + $0x6e] sm:$0xc] %vm1936_vm1, %v1935_v19   ;;  %vm2271_vm1 = vcmask 302304  }
 0x12a   :  { %v1956_v20 = vpop.permute.xlu0 %1955  }
 0x12b   :  { %1959 = vst.msk [vmem:[#allocation0 + $0x8] sm:$0x3] %vm1957_vm13, %v1956_v20   ;;  %1961 = vst.msk [vmem:[#allocation0 + $0x4e] sm:$0xc] %vm1957_vm13, %v1956_v20   ;;  %v1977_v21 = vpop.permute.xlu1 %1976   ;;  %vm2292_vm13 = vcmask 294104  }
 0x12c   :  { %1980 = vst.msk [vmem:[#allocation0 + $0x30] sm:$0x3] %vm1978_vm2, %v1977_v21   ;;  %1982 = vst.msk [vmem:[#allocation0 + $0x76] sm:$0xc] %vm1978_vm2, %v1977_v21   ;;  %vm2312_vm2 = vcmask 285904  }
 0x12e   :  { %v1998_v22 = vpop.permute.xlu0 %1997  }
 0x12f   :  { %2001 = vst.msk [vmem:[#allocation0 + $0x10] sm:$0x3] %vm1999_vm14, %v1998_v22   ;;  %2003 = vst.msk [vmem:[#allocation0 + $0x56] sm:$0xc] %vm1999_vm14, %v1998_v22   ;;  %v2019_v23 = vpop.permute.xlu1 %2018   ;;  %vm2333_vm14 = vcmask 277704  }
 0x130   :  { %2022 = vst.msk [vmem:[#allocation0 + $0x80] sm:$0x3] %vm2020_vm15, %v2019_v23   ;;  %2024 = vst.msk [vmem:[#allocation0 + $0x36] sm:$0xc] %vm2020_vm15, %v2019_v23   ;;  %vm2354_vm15 = vcmask 269504  }
 0x132   :  { %v2040_v24 = vpop.permute.xlu0 %2039  }
 0x133   :  { %2043 = vst.msk [vmem:[#allocation0 + $0x60] sm:$0x3] %vm2041_vm7, %v2040_v24   ;;  %2045 = vst.msk [vmem:[#allocation0 + $0x16] sm:$0xc] %vm2041_vm7, %v2040_v24   ;;  %v2061_v25 = vpop.permute.xlu1 %2060   ;;  %vm2375_vm7 = vcmask 261304  }
 0x134   :  { %2064 = vst.msk [vmem:[#allocation0 + $0x40] sm:$0x3] %vm2062_vm6, %v2061_v25   ;;  %2066 = vst.msk [vmem:[#allocation0 + $0x86] sm:$0xc] %vm2062_vm6, %v2061_v25   ;;  %vm2396_vm6 = vcmask 253104  }
 0x136   :  { %v2082_v26 = vpop.permute.xlu0 %2081  }
 0x137   :  { %2085 = vst.msk [vmem:[#allocation0 + $0x20] sm:$0x3] %vm2083_vm4, %v2082_v26   ;;  %2087 = vst.msk [vmem:[#allocation0 + $0x66] sm:$0xc] %vm2083_vm4, %v2082_v26   ;;  %v2103_v27 = vpop.permute.xlu1 %2102   ;;  %vm2417_vm4 = vcmask 244904  }
 0x138   :  { %2105 = vst.msk [vmem:[#allocation0] sm:$0x3] %vm2104_vm5, %v2103_v27   ;;  %2107 = vst.msk [vmem:[#allocation0 + $0x46] sm:$0xc] %vm2104_vm5, %v2103_v27   ;;  %vm2438_vm5 = vcmask 236704  }
 0x13a   :  { %v2123_v28 = vpop.permute.xlu0 %2122  }
 0x13b   :  { %2126 = vst.msk [vmem:[#allocation0 + $0x28] sm:$0x3] %vm2124_vm8, %v2123_v28   ;;  %2128 = vst.msk [vmem:[#allocation0 + $0x6e] sm:$0xc] %vm2124_vm8, %v2123_v28   ;;  %v2144_v29 = vpop.permute.xlu1 %2143   ;;  %vm2459_vm8 = vcmask 228504  }
 0x13c   :  { %2147 = vst.msk [vmem:[#allocation0 + $0x8] sm:$0x3] %vm2145_vm3, %v2144_v29   ;;  %2149 = vst.msk [vmem:[#allocation0 + $0x4e] sm:$0xc] %vm2145_vm3, %v2144_v29   ;;  %vm2480_vm3 = vcmask 220304  }
 0x13e   :  { %v2165_v30 = vpop.permute.xlu0 %2164  }
 0x13f   :  { %2168 = vst.msk [vmem:[#allocation0 + $0x30] sm:$0x3] %vm2166_vm9, %v2165_v30   ;;  %2170 = vst.msk [vmem:[#allocation0 + $0x76] sm:$0xc] %vm2166_vm9, %v2165_v30   ;;  %v2186_v31 = vpop.permute.xlu1 %2185   ;;  %vm2500_vm9 = vcmask 212104  }
 0x140   :  { %2189 = vst.msk [vmem:[#allocation0 + $0x10] sm:$0x3] %vm2187_vm10, %v2186_v31   ;;  %2191 = vst.msk [vmem:[#allocation0 + $0x56] sm:$0xc] %vm2187_vm10, %v2186_v31   ;;  %vm2521_vm10 = vcmask 203904  }
 0x142   :  { %v2207_v32 = vpop.permute.xlu0 %2206  }
 0x143   :  { %2210 = vst.msk [vmem:[#allocation0 + $0x80] sm:$0x3] %vm2208_vm11, %v2207_v32   ;;  %2212 = vst.msk [vmem:[#allocation0 + $0x36] sm:$0xc] %vm2208_vm11, %v2207_v32   ;;  %v2228_v33 = vpop.permute.xlu1 %2227   ;;  %vm2542_vm11 = vcmask 195704  }
 0x144   :  { %2231 = vst.msk [vmem:[#allocation0 + $0x60] sm:$0x3] %vm2229_vm12, %v2228_v33   ;;  %2233 = vst.msk [vmem:[#allocation0 + $0x16] sm:$0xc] %vm2229_vm12, %v2228_v33   ;;  %vm2563_vm12 = vcmask 187504  }
 0x146   :  { %v2249_v34 = vpop.permute.xlu0 %2248  }
 0x147   :  { %2252 = vst.msk [vmem:[#allocation0 + $0x40] sm:$0x3] %vm2250_vm0, %v2249_v34   ;;  %2254 = vst.msk [vmem:[#allocation0 + $0x86] sm:$0xc] %vm2250_vm0, %v2249_v34   ;;  %v2270_v35 = vpop.permute.xlu1 %2269   ;;  %vm2584_vm0 = vcmask 179304  }
 0x148   :  { %2273 = vst.msk [vmem:[#allocation0 + $0x20] sm:$0x3] %vm2271_vm1, %v2270_v35   ;;  %2275 = vst.msk [vmem:[#allocation0 + $0x66] sm:$0xc] %vm2271_vm1, %v2270_v35   ;;  %vm2605_vm1 = vcmask 171104  }
 0x14a   :  { %v2291_v36 = vpop.permute.xlu0 %2290  }
 0x14b   :  { %2293 = vst.msk [vmem:[#allocation0] sm:$0x3] %vm2292_vm13, %v2291_v36   ;;  %2295 = vst.msk [vmem:[#allocation0 + $0x46] sm:$0xc] %vm2292_vm13, %v2291_v36   ;;  %v2311_v37 = vpop.permute.xlu1 %2310   ;;  %vm2626_vm13 = vcmask 162904  }
 0x14c   :  { %2314 = vst.msk [vmem:[#allocation0 + $0x28] sm:$0x3] %vm2312_vm2, %v2311_v37   ;;  %2316 = vst.msk [vmem:[#allocation0 + $0x6e] sm:$0xc] %vm2312_vm2, %v2311_v37   ;;  %vm2647_vm2 = vcmask 154704  }
 0x14e   :  { %v2332_v38 = vpop.permute.xlu0 %2331  }
 0x14f   :  { %2335 = vst.msk [vmem:[#allocation0 + $0x8] sm:$0x3] %vm2333_vm14, %v2332_v38   ;;  %2337 = vst.msk [vmem:[#allocation0 + $0x4e] sm:$0xc] %vm2333_vm14, %v2332_v38   ;;  %v2353_v39 = vpop.permute.xlu1 %2352   ;;  %vm2668_vm14 = vcmask 146504  }
 0x150   :  { %2356 = vst.msk [vmem:[#allocation0 + $0x30] sm:$0x3] %vm2354_vm15, %v2353_v39   ;;  %2358 = vst.msk [vmem:[#allocation0 + $0x76] sm:$0xc] %vm2354_vm15, %v2353_v39   ;;  %vm2688_vm15 = vcmask 138304  }
 0x152   :  { %v2374_v40 = vpop.permute.xlu0 %2373  }
 0x153   :  { %2377 = vst.msk [vmem:[#allocation0 + $0x10] sm:$0x3] %vm2375_vm7, %v2374_v40   ;;  %2379 = vst.msk [vmem:[#allocation0 + $0x56] sm:$0xc] %vm2375_vm7, %v2374_v40   ;;  %v2395_v41 = vpop.permute.xlu1 %2394   ;;  %vm2709_vm7 = vcmask 130104  }
 0x154   :  { %2398 = vst.msk [vmem:[#allocation0 + $0x80] sm:$0x3] %vm2396_vm6, %v2395_v41   ;;  %2400 = vst.msk [vmem:[#allocation0 + $0x36] sm:$0xc] %vm2396_vm6, %v2395_v41   ;;  %vm2730_vm6 = vcmask 121904  }
 0x156   :  { %v2416_v42 = vpop.permute.xlu0 %2415  }
 0x157   :  { %2419 = vst.msk [vmem:[#allocation0 + $0x60] sm:$0x3] %vm2417_vm4, %v2416_v42   ;;  %2421 = vst.msk [vmem:[#allocation0 + $0x16] sm:$0xc] %vm2417_vm4, %v2416_v42   ;;  %vm2751_vm4 = vcmask 113704  }
 0x158   :  { %v2437_v43 = vpop.permute.xlu1 %2436  }
 0x159   :  { %2440 = vst.msk [vmem:[#allocation0 + $0x40] sm:$0x3] %vm2438_vm5, %v2437_v43   ;;  %2442 = vst.msk [vmem:[#allocation0 + $0x86] sm:$0xc] %vm2438_vm5, %v2437_v43   ;;  %vm2772_vm5 = vcmask 105504  }
 0x15a   :  { %v2458_v44 = vpop.permute.xlu0 %2457  }
 0x15b   :  { %2461 = vst.msk [vmem:[#allocation0 + $0x20] sm:$0x3] %vm2459_vm8, %v2458_v44   ;;  %2463 = vst.msk [vmem:[#allocation0 + $0x66] sm:$0xc] %vm2459_vm8, %v2458_v44   ;;  %vm2793_vm8 = vcmask 97304  }
 0x15c   :  { %v2479_v45 = vpop.permute.xlu1 %2478  }
 0x15d   :  { %2481 = vst.msk [vmem:[#allocation0] sm:$0x3] %vm2480_vm3, %v2479_v45   ;;  %2483 = vst.msk [vmem:[#allocation0 + $0x46] sm:$0xc] %vm2480_vm3, %v2479_v45   ;;  %vm2814_vm3 = vcmask 89104  }
 0x15f   :  { %v2499_v46 = vpop.permute.xlu0 %2498  }
 0x160   :  { %2502 = vst.msk [vmem:[#allocation0 + $0x28] sm:$0x3] %vm2500_vm9, %v2499_v46   ;;  %2504 = vst.msk [vmem:[#allocation0 + $0x6e] sm:$0xc] %vm2500_vm9, %v2499_v46   ;;  %vm2835_vm9 = vcmask 80904  }
 0x161   :  { %v2520_v47 = vpop.permute.xlu1 %2519  }
 0x162   :  { %2523 = vst.msk [vmem:[#allocation0 + $0x8] sm:$0x3] %vm2521_vm10, %v2520_v47   ;;  %2525 = vst.msk [vmem:[#allocation0 + $0x4e] sm:$0xc] %vm2521_vm10, %v2520_v47  }
 0x163   :  { %v2541_v48 = vpop.permute.xlu0 %2540  }
 0x164   :  { %2544 = vst.msk [vmem:[#allocation0 + $0x30] sm:$0x3] %vm2542_vm11, %v2541_v48   ;;  %2546 = vst.msk [vmem:[#allocation0 + $0x76] sm:$0xc] %vm2542_vm11, %v2541_v48  }
 0x166   :  { %v2562_v49 = vpop.permute.xlu1 %2561  }
 0x167   :  { %2565 = vst.msk [vmem:[#allocation0 + $0x10] sm:$0x3] %vm2563_vm12, %v2562_v49   ;;  %2567 = vst.msk [vmem:[#allocation0 + $0x56] sm:$0xc] %vm2563_vm12, %v2562_v49  }
 0x168   :  { %v2583_v50 = vpop.permute.xlu0 %2582  }
 0x169   :  { %2586 = vst.msk [vmem:[#allocation0 + $0x80] sm:$0x3] %vm2584_vm0, %v2583_v50   ;;  %2588 = vst.msk [vmem:[#allocation0 + $0x36] sm:$0xc] %vm2584_vm0, %v2583_v50  }
 0x16a   :  { %v2604_v51 = vpop.permute.xlu1 %2603  }
 0x16b   :  { %2607 = vst.msk [vmem:[#allocation0 + $0x60] sm:$0x3] %vm2605_vm1, %v2604_v51   ;;  %2609 = vst.msk [vmem:[#allocation0 + $0x16] sm:$0xc] %vm2605_vm1, %v2604_v51  }
 0x16d   :  { %v2625_v52 = vpop.permute.xlu0 %2624  }
 0x16e   :  { %2628 = vst.msk [vmem:[#allocation0 + $0x40] sm:$0x3] %vm2626_vm13, %v2625_v52   ;;  %2630 = vst.msk [vmem:[#allocation0 + $0x86] sm:$0xc] %vm2626_vm13, %v2625_v52  }
 0x16f   :  { %v2646_v53 = vpop.permute.xlu1 %2645  }
 0x170   :  { %2649 = vst.msk [vmem:[#allocation0 + $0x20] sm:$0x3] %vm2647_vm2, %v2646_v53   ;;  %2651 = vst.msk [vmem:[#allocation0 + $0x66] sm:$0xc] %vm2647_vm2, %v2646_v53  }
 0x171   :  { %v2667_v54 = vpop.permute.xlu0 %2666  }
 0x172   :  { %2669 = vst.msk [vmem:[#allocation0] sm:$0x3] %vm2668_vm14, %v2667_v54   ;;  %2671 = vst.msk [vmem:[#allocation0 + $0x46] sm:$0xc] %vm2668_vm14, %v2667_v54  }
 0x174   :  { %v2687_v55 = vpop.permute.xlu1 %2686  }
 0x175   :  { %2690 = vst.msk [vmem:[#allocation0 + $0x28] sm:$0x3] %vm2688_vm15, %v2687_v55   ;;  %2692 = vst.msk [vmem:[#allocation0 + $0x6e] sm:$0xc] %vm2688_vm15, %v2687_v55  }
 0x176   :  { %v2708_v56 = vpop.permute.xlu0 %2707  }
 0x177   :  { %2711 = vst.msk [vmem:[#allocation0 + $0x8] sm:$0x3] %vm2709_vm7, %v2708_v56   ;;  %2713 = vst.msk [vmem:[#allocation0 + $0x4e] sm:$0xc] %vm2709_vm7, %v2708_v56  }
 0x179   :  { %v2843_v58 = vld [vmem:[#allocation0] sm:$0x3]  ;;  %v2894_v59 = vld [vmem:[#allocation0 + $0x48] sm:$0x3] }
 0x17a   :  { %v2729_v57 = vpop.permute.xlu1 %2728   ;;  %v2750_v60 = vpop.permute.xlu0 %2749   ;;  %2845 = vst [vmem:[%s6038_s1] sm:$0x3] %v2843_v58  ;;  %3514 = vst [vmem:[%s6038_s1 + $0x12] sm:$0x3] %v2894_v59 }
 0x17b   :  { %2732 = vst.msk [vmem:[#allocation0 + $0x30] sm:$0x3] %vm2730_vm6, %v2729_v57   ;;  %2734 = vst.msk [vmem:[#allocation0 + $0x76] sm:$0xc] %vm2730_vm6, %v2729_v57  }
 0x17c   :  { %2753 = vst.msk [vmem:[#allocation0 + $0x10] sm:$0x3] %vm2751_vm4, %v2750_v60   ;;  %2755 = vst.msk [vmem:[#allocation0 + $0x56] sm:$0xc] %vm2751_vm4, %v2750_v60   ;;  %v2870_v61 = vld [vmem:[#allocation0 + $0x28] sm:$0x3] }
 0x17d   :  { %v2924_v62 = vld [vmem:[#allocation0 + $0x70] sm:$0x3]  ;;  %3510 = vst [vmem:[%s6038_s1 + $0xa] sm:$0x3] %v2870_v61 }
 0x17e   :  { %v2771_v63 = vpop.permute.xlu1 %2770   ;;  %3519 = vst [vmem:[%s6038_s1 + $0x1c] sm:$0x3] %v2924_v62  ;;  %v2847_v0 = vld [vmem:[#allocation0 + $0x8] sm:$0x3]  ;;  %v2900_v1 = vld [vmem:[#allocation0 + $0x50] sm:$0x3]  ;;  %v2792_v2 = vpop.permute.xlu0 %2791  }
 0x17f   :  { %2774 = vst.msk [vmem:[#allocation0 + $0x80] sm:$0x3] %vm2772_vm5, %v2771_v63   ;;  %2776 = vst.msk [vmem:[#allocation0 + $0x36] sm:$0xc] %vm2772_vm5, %v2771_v63  }
 0x180   :  { %3506 = vst [vmem:[%s6038_s1 + $0x2] sm:$0x3] %v2847_v0  ;;  %3515 = vst [vmem:[%s6038_s1 + $0x14] sm:$0x3] %v2900_v1 }
 0x181   :  { %2795 = vst.msk [vmem:[#allocation0 + $0x60] sm:$0x3] %vm2793_vm8, %v2792_v2   ;;  %2797 = vst.msk [vmem:[#allocation0 + $0x16] sm:$0xc] %vm2793_vm8, %v2792_v2  }
 0x182   :  { %v2876_v3 = vld [vmem:[#allocation0 + $0x30] sm:$0x3]  ;;  %v2930_v4 = vld [vmem:[#allocation0 + $0x78] sm:$0x3]  ;;  %v2813_v5 = vpop.permute.xlu1 %2812   ;;  %v2834_v8 = vpop.permute.xlu0 %2833  }
 0x183   :  { %3511 = vst [vmem:[%s6038_s1 + $0xc] sm:$0x3] %v2876_v3  ;;  %3520 = vst [vmem:[%s6038_s1 + $0x1e] sm:$0x3] %v2930_v4  ;;  %v2852_v6 = vld [vmem:[#allocation0 + $0x10] sm:$0x3] }
 0x184   :  { %v2906_v7 = vld [vmem:[#allocation0 + $0x58] sm:$0x3]  ;;  %2816 = vst.msk [vmem:[#allocation0 + $0x40] sm:$0x3] %vm2814_vm3, %v2813_v5   ;;  %2818 = vst.msk [vmem:[#allocation0 + $0x86] sm:$0xc] %vm2814_vm3, %v2813_v5  }
 0x185   :  { %3507 = vst [vmem:[%s6038_s1 + $0x4] sm:$0x3] %v2852_v6  ;;  %3516 = vst [vmem:[%s6038_s1 + $0x16] sm:$0x3] %v2906_v7 }
 0x186   :  { %2837 = vst.msk [vmem:[#allocation0 + $0x20] sm:$0x3] %vm2835_vm9, %v2834_v8   ;;  %2839 = vst.msk [vmem:[#allocation0 + $0x66] sm:$0xc] %vm2835_vm9, %v2834_v8   ;;  %v2882_v9 = vld [vmem:[#allocation0 + $0x38] sm:$0x3] }
 0x187   :  { %v2936_v10 = vld [vmem:[#allocation0 + $0x80] sm:$0x3]  ;;  %3512 = vst [vmem:[%s6038_s1 + $0xe] sm:$0x3] %v2882_v9 }
 0x188   :  { %3521 = vst [vmem:[%s6038_s1 + $0x20] sm:$0x3] %v2936_v10  ;;  %v2858_v11 = vld [vmem:[#allocation0 + $0x18] sm:$0x3]  ;;  %v2912_v12 = vld [vmem:[#allocation0 + $0x60] sm:$0x3] }
 0x189   :  { %3508 = vst [vmem:[%s6038_s1 + $0x6] sm:$0x3] %v2858_v11  ;;  %3517 = vst [vmem:[%s6038_s1 + $0x18] sm:$0x3] %v2912_v12 }
 0x18b   :  { %v2888_v13 = vld [vmem:[#allocation0 + $0x40] sm:$0x3]  ;;  %v2942_v14 = vld [vmem:[#allocation0 + $0x88] sm:$0x3] }
 0x18c   :  { %3513 = vst [vmem:[%s6038_s1 + $0x10] sm:$0x3] %v2888_v13  ;;  %3522 = vst [vmem:[%s6038_s1 + $0x22] sm:$0x3] %v2942_v14 }
 0x18d   :  { %v2864_v15 = vld [vmem:[#allocation0 + $0x20] sm:$0x3]  ;;  %v2918_v16 = vld [vmem:[#allocation0 + $0x68] sm:$0x3] }
 0x18e   :  { %3509 = vst [vmem:[%s6038_s1 + $0x8] sm:$0x3] %v2864_v15  ;;  %3518 = vst [vmem:[%s6038_s1 + $0x1a] sm:$0x3] %v2918_v16 }

// kernel: conv_block_deformconv.8
= control target key start
LH: loop header
LB: loop body
LE: loop exit
PB: predicated region body
PF: predicated region fallthrough
CT: control target
= control target key end

     0   :  { %s740_s12 = smov 0   ;;  %s887_s0 = inlined_call_operand.vmem [shape: f32[512,128], index: 0, kind: input, shape index: {}]   ;;  %s888_s1 = inlined_call_operand.vmem [shape: f32[1,128], index: 1, kind: input, shape index: {}]   ;;  %s889_s2 = inlined_call_operand.vmem [shape: f32[1,128], index: 2, kind: input, shape index: {}]   ;;  %s890_s3 = inlined_call_operand.vmem [shape: bf16[512,128], index: 3, kind: output, shape index: {}]  }
   0x1 LB: > { %s532_s13 = sadd.s32 4294967295, %s718_s12   ;;  %p536_p0 = scmp.ge.s32.totalorder %s718_s12, 1  ;;  %s718_s12 = sphi %s740_s12, %s13_s12  }
   0x2   : > { %p138_p1 = scmp.lt.s32.totalorder %s718_s12, 3 }
   0x4   : > { %p139_p2 = pnand %p536_p0, %p138_p1 }
   0x5   : > { %s537_s14 = sshll.u32 (!%p139_p2), %s532_s13, 5  ;;  %v754_v0 = vld [vmem:[%s888_s1] ss:$0 sm:$0xff] (!%p139_p2) }
   0x6   : > { %142 = sbr.rel (%p139_p2) target bundleno = 51 (0x33), region = 32  ;;  %p163_p3 = scmp.lt.s32.totalorder (!%p139_p2), %s537_s14, 63  ;;  %v764_v1 = vld [vmem:[%s889_s2] ss:$0 sm:$0xff] (!%p139_p2) }
   0xd   : > { %s892_s14 = smov (!%p163_p3, %s537_s14), 63 }
   0xe   : > { %s538_s15 = sshll.u32 %s892_s14, 3  ;;  %s540_s23 = sshll.u32 %s892_s14, 2 }
   0xf   : > { %s759_s20 = scalar_lea.vmem %s887_s0, %s538_s15  ;;  %s796_s26 = scalar_lea.vmem %s890_s3, %s540_s23 }
  0x10   : > { %v174_v2 = vld [vmem:[%s759_s20] sm:$0xff]  ;;  %v175_v3 = vld [vmem:[%s759_s20 + $0x8] sm:$0xff]  ;;  %v176_v4 = vld [vmem:[%s759_s20 + $0x10] sm:$0xff] }
  0x11   : > { %v213_v5 = vmul.f32 %v754_v0, %v174_v2  ;;  %v214_v6 = vmul.f32 %v754_v0, %v175_v3  ;;  %v177_v7 = vld [vmem:[%s759_s20 + $0x18] sm:$0xff]  ;;  %v215_v8 = vmul.f32 %v754_v0, %v176_v4  ;;  %v178_v9 = vld [vmem:[%s759_s20 + $0x20] sm:$0xff]  ;;  %v179_v10 = vld [vmem:[%s759_s20 + $0x28] sm:$0xff] }
  0x12   : > { %v216_v11 = vmul.f32 %v754_v0, %v177_v7  ;;  %v217_v12 = vmul.f32 %v754_v0, %v178_v9  ;;  %v218_v13 = vmul.f32 %v754_v0, %v179_v10  ;;  %v180_v14 = vld [vmem:[%s759_s20 + $0x30] sm:$0xff]  ;;  %v181_v15 = vld [vmem:[%s759_s20 + $0x38] sm:$0xff]  ;;  %v182_v24 = vld [vmem:[%s759_s20 + $0x40] sm:$0xff] }
  0x13   : > { %v252_v16 = vadd.f32 %v764_v1, %v213_v5  ;;  %v253_v17 = vadd.f32 %v764_v1, %v214_v6  ;;  %v254_v18 = vadd.f32 %v764_v1, %v215_v8  ;;  %v219_v19 = vmul.f32 %v754_v0, %v180_v14  ;;  %v183_v25 = vld [vmem:[%s759_s20 + $0x48] sm:$0xff]  ;;  %v184_v30 = vld [vmem:[%s759_s20 + $0x50] sm:$0xff]  ;;  %v185_v35 = vld [vmem:[%s759_s20 + $0x58] sm:$0xff] }
  0x14   : > { %v255_v20 = vadd.f32 %v764_v1, %v216_v11  ;;  %v256_v21 = vadd.f32 %v764_v1, %v217_v12  ;;  %v257_v22 = vadd.f32 %v764_v1, %v218_v13  ;;  %v220_v23 = vmul.f32 %v754_v0, %v181_v15  ;;  %v186_v36 = vld [vmem:[%s759_s20 + $0x60] sm:$0xff]  ;;  %v187_v41 = vld [vmem:[%s759_s20 + $0x68] sm:$0xff]  ;;  %v188_v42 = vld [vmem:[%s759_s20 + $0x70] sm:$0xff] }
  0x15   : > { %v284_v26 = vmax.f32 %v252_v16, 0.0  ;;  %v285_v27 = vmax.f32 %v253_v17, 0.0  ;;  %v286_v28 = vmax.f32 %v254_v18, 0.0  ;;  %v258_v29 = vadd.f32 %v764_v1, %v219_v19  ;;  %v189_v51 = vld [vmem:[%s759_s20 + $0x78] sm:$0xff]  ;;  %v190_v56 = vld [vmem:[%s759_s20 + $0x80] sm:$0xff]  ;;  %v191_v61 = vld [vmem:[%s759_s20 + $0x88] sm:$0xff] }
  0x16   : > { %v287_v31 = vmax.f32 %v255_v20, 0.0  ;;  %v288_v32 = vmax.f32 %v256_v21, 0.0  ;;  %v289_v33 = vmax.f32 %v257_v22, 0.0  ;;  %v259_v34 = vadd.f32 %v764_v1, %v220_v23  ;;  %v192_v4 = vld [vmem:[%s759_s20 + $0x90] sm:$0xff]  ;;  %v193_v5 = vld [vmem:[%s759_s20 + $0x98] sm:$0xff]  ;;  %v194_v10 = vld [vmem:[%s759_s20 + $0xa0] sm:$0xff] }
  0x17   : > { %v612_v37 = vpack.c.bf16 %v285_v27, %v284_v26  ;;  %v290_v38 = vmax.f32 %v258_v29, 0.0  ;;  %v221_v39 = vmul.f32 %v754_v0, %v182_v24  ;;  %v222_v40 = vmul.f32 %v754_v0, %v183_v25  ;;  %v195_v15 = vld [vmem:[%s759_s20 + $0xa8] sm:$0xff]  ;;  %v196_v20 = vld [vmem:[%s759_s20 + $0xb0] sm:$0xff]  ;;  %v197_v25 = vld [vmem:[%s759_s20 + $0xb8] sm:$0xff] }
  0x18   : > { %v617_v43 = vpack.c.bf16 %v287_v31, %v286_v28  ;;  %v622_v44 = vpack.c.bf16 %v289_v33, %v288_v32  ;;  %v291_v45 = vmax.f32 %v259_v34, 0.0  ;;  %v223_v46 = vmul.f32 %v754_v0, %v184_v30  ;;  %v198_v30 = vld [vmem:[%s759_s20 + $0xc0] sm:$0xff] }
  0x19   : > { %613 = vst [vmem:[%s796_s26] sm:$0xff] %v612_v37   ;;  %v260_v47 = vadd.f32 %v764_v1, %v221_v39  ;;  %v261_v48 = vadd.f32 %v764_v1, %v222_v40  ;;  %v224_v49 = vmul.f32 %v754_v0, %v185_v35  ;;  %v225_v50 = vmul.f32 %v754_v0, %v186_v36  ;;  %v199_v35 = vld [vmem:[%s759_s20 + $0xc8] sm:$0xff]  ;;  %v200_v40 = vld [vmem:[%s759_s20 + $0xd0] sm:$0xff] }
  0x1a   : > { %689 = vst [vmem:[%s796_s26 + $0x8] sm:$0xff] %v617_v43   ;;  %690 = vst [vmem:[%s796_s26 + $0x10] sm:$0xff] %v622_v44   ;;  %v627_v52 = vpack.c.bf16 %v291_v45, %v290_v38  ;;  %v262_v53 = vadd.f32 %v764_v1, %v223_v46  ;;  %v226_v54 = vmul.f32 %v754_v0, %v187_v41  ;;  %v201_v41 = vld [vmem:[%s759_s20 + $0xd8] sm:$0xff]  ;;  %v202_v46 = vld [vmem:[%s759_s20 + $0xe0] sm:$0xff] }
  0x1b   : > { %v227_v55 = vmul.f32 %v754_v0, %v188_v42  ;;  %v292_v57 = vmax.f32 %v260_v47, 0.0  ;;  %v293_v58 = vmax.f32 %v261_v48, 0.0  ;;  %v263_v59 = vadd.f32 %v764_v1, %v224_v49 }
  0x1c   : > { %v264_v60 = vadd.f32 %v764_v1, %v225_v50  ;;  %691 = vst [vmem:[%s796_s26 + $0x18] sm:$0xff] %v627_v52   ;;  %v294_v62 = vmax.f32 %v262_v53, 0.0  ;;  %v265_v63 = vadd.f32 %v764_v1, %v226_v54  ;;  %v228_v2 = vmul.f32 %v754_v0, %v189_v51  ;;  %v203_v51 = vld [vmem:[%s759_s20 + $0xe8] sm:$0xff] }
  0x1d   : > { %v266_v3 = vadd.f32 %v764_v1, %v227_v55  ;;  %v632_v6 = vpack.c.bf16 %v293_v58, %v292_v57  ;;  %v295_v7 = vmax.f32 %v263_v59, 0.0  ;;  %v229_v9 = vmul.f32 %v754_v0, %v190_v56  ;;  %v204_v56 = vld [vmem:[%s759_s20 + $0xf0] sm:$0xff] }
  0x1e   : > { %v296_v8 = vmax.f32 %v264_v60, 0.0  ;;  %v297_v11 = vmax.f32 %v265_v63, 0.0  ;;  %v267_v12 = vadd.f32 %v764_v1, %v228_v2  ;;  %v230_v14 = vmul.f32 %v754_v0, %v191_v61  ;;  %v205_v61 = vld [vmem:[%s759_s20 + $0xf8] sm:$0xff] }
  0x1f   : > { %v298_v13 = vmax.f32 %v266_v3, 0.0  ;;  %692 = vst [vmem:[%s796_s26 + $0x20] sm:$0xff] %v632_v6   ;;  %v637_v16 = vpack.c.bf16 %v295_v7, %v294_v62  ;;  %v268_v17 = vadd.f32 %v764_v1, %v229_v9  ;;  %v231_v18 = vmul.f32 %v754_v0, %v192_v4 }
  0x20   : > { %v232_v19 = vmul.f32 %v754_v0, %v193_v5  ;;  %v642_v21 = vpack.c.bf16 %v297_v11, %v296_v8  ;;  %v299_v22 = vmax.f32 %v267_v12, 0.0  ;;  %v269_v23 = vadd.f32 %v764_v1, %v230_v14 }
  0x21   : > { %v233_v24 = vmul.f32 %v754_v0, %v194_v10  ;;  %693 = vst [vmem:[%s796_s26 + $0x28] sm:$0xff] %v637_v16   ;;  %v300_v26 = vmax.f32 %v268_v17, 0.0  ;;  %v270_v27 = vadd.f32 %v764_v1, %v231_v18  ;;  %v234_v29 = vmul.f32 %v754_v0, %v195_v15 }
  0x22   : > { %v271_v28 = vadd.f32 %v764_v1, %v232_v19  ;;  %694 = vst [vmem:[%s796_s26 + $0x30] sm:$0xff] %v642_v21   ;;  %v647_v31 = vpack.c.bf16 %v299_v22, %v298_v13  ;;  %v301_v32 = vmax.f32 %v269_v23, 0.0  ;;  %v235_v34 = vmul.f32 %v754_v0, %v196_v20 }
  0x23   : > { %v272_v33 = vadd.f32 %v764_v1, %v233_v24  ;;  %v302_v36 = vmax.f32 %v270_v27, 0.0  ;;  %v273_v38 = vadd.f32 %v764_v1, %v234_v29  ;;  %v236_v39 = vmul.f32 %v754_v0, %v197_v25 }
  0x24   : > { %v303_v37 = vmax.f32 %v271_v28, 0.0  ;;  %695 = vst [vmem:[%s796_s26 + $0x38] sm:$0xff] %v647_v31   ;;  %v652_v42 = vpack.c.bf16 %v301_v32, %v300_v26  ;;  %v274_v44 = vadd.f32 %v764_v1, %v235_v34  ;;  %v237_v45 = vmul.f32 %v754_v0, %v198_v30 }
  0x25   : > { %v304_v43 = vmax.f32 %v272_v33, 0.0  ;;  %v305_v48 = vmax.f32 %v273_v38, 0.0  ;;  %v275_v49 = vadd.f32 %v764_v1, %v236_v39  ;;  %v238_v50 = vmul.f32 %v754_v0, %v199_v35 }
  0x26   : > { %v657_v47 = vpack.c.bf16 %v303_v37, %v302_v36  ;;  %696 = vst [vmem:[%s796_s26 + $0x40] sm:$0xff] %v652_v42   ;;  %v306_v52 = vmax.f32 %v274_v44, 0.0  ;;  %v276_v53 = vadd.f32 %v764_v1, %v237_v45  ;;  %v239_v54 = vmul.f32 %v754_v0, %v200_v40 }
  0x27   : > { %v240_v55 = vmul.f32 %v754_v0, %v201_v41  ;;  %v662_v57 = vpack.c.bf16 %v305_v48, %v304_v43  ;;  %v307_v58 = vmax.f32 %v275_v49, 0.0  ;;  %v277_v59 = vadd.f32 %v764_v1, %v238_v50 }
  0x28   : > { %697 = vst [vmem:[%s796_s26 + $0x48] sm:$0xff] %v657_v47   ;;  %v241_v60 = vmul.f32 %v754_v0, %v202_v46  ;;  %v308_v62 = vmax.f32 %v276_v53, 0.0  ;;  %v278_v63 = vadd.f32 %v764_v1, %v239_v54  ;;  %v242_v3 = vmul.f32 %v754_v0, %v203_v51 }
  0x29   : > { %v279_v2 = vadd.f32 %v764_v1, %v240_v55  ;;  %698 = vst [vmem:[%s796_s26 + $0x50] sm:$0xff] %v662_v57   ;;  %v667_v4 = vpack.c.bf16 %v307_v58, %v306_v52  ;;  %v309_v5 = vmax.f32 %v277_v59, 0.0  ;;  %v243_v7 = vmul.f32 %v754_v0, %v204_v56 }
  0x2a   : > { %v280_v6 = vadd.f32 %v764_v1, %v241_v60  ;;  %v310_v8 = vmax.f32 %v278_v63, 0.0  ;;  %v281_v10 = vadd.f32 %v764_v1, %v242_v3  ;;  %v244_v11 = vmul.f32 %v754_v0, %v205_v61 }
  0x2b   : > { %v311_v9 = vmax.f32 %v279_v2, 0.0  ;;  %699 = vst [vmem:[%s796_s26 + $0x58] sm:$0xff] %v667_v4   ;;  %v672_v12 = vpack.c.bf16 %v309_v5, %v308_v62  ;;  %v282_v14 = vadd.f32 %v764_v1, %v243_v7 }
  0x2c   : > { %v312_v13 = vmax.f32 %v280_v6, 0.0  ;;  %v313_v16 = vmax.f32 %v281_v10, 0.0  ;;  %v283_v17 = vadd.f32 %v764_v1, %v244_v11 }
  0x2d   : > { %v677_v15 = vpack.c.bf16 %v311_v9, %v310_v8  ;;  %700 = vst [vmem:[%s796_s26 + $0x60] sm:$0xff] %v672_v12   ;;  %v314_v18 = vmax.f32 %v282_v14, 0.0 }
  0x2e   : > { %v682_v19 = vpack.c.bf16 %v313_v16, %v312_v13  ;;  %v315_v20 = vmax.f32 %v283_v17, 0.0 }
  0x2f   : > { %701 = vst [vmem:[%s796_s26 + $0x68] sm:$0xff] %v677_v15  }
  0x30   : > { %702 = vst [vmem:[%s796_s26 + $0x70] sm:$0xff] %v682_v19   ;;  %v687_v21 = vpack.c.bf16 %v315_v20, %v314_v18 }
  0x32   : > { %703 = vst [vmem:[%s796_s26 + $0x78] sm:$0xff] %v687_v21  }
  0x33 PF: > { %s13_s12 = sadd.s32 1, %s718_s12  }
  0x34   : > { %p10_p4 = scmp.ge.s32.totalorder %s13_s12, 4  }
  0x36   :  { %12 = sbr.rel (!%p10_p4) target bundleno = 1 (0x1), region = 62 }

// kernel: conv_block_deformconv.7
= control target key start
LH: loop header
LB: loop body
LE: loop exit
PB: predicated region body
PF: predicated region fallthrough
CT: control target
= control target key end

     0   :  { %s982_s15 = smov 0   ;;  %s1151_s0 = inlined_call_operand.vmem [shape: bf16[512,36], index: 0, kind: input, shape index: {}]   ;;  %s1152_s1 = inlined_call_operand.vmem [shape: bf16[36,128], index: 1, kind: input, shape index: {}]   ;;  %s1153_s2 = inlined_call_operand.vmem [shape: f32[512,128], index: 2, kind: output, shape index: {0}]   ;;  %s1154_s3 = inlined_call_operand.vmem [shape: f32[2,1,128], index: 3, kind: output, shape index: {1}]   ;;  %s1155_s4 = inlined_call_operand.vmem [shape: f32[2,1,128], index: 4, kind: output, shape index: {2}]  }
   0x1 LB: > { %s988_s16 = sadd.s32 4294967295, %s955_s15   ;;  %p815_p0 = scmp.ge.s32.totalorder %s955_s15, 1  ;;  %s955_s15 = sphi %s982_s15, %s15_s15  }
   0x2   : > { %p168_p1 = scmp.lt.s32.totalorder %s955_s15, 3 }
   0x4   : > { %p169_p2 = pnand %p815_p0, %p168_p1 }
   0x5   : > { %v930_v0 = vld [vmem:[%s1152_s1] sm:$0xff] (!%p169_p2)   ;;  %v931_v1 = vld [vmem:[%s1152_s1 + $0x8] sm:$0xff] (!%p169_p2)   ;;  %s816_s21 = sshll.u32 (!%p169_p2), %s988_s16, 5  ;;  %v932_v2 = vld [vmem:[%s1152_s1 + $0x10] ss:$0 sps:$4 sm:$0x33] (!%p169_p2)  }
   0x6   : > { %172 = sbr.rel (%p169_p2) target bundleno = 310 (0x136), region = 28  ;;  %876 = vmatprep.subr.bf16.mxu0 (!%p169_p2), %v930_v0  ;;  %p201_p3 = scmp.lt.s32.totalorder (!%p169_p2), %s816_s21, 63  ;;  %914 = vmatprep.subr.bf16.mxu1 (!%p169_p2), %v930_v0  ;;  %vm400_vm0 = vcmask (!%p169_p2), 1041408   ;;  %vm351_vm1 = vcmask (!%p169_p2), 293888  }
   0x7   : > { %877 = vmatpush3.bf16.msra.mxu0 (!%p169_p2), %v930_v0  ;;  %917 = vmatpush3.bf16.msra.mxu1 (!%p169_p2), %v930_v0  ;;  %v402_v3 = vsel (!%p169_p2), %vm400_vm0, %v932_v2, 0  ;;  %p212_p4 = scmp.lt.s32.totalorder (!%p169_p2), %s988_s16, 1 }
   0x8   : > { %878 = vmatprep.subr.bf16.mxu0 (!%p169_p2), %v931_v1  ;;  %915 = vmatprep.subr.bf16.mxu1 (!%p169_p2), %v931_v1 }
   0xb   : > { %879 = vmatpush3.bf16.msra.mxu0 (!%p169_p2), %v931_v1  ;;  %918 = vmatpush3.bf16.msra.mxu1 (!%p169_p2), %v931_v1 }
   0xc   : > { %920 = vmatprep.subr.msk.bf16.mxu0 (!%p169_p2), %vm400_vm0, %v932_v2  ;;  %921 = vmatprep.subr.msk.bf16.mxu1 (!%p169_p2), %vm400_vm0, %v932_v2 }
   0xd   : > { %s1157_s21 = smov (!%p201_p3, %s816_s21), 63  ;;  %s1159_s16 = smov (!%p212_p4, %s988_s16), 1 }
   0xe   : > { %s817_s24 = sshll.u32 %s1157_s21, 2  ;;  %s819_s28 = sshll.u32 %s1157_s21, 3 }
   0xf   : > { %s1008_s27 = scalar_lea.vmem %s1151_s0, %s817_s24  ;;  %881 = vmatpush3.bf16.msra.mxu0 %v402_v3  ;;  %919 = vmatpush3.bf16.msra.mxu1 %v402_v3  ;;  %s1046_s5 = scalar_lea.vmem %s1153_s2, %s819_s28 }
  0x10   : > { %v933_v4 = vld [vmem:[%s1008_s27] sm:$0xff]   ;;  %v934_v5 = vld [vmem:[%s1008_s27 + $0x8] sm:$0xff]   ;;  %v935_v6 = vld [vmem:[%s1008_s27 + $0x10] sm:$0xff]   ;;  %s214_s8 = scalar_lea.vmem %s1154_s3, %s1159_s16  ;;  %s217_s11 = scalar_lea.vmem %s1155_s4, %s1159_s16 }
  0x11   : > { %882 = vmatprep.mubr.msk.bf16.mxu0 %vm351_vm1, %v933_v4  ;;  %v936_v7 = vld [vmem:[%s1008_s27 + $0x18] sm:$0xff]   ;;  %v941_v8 = vld [vmem:[%s1008_s27 + $0x40] sm:$0xff]   ;;  %v942_v9 = vld [vmem:[%s1008_s27 + $0x48] sm:$0xff]  }
  0x12   : > { %883 = vmatmul.mubr.msk.bf16.vlgmr.msra.gmra.mrb[0].mxu0 %vm351_vm1, %v934_v5  ;;  %898 = vmatprep.mubr.msk.bf16.mxu1 %vm351_vm1, %v941_v8  ;;  %v943_v10 = vld [vmem:[%s1008_s27 + $0x50] sm:$0xff]   ;;  %v937_v11 = vld [vmem:[%s1008_s27 + $0x20] sm:$0xff]   ;;  %v944_v12 = vld [vmem:[%s1008_s27 + $0x58] sm:$0xff]  }
  0x13   : > { %886 = vmatprep.mubr.msk.bf16.mxu0 %vm351_vm1, %v935_v6  ;;  %899 = vmatmul.mubr.msk.bf16.vlgmr.msra.gmra.mrb[0].mxu1 %vm351_vm1, %v942_v9  ;;  %v945_v13 = vld [vmem:[%s1008_s27 + $0x60] sm:$0xff]   ;;  %v938_v14 = vld [vmem:[%s1008_s27 + $0x28] sm:$0xff]   ;;  %v939_v15 = vld [vmem:[%s1008_s27 + $0x30] sm:$0xff]  }
  0x14   : > { %902 = vmatprep.mubr.msk.bf16.mxu1 %vm351_vm1, %v943_v10  ;;  %v946_v16 = vld [vmem:[%s1008_s27 + $0x68] sm:$0xff]   ;;  %v947_v17 = vld [vmem:[%s1008_s27 + $0x70] sm:$0xff]   ;;  %v940_v18 = vld [vmem:[%s1008_s27 + $0x38] sm:$0xff]  }
  0x15   : > { %v948_v19 = vld [vmem:[%s1008_s27 + $0x78] sm:$0xff]  }
  0x1a   : > { %887 = vmatmul.mubr.msk.bf16.gmra.mrb[4].mxu0 %vm351_vm1, %v936_v7 }
  0x1b   : > { %890 = vmatprep.mubr.msk.bf16.mxu0 %vm351_vm1, %v937_v11  ;;  %903 = vmatmul.mubr.msk.bf16.gmra.mrb[4].mxu1 %vm351_vm1, %v944_v12 }
  0x1c   : > { %906 = vmatprep.mubr.msk.bf16.mxu1 %vm351_vm1, %v945_v13 }
  0x22   : > { %891 = vmatmul.mubr.msk.bf16.gmra.mrb[8].mxu0 %vm351_vm1, %v938_v14 }
  0x23   : > { %894 = vmatprep.mubr.msk.bf16.mxu0 %vm351_vm1, %v939_v15  ;;  %907 = vmatmul.mubr.msk.bf16.gmra.mrb[8].mxu1 %vm351_vm1, %v946_v16 }
  0x24   : > { %910 = vmatprep.mubr.msk.bf16.mxu1 %vm351_vm1, %v947_v17 }
  0x2a   : > { %895 = vmatmul.mubr.msk.bf16.gmra.mrb[12].mxu0 %vm351_vm1, %v940_v18 }
  0x2b   : > { %911 = vmatmul.mubr.msk.bf16.gmra.mrb[12].mxu1 %vm351_vm1, %v948_v19 }
  0xe5   : > { %v884_v20 = vpop.f32.mrb[0].mxu0 }
  0xe6   : > { %567 = vst [vmem:[%s1046_s5 + $0x10] sm:$0xff] %v884_v20  ;;  %v438_v21 = vpop.f32.mrb[1].mxu0  ;;  %v1052_v27 = vpop.f32.mrb[0].mxu1  ;;  %v637_v28 = vmul.f32 %v884_v20, %v884_v20 }
  0xe7   : > { %565 = vst [vmem:[%s1046_s5] sm:$0xff] %v438_v21  ;;  %v885_v22 = vpop.f32.mrb[2].mxu0  ;;  %v635_v24 = vmul.f32 %v438_v21, %v438_v21  ;;  %583 = vst [vmem:[%s1046_s5 + $0x90] sm:$0xff] %v1052_v27  ;;  %v1056_v31 = vpop.f32.mrb[1].mxu1 }
  0xe8   : > { %568 = vst [vmem:[%s1046_s5 + $0x18] sm:$0xff] %v885_v22  ;;  %v441_v23 = vpop.f32.mrb[3].mxu0  ;;  %581 = vst [vmem:[%s1046_s5 + $0x80] sm:$0xff] %v1056_v31  ;;  %v1060_v32 = vpop.f32.mrb[2].mxu1  ;;  %v638_v33 = vmul.f32 %v885_v22, %v885_v22 }
  0xe9   : > { %566 = vst [vmem:[%s1046_s5 + $0x8] sm:$0xff] %v441_v23  ;;  %v597_v25 = vadd.f32 %v441_v23, %v438_v21  ;;  %v636_v26 = vmul.f32 %v441_v23, %v441_v23  ;;  %584 = vst [vmem:[%s1046_s5 + $0x98] sm:$0xff] %v1060_v32  ;;  %v1064_v37 = vpop.f32.mrb[3].mxu1 }
  0xea   : > { %582 = vst [vmem:[%s1046_s5 + $0x88] sm:$0xff] %v1064_v37 }
  0xeb   : > { %v598_v29 = vadd.f32 %v884_v20, %v597_v25  ;;  %v667_v30 = vadd.f32 %v636_v26, %v635_v24 }
  0xed   : > { %v668_v34 = vadd.f32 %v667_v30, %v637_v28  ;;  %v888_v35 = vpop.f32.mrb[4].mxu0  ;;  %v599_v36 = vadd.f32 %v885_v22, %v598_v29 }
  0xee   : > { %571 = vst [vmem:[%s1046_s5 + $0x30] sm:$0xff] %v888_v35  ;;  %v454_v38 = vpop.f32.mrb[5].mxu0  ;;  %v1072_v47 = vpop.f32.mrb[4].mxu1  ;;  %v641_v48 = vmul.f32 %v888_v35, %v888_v35 }
  0xef   : > { %569 = vst [vmem:[%s1046_s5 + $0x20] sm:$0xff] %v454_v38  ;;  %v600_v39 = vadd.f32 %v599_v36, %v454_v38  ;;  %v639_v40 = vmul.f32 %v454_v38, %v454_v38  ;;  %v669_v41 = vadd.f32 %v668_v34, %v638_v33  ;;  %v889_v42 = vpop.f32.mrb[6].mxu0  ;;  %587 = vst [vmem:[%s1046_s5 + $0xb0] sm:$0xff] %v1072_v47  ;;  %v1076_v51 = vpop.f32.mrb[5].mxu1 }
  0xf0   : > { %572 = vst [vmem:[%s1046_s5 + $0x38] sm:$0xff] %v889_v42  ;;  %v457_v43 = vpop.f32.mrb[7].mxu0  ;;  %585 = vst [vmem:[%s1046_s5 + $0xa0] sm:$0xff] %v1076_v51  ;;  %v1080_v52 = vpop.f32.mrb[6].mxu1  ;;  %v642_v53 = vmul.f32 %v889_v42, %v889_v42 }
  0xf1   : > { %v670_v44 = vadd.f32 %v669_v41, %v639_v40  ;;  %570 = vst [vmem:[%s1046_s5 + $0x28] sm:$0xff] %v457_v43  ;;  %v601_v45 = vadd.f32 %v600_v39, %v457_v43  ;;  %v640_v46 = vmul.f32 %v457_v43, %v457_v43  ;;  %588 = vst [vmem:[%s1046_s5 + $0xb8] sm:$0xff] %v1080_v52  ;;  %v1084_v57 = vpop.f32.mrb[7].mxu1 }
  0xf2   : > { %586 = vst [vmem:[%s1046_s5 + $0xa8] sm:$0xff] %v1084_v57  ;;  %v653_v43 = vmul.f32 %v1052_v27, %v1052_v27 }
  0xf3   : > { %v602_v49 = vadd.f32 %v888_v35, %v601_v45  ;;  %v671_v50 = vadd.f32 %v670_v44, %v640_v46  ;;  %v651_v35 = vmul.f32 %v1056_v31, %v1056_v31  ;;  %v654_v46 = vmul.f32 %v1060_v32, %v1060_v32 }
  0xf5   : > { %v672_v54 = vadd.f32 %v671_v50, %v641_v48  ;;  %v892_v55 = vpop.f32.mrb[8].mxu0  ;;  %v603_v56 = vadd.f32 %v889_v42, %v602_v49  ;;  %v652_v42 = vmul.f32 %v1064_v37, %v1064_v37 }
  0xf6   : > { %575 = vst [vmem:[%s1046_s5 + $0x50] sm:$0xff] %v892_v55  ;;  %v470_v58 = vpop.f32.mrb[9].mxu0  ;;  %v1092_v3 = vpop.f32.mrb[8].mxu1  ;;  %v645_v4 = vmul.f32 %v892_v55, %v892_v55 }
  0xf7   : > { %573 = vst [vmem:[%s1046_s5 + $0x40] sm:$0xff] %v470_v58  ;;  %v604_v59 = vadd.f32 %v603_v56, %v470_v58  ;;  %v643_v60 = vmul.f32 %v470_v58, %v470_v58  ;;  %v673_v61 = vadd.f32 %v672_v54, %v642_v53  ;;  %v893_v62 = vpop.f32.mrb[10].mxu0  ;;  %591 = vst [vmem:[%s1046_s5 + $0xd0] sm:$0xff] %v1092_v3  ;;  %v534_v7 = vpop.f32.mrb[9].mxu1 }
  0xf8   : > { %576 = vst [vmem:[%s1046_s5 + $0x58] sm:$0xff] %v893_v62  ;;  %v473_v63 = vpop.f32.mrb[11].mxu0  ;;  %589 = vst [vmem:[%s1046_s5 + $0xc0] sm:$0xff] %v534_v7  ;;  %v1097_v8 = vpop.f32.mrb[10].mxu1  ;;  %v646_v9 = vmul.f32 %v893_v62, %v893_v62 }
  0xf9   : > { %v674_v0 = vadd.f32 %v673_v61, %v643_v60  ;;  %574 = vst [vmem:[%s1046_s5 + $0x48] sm:$0xff] %v473_v63  ;;  %v605_v1 = vadd.f32 %v604_v59, %v473_v63  ;;  %v644_v2 = vmul.f32 %v473_v63, %v473_v63  ;;  %592 = vst [vmem:[%s1046_s5 + $0xd8] sm:$0xff] %v1097_v8  ;;  %v537_v13 = vpop.f32.mrb[11].mxu1 }
  0xfa   : > { %590 = vst [vmem:[%s1046_s5 + $0xc8] sm:$0xff] %v537_v13 }
  0xfb   : > { %v606_v5 = vadd.f32 %v892_v55, %v605_v1  ;;  %v675_v6 = vadd.f32 %v674_v0, %v644_v2  ;;  %v656_v55 = vmul.f32 %v1084_v57, %v1084_v57  ;;  %v660_v1 = vmul.f32 %v537_v13, %v537_v13 }
  0xfd   : > { %v676_v10 = vadd.f32 %v675_v6, %v645_v4  ;;  %v896_v11 = vpop.f32.mrb[12].mxu0  ;;  %v607_v12 = vadd.f32 %v893_v62, %v606_v5 }
  0xfe   : > { %579 = vst [vmem:[%s1046_s5 + $0x70] sm:$0xff] %v896_v11  ;;  %v486_v14 = vpop.f32.mrb[13].mxu0  ;;  %v912_v23 = vpop.f32.mrb[12].mxu1  ;;  %v649_v24 = vmul.f32 %v896_v11, %v896_v11 }
  0xff   : > { %577 = vst [vmem:[%s1046_s5 + $0x60] sm:$0xff] %v486_v14  ;;  %v608_v15 = vadd.f32 %v607_v12, %v486_v14  ;;  %v647_v16 = vmul.f32 %v486_v14, %v486_v14  ;;  %v677_v17 = vadd.f32 %v676_v10, %v646_v9  ;;  %v897_v18 = vpop.f32.mrb[14].mxu0  ;;  %595 = vst [vmem:[%s1046_s5 + $0xf0] sm:$0xff] %v912_v23  ;;  %v550_v28 = vpop.f32.mrb[13].mxu1 }
 0x100   : > { %580 = vst [vmem:[%s1046_s5 + $0x78] sm:$0xff] %v897_v18  ;;  %v489_v19 = vpop.f32.mrb[15].mxu0  ;;  %593 = vst [vmem:[%s1046_s5 + $0xe0] sm:$0xff] %v550_v28  ;;  %v913_v29 = vpop.f32.mrb[14].mxu1  ;;  %v650_v30 = vmul.f32 %v897_v18, %v897_v18 }
 0x101   : > { %v678_v20 = vadd.f32 %v677_v17, %v647_v16  ;;  %578 = vst [vmem:[%s1046_s5 + $0x68] sm:$0xff] %v489_v19  ;;  %v609_v21 = vadd.f32 %v608_v15, %v489_v19  ;;  %v648_v22 = vmul.f32 %v489_v19, %v489_v19  ;;  %596 = vst [vmem:[%s1046_s5 + $0xf8] sm:$0xff] %v913_v29  ;;  %v553_v36 = vpop.f32.mrb[15].mxu1 }
 0x102   : > { %594 = vst [vmem:[%s1046_s5 + $0xe8] sm:$0xff] %v553_v36  ;;  %v664_v12 = vmul.f32 %v553_v36, %v553_v36  ;;  %v666_v16 = vmul.f32 %v913_v29, %v913_v29 }
 0x103   : > { %v610_v25 = vadd.f32 %v896_v11, %v609_v21  ;;  %v679_v26 = vadd.f32 %v678_v20, %v648_v22 }
 0x105   : > { %v680_v33 = vadd.f32 %v679_v26, %v649_v24  ;;  %v611_v34 = vadd.f32 %v897_v18, %v610_v25 }
 0x107   : > { %v612_v38 = vadd.f32 %v611_v34, %v1056_v31  ;;  %v681_v39 = vadd.f32 %v680_v33, %v650_v30  ;;  %v655_v31 = vmul.f32 %v1076_v51, %v1076_v51 }
 0x109   : > { %v682_v40 = vadd.f32 %v681_v39, %v651_v35  ;;  %v613_v41 = vadd.f32 %v612_v38, %v1064_v37 }
 0x10b   : > { %v614_v44 = vadd.f32 %v1052_v27, %v613_v41  ;;  %v683_v45 = vadd.f32 %v682_v40, %v652_v42  ;;  %v657_v27 = vmul.f32 %v1072_v47, %v1072_v47 }
 0x10d   : > { %v684_v48 = vadd.f32 %v683_v45, %v653_v43  ;;  %v615_v49 = vadd.f32 %v1060_v32, %v614_v44  ;;  %v658_v32 = vmul.f32 %v1080_v52, %v1080_v52 }
 0x10f   : > { %v616_v50 = vadd.f32 %v615_v49, %v1076_v51  ;;  %v685_v53 = vadd.f32 %v684_v48, %v654_v46  ;;  %v659_v51 = vmul.f32 %v534_v7, %v534_v7 }
 0x111   : > { %v686_v54 = vadd.f32 %v685_v53, %v655_v31  ;;  %v617_v37 = vadd.f32 %v616_v50, %v1084_v57  ;;  %v661_v57 = vmul.f32 %v1092_v3, %v1092_v3 }
 0x113   : > { %v618_v56 = vadd.f32 %v1072_v47, %v617_v37  ;;  %v687_v58 = vadd.f32 %v686_v54, %v656_v55  ;;  %v662_v47 = vmul.f32 %v1097_v8, %v1097_v8 }
 0x115   : > { %v688_v59 = vadd.f32 %v687_v58, %v657_v27  ;;  %v619_v60 = vadd.f32 %v1080_v52, %v618_v56  ;;  %v663_v52 = vmul.f32 %v550_v28, %v550_v28 }
 0x117   : > { %v620_v61 = vadd.f32 %v619_v60, %v534_v7  ;;  %v689_v62 = vadd.f32 %v688_v59, %v658_v32 }
 0x119   : > { %v690_v63 = vadd.f32 %v689_v62, %v659_v51  ;;  %v621_v0 = vadd.f32 %v620_v61, %v537_v13  ;;  %v665_v13 = vmul.f32 %v912_v23, %v912_v23 }
 0x11b   : > { %v622_v2 = vadd.f32 %v1092_v3, %v621_v0  ;;  %v691_v4 = vadd.f32 %v690_v63, %v660_v1 }
 0x11d   : > { %v692_v5 = vadd.f32 %v691_v4, %v661_v57  ;;  %v623_v6 = vadd.f32 %v1097_v8, %v622_v2 }
 0x11f   : > { %v624_v9 = vadd.f32 %v623_v6, %v550_v28  ;;  %v693_v7 = vadd.f32 %v692_v5, %v662_v47 }
 0x121   : > { %v694_v10 = vadd.f32 %v693_v7, %v663_v52  ;;  %v625_v11 = vadd.f32 %v624_v9, %v553_v36 }
 0x123   : > { %v626_v14 = vadd.f32 %v912_v23, %v625_v11  ;;  %v695_v15 = vadd.f32 %v694_v10, %v664_v12 }
 0x125   : > { %v627_v3 = vadd.f32 %v913_v29, %v626_v14  ;;  %v696_v17 = vadd.f32 %v695_v15, %v665_v13 }
 0x127   : > { %v628_v18 = vrot.slane %v627_v3, 4  ;;  %v697_v19 = vadd.f32 %v696_v17, %v666_v16 }
 0x129   : > { %v629_v20 = vadd.f32 %v628_v18, %v627_v3  ;;  %v698_v21 = vrot.slane %v697_v19, 4 }
 0x12b   : > { %v630_v22 = vrot.slane %v629_v20, 2  ;;  %v699_v8 = vadd.f32 %v698_v21, %v697_v19 }
 0x12d   : > { %v631_v24 = vadd.f32 %v630_v22, %v629_v20  ;;  %v700_v25 = vrot.slane %v699_v8, 2 }
 0x12f   : > { %v632_v26 = vrot.slane %v631_v24, 1  ;;  %v701_v28 = vadd.f32 %v700_v25, %v699_v8 }
 0x131   : > { %v633_v23 = vadd.f32 %v632_v26, %v631_v24  ;;  %v702_v30 = vrot.slane %v701_v28, 1 }
 0x133   : > { %634 = vst [vmem:[%s214_s8] sm:$0x1] %v633_v23  ;;  %v703_v29 = vadd.f32 %v702_v30, %v701_v28 }
 0x135   : > { %704 = vst [vmem:[%s217_s11] sm:$0x1] %v703_v29 }
 0x136 PF: > { %s15_s15 = sadd.s32 1, %s955_s15  }
 0x137   : > { %p12_p5 = scmp.ge.s32.totalorder %s15_s15, 4  }
 0x139   :  { %14 = sbr.rel (!%p12_p5) target bundleno = 1 (0x1), region = 82 }

// kernel: conv_block_deformconv.9
= control target key start
LH: loop header
LB: loop body
LE: loop exit
PB: predicated region body
PF: predicated region fallthrough
CT: control target
= control target key end

     0   :  { %s4219_s12 = smov 0   ;;  %s5221_s0 = inlined_call_operand.vmem [shape: bf16[2,324,8], index: 0, kind: input, shape index: {}]   ;;  %s5222_s1 = inlined_call_operand.vmem [shape: bf16[9,8,128], index: 1, kind: input, shape index: {}]   ;;  %s5223_s2 = inlined_call_operand.vmem [shape: f32[1,128], index: 2, kind: input, shape index: {}]   ;;  %s5224_s3 = inlined_call_operand.vmem [shape: f32[2,286,128], index: 3, kind: output, shape index: {}]  }
   0x1 LB: > { %s3144_s13 = sadd.s32 4294967295, %s4197_s12   ;;  %p3148_p0 = scmp.ge.s32.totalorder %s4197_s12, 1  ;;  %s4197_s12 = sphi %s4219_s12, %s13_s12  }
   0x2   : > { %p137_p1 = scmp.lt.s32.totalorder %s4197_s12, 3 }
   0x4   : > { %p138_p2 = pnand %p3148_p0, %p137_p1 }
   0x6   : > { %141 = sbr.rel (%p138_p2) target bundleno = 570 (0x23a), region = 32 }
   0xd   : > { %vm505_vm0 = vcmask 1043456   ;;  %v4230_v0 = vld [vmem:[%s5222_s1 + $0x10] sm:$0xf]  ;;  %v3151_v1 = vld [vmem:[%s5222_s1 + $0x4] sm:$0xf]  ;;  %p161_p3 = scmp.lt.s32.totalorder %s3144_s13, 1 }
   0xe   : > { %4153 = vmatprep.subr.msk.bf16.mxu0 %vm505_vm0, %v4230_v0  ;;  %4149 = vmatprep.subr.msk.bf16.mxu1 %vm505_vm0, %v3151_v1  ;;  %v4240_v2 = vsel %vm505_vm0, %v4230_v0, 0  ;;  %v507_v3 = vsel %vm505_vm0, %v3151_v1, 0  ;;  %v3265_v4 = vld [vmem:[%s5222_s1 + $0x14] sm:$0xf]  ;;  %v213_v5 = vld [vmem:[%s5222_s1] sm:$0xf] }
   0xf   : > { %5253 = vst [vmem:[#allocation2_spill] sm:$0xff] %v4240_v2  ;;  %3670 = vmatpush3.bf16.msra.mxu0 %v4240_v2  ;;  %3518 = vmatpush3.bf16.msra.mxu1 %v507_v3  ;;  %s5285_s13 = smov (!%p161_p3, %s3144_s13), 1  ;;  %vm306_vm1 = vsmask.f32 7424  ;;  %vm1446_vm2 = vsmask.f32 6400 }
  0x10   : > { %4155 = vmatprep.subr.msk.bf16.mxu0 %vm505_vm0, %v3265_v4  ;;  %s4159_s22 = smul.u32 164, %s5285_s13  ;;  %4150 = vmatprep.subr.msk.bf16.mxu1 %vm505_vm0, %v213_v5  ;;  %vm450_vm3 = vcmask 64512   ;;  %v1893_v8 = vsel %vm505_vm0, %v3265_v4, 0  ;;  %v723_v10 = vsel %vm505_vm0, %v213_v5, 0  ;;  %v4305_v36 = vld [vmem:[%s5222_s1 + $0x8] sm:$0xf] }
  0x11   : > { %v4336_v51 = vld [vmem:[%s5222_s1 + $0x18] sm:$0xf]  ;;  %vm1800_vm4 = vcmask 1045504   ;;  %vm2344_vm5 = vsmask.f32 5376  ;;  %vm904_vm6 = vcmask 1046528  }
  0x12   : > { %s4258_s25 = scalar_lea.vmem %s5221_s0, %s4159_s22  ;;  %vm2702_vm7 = vcmask 1044480   ;;  %s4160_s9 = smul.u32 288, %s5285_s13 }
  0x13   : > { %v4261_v6 = vld [vmem:[%s4258_s25] sm:$0xff]   ;;  %v4264_v7 = vld [vmem:[%s4258_s25 + $0x8] sm:$0xff]   ;;  %v4268_v9 = vld [vmem:[%s4258_s25 + $0x10] sm:$0xff]  }
  0x14   : > { %v308_v11 = vshrl.u32 %v4261_v6, 16  ;;  %v310_v12 = vshll.u32 %v4261_v6, 16  ;;  %v315_v13 = vshll.u32 %v4264_v7, 16  ;;  %v319_v14 = vshrl.u32 %v4264_v7, 16  ;;  %v4282_v17 = vld [vmem:[%s4258_s25 + $0x18] sm:$0xff]   ;;  %v4285_v18 = vld [vmem:[%s4258_s25 + $0x20] sm:$0xff]   ;;  %s5138_s16 = scalar_lea.vmem %s5224_s3, %s4160_s9 }
  0x15   : > { %v4276_v15 = vshll.u32 %v4268_v9, 16  ;;  %v4279_v16 = vshrl.u32 %v4268_v9, 16  ;;  %v4291_v26 = vshll.u32 %v4282_v17, 16  ;;  %v4294_v30 = vshrl.u32 %v4282_v17, 16  ;;  %v4297_v31 = vld [vmem:[%s4258_s25 + $0x28] sm:$0xff]   ;;  %v4314_v41 = vld [vmem:[%s4258_s25 + $0x30] sm:$0xff]  }
  0x16   : > { %v312_v19 = vrot.slane %v310_v12, 1  ;;  %v317_v20 = vrot.slane %v315_v13, 1  ;;  %v1447_v21 = vrot.slane %v319_v14, 1  ;;  %v1448_v22 = vrot.slane %v315_v13, 2  ;;  %v4331_v50 = vld [vmem:[%s4258_s25 + $0x38] sm:$0xff]   ;;  %v4359_v63 = vld [vmem:[%s4258_s25 + $0x40] sm:$0xff]  }
  0x17   : > { %v1450_v23 = vrot.slane %v4279_v16, 1  ;;  %v1451_v24 = vrot.slane %v4276_v15, 2  ;;  %v325_v25 = vrot.slane %v4276_v15, 1  ;;  %v1455_v33 = vrot.slane %v4291_v26, 2 }
  0x18   : > { %v313_v27 = vor.u32 %v312_v19, %v308_v11  ;;  %v321_v28 = vor.u32 %v319_v14, %v317_v20  ;;  %v1449_v29 = vor.u32 %v1448_v22, %v1447_v21  ;;  %v333_v35 = vrot.slane %v4291_v26, 1 }
  0x19   : > { %v1452_v32 = vor.u32 %v1451_v24, %v1450_v23  ;;  %v329_v34 = vor.u32 %v4279_v16, %v325_v25  ;;  %v1454_v39 = vrot.slane %v4294_v30, 1  ;;  %v4311_v40 = vshll.u32 %v4285_v18, 16  ;;  %v4386_v23 = vld [vmem:[%s4258_s25 + $0x48] sm:$0xff]  }
  0x1a   : > { %v318_v37 = vsel %vm306_vm1, %v313_v27, %v317_v20  ;;  %v326_v38 = vsel %vm306_vm1, %v321_v28, %v325_v25  ;;  %v4320_v44 = vshrl.u32 %v4285_v18, 16  ;;  %v337_v45 = vor.u32 %v4294_v30, %v333_v35  ;;  %v4393_v28 = vld [vmem:[%s4258_s25 + $0x50] sm:$0xff]  }
  0x1b   : > { %3519 = vmatprep.mubr.msk.bf16.mxu1 %vm450_vm3, %v318_v37  ;;  %v1453_v42 = vsel %vm1446_vm2, %v1449_v29, %v1452_v32  ;;  %v334_v43 = vsel %vm306_vm1, %v329_v34, %v333_v35  ;;  %v1456_v46 = vor.u32 %v1455_v33, %v1454_v39  ;;  %v1459_v47 = vrot.slane %v4311_v40, 2 }
  0x1c   : > { %3671 = vmatprep.mubr.msk.bf16.mxu0 %vm450_vm3, %v1453_v42  ;;  %3520 = vmatmul.mubr.msk.bf16.vlgmr.msra.gmra.mrb[0].mxu1 %vm450_vm3, %v326_v38  ;;  %v341_v48 = vrot.slane %v4311_v40, 1  ;;  %v4328_v49 = vshll.u32 %v4297_v31, 16  ;;  %v1458_v52 = vrot.slane %v4320_v44, 1  ;;  %v4341_v53 = vshrl.u32 %v4297_v31, 16 }
  0x1d   : > { %3523 = vmatprep.mubr.msk.bf16.mxu1 %vm450_vm3, %v334_v43  ;;  %3556 = vmatpush3.bf16.msra.mxu1 %v723_v10  ;;  %v4344_v54 = vshll.u32 %v4314_v41, 16  ;;  %v4347_v55 = vshrl.u32 %v4314_v41, 16  ;;  %v1457_v56 = vsel %vm1446_vm2, %v1452_v32, %v1456_v46  ;;  %v4363_v3 = vshll.u32 %v4331_v50, 16 }
  0x1e   : > { %v1463_v57 = vrot.slane %v4328_v49, 2  ;;  %v345_v58 = vor.u32 %v4320_v44, %v341_v48  ;;  %4151 = vmatprep.subr.msk.bf16.mxu1 %vm505_vm0, %v4305_v36  ;;  %3672 = vmatmul.mubr.msk.bf16.vlgmr.msra.gmra.mrb[0].mxu0 %vm450_vm3, %v1457_v56  ;;  %v1460_v59 = vor.u32 %v1459_v47, %v1458_v52  ;;  %v1462_v60 = vrot.slane %v4341_v53, 1  ;;  %v4420_v56 = vld [vmem:[%s4258_s25 + $0x58] sm:$0xff]  }
  0x1f   : > { %v349_v61 = vrot.slane %v4328_v49, 1  ;;  %v1466_v62 = vrot.slane %v4347_v55, 1  ;;  %3708 = vmatpush3.bf16.msra.mxu0 %v1893_v8  ;;  %v1467_v1 = vrot.slane %v4344_v54, 2  ;;  %v4366_v4 = vshrl.u32 %v4331_v50, 16 }
  0x20   : > { %v1461_v5 = vsel %vm1446_vm2, %v1456_v46, %v1460_v59  ;;  %v342_v10 = vsel %vm306_vm1, %v337_v45, %v341_v48  ;;  %v1464_v11 = vor.u32 %v1463_v57, %v1462_v60  ;;  %4156 = vmatprep.subr.msk.bf16.mxu0 %vm505_vm0, %v4336_v51  ;;  %v357_v13 = vrot.slane %v4344_v54, 1 }
  0x21   : > { %3675 = vmatprep.mubr.msk.bf16.mxu0 %vm450_vm3, %v1461_v5  ;;  %v350_v8 = vsel %vm306_vm1, %v345_v58, %v349_v61  ;;  %v1468_v12 = vor.u32 %v1467_v1, %v1466_v62  ;;  %v4376_v14 = vshll.u32 %v4359_v63, 16  ;;  %v1470_v20 = vrot.slane %v4366_v4, 1 }
  0x22   : > { %v1465_v19 = vsel %vm1446_vm2, %v1460_v59, %v1464_v11  ;;  %v1471_v21 = vrot.slane %v4363_v3, 2  ;;  %v4383_v22 = vshrl.u32 %v4359_v63, 16  ;;  %v353_v25 = vor.u32 %v4341_v53, %v349_v61 }
  0x23   : > { %v1469_v24 = vsel %vm1446_vm2, %v1464_v11, %v1468_v12  ;;  %v1475_v27 = vrot.slane %v4376_v14, 2  ;;  %v361_v29 = vor.u32 %v4347_v55, %v357_v13  ;;  %v365_v32 = vrot.slane %v4363_v3, 1 }
  0x24   : > { %3524 = vmatmul.mubr.msk.bf16.gmra.mrb[4].mxu1 %vm450_vm3, %v342_v10  ;;  %v1474_v33 = vrot.slane %v4383_v22, 1  ;;  %v1472_v34 = vor.u32 %v1471_v21, %v1470_v20  ;;  %v4401_v35 = vshll.u32 %v4386_v23, 16  ;;  %v4404_v37 = vshrl.u32 %v4386_v23, 16 }
  0x25   : > { %3527 = vmatprep.mubr.msk.bf16.mxu1 %vm450_vm3, %v350_v8  ;;  %v358_v38 = vsel %vm306_vm1, %v353_v25, %v357_v13  ;;  %v4408_v42 = vshll.u32 %v4393_v28, 16  ;;  %v4411_v43 = vshrl.u32 %v4393_v28, 16  ;;  %v366_v45 = vsel %vm306_vm1, %v361_v29, %v365_v32 }
  0x26   : > { %3676 = vmatmul.mubr.msk.bf16.gmra.mrb[4].mxu0 %vm450_vm3, %v1465_v19  ;;  %v1476_v39 = vor.u32 %v1475_v27, %v1474_v33  ;;  %v1473_v46 = vsel %vm1446_vm2, %v1468_v12, %v1472_v34  ;;  %v373_v47 = vrot.slane %v4376_v14, 1  ;;  %v1478_v48 = vrot.slane %v4404_v37, 1  ;;  %v4453_v33 = vld [vmem:[%s4258_s25 + $0x68] sm:$0xff]  }
  0x27   : > { %3679 = vmatprep.mubr.msk.bf16.mxu0 %vm450_vm3, %v1469_v24  ;;  %v1479_v52 = vrot.slane %v4401_v35, 2  ;;  %v369_v58 = vor.u32 %v4366_v4, %v365_v32  ;;  %v1482_v59 = vrot.slane %v4411_v43, 1  ;;  %v1483_v60 = vrot.slane %v4408_v42, 2  ;;  %v4445_v24 = vld [vmem:[%s4258_s25 + $0x60] sm:$0xff]  }
  0x28   : > { %v1477_v57 = vsel %vm1446_vm2, %v1472_v34, %v1476_v39  ;;  %v377_v61 = vor.u32 %v4383_v22, %v373_v47  ;;  %v381_v62 = vrot.slane %v4401_v35, 1  ;;  %v4432_v5 = vshll.u32 %v4420_v56, 16 }
  0x29   : > { %v1480_v1 = vor.u32 %v1479_v52, %v1478_v48  ;;  %v4435_v10 = vshrl.u32 %v4420_v56, 16  ;;  %v374_v11 = vsel %vm306_vm1, %v369_v58, %v373_v47  ;;  %v1484_v8 = vor.u32 %v1483_v60, %v1482_v59  ;;  %v4478_v60 = vld [vmem:[%s4258_s25 + $0x70] sm:$0xff]  }
  0x2a   : > { %5254 = vst [vmem:[#allocation3_spill] sm:$0xff] %v4432_v5  ;;  %v382_v12 = vsel %vm306_vm1, %v377_v61, %v381_v62  ;;  %v389_v19 = vrot.slane %v4408_v42, 1  ;;  %v1487_v21 = vrot.slane %v4432_v5, 2  ;;  %v385_v27 = vor.u32 %v4404_v37, %v381_v62  ;;  %v4481_v61 = vld [vmem:[%s4258_s25 + $0x98] sm:$0xf] }
  0x2b   : > { %v1481_v13 = vsel %vm1446_vm2, %v1476_v39, %v1480_v1  ;;  %v1486_v20 = vrot.slane %v4435_v10, 1  ;;  %v1485_v25 = vsel %vm1446_vm2, %v1480_v1, %v1484_v8  ;;  %v397_v32 = vrot.slane %v4432_v5, 1 }
  0x2c   : > { %3528 = vmatmul.mubr.msk.bf16.gmra.mrb[8].mxu1 %vm450_vm3, %v358_v38  ;;  %v393_v29 = vor.u32 %v4411_v43, %v389_v19  ;;  %v4460_v38 = vshll.u32 %v4445_v24, 16  ;;  %v390_v39 = vsel %vm306_vm1, %v385_v27, %v389_v19  ;;  %v4467_v48 = vshrl.u32 %v4445_v24, 16 }
  0x2d   : > { %3531 = vmatprep.mubr.msk.bf16.mxu1 %vm450_vm3, %v366_v45  ;;  %v4457_v34 = vor.u32 %v1487_v21, %v1486_v20  ;;  %v1801_v45 = vrot.slane %v4264_v7, 2  ;;  %v4470_v52 = vshll.u32 %v4453_v33, 16  ;;  %v401_v1 = vor.u32 %v4435_v10, %v397_v32 }
  0x2e   : > { %3680 = vmatmul.mubr.msk.bf16.gmra.mrb[8].mxu0 %vm450_vm3, %v1473_v46  ;;  %5256 = vst [vmem:[#allocation5_spill] sm:$0xff] %v4460_v38  ;;  %v1802_v46 = vrot.slane %v4268_v9, 2  ;;  %v398_v47 = vsel %vm306_vm1, %v393_v29, %v397_v32  ;;  %5257 = vst [vmem:[#allocation6_spill] sm:$0xff] %v4467_v48  ;;  %v405_v59 = vrot.slane %v4460_v38, 1  ;;  %v1804_v19 = vrot.slane %v4282_v17, 2 }
  0x2f   : > { %3683 = vmatprep.mubr.msk.bf16.mxu0 %vm450_vm3, %v1477_v57  ;;  %5255 = vst [vmem:[#allocation4_spill] sm:$0xff] %v4457_v34  ;;  %5258 = vst [vmem:[#allocation7_spill] sm:$0xff] %v4470_v52  ;;  %v211_v57 = vld [vmem:[%s4258_s25 + $0x9c] sm:$0xf]  ;;  %v1489_v58 = vsel %vm1446_vm2, %v1484_v8, %v4457_v34  ;;  %v413_v8 = vrot.slane %v4470_v52, 1  ;;  %v4498_v20 = vshll.u32 %v4478_v60, 16 }
  0x30   : > { %v1803_v62 = vsel %vm1800_vm4, %v1801_v45, %v1802_v46  ;;  %v406_v21 = vsel %vm306_vm1, %v401_v1, %v405_v59  ;;  %v4503_v27 = vshrl.u32 %v4453_v33, 16  ;;  %v4507_v32 = vshrl.u32 %v4478_v60, 16  ;;  %v4513_v45 = vld [vmem:[%s4258_s25 + $0x90] sm:$0xff]   ;;  %v4538_v34 = vld [vmem:[%s5222_s1 + $0x1c] sm:$0xf] }
  0x31   : > { %5259 = vst [vmem:[#allocation8_spill] sm:$0xff] %v4498_v20  ;;  %5263 = vst [vmem:[#allocation12_spill] sm:$0xff] %v4513_v45  ;;  %v1810_v2 = vrot.slane %v4314_v41, 2 }
  0x32   : > { %5260 = vst [vmem:[#allocation9_spill] sm:$0xff] %v4503_v27  ;;  %5261 = vst [vmem:[#allocation10_spill] sm:$0xff] %v4507_v32  ;;  %v417_v1 = vor.u32 %v4503_v27, %v413_v8 }
  0x34   : > { %3532 = vmatmul.mubr.msk.bf16.gmra.mrb[12].mxu1 %vm450_vm3, %v374_v11  ;;  %v4487_v11 = vcombine.low %v4481_v61, %v211_v57  ;;  %v421_v57 = vrot.slane %v4498_v20, 1 }
  0x35   : > { %3535 = vmatprep.mubr.msk.bf16.mxu1 %vm450_vm3, %v382_v12  ;;  %v409_v12 = vor.u32 %v4467_v48, %v405_v59  ;;  %v2127_v59 = vsel %vm505_vm0, %v4336_v51, 0  ;;  %v4543_v51 = vrot.slane %v4513_v45, 2  ;;  %v2353_v48 = vrot.slane %v4311_v40, 3 }
  0x36   : > { %3684 = vmatmul.mubr.msk.bf16.gmra.mrb[12].mxu0 %vm450_vm3, %v1481_v13  ;;  %v4492_v13 = vld [vmem:[%s4258_s25 + $0x78] sm:$0xff]   ;;  %v1816_v40 = vrot.slane %v4386_v23, 2 }
  0x37   : > { %3687 = vmatprep.mubr.msk.bf16.mxu0 %vm450_vm3, %v1485_v25  ;;  %v1806_v25 = vrot.slane %v4285_v18, 2  ;;  %v414_v29 = vsel %vm306_vm1, %v409_v12, %v413_v8  ;;  %v425_v12 = vor.u32 %v4507_v32, %v421_v57  ;;  %v1808_v8 = vrot.slane %v4297_v31, 2 }
  0x38   : > { %v4555_v20 = vshrl.u32 %v4492_v13, 16 }
  0x3a   : > { %5265 = vst [vmem:[#allocation14_spill] sm:$0xff] %v4555_v20 }
  0x3c   : > { %3536 = vmatmul.mubr.msk.bf16.gmra.mrb[16].mxu1 %vm450_vm3, %v390_v39  ;;  %v4510_v39 = vshll.u32 %v4492_v13, 16 }
  0x3d   : > { %3539 = vmatprep.mubr.msk.bf16.mxu1 %vm450_vm3, %v398_v47  ;;  %v4517_v47 = vsel %vm1800_vm4, %v1802_v46, %v1804_v19  ;;  %v4533_v46 = vld [vmem:[%s4258_s25 + $0x88] sm:$0xff]  }
  0x3e   : > { %3688 = vmatmul.mubr.msk.bf16.gmra.mrb[16].mxu0 %vm450_vm3, %v1489_v58  ;;  %5262 = vst [vmem:[#allocation11_spill] sm:$0xff] %v4510_v39  ;;  %v4521_v58 = vld [vmem:[%s4258_s25 + $0x80] sm:$0xff]  }
  0x3f   : > { %3709 = vmatprep.mubr.msk.bf16.mxu0 %vm450_vm3, %v1803_v62  ;;  %v4527_v62 = vsel %vm1800_vm4, %v1804_v19, %v1806_v25  ;;  %v5237_v19 = vrot.slane %v4487_v11, 2  ;;  %v4567_v32 = vshrl.u32 %v4521_v58, 16 }
  0x41   : > { %5266 = vst [vmem:[#allocation15_spill] sm:$0xff] %v4567_v32 }
  0x44   : > { %3540 = vmatmul.mubr.msk.bf16.gmra.mrb[20].mxu1 %vm450_vm3, %v406_v21  ;;  %v429_v21 = vrot.slane %v4510_v39, 1  ;;  %v422_v39 = vsel %vm306_vm1, %v417_v1, %v421_v57  ;;  %v4570_v57 = vshll.u32 %v4533_v46, 16  ;;  %v4574_v1 = vsel %vm1800_vm4, %v1806_v25, %v1808_v8 }
  0x45   : > { %3543 = vmatprep.mubr.msk.bf16.mxu1 %vm450_vm3, %v414_v29  ;;  %v4550_v29 = vshll.u32 %v4521_v58, 16  ;;  %v2346_v25 = vrot.slane %v4276_v15, 3  ;;  %v2352_v15 = vrot.slane %v4320_v44, 2 }
  0x46   : > { %3710 = vmatmul.mubr.msk.bf16.vlgmr.msra.gmra.mrb[0].mxu0 %vm450_vm3, %v4517_v47  ;;  %v430_v45 = vsel %vm306_vm1, %v425_v12, %v429_v21  ;;  %5267 = vst [vmem:[#allocation16_spill] sm:$0xff] %v4570_v57  ;;  %v433_v12 = vor.u32 %v4555_v20, %v429_v21  ;;  %v445_v38 = vrot.slane %v4570_v57, 1  ;;  %v2349_v21 = vrot.slane %v4291_v26, 3 }
  0x47   : > { %3746 = vmatpush3.bf16.msra.mxu0 %v2127_v59  ;;  %3713 = vmatprep.mubr.msk.bf16.mxu0 %vm450_vm3, %v4527_v62  ;;  %5264 = vst [vmem:[#allocation13_spill] sm:$0xff] %v4550_v29  ;;  %v4563_v59 = vsel %vm1800_vm4, %v4543_v51, %v5237_v19  ;;  %v437_v52 = vrot.slane %v4550_v29, 1  ;;  %v4579_v19 = vsel %vm1800_vm4, %v1808_v8, %v1810_v2  ;;  %v2348_v8 = vrot.slane %v4294_v30, 2 }
  0x48   : > { %4157 = vmatprep.subr.msk.bf16.mxu0 %vm505_vm0, %v4538_v34  ;;  %v1814_v57 = vrot.slane %v4359_v63, 2  ;;  %v4603_v26 = vshrl.u32 %v4533_v46, 16 }
  0x49   : > { %v441_v27 = vor.u32 %v4567_v32, %v437_v52  ;;  %v438_v29 = vsel %vm306_vm1, %v433_v12, %v437_v52  ;;  %v2354_v52 = vor.u32 %v2353_v48, %v2352_v15  ;;  %v2356_v48 = vrot.slane %v4341_v53, 2 }
  0x4a   : > { %v2360_v12 = vrot.slane %v4347_v55, 2  ;;  %v2364_v55 = vrot.slane %v4366_v4, 2  ;;  %v2368_v15 = vrot.slane %v4383_v22, 2  ;;  %v4656_v4 = vld [vmem:[%s5222_s1 + $0xc] sm:$0xf]  ;;  %v2372_v22 = vrot.slane %v4404_v37, 2 }
  0x4b   : > { %v446_v20 = vsel %vm306_vm1, %v441_v27, %v445_v38 }
  0x4c   : > { %3544 = vmatmul.mubr.msk.bf16.gmra.mrb[24].mxu1 %vm450_vm3, %v422_v39  ;;  %v2345_v39 = vrot.slane %v4279_v16, 2  ;;  %v2350_v16 = vor.u32 %v2349_v21, %v2348_v8  ;;  %v1822_v8 = vrot.slane %v4445_v24, 2 }
  0x4d   : > { %3547 = vmatprep.mubr.msk.bf16.mxu1 %vm450_vm3, %v430_v45  ;;  %v1812_v45 = vrot.slane %v4331_v50, 2 }
  0x4e   : > { %3714 = vmatmul.mubr.msk.bf16.gmra.mrb[4].mxu0 %vm450_vm3, %v4574_v1  ;;  %v2347_v32 = vor.u32 %v2346_v25, %v2345_v39  ;;  %v4613_v44 = vsel %vm2344_vm5, %v2350_v16, %v2354_v52  ;;  %v2361_v39 = vrot.slane %v4344_v54, 3  ;;  %v4628_v25 = vsel %vm1800_vm4, %v1814_v57, %v1816_v40 }
  0x4f   : > { %3717 = vmatprep.mubr.msk.bf16.mxu0 %vm450_vm3, %v4579_v19  ;;  %v4600_v5 = vsel %vm1800_vm4, %v1810_v2, %v1812_v45  ;;  %v4610_v27 = vsel %vm1800_vm4, %v1812_v45, %v1814_v57  ;;  %v449_v2 = vor.u32 %v4603_v26, %v445_v38  ;;  %v2365_v57 = vrot.slane %v4363_v3, 3 }
  0x50   : > { %v4606_v30 = vsel %vm2344_vm5, %v2347_v32, %v2350_v16  ;;  %v1818_v32 = vrot.slane %v4393_v28, 2  ;;  %v2362_v53 = vor.u32 %v2361_v39, %v2360_v12  ;;  %v1820_v45 = vrot.slane %v4420_v56, 2 }
  0x51   : > { %v2366_v21 = vor.u32 %v2365_v57, %v2364_v55  ;;  %v995_v16 = vsel %vm505_vm0, %v4305_v36, 0  ;;  %v2376_v12 = vrot.slane %v4411_v43, 2  ;;  %v2377_v39 = vrot.slane %v4408_v42, 3 }
  0x52   : > { %v4669_v36 = vsel %vm1800_vm4, %v1820_v45, %v1822_v8  ;;  %v1828_v43 = vrot.slane %v4492_v13, 2  ;;  %v1830_v57 = vrot.slane %v4521_v58, 2 }
  0x53   : > { %v4659_v3 = vsel %vm2344_vm5, %v2362_v53, %v2366_v21  ;;  %v4694_v37 = vor.u32 %v2377_v39, %v2376_v12  ;;  %v4861_v39 = vld [vmem:[%s4258_s25 + $0xa0] ss:$0 sps:$4 sm:$0x33]  }
  0x54   : > { %3548 = vmatmul.mubr.msk.bf16.gmra.mrb[28].mxu1 %vm450_vm3, %v438_v29 }
  0x55   : > { %3551 = vmatprep.mubr.msk.bf16.mxu1 %vm450_vm3, %v446_v20  ;;  %v2357_v20 = vrot.slane %v4328_v49, 3  ;;  %v4636_v49 = vsel %vm1800_vm4, %v1816_v40, %v1818_v32 }
  0x56   : > { %3718 = vmatmul.mubr.msk.bf16.gmra.mrb[8].mxu0 %vm450_vm3, %v4600_v5 }
  0x57   : > { %3721 = vmatprep.mubr.msk.bf16.mxu0 %vm450_vm3, %v4610_v27  ;;  %v2358_v29 = vor.u32 %v2357_v20, %v2356_v48  ;;  %v2373_v48 = vrot.slane %v4401_v35, 3  ;;  %v1824_v20 = vrot.slane %v4453_v33, 2 }
  0x59   : > { %v4631_v38 = vsel %vm2344_vm5, %v2354_v52, %v2358_v29  ;;  %v4641_v54 = vsel %vm2344_vm5, %v2358_v29, %v2362_v53  ;;  %v2369_v52 = vrot.slane %v4376_v14, 3  ;;  %v2374_v29 = vor.u32 %v2373_v48, %v2372_v22 }
  0x5a   : > { %v4692_v35 = vsel %vm1800_vm4, %v1822_v8, %v1824_v20  ;;  %v4719_v8 = vsel %vm1800_vm4, %v1828_v43, %v1830_v57  ;;  %v2485_v22 = vsel %vm505_vm0, %v4538_v34, 0  ;;  %v905_v34 = vrot.slane %v4261_v6, 1 }
  0x5b   : > { %v2370_v40 = vor.u32 %v2369_v52, %v2368_v15  ;;  %v4703_v42 = vsel %vm2344_vm5, %v2374_v29, %v4694_v37  ;;  %v4733_v15 = vcombine.low %v4481_v61, %v4481_v61 }
  0x5c   : > { %3552 = vmatmul.mubr.msk.bf16.gmra.mrb[32].mxu1 %vm450_vm3, %v449_v2  ;;  %v4664_v2 = vsel %vm1800_vm4, %v1818_v32, %v1820_v45  ;;  %v1826_v32 = vrot.slane %v4478_v60, 2 }
  0x5d   : > { %3557 = vmatprep.mubr.msk.bf16.mxu1 %vm450_vm3, %v4261_v6  ;;  %v4674_v14 = vsel %vm2344_vm5, %v2366_v21, %v2370_v40  ;;  %v4687_v53 = vsel %vm2344_vm5, %v2370_v40, %v2374_v29  ;;  %v1832_v21 = vrot.slane %v4533_v46, 2  ;;  %v1836_v40 = vrot.slane %v4733_v15, 2 }
  0x5e   : > { %3722 = vmatmul.mubr.msk.bf16.gmra.mrb[12].mxu0 %vm450_vm3, %v4628_v25  ;;  %v4699_v55 = vsel %vm1800_vm4, %v1824_v20, %v1826_v32  ;;  %v4714_v45 = vsel %vm1800_vm4, %v1826_v32, %v1828_v43  ;;  %v910_v6 = vrot.slane %v4282_v17, 1  ;;  %v920_v20 = vrot.slane %v4359_v63, 1 }
  0x5f   : > { %3725 = vmatprep.mubr.msk.bf16.mxu0 %vm450_vm3, %v4636_v49  ;;  %v4739_v52 = vsel %vm1800_vm4, %v1832_v21, %v4543_v51  ;;  %v1837_v61 = vsel %vm1800_vm4, %v4543_v51, %v1836_v40  ;;  %v4764_v51 = vld [vmem:[%s5222_s1 + $0x20] sm:$0xf]  ;;  %v922_v32 = vrot.slane %v4386_v23, 1  ;;  %v2118_v43 = vrot.slane %v4861_v39, 2 }
  0x61   : > { %v4856_v12 = vsel %vm904_vm6, %v920_v20, %v922_v32 }
  0x64   : > { %3558 = vmatmul.mubr.msk.bf16.vlgmr.msra.gmra.mrb[0].mxu1 %vm450_vm3, %v4264_v7 }
  0x65   : > { %3561 = vmatprep.mubr.msk.bf16.mxu1 %vm450_vm3, %v4268_v9  ;;  %3594 = vmatpush3.bf16.msra.mxu1 %v995_v16  ;;  %v4729_v16 = vsel %vm1800_vm4, %v1830_v57, %v1832_v21 }
  0x66   : > { %4152 = vmatprep.subr.msk.bf16.mxu1 %vm505_vm0, %v4656_v4  ;;  %3726 = vmatmul.mubr.msk.bf16.gmra.mrb[16].mxu0 %vm450_vm3, %v4664_v2 }
  0x67   : > { %3729 = vmatprep.mubr.msk.bf16.mxu0 %vm450_vm3, %v4669_v36 }
  0x6c   : > { %3562 = vmatmul.mubr.msk.bf16.gmra.mrb[4].mxu1 %vm450_vm3, %v4282_v17 }
  0x6d   : > { %3565 = vmatprep.mubr.msk.bf16.mxu1 %vm450_vm3, %v4285_v18 }
  0x6e   : > { %3730 = vmatmul.mubr.msk.bf16.gmra.mrb[20].mxu0 %vm450_vm3, %v4692_v35 }
  0x6f   : > { %3733 = vmatprep.mubr.msk.bf16.mxu0 %vm450_vm3, %v4699_v55 }
  0x74   : > { %3566 = vmatmul.mubr.msk.bf16.gmra.mrb[8].mxu1 %vm450_vm3, %v4297_v31 }
  0x75   : > { %3569 = vmatprep.mubr.msk.bf16.mxu1 %vm450_vm3, %v4314_v41 }
  0x76   : > { %3734 = vmatmul.mubr.msk.bf16.gmra.mrb[24].mxu0 %vm450_vm3, %v4714_v45 }
  0x77   : > { %3737 = vmatprep.mubr.msk.bf16.mxu0 %vm450_vm3, %v4719_v8 }
  0x7c   : > { %3570 = vmatmul.mubr.msk.bf16.gmra.mrb[12].mxu1 %vm450_vm3, %v4331_v50 }
  0x7d   : > { %3573 = vmatprep.mubr.msk.bf16.mxu1 %vm450_vm3, %v4359_v63 }
  0x7e   : > { %3738 = vmatmul.mubr.msk.bf16.gmra.mrb[28].mxu0 %vm450_vm3, %v4729_v16 }
  0x7f   : > { %3741 = vmatprep.mubr.msk.bf16.mxu0 %vm450_vm3, %v4739_v52 }
  0x84   : > { %3574 = vmatmul.mubr.msk.bf16.gmra.mrb[16].mxu1 %vm450_vm3, %v4386_v23 }
  0x85   : > { %3577 = vmatprep.mubr.msk.bf16.mxu1 %vm450_vm3, %v4393_v28 }
  0x86   : > { %3742 = vmatmul.mubr.msk.bf16.gmra.mrb[32].mxu0 %vm450_vm3, %v1837_v61  ;;  %v2795_v61 = vsel %vm505_vm0, %v4764_v51, 0 }
  0x87   : > { %3747 = vmatprep.mubr.msk.bf16.mxu0 %vm450_vm3, %v4517_v47  ;;  %v906_v47 = vrot.slane %v4264_v7, 1 }
  0x8c   : > { %3578 = vmatmul.mubr.msk.bf16.gmra.mrb[20].mxu1 %vm450_vm3, %v4420_v56 }
  0x8d   : > { %3581 = vmatprep.mubr.msk.bf16.mxu1 %vm450_vm3, %v4445_v24 }
  0x8e   : > { %3748 = vmatmul.mubr.msk.bf16.vlgmr.msra.gmra.mrb[0].mxu0 %vm450_vm3, %v4527_v62  ;;  %v907_v62 = vsel %vm904_vm6, %v905_v34, %v906_v47  ;;  %v934_v34 = vrot.slane %v4492_v13, 1 }
  0x8f   : > { %3784 = vmatpush3.bf16.msra.mxu0 %v2485_v22  ;;  %3751 = vmatprep.mubr.msk.bf16.mxu0 %vm450_vm3, %v4574_v1  ;;  %v1226_v1 = vsel %vm505_vm0, %v4656_v4, 0  ;;  %v932_v22 = vrot.slane %v4478_v60, 1 }
  0x90   : > { %4158 = vmatprep.subr.msk.bf16.mxu0 %vm505_vm0, %v4764_v51  ;;  %v936_v51 = vrot.slane %v4521_v58, 1 }
  0x94   : > { %3582 = vmatmul.mubr.msk.bf16.gmra.mrb[24].mxu1 %vm450_vm3, %v4453_v33 }
  0x95   : > { %3585 = vmatprep.mubr.msk.bf16.mxu1 %vm450_vm3, %v4478_v60 }
  0x96   : > { %3752 = vmatmul.mubr.msk.bf16.gmra.mrb[4].mxu0 %vm450_vm3, %v4579_v19 }
  0x97   : > { %3755 = vmatprep.mubr.msk.bf16.mxu0 %vm450_vm3, %v4600_v5  ;;  %v908_v5 = vrot.slane %v4268_v9, 1 }
  0x99   : > { %v4801_v7 = vsel %vm904_vm6, %v906_v47, %v908_v5  ;;  %v4804_v19 = vsel %vm904_vm6, %v908_v5, %v910_v6  ;;  %v4912_v47 = vsel %vm904_vm6, %v932_v22, %v934_v34  ;;  %v2380_v5 = vrot.slane %v4435_v10, 2 }
  0x9c   : > { %3586 = vmatmul.mubr.msk.bf16.gmra.mrb[28].mxu1 %vm450_vm3, %v4492_v13 }
  0x9d   : > { %3589 = vmatprep.mubr.msk.bf16.mxu1 %vm450_vm3, %v4521_v58 }
  0x9e   : > { %3756 = vmatmul.mubr.msk.bf16.gmra.mrb[8].mxu0 %vm450_vm3, %v4610_v27  ;;  %v912_v27 = vrot.slane %v4285_v18, 1 }
  0x9f   : > { %3759 = vmatprep.mubr.msk.bf16.mxu0 %vm450_vm3, %v4628_v25  ;;  %v914_v25 = vrot.slane %v4297_v31, 1 }
  0xa1   : > { %v4824_v4 = vsel %vm904_vm6, %v912_v27, %v914_v25 }
  0xa4   : > { %3590 = vmatmul.mubr.msk.bf16.gmra.mrb[32].mxu1 %vm450_vm3, %v4533_v46 }
  0xa5   : > { %3595 = vmatprep.mubr.msk.bf16.mxu1 %vm450_vm3, %v907_v62 }
  0xa6   : > { %3760 = vmatmul.mubr.msk.bf16.gmra.mrb[12].mxu0 %vm450_vm3, %v4636_v49  ;;  %v4821_v49 = vsel %vm904_vm6, %v910_v6, %v912_v27  ;;  %v5269_v6 = vld [vmem:[#allocation3_spill] sm:$0xff] }
  0xa7   : > { %3763 = vmatprep.mubr.msk.bf16.mxu0 %vm450_vm3, %v4664_v2  ;;  %v918_v2 = vrot.slane %v4331_v50, 1 }
  0xa9   : > { %v4853_v29 = vsel %vm904_vm6, %v918_v2, %v920_v20 }
  0xac   : > { %3596 = vmatmul.mubr.msk.bf16.vlgmr.msra.gmra.mrb[0].mxu1 %vm450_vm3, %v4801_v7 }
  0xad   : > { %3599 = vmatprep.mubr.msk.bf16.mxu1 %vm450_vm3, %v4804_v19  ;;  %3632 = vmatpush3.bf16.msra.mxu1 %v1226_v1  ;;  %v5270_v1 = vld [vmem:[#allocation6_spill] sm:$0xff] }
  0xae   : > { %4154 = vmatprep.subr.msk.bf16.mxu1 %vm505_vm0, %v4230_v0  ;;  %3764 = vmatmul.mubr.msk.bf16.gmra.mrb[16].mxu0 %vm450_vm3, %v4669_v36  ;;  %v916_v0 = vrot.slane %v4314_v41, 1  ;;  %v2384_v27 = vrot.slane %v5270_v1, 2 }
  0xaf   : > { %3767 = vmatprep.mubr.msk.bf16.mxu0 %vm450_vm3, %v4692_v35  ;;  %v924_v35 = vrot.slane %v4393_v28, 1 }
  0xb0   : > { %v4837_v36 = vsel %vm904_vm6, %v914_v25, %v916_v0  ;;  %v4840_v48 = vsel %vm904_vm6, %v916_v0, %v918_v2  ;;  %v5271_v25 = vld [vmem:[#allocation5_spill] sm:$0xff] }
  0xb1   : > { %v4873_v57 = vsel %vm904_vm6, %v922_v32, %v924_v35  ;;  %v2385_v0 = vrot.slane %v5271_v25, 3  ;;  %v5272_v2 = vld [vmem:[#allocation9_spill] sm:$0xff] }
  0xb2   : > { %v2388_v20 = vrot.slane %v5272_v2, 2 }
  0xb4   : > { %3600 = vmatmul.mubr.msk.bf16.gmra.mrb[4].mxu1 %vm450_vm3, %v4821_v49 }
  0xb5   : > { %3603 = vmatprep.mubr.msk.bf16.mxu1 %vm450_vm3, %v4824_v4 }
  0xb6   : > { %3768 = vmatmul.mubr.msk.bf16.gmra.mrb[20].mxu0 %vm450_vm3, %v4699_v55  ;;  %v926_v55 = vrot.slane %v4420_v56, 1 }
  0xb7   : > { %3771 = vmatprep.mubr.msk.bf16.mxu0 %vm450_vm3, %v4714_v45 }
  0xb8   : > { %v4876_v45 = vsel %vm904_vm6, %v924_v35, %v926_v55 }
  0xbc   : > { %3604 = vmatmul.mubr.msk.bf16.gmra.mrb[8].mxu1 %vm450_vm3, %v4837_v36 }
  0xbd   : > { %3607 = vmatprep.mubr.msk.bf16.mxu1 %vm450_vm3, %v4840_v48 }
  0xbe   : > { %3772 = vmatmul.mubr.msk.bf16.gmra.mrb[24].mxu0 %vm450_vm3, %v4719_v8  ;;  %v5268_v8 = vrot.slane %v4487_v11, 2 }
  0xbf   : > { %3775 = vmatprep.mubr.msk.bf16.mxu0 %vm450_vm3, %v4729_v16  ;;  %v930_v16 = vrot.slane %v4453_v33, 1 }
  0xc0   : > { %v2119_v21 = vsel %vm1800_vm4, %v5268_v8, %v2118_v43  ;;  %v5275_v8 = vld [vmem:[#allocation8_spill] sm:$0xff] }
  0xc4   : > { %3608 = vmatmul.mubr.msk.bf16.gmra.mrb[12].mxu1 %vm450_vm3, %v4853_v29 }
  0xc5   : > { %3611 = vmatprep.mubr.msk.bf16.mxu1 %vm450_vm3, %v4856_v12 }
  0xc6   : > { %3776 = vmatmul.mubr.msk.bf16.gmra.mrb[28].mxu0 %vm450_vm3, %v4739_v52 }
  0xc7   : > { %3779 = vmatprep.mubr.msk.bf16.mxu0 %vm450_vm3, %v4563_v59  ;;  %v928_v59 = vrot.slane %v4445_v24, 1 }
  0xc9   : > { %v4891_v52 = vsel %vm904_vm6, %v926_v55, %v928_v59  ;;  %v4894_v40 = vsel %vm904_vm6, %v928_v59, %v930_v16  ;;  %v5276_v59 = vld [vmem:[#allocation2_spill] sm:$0xff] }
  0xcc   : > { %3612 = vmatmul.mubr.msk.bf16.gmra.mrb[16].mxu1 %vm450_vm3, %v4873_v57 }
  0xcd   : > { %3615 = vmatprep.mubr.msk.bf16.mxu1 %vm450_vm3, %v4876_v45 }
  0xce   : > { %3780 = vmatmul.mubr.msk.bf16.gmra.mrb[32].mxu0 %vm450_vm3, %v2119_v21 }
  0xcf   : > { %3785 = vmatprep.mubr.msk.bf16.mxu0 %vm450_vm3, %v4606_v30  ;;  %v4909_v30 = vsel %vm904_vm6, %v930_v16, %v932_v22 }
  0xd4   : > { %3616 = vmatmul.mubr.msk.bf16.gmra.mrb[20].mxu1 %vm450_vm3, %v4891_v52 }
  0xd5   : > { %3619 = vmatprep.mubr.msk.bf16.mxu1 %vm450_vm3, %v4894_v40 }
  0xd6   : > { %3786 = vmatmul.mubr.msk.bf16.vlgmr.msra.gmra.mrb[0].mxu0 %vm450_vm3, %v4613_v44  ;;  %v4920_v44 = vrot.slane %v4533_v46, 1 }
  0xd7   : > { %3822 = vmatpush3.bf16.msra.mxu0 %v2795_v61  ;;  %3789 = vmatprep.mubr.msk.bf16.mxu0 %vm450_vm3, %v4631_v38  ;;  %v4927_v38 = vsel %vm904_vm6, %v934_v34, %v936_v51  ;;  %v5278_v61 = vld [vmem:[#allocation11_spill] sm:$0xff] }
  0xd8   : > { %v4931_v62 = vsel %vm904_vm6, %v936_v51, %v4920_v44  ;;  %v2397_v22 = vrot.slane %v5278_v61, 3 }
  0xdc   : > { %3620 = vmatmul.mubr.msk.bf16.gmra.mrb[24].mxu1 %vm450_vm3, %v4909_v30 }
  0xdd   : > { %3623 = vmatprep.mubr.msk.bf16.mxu1 %vm450_vm3, %v4912_v47 }
  0xde   : > { %3790 = vmatmul.mubr.msk.bf16.gmra.mrb[4].mxu0 %vm450_vm3, %v4641_v54  ;;  %v2381_v54 = vrot.slane %v5269_v6, 3  ;;  %v5280_v6 = vld [vmem:[#allocation13_spill] sm:$0xff] }
  0xdf   : > { %3793 = vmatprep.mubr.msk.bf16.mxu0 %vm450_vm3, %v4659_v3 }
  0xe0   : > { %v2382_v3 = vor.u32 %v2381_v54, %v2380_v5  ;;  %v2401_v54 = vrot.slane %v5280_v6, 3 }
  0xe2   : > { %v2383_v10 = vsel %vm2344_vm5, %v4694_v37, %v2382_v3  ;;  %v2393_v37 = vrot.slane %v5275_v8, 3 }
  0xe4   : > { %3624 = vmatmul.mubr.msk.bf16.gmra.mrb[28].mxu1 %vm450_vm3, %v4927_v38 }
  0xe5   : > { %3627 = vmatprep.mubr.msk.bf16.mxu1 %vm450_vm3, %v4931_v62 }
  0xe6   : > { %3794 = vmatmul.mubr.msk.bf16.gmra.mrb[8].mxu0 %vm450_vm3, %v4674_v14  ;;  %v5273_v14 = vld [vmem:[#allocation7_spill] sm:$0xff] }
  0xe7   : > { %3797 = vmatprep.mubr.msk.bf16.mxu0 %vm450_vm3, %v4687_v53  ;;  %v2389_v32 = vrot.slane %v5273_v14, 3  ;;  %v2386_v53 = vor.u32 %v2385_v0, %v2384_v27  ;;  %v2404_v27 = vrot.slane %v4603_v26, 2  ;;  %v5281_v0 = vld [vmem:[#allocation16_spill] sm:$0xff] }
  0xe9   : > { %v2390_v35 = vor.u32 %v2389_v32, %v2388_v20  ;;  %v2387_v55 = vsel %vm2344_vm5, %v2382_v3, %v2386_v53  ;;  %v5282_v20 = vld [vmem:[#allocation12_spill] sm:$0xff] }
  0xea   : > { %v1515_v32 = vshrl.u32 %v5282_v20, 16 }
  0xeb   : > { %v2391_v21 = vsel %vm2344_vm5, %v2386_v53, %v2390_v35  ;;  %v1518_v53 = vshll.u32 %v5282_v20, 16 }
  0xec   : > { %3628 = vmatmul.mubr.msk.bf16.gmra.mrb[32].mxu1 %vm450_vm3, %v4920_v44 }
  0xed   : > { %3633 = vmatprep.mubr.msk.bf16.mxu1 %vm450_vm3, %v4801_v7  ;;  %v5274_v7 = vld [vmem:[#allocation10_spill] sm:$0xff] }
  0xee   : > { %3798 = vmatmul.mubr.msk.bf16.gmra.mrb[12].mxu0 %vm450_vm3, %v4703_v42  ;;  %v2392_v43 = vrot.slane %v5274_v7, 2  ;;  %v5277_v42 = vld [vmem:[#allocation14_spill] sm:$0xff] }
  0xef   : > { %3801 = vmatprep.mubr.msk.bf16.mxu0 %vm450_vm3, %v2383_v10  ;;  %v2396_v16 = vrot.slane %v5277_v42, 2  ;;  %v2405_v10 = vrot.slane %v5281_v0, 3 }
  0xf1   : > { %v2398_v34 = vor.u32 %v2397_v22, %v2396_v16 }
  0xf4   : > { %3634 = vmatmul.mubr.msk.bf16.vlgmr.msra.gmra.mrb[0].mxu1 %vm450_vm3, %v4804_v19  ;;  %v2394_v19 = vor.u32 %v2393_v37, %v2392_v43  ;;  %v2408_v37 = vrot.slane %v1515_v32, 2 }
  0xf5   : > { %3637 = vmatprep.mubr.msk.bf16.mxu1 %vm450_vm3, %v4821_v49  ;;  %3860 = vmatpush3.bf16.msra.mxu1 %v5276_v59  ;;  %v5279_v49 = vld [vmem:[#allocation15_spill] sm:$0xff] }
  0xf6   : > { %3802 = vmatmul.mubr.msk.bf16.gmra.mrb[16].mxu0 %vm450_vm3, %v2387_v55  ;;  %v2395_v51 = vsel %vm2344_vm5, %v2390_v35, %v2394_v19  ;;  %v2400_v5 = vrot.slane %v5279_v49, 2  ;;  %v2399_v3 = vsel %vm2344_vm5, %v2394_v19, %v2398_v34  ;;  %v2406_v35 = vor.u32 %v2405_v10, %v2404_v27 }
  0xf7   : > { %3805 = vmatprep.mubr.msk.bf16.mxu0 %vm450_vm3, %v2391_v21  ;;  %v2413_v55 = vshrl.u32 %v4487_v11, 16  ;;  %v2409_v21 = vrot.slane %v1518_v53, 3  ;;  %v2422_v19 = vshrl.u32 %v4861_v39, 16  ;;  %v2703_v10 = vrot.slane %v4268_v9, 3 }
  0xf8   : > { %v2708_v9 = vrot.slane %v4297_v31, 3 }
  0xf9   : > { %v2415_v16 = vrot.slane %v2413_v55, 2  ;;  %v1490_v55 = vrot.slane %v5270_v1, 1  ;;  %v1495_v1 = vrot.slane %v5273_v14, 2 }
  0xfc   : > { %3638 = vmatmul.mubr.msk.bf16.gmra.mrb[4].mxu1 %vm450_vm3, %v4824_v4  ;;  %v2402_v4 = vor.u32 %v2401_v54, %v2400_v5 }
  0xfd   : > { %3641 = vmatprep.mubr.msk.bf16.mxu1 %vm450_vm3, %v4837_v36  ;;  %v2416_v36 = vshll.u32 %v4487_v11, 16 }
  0xfe   : > { %3806 = vmatmul.mubr.msk.bf16.gmra.mrb[20].mxu0 %vm450_vm3, %v2395_v51  ;;  %v2403_v43 = vsel %vm2344_vm5, %v2398_v34, %v2402_v4  ;;  %v2407_v59 = vsel %vm2344_vm5, %v2402_v4, %v2406_v35  ;;  %v2425_v34 = vshll.u32 %v4861_v39, 16  ;;  %v2704_v4 = vrot.slane %v4282_v17, 3 }
  0xff   : > { %3809 = vmatprep.mubr.msk.bf16.mxu0 %vm450_vm3, %v2399_v3  ;;  %v2418_v22 = vrot.slane %v2416_v36, 3  ;;  %v1491_v36 = vrot.slane %v5271_v25, 2 }
 0x100   : > { %v2427_v54 = vrot.slane %v2425_v34, 3  ;;  %v1506_v34 = vrot.slane %v5279_v49, 1  ;;  %v2728_v49 = vrot.slane %v4492_v13, 3 }
 0x101   : > { %v2419_v51 = vor.u32 %v2418_v22, %v2415_v16 }
 0x104   : > { %3642 = vmatmul.mubr.msk.bf16.gmra.mrb[8].mxu1 %vm450_vm3, %v4840_v48  ;;  %v2410_v48 = vor.u32 %v2409_v21, %v2408_v37  ;;  %v1492_v37 = vor.u32 %v1491_v36, %v1490_v55  ;;  %v1498_v21 = vrot.slane %v5274_v7, 1  ;;  %v2724_v7 = vrot.slane %v4453_v33, 3 }
 0x105   : > { %3645 = vmatprep.mubr.msk.bf16.mxu1 %vm450_vm3, %v4853_v29  ;;  %v2424_v29 = vrot.slane %v2422_v19, 2 }
 0x106   : > { %3810 = vmatmul.mubr.msk.bf16.gmra.mrb[24].mxu0 %vm450_vm3, %v2403_v43  ;;  %v2411_v5 = vsel %vm2344_vm5, %v2406_v35, %v2410_v48  ;;  %v2420_v3 = vsel %vm2344_vm5, %v2410_v48, %v2419_v51  ;;  %v2706_v35 = vrot.slane %v4285_v18, 3  ;;  %v2712_v18 = vrot.slane %v4331_v50, 3 }
 0x107   : > { %3813 = vmatprep.mubr.msk.bf16.mxu0 %vm450_vm3, %v2407_v59  ;;  %v2428_v27 = vor.u32 %v2427_v54, %v2424_v29  ;;  %v2716_v50 = vrot.slane %v4386_v23, 3  ;;  %v2720_v23 = vrot.slane %v4420_v56, 3  ;;  %v1499_v59 = vrot.slane %v5275_v8, 2 }
 0x108   : > { %v2707_v17 = vsel %vm2702_vm7, %v2704_v4, %v2706_v35  ;;  %v1502_v8 = vrot.slane %v5277_v42, 1  ;;  %v1503_v48 = vrot.slane %v5278_v61, 2  ;;  %v2726_v42 = vrot.slane %v4478_v60, 3 }
 0x109   : > { %v1500_v22 = vor.u32 %v1499_v59, %v1498_v21  ;;  %v1511_v54 = vrot.slane %v5281_v0, 2  ;;  %v2730_v0 = vrot.slane %v4521_v58, 3  ;;  %v2734_v58 = vrot.slane %v5282_v20, 3 }
 0x10a   : > { %v1504_v29 = vor.u32 %v1503_v48, %v1502_v8  ;;  %v2727_v60 = vsel %vm2702_vm7, %v2724_v7, %v2726_v42  ;;  %v2729_v13 = vsel %vm2702_vm7, %v2726_v42, %v2728_v49 }
 0x10c   : > { %3646 = vmatmul.mubr.msk.bf16.gmra.mrb[12].mxu1 %vm450_vm3, %v4856_v12  ;;  %v2429_v12 = vsel %vm2344_vm5, %v2419_v51, %v2428_v27  ;;  %v1507_v51 = vrot.slane %v5280_v6, 2  ;;  %v1505_v61 = vsel %vm1446_vm2, %v1500_v22, %v1504_v29  ;;  %v1510_v6 = vrot.slane %v4603_v26, 1 }
 0x10d   : > { %3649 = vmatprep.mubr.msk.bf16.mxu1 %vm450_vm3, %v4873_v57  ;;  %v2705_v57 = vsel %vm2702_vm7, %v2703_v10, %v2704_v4  ;;  %v1517_v27 = vrot.slane %v1515_v32, 1  ;;  %v1520_v10 = vrot.slane %v1518_v53, 2  ;;  %v2732_v53 = vrot.slane %v4533_v46, 3 }
 0x10e   : > { %3814 = vmatmul.mubr.msk.bf16.gmra.mrb[28].mxu0 %vm450_vm3, %v2411_v5  ;;  %v1508_v33 = vor.u32 %v1507_v51, %v1506_v34  ;;  %v1512_v4 = vor.u32 %v1511_v54, %v1510_v6 }
 0x10f   : > { %3817 = vmatprep.mubr.msk.bf16.mxu0 %vm450_vm3, %v2420_v3  ;;  %v1521_v26 = vor.u32 %v1520_v10, %v1517_v27 }
 0x110   : > { %v1509_v3 = vsel %vm1446_vm2, %v1504_v29, %v1508_v33  ;;  %v1513_v32 = vsel %vm1446_vm2, %v1508_v33, %v1512_v4 }
 0x114   : > { %3650 = vmatmul.mubr.msk.bf16.gmra.mrb[16].mxu1 %vm450_vm3, %v4876_v45  ;;  %v2709_v45 = vsel %vm2702_vm7, %v2706_v35, %v2708_v9  ;;  %v2731_v35 = vsel %vm2702_vm7, %v2728_v49, %v2730_v0 }
 0x115   : > { %3653 = vmatprep.mubr.msk.bf16.mxu1 %vm450_vm3, %v4891_v52  ;;  %v2710_v52 = vrot.slane %v4314_v41, 3  ;;  %v2714_v41 = vrot.slane %v4359_v63, 3  ;;  %v2718_v63 = vrot.slane %v4393_v28, 3 }
 0x116   : > { %3818 = vmatmul.mubr.msk.bf16.gmra.mrb[32].mxu0 %vm450_vm3, %v2429_v12  ;;  %v1524_v12 = vshll.u32 %v4733_v15, 16  ;;  %v2736_v15 = vrot.slane %v4487_v11, 3 }
 0x117   : > { %3823 = vmatprep.mubr.msk.bf16.mxu0 %vm450_vm3, %v2705_v57  ;;  %v2711_v31 = vsel %vm2702_vm7, %v2708_v9, %v2710_v52  ;;  %v2717_v43 = vsel %vm2702_vm7, %v2714_v41, %v2716_v50  ;;  %v2719_v16 = vsel %vm2702_vm7, %v2716_v50, %v2718_v63  ;;  %v2721_v28 = vsel %vm2702_vm7, %v2718_v63, %v2720_v23 }
 0x118   : > { %v1522_v57 = vsel %vm1446_vm2, %v1512_v4, %v1521_v26  ;;  %v2733_v9 = vsel %vm2702_vm7, %v2730_v0, %v2732_v53 }
 0x11c   : > { %3654 = vmatmul.mubr.msk.bf16.gmra.mrb[20].mxu1 %vm450_vm3, %v4894_v40  ;;  %v2713_v40 = vsel %vm2702_vm7, %v2710_v52, %v2712_v18  ;;  %v2737_v52 = vsel %vm2702_vm7, %v2734_v58, %v2736_v15 }
 0x11d   : > { %3657 = vmatprep.mubr.msk.bf16.mxu1 %vm450_vm3, %v4909_v30  ;;  %v1217_v30 = vrot.slane %v5282_v20, 1 }
 0x11e   : > { %3824 = vmatmul.mubr.msk.bf16.vlgmr.msra.gmra.mrb[0].mxu0 %vm450_vm3, %v2707_v17  ;;  %v1526_v17 = vrot.slane %v1524_v12, 2 }
 0x11f   : > { %3827 = vmatprep.mubr.msk.bf16.mxu0 %vm450_vm3, %v2709_v45  ;;  %v2735_v45 = vsel %vm2702_vm7, %v2732_v53, %v2734_v58 }
 0x120   : > { %v1527_v46 = vsel %vm1446_vm2, %v1521_v26, %v1526_v17 }
 0x124   : > { %3658 = vmatmul.mubr.msk.bf16.gmra.mrb[24].mxu1 %vm450_vm3, %v4912_v47  ;;  %v1218_v47 = vsel %vm904_vm6, %v4920_v44, %v1217_v30  ;;  %v1494_v44 = vrot.slane %v5272_v2, 1  ;;  %v2722_v2 = vrot.slane %v4445_v24, 3 }
 0x125   : > { %3661 = vmatprep.mubr.msk.bf16.mxu1 %vm450_vm3, %v4927_v38  ;;  %v2715_v38 = vsel %vm2702_vm7, %v2712_v18, %v2714_v41  ;;  %v2738_v18 = vrot.slane %v4861_v39, 3 }
 0x126   : > { %3828 = vmatmul.mubr.msk.bf16.gmra.mrb[4].mxu0 %vm450_vm3, %v2711_v31  ;;  %v1496_v56 = vor.u32 %v1495_v1, %v1494_v44  ;;  %v2723_v5 = vsel %vm2702_vm7, %v2720_v23, %v2722_v2  ;;  %v2725_v24 = vsel %vm2702_vm7, %v2722_v2, %v2724_v7 }
 0x127   : > { %3831 = vmatprep.mubr.msk.bf16.mxu0 %vm450_vm3, %v2713_v40  ;;  %v2739_v31 = vsel %vm2702_vm7, %v2736_v15, %v2738_v18 }
 0x128   : > { %v1497_v14 = vsel %vm1446_vm2, %v1492_v37, %v1496_v56  ;;  %v1501_v19 = vsel %vm1446_vm2, %v1496_v56, %v1500_v22 }
 0x12c   : > { %3662 = vmatmul.mubr.msk.bf16.gmra.mrb[28].mxu1 %vm450_vm3, %v4931_v62  ;;  %v5283_v62 = vld [vmem:[#allocation4_spill] sm:$0xff] }
 0x12d   : > { %3665 = vmatprep.mubr.msk.bf16.mxu1 %vm450_vm3, %v1218_v47  ;;  %v1493_v25 = vsel %vm1446_vm2, %v5283_v62, %v1492_v37 }
 0x12e   : > { %3832 = vmatmul.mubr.msk.bf16.gmra.mrb[8].mxu0 %vm450_vm3, %v2715_v38 }
 0x12f   : > { %3835 = vmatprep.mubr.msk.bf16.mxu0 %vm450_vm3, %v2717_v43 }
 0x134   : > { %3666 = vmatmul.mubr.msk.bf16.gmra.mrb[32].mxu1 %vm450_vm3, %v1217_v30 }
 0x135   : > { %3691 = vmatprep.mubr.msk.bf16.mxu1 %vm450_vm3, %v1493_v25 }
 0x136   : > { %3836 = vmatmul.mubr.msk.bf16.gmra.mrb[12].mxu0 %vm450_vm3, %v2719_v16  ;;  %v5133_v16 = vld [vmem:[%s5223_s2] ss:$0 sm:$0xff] }
 0x137   : > { %3839 = vmatprep.mubr.msk.bf16.mxu0 %vm450_vm3, %v2721_v28 }
 0x13c   : > { %3692 = vmatmul.mubr.msk.bf16.vlgmr.msra.gmra.mrb[20].mxu1 %vm450_vm3, %v1497_v14 }
 0x13d   : > { %3695 = vmatprep.mubr.msk.bf16.mxu1 %vm450_vm3, %v1501_v19 }
 0x13e   : > { %3840 = vmatmul.mubr.msk.bf16.gmra.mrb[16].mxu0 %vm450_vm3, %v2723_v5 }
 0x13f   : > { %3843 = vmatprep.mubr.msk.bf16.mxu0 %vm450_vm3, %v2725_v24 }
 0x144   : > { %3696 = vmatmul.mubr.msk.bf16.gmra.mrb[24].mxu1 %vm450_vm3, %v1505_v61 }
 0x145   : > { %3699 = vmatprep.mubr.msk.bf16.mxu1 %vm450_vm3, %v1509_v3 }
 0x146   : > { %3844 = vmatmul.mubr.msk.bf16.gmra.mrb[20].mxu0 %vm450_vm3, %v2727_v60 }
 0x147   : > { %3847 = vmatprep.mubr.msk.bf16.mxu0 %vm450_vm3, %v2729_v13 }
 0x14c   : > { %3700 = vmatmul.mubr.msk.bf16.gmra.mrb[28].mxu1 %vm450_vm3, %v1513_v32 }
 0x14d   : > { %3703 = vmatprep.mubr.msk.bf16.mxu1 %vm450_vm3, %v1522_v57 }
 0x14e   : > { %3848 = vmatmul.mubr.msk.bf16.gmra.mrb[24].mxu0 %vm450_vm3, %v2731_v35 }
 0x14f   : > { %3851 = vmatprep.mubr.msk.bf16.mxu0 %vm450_vm3, %v2733_v9 }
 0x154   : > { %3704 = vmatmul.mubr.msk.bf16.gmra.mrb[32].mxu1 %vm450_vm3, %v1527_v46 }
 0x156   : > { %3852 = vmatmul.mubr.msk.bf16.gmra.mrb[28].mxu0 %vm450_vm3, %v2735_v45 }
 0x157   : > { %3855 = vmatprep.mubr.msk.bf16.mxu0 %vm450_vm3, %v2737_v52 }
 0x15e   : > { %3856 = vmatmul.mubr.msk.bf16.gmra.mrb[32].mxu0 %vm450_vm3, %v2739_v31 }
 0x1c7   : > { %v3635_v20 = vpop.f32.mrb[0].mxu1 }
 0x1c8   : > { %v1262_v40 = vpop.f32.mrb[1].mxu1 }
 0x1c9   : > { %v3636_v30 = vpop.f32.mrb[2].mxu1 }
 0x1ca   : > { %v1265_v11 = vpop.f32.mrb[3].mxu1 }
 0x1cf   : > { %v3639_v41 = vpop.f32.mrb[4].mxu1 }
 0x1d0   : > { %v1278_v50 = vpop.f32.mrb[5].mxu1 }
 0x1d1   : > { %v3640_v47 = vpop.f32.mrb[6].mxu1 }
 0x1d2   : > { %v1281_v55 = vpop.f32.mrb[7].mxu1 }
 0x1d7   : > { %v3643_v36 = vpop.f32.mrb[8].mxu1 }
 0x1d8   : > { %v1294_v38 = vpop.f32.mrb[9].mxu1 }
 0x1d9   : > { %v3644_v43 = vpop.f32.mrb[10].mxu1 }
 0x1da   : > { %v1297_v37 = vpop.f32.mrb[11].mxu1 }
 0x1df   : > { %v3647_v63 = vpop.f32.mrb[12].mxu1 }
 0x1e0   : > { %v1310_v23 = vpop.f32.mrb[13].mxu1 }
 0x1e1   : > { %v5117_v39 = vpop.f32.mrb[14].mxu1 }
 0x1e2   : > { %v5119_v44 = vpop.f32.mrb[15].mxu1 }
 0x1e7   : > { %v5121_v1 = vpop.f32.mrb[16].mxu1 }
 0x1e8   : > { %v5123_v62 = vpop.f32.mrb[17].mxu1 }
 0x1e9   : > { %v5125_v25 = vpop.f32.mrb[18].mxu1 }
 0x1ea   : > { %v5127_v21 = vpop.f32.mrb[19].mxu1 }
 0x1f1   : > { %v3825_v59 = vpop.f32.mrb[0].mxu0 }
 0x1f2   : > { %v3861_v28 = vadd.f32 %v3825_v59, %v3635_v20  ;;  %v2831_v56 = vpop.f32.mrb[1].mxu0 }
 0x1f3   : > { %v3862_v22 = vadd.f32 %v2831_v56, %v1262_v40  ;;  %v3826_v2 = vpop.f32.mrb[2].mxu0 }
 0x1f4   : > { %v3019_v14 = vadd.f32 %v3861_v28, %v5133_v16  ;;  %v3863_v7 = vadd.f32 %v3826_v2, %v3636_v30  ;;  %v2834_v8 = vpop.f32.mrb[3].mxu0 }
 0x1f5   : > { %v3017_v48 = vadd.f32 %v3862_v22, %v5133_v16  ;;  %v3864_v19 = vadd.f32 %v2834_v8, %v1265_v11 }
 0x1f6   : > { %3055 = vst [vmem:[%s5138_s16 + $0x10] sm:$0xff] %v3019_v14  ;;  %v3020_v34 = vadd.f32 %v3863_v7, %v5133_v16 }
 0x1f7   : > { %3053 = vst [vmem:[%s5138_s16] sm:$0xff] %v3017_v48  ;;  %v3018_v51 = vadd.f32 %v3864_v19, %v5133_v16 }
 0x1f8   : > { %3056 = vst [vmem:[%s5138_s16 + $0x18] sm:$0xff] %v3020_v34 }
 0x1f9   : > { %3054 = vst [vmem:[%s5138_s16 + $0x8] sm:$0xff] %v3018_v51  ;;  %v3829_v5 = vpop.f32.mrb[4].mxu0 }
 0x1fa   : > { %v3865_v24 = vadd.f32 %v3829_v5, %v3639_v41  ;;  %v2847_v29 = vpop.f32.mrb[5].mxu0 }
 0x1fb   : > { %v3866_v33 = vadd.f32 %v2847_v29, %v1278_v50  ;;  %v3830_v42 = vpop.f32.mrb[6].mxu0 }
 0x1fc   : > { %v3023_v61 = vadd.f32 %v3865_v24, %v5133_v16  ;;  %v3867_v49 = vadd.f32 %v3830_v42, %v3640_v47  ;;  %v2850_v6 = vpop.f32.mrb[7].mxu0 }
 0x1fd   : > { %v3021_v54 = vadd.f32 %v3866_v33, %v5133_v16  ;;  %v3868_v3 = vadd.f32 %v2850_v6, %v1281_v55 }
 0x1fe   : > { %3059 = vst [vmem:[%s5138_s16 + $0x30] sm:$0xff] %v3023_v61  ;;  %v3024_v27 = vadd.f32 %v3867_v49, %v5133_v16 }
 0x1ff   : > { %3057 = vst [vmem:[%s5138_s16 + $0x20] sm:$0xff] %v3021_v54  ;;  %v3022_v10 = vadd.f32 %v3868_v3, %v5133_v16 }
 0x200   : > { %3060 = vst [vmem:[%s5138_s16 + $0x38] sm:$0xff] %v3024_v27 }
 0x201   : > { %3058 = vst [vmem:[%s5138_s16 + $0x28] sm:$0xff] %v3022_v10  ;;  %v3833_v60 = vpop.f32.mrb[8].mxu0 }
 0x202   : > { %v3869_v13 = vadd.f32 %v3833_v60, %v3643_v36  ;;  %v2863_v4 = vpop.f32.mrb[9].mxu0 }
 0x203   : > { %v3870_v26 = vadd.f32 %v2863_v4, %v1294_v38  ;;  %v3834_v0 = vpop.f32.mrb[10].mxu0 }
 0x204   : > { %v3027_v32 = vadd.f32 %v3869_v13, %v5133_v16  ;;  %v3871_v53 = vadd.f32 %v3834_v0, %v3644_v43  ;;  %v2866_v12 = vpop.f32.mrb[11].mxu0 }
 0x205   : > { %v3025_v57 = vadd.f32 %v3870_v26, %v5133_v16  ;;  %v3872_v35 = vadd.f32 %v2866_v12, %v1297_v37 }
 0x206   : > { %3063 = vst [vmem:[%s5138_s16 + $0x50] sm:$0xff] %v3027_v32  ;;  %v3028_v9 = vadd.f32 %v3871_v53, %v5133_v16 }
 0x207   : > { %3061 = vst [vmem:[%s5138_s16 + $0x40] sm:$0xff] %v3025_v57  ;;  %v3026_v17 = vadd.f32 %v3872_v35, %v5133_v16 }
 0x208   : > { %3064 = vst [vmem:[%s5138_s16 + $0x58] sm:$0xff] %v3028_v9 }
 0x209   : > { %3062 = vst [vmem:[%s5138_s16 + $0x48] sm:$0xff] %v3026_v17  ;;  %v3837_v58 = vpop.f32.mrb[12].mxu0 }
 0x20a   : > { %v3873_v46 = vadd.f32 %v3837_v58, %v3647_v63  ;;  %v2879_v15 = vpop.f32.mrb[13].mxu0 }
 0x20b   : > { %v3874_v45 = vadd.f32 %v2879_v15, %v1310_v23  ;;  %v3838_v52 = vpop.f32.mrb[14].mxu0 }
 0x20c   : > { %v3031_v18 = vadd.f32 %v3873_v46, %v5133_v16  ;;  %v3875_v31 = vadd.f32 %v3838_v52, %v5117_v39  ;;  %v2882_v20 = vpop.f32.mrb[15].mxu0 }
 0x20d   : > { %v3029_v40 = vadd.f32 %v3874_v45, %v5133_v16  ;;  %v3876_v30 = vadd.f32 %v2882_v20, %v5119_v44 }
 0x20e   : > { %3067 = vst [vmem:[%s5138_s16 + $0x70] sm:$0xff] %v3031_v18  ;;  %v3032_v11 = vadd.f32 %v3875_v31, %v5133_v16 }
 0x20f   : > { %v3693_v41 = vpop.f32.mrb[20].mxu1  ;;  %3065 = vst [vmem:[%s5138_s16 + $0x60] sm:$0xff] %v3029_v40  ;;  %v3030_v50 = vadd.f32 %v3876_v30, %v5133_v16 }
 0x210   : > { %v1699_v47 = vpop.f32.mrb[21].mxu1  ;;  %3068 = vst [vmem:[%s5138_s16 + $0x78] sm:$0xff] %v3032_v11 }
 0x211   : > { %v3694_v55 = vpop.f32.mrb[22].mxu1  ;;  %3066 = vst [vmem:[%s5138_s16 + $0x68] sm:$0xff] %v3030_v50  ;;  %v3841_v36 = vpop.f32.mrb[16].mxu0 }
 0x212   : > { %v1702_v38 = vpop.f32.mrb[23].mxu1  ;;  %v3877_v43 = vadd.f32 %v3841_v36, %v5121_v1  ;;  %v2895_v37 = vpop.f32.mrb[17].mxu0 }
 0x213   : > { %v3878_v63 = vadd.f32 %v2895_v37, %v5123_v62  ;;  %v3842_v23 = vpop.f32.mrb[18].mxu0 }
 0x214   : > { %v3035_v39 = vadd.f32 %v3877_v43, %v5133_v16  ;;  %v3879_v44 = vadd.f32 %v3842_v23, %v5125_v25  ;;  %v2898_v59 = vpop.f32.mrb[19].mxu0 }
 0x215   : > { %v3033_v28 = vadd.f32 %v3878_v63, %v5133_v16  ;;  %v3880_v56 = vadd.f32 %v2898_v59, %v5127_v21 }
 0x216   : > { %3071 = vst [vmem:[%s5138_s16 + $0x90] sm:$0xff] %v3035_v39  ;;  %v3036_v22 = vadd.f32 %v3879_v44, %v5133_v16 }
 0x217   : > { %v3697_v2 = vpop.f32.mrb[24].mxu1  ;;  %3069 = vst [vmem:[%s5138_s16 + $0x80] sm:$0xff] %v3033_v28  ;;  %v3034_v1 = vadd.f32 %v3880_v56, %v5133_v16 }
 0x218   : > { %v1715_v14 = vpop.f32.mrb[25].mxu1  ;;  %3072 = vst [vmem:[%s5138_s16 + $0x98] sm:$0xff] %v3036_v22 }
 0x219   : > { %v3698_v62 = vpop.f32.mrb[26].mxu1  ;;  %3070 = vst [vmem:[%s5138_s16 + $0x88] sm:$0xff] %v3034_v1  ;;  %v3845_v7 = vpop.f32.mrb[20].mxu0 }
 0x21a   : > { %v1718_v25 = vpop.f32.mrb[27].mxu1  ;;  %v3881_v8 = vadd.f32 %v3845_v7, %v3693_v41  ;;  %v2911_v48 = vpop.f32.mrb[21].mxu0 }
 0x21b   : > { %v3882_v21 = vadd.f32 %v2911_v48, %v1699_v47  ;;  %v3846_v19 = vpop.f32.mrb[22].mxu0 }
 0x21c   : > { %v3039_v34 = vadd.f32 %v3881_v8, %v5133_v16  ;;  %v3883_v51 = vadd.f32 %v3846_v19, %v3694_v55  ;;  %v2914_v5 = vpop.f32.mrb[23].mxu0 }
 0x21d   : > { %v3037_v24 = vadd.f32 %v3882_v21, %v5133_v16  ;;  %v3884_v29 = vadd.f32 %v2914_v5, %v1702_v38 }
 0x21e   : > { %3075 = vst [vmem:[%s5138_s16 + $0xb0] sm:$0xff] %v3039_v34  ;;  %v3040_v33 = vadd.f32 %v3883_v51, %v5133_v16 }
 0x21f   : > { %v3701_v42 = vpop.f32.mrb[28].mxu1  ;;  %3073 = vst [vmem:[%s5138_s16 + $0xa0] sm:$0xff] %v3037_v24  ;;  %v3038_v61 = vadd.f32 %v3884_v29, %v5133_v16 }
 0x220   : > { %v1731_v49 = vpop.f32.mrb[29].mxu1  ;;  %3076 = vst [vmem:[%s5138_s16 + $0xb8] sm:$0xff] %v3040_v33 }
 0x221   : > { %v3702_v6 = vpop.f32.mrb[30].mxu1  ;;  %3074 = vst [vmem:[%s5138_s16 + $0xa8] sm:$0xff] %v3038_v61  ;;  %v3849_v54 = vpop.f32.mrb[24].mxu0 }
 0x222   : > { %v1734_v3 = vpop.f32.mrb[31].mxu1  ;;  %v3885_v27 = vadd.f32 %v3849_v54, %v3697_v2  ;;  %v2927_v10 = vpop.f32.mrb[25].mxu0 }
 0x223   : > { %v3886_v60 = vadd.f32 %v2927_v10, %v1715_v14  ;;  %v3850_v13 = vpop.f32.mrb[26].mxu0 }
 0x224   : > { %v3043_v4 = vadd.f32 %v3885_v27, %v5133_v16  ;;  %v3887_v26 = vadd.f32 %v3850_v13, %v3698_v62  ;;  %v2930_v0 = vpop.f32.mrb[27].mxu0 }
 0x225   : > { %v3041_v32 = vadd.f32 %v3886_v60, %v5133_v16  ;;  %v3888_v53 = vadd.f32 %v2930_v0, %v1718_v25 }
 0x226   : > { %3079 = vst [vmem:[%s5138_s16 + $0xd0] sm:$0xff] %v3043_v4  ;;  %v3044_v12 = vadd.f32 %v3887_v26, %v5133_v16 }
 0x227   : > { %v3705_v57 = vpop.f32.mrb[32].mxu1  ;;  %3077 = vst [vmem:[%s5138_s16 + $0xc0] sm:$0xff] %v3041_v32  ;;  %v3042_v35 = vadd.f32 %v3888_v53, %v5133_v16 }
 0x228   : > { %v1747_v9 = vpop.f32.mrb[33].mxu1  ;;  %3080 = vst [vmem:[%s5138_s16 + $0xd8] sm:$0xff] %v3044_v12 }
 0x229   : > { %v3706_v17 = vpop.f32.mrb[34].mxu1  ;;  %3078 = vst [vmem:[%s5138_s16 + $0xc8] sm:$0xff] %v3042_v35  ;;  %v3853_v58 = vpop.f32.mrb[28].mxu0 }
 0x22a   : > { %v1750_v46 = vpop.f32.mrb[35].mxu1  ;;  %v3889_v15 = vadd.f32 %v3853_v58, %v3701_v42  ;;  %v2943_v45 = vpop.f32.mrb[29].mxu0 }
 0x22b   : > { %v3890_v52 = vadd.f32 %v2943_v45, %v1731_v49  ;;  %v3854_v18 = vpop.f32.mrb[30].mxu0 }
 0x22c   : > { %v3047_v31 = vadd.f32 %v3889_v15, %v5133_v16  ;;  %v3891_v20 = vadd.f32 %v3854_v18, %v3702_v6  ;;  %v2946_v40 = vpop.f32.mrb[31].mxu0 }
 0x22d   : > { %v3045_v30 = vadd.f32 %v3890_v52, %v5133_v16  ;;  %v3892_v11 = vadd.f32 %v2946_v40, %v1734_v3 }
 0x22e   : > { %3083 = vst [vmem:[%s5138_s16 + $0xf0] sm:$0xff] %v3047_v31  ;;  %v3048_v41 = vadd.f32 %v3891_v20, %v5133_v16 }
 0x22f   : > { %3081 = vst [vmem:[%s5138_s16 + $0xe0] sm:$0xff] %v3045_v30  ;;  %v3046_v50 = vadd.f32 %v3892_v11, %v5133_v16 }
 0x230   : > { %3084 = vst [vmem:[%s5138_s16 + $0xf8] sm:$0xff] %v3048_v41 }
 0x231   : > { %3082 = vst [vmem:[%s5138_s16 + $0xe8] sm:$0xff] %v3046_v50  ;;  %v3857_v47 = vpop.f32.mrb[32].mxu0 }
 0x232   : > { %v3893_v55 = vadd.f32 %v3857_v47, %v3705_v57  ;;  %v2959_v36 = vpop.f32.mrb[33].mxu0 }
 0x233   : > { %v3894_v38 = vadd.f32 %v2959_v36, %v1747_v9  ;;  %v3858_v43 = vpop.f32.mrb[34].mxu0 }
 0x234   : > { %v3051_v37 = vadd.f32 %v3893_v55, %v5133_v16  ;;  %v3895_v63 = vadd.f32 %v3858_v43, %v3706_v17  ;;  %v2962_v23 = vpop.f32.mrb[35].mxu0 }
 0x235   : > { %v3049_v39 = vadd.f32 %v3894_v38, %v5133_v16  ;;  %v3896_v44 = vadd.f32 %v2962_v23, %v1750_v46 }
 0x236   : > { %3087 = vst [vmem:[%s5138_s16 + $0x110] sm:$0xff] %v3051_v37  ;;  %v3052_v59 = vadd.f32 %v3895_v63, %v5133_v16 }
 0x237   : > { %3085 = vst [vmem:[%s5138_s16 + $0x100] sm:$0xff] %v3049_v39  ;;  %v3050_v28 = vadd.f32 %v3896_v44, %v5133_v16 }
 0x238   : > { %3088 = vst [vmem:[%s5138_s16 + $0x118] sm:$0x3f] %v3052_v59 }
 0x239   : > { %3086 = vst [vmem:[%s5138_s16 + $0x108] sm:$0xff] %v3050_v28 }
 0x23a PF: > { %s13_s12 = sadd.s32 1, %s4197_s12  }
 0x23b   : > { %p10_p4 = scmp.ge.s32.totalorder %s13_s12, 4  }
 0x23d   :  { %12 = sbr.rel (!%p10_p4) target bundleno = 1 (0x1), region = 70 }

// kernel: conv_block_deformconv.11
= control target key start
LH: loop header
LB: loop body
LE: loop exit
PB: predicated region body
PF: predicated region fallthrough
CT: control target
= control target key end

     0   :  { %s453_s12 = smov 0   ;;  %s612_s0 = inlined_call_operand.vmem [shape: f32[512,128], index: 0, kind: input, shape index: {}]   ;;  %s613_s1 = inlined_call_operand.vmem [shape: f32[1,128], index: 1, kind: input, shape index: {}]   ;;  %s614_s2 = inlined_call_operand.vmem [shape: f32[1,128], index: 2, kind: input, shape index: {}]   ;;  %s615_s3 = inlined_call_operand.vmem [shape: f32[512,128], index: 3, kind: output, shape index: {}]  }
   0x1 LB: > { %s404_s13 = sadd.s32 4294967295, %s431_s12   ;;  %p408_p0 = scmp.ge.s32.totalorder %s431_s12, 1  ;;  %s431_s12 = sphi %s453_s12, %s13_s12  }
   0x2   : > { %p138_p1 = scmp.lt.s32.totalorder %s431_s12, 3 }
   0x4   : > { %p139_p2 = pnand %p408_p0, %p138_p1 }
   0x5   : > { %s409_s14 = sshll.u32 (!%p139_p2), %s404_s13, 5  ;;  %v464_v0 = vld [vmem:[%s613_s1] ss:$0 sm:$0xff] (!%p139_p2) }
   0x6   : > { %142 = sbr.rel (%p139_p2) target bundleno = 46 (0x2e), region = 32  ;;  %p163_p3 = scmp.lt.s32.totalorder (!%p139_p2), %s409_s14, 63  ;;  %v474_v1 = vld [vmem:[%s614_s2] ss:$0 sm:$0xff] (!%p139_p2) }
   0xd   : > { %s617_s14 = smov (!%p163_p3, %s409_s14), 63 }
   0xe   : > { %s410_s15 = sshll.u32 %s617_s14, 3 }
   0xf   : > { %s469_s20 = scalar_lea.vmem %s612_s0, %s410_s15  ;;  %s497_s25 = scalar_lea.vmem %s615_s3, %s410_s15 }
  0x10   : > { %v174_v2 = vld [vmem:[%s469_s20] sm:$0xff]  ;;  %v175_v3 = vld [vmem:[%s469_s20 + $0x8] sm:$0xff]  ;;  %v176_v4 = vld [vmem:[%s469_s20 + $0x10] sm:$0xff] }
  0x11   : > { %v213_v5 = vmul.f32 %v464_v0, %v174_v2  ;;  %v214_v6 = vmul.f32 %v464_v0, %v175_v3  ;;  %v215_v7 = vmul.f32 %v464_v0, %v176_v4  ;;  %v177_v8 = vld [vmem:[%s469_s20 + $0x18] sm:$0xff]  ;;  %v178_v9 = vld [vmem:[%s469_s20 + $0x20] sm:$0xff]  ;;  %v179_v10 = vld [vmem:[%s469_s20 + $0x28] sm:$0xff] }
  0x12   : > { %v216_v11 = vmul.f32 %v464_v0, %v177_v8  ;;  %v217_v12 = vmul.f32 %v464_v0, %v178_v9  ;;  %v218_v13 = vmul.f32 %v464_v0, %v179_v10  ;;  %v180_v14 = vld [vmem:[%s469_s20 + $0x30] sm:$0xff]  ;;  %v181_v15 = vld [vmem:[%s469_s20 + $0x38] sm:$0xff]  ;;  %v182_v24 = vld [vmem:[%s469_s20 + $0x40] sm:$0xff] }
  0x13   : > { %v252_v16 = vadd.f32 %v474_v1, %v213_v5  ;;  %v253_v17 = vadd.f32 %v474_v1, %v214_v6  ;;  %v254_v18 = vadd.f32 %v474_v1, %v215_v7  ;;  %v219_v19 = vmul.f32 %v464_v0, %v180_v14  ;;  %v183_v25 = vld [vmem:[%s469_s20 + $0x48] sm:$0xff]  ;;  %v184_v26 = vld [vmem:[%s469_s20 + $0x50] sm:$0xff]  ;;  %v185_v31 = vld [vmem:[%s469_s20 + $0x58] sm:$0xff] }
  0x14   : > { %v255_v20 = vadd.f32 %v474_v1, %v216_v11  ;;  %v256_v21 = vadd.f32 %v474_v1, %v217_v12  ;;  %v257_v22 = vadd.f32 %v474_v1, %v218_v13  ;;  %v220_v23 = vmul.f32 %v464_v0, %v181_v15  ;;  %v186_v32 = vld [vmem:[%s469_s20 + $0x60] sm:$0xff]  ;;  %v187_v33 = vld [vmem:[%s469_s20 + $0x68] sm:$0xff]  ;;  %v188_v38 = vld [vmem:[%s469_s20 + $0x70] sm:$0xff] }
  0x15   : > { %v284_v27 = vmax.f32 %v252_v16, 0.0  ;;  %v285_v28 = vmax.f32 %v253_v17, 0.0  ;;  %v286_v29 = vmax.f32 %v254_v18, 0.0  ;;  %v258_v30 = vadd.f32 %v474_v1, %v219_v19  ;;  %v189_v43 = vld [vmem:[%s469_s20 + $0x78] sm:$0xff]  ;;  %v190_v56 = vld [vmem:[%s469_s20 + $0x80] sm:$0xff]  ;;  %v191_v57 = vld [vmem:[%s469_s20 + $0x88] sm:$0xff] }
  0x16   : > { %v287_v34 = vmax.f32 %v255_v20, 0.0  ;;  %v288_v35 = vmax.f32 %v256_v21, 0.0  ;;  %v289_v36 = vmax.f32 %v257_v22, 0.0  ;;  %v259_v37 = vadd.f32 %v474_v1, %v220_v23  ;;  %v192_v58 = vld [vmem:[%s469_s20 + $0x90] sm:$0xff]  ;;  %v193_v63 = vld [vmem:[%s469_s20 + $0x98] sm:$0xff]  ;;  %v194_v2 = vld [vmem:[%s469_s20 + $0xa0] sm:$0xff] }
  0x17   : > { %316 = vst [vmem:[%s497_s25] sm:$0xff] %v284_v27  ;;  %317 = vst [vmem:[%s497_s25 + $0x8] sm:$0xff] %v285_v28  ;;  %v290_v39 = vmax.f32 %v258_v30, 0.0  ;;  %v221_v40 = vmul.f32 %v464_v0, %v182_v24  ;;  %v222_v41 = vmul.f32 %v464_v0, %v183_v25  ;;  %v223_v42 = vmul.f32 %v464_v0, %v184_v26  ;;  %v195_v3 = vld [vmem:[%s469_s20 + $0xa8] sm:$0xff]  ;;  %v196_v8 = vld [vmem:[%s469_s20 + $0xb0] sm:$0xff] }
  0x18   : > { %318 = vst [vmem:[%s497_s25 + $0x10] sm:$0xff] %v286_v29  ;;  %319 = vst [vmem:[%s497_s25 + $0x18] sm:$0xff] %v287_v34  ;;  %v291_v44 = vmax.f32 %v259_v37, 0.0  ;;  %v224_v45 = vmul.f32 %v464_v0, %v185_v31  ;;  %v225_v46 = vmul.f32 %v464_v0, %v186_v32  ;;  %v226_v47 = vmul.f32 %v464_v0, %v187_v33  ;;  %v197_v13 = vld [vmem:[%s469_s20 + $0xb8] sm:$0xff]  ;;  %v198_v26 = vld [vmem:[%s469_s20 + $0xc0] sm:$0xff] }
  0x19   : > { %320 = vst [vmem:[%s497_s25 + $0x20] sm:$0xff] %v288_v35  ;;  %321 = vst [vmem:[%s497_s25 + $0x28] sm:$0xff] %v289_v36  ;;  %v260_v48 = vadd.f32 %v474_v1, %v221_v40  ;;  %v261_v49 = vadd.f32 %v474_v1, %v222_v41  ;;  %v262_v50 = vadd.f32 %v474_v1, %v223_v42  ;;  %v199_v27 = vld [vmem:[%s469_s20 + $0xc8] sm:$0xff]  ;;  %v200_v28 = vld [vmem:[%s469_s20 + $0xd0] sm:$0xff] }
  0x1a   : > { %322 = vst [vmem:[%s497_s25 + $0x30] sm:$0xff] %v290_v39  ;;  %v227_v51 = vmul.f32 %v464_v0, %v188_v38  ;;  %323 = vst [vmem:[%s497_s25 + $0x38] sm:$0xff] %v291_v44  ;;  %v263_v52 = vadd.f32 %v474_v1, %v224_v45  ;;  %v264_v53 = vadd.f32 %v474_v1, %v225_v46  ;;  %v201_v33 = vld [vmem:[%s469_s20 + $0xd8] sm:$0xff]  ;;  %v202_v34 = vld [vmem:[%s469_s20 + $0xe0] sm:$0xff] }
  0x1b   : > { %v265_v54 = vadd.f32 %v474_v1, %v226_v47  ;;  %v228_v55 = vmul.f32 %v464_v0, %v189_v43  ;;  %v292_v59 = vmax.f32 %v260_v48, 0.0  ;;  %v293_v60 = vmax.f32 %v261_v49, 0.0  ;;  %v203_v35 = vld [vmem:[%s469_s20 + $0xe8] sm:$0xff]  ;;  %v204_v40 = vld [vmem:[%s469_s20 + $0xf0] sm:$0xff]  ;;  %v205_v45 = vld [vmem:[%s469_s20 + $0xf8] sm:$0xff] }
  0x1c   : > { %v294_v61 = vmax.f32 %v262_v50, 0.0  ;;  %v266_v62 = vadd.f32 %v474_v1, %v227_v51  ;;  %v295_v4 = vmax.f32 %v263_v52, 0.0  ;;  %v296_v5 = vmax.f32 %v264_v53, 0.0 }
  0x1d   : > { %v297_v6 = vmax.f32 %v265_v54, 0.0  ;;  %v267_v7 = vadd.f32 %v474_v1, %v228_v55  ;;  %324 = vst [vmem:[%s497_s25 + $0x40] sm:$0xff] %v292_v59  ;;  %325 = vst [vmem:[%s497_s25 + $0x48] sm:$0xff] %v293_v60  ;;  %v229_v10 = vmul.f32 %v464_v0, %v190_v56  ;;  %v230_v11 = vmul.f32 %v464_v0, %v191_v57 }
  0x1e   : > { %326 = vst [vmem:[%s497_s25 + $0x50] sm:$0xff] %v294_v61  ;;  %v298_v9 = vmax.f32 %v266_v62, 0.0  ;;  %v231_v12 = vmul.f32 %v464_v0, %v192_v58  ;;  %327 = vst [vmem:[%s497_s25 + $0x58] sm:$0xff] %v295_v4  ;;  %v232_v15 = vmul.f32 %v464_v0, %v193_v63  ;;  %v233_v16 = vmul.f32 %v464_v0, %v194_v2 }
  0x1f   : > { %328 = vst [vmem:[%s497_s25 + $0x60] sm:$0xff] %v296_v5  ;;  %329 = vst [vmem:[%s497_s25 + $0x68] sm:$0xff] %v297_v6  ;;  %v299_v14 = vmax.f32 %v267_v7, 0.0  ;;  %v234_v17 = vmul.f32 %v464_v0, %v195_v3  ;;  %v268_v18 = vadd.f32 %v474_v1, %v229_v10  ;;  %v269_v19 = vadd.f32 %v474_v1, %v230_v11 }
  0x20   : > { %330 = vst [vmem:[%s497_s25 + $0x70] sm:$0xff] %v298_v9  ;;  %v270_v20 = vadd.f32 %v474_v1, %v231_v12  ;;  %v235_v21 = vmul.f32 %v464_v0, %v196_v8  ;;  %v271_v22 = vadd.f32 %v474_v1, %v232_v15  ;;  %v272_v23 = vadd.f32 %v474_v1, %v233_v16 }
  0x21   : > { %331 = vst [vmem:[%s497_s25 + $0x78] sm:$0xff] %v299_v14  ;;  %v273_v24 = vadd.f32 %v474_v1, %v234_v17  ;;  %v236_v25 = vmul.f32 %v464_v0, %v197_v13  ;;  %v300_v29 = vmax.f32 %v268_v18, 0.0  ;;  %v301_v30 = vmax.f32 %v269_v19, 0.0 }
  0x22   : > { %v302_v31 = vmax.f32 %v270_v20, 0.0  ;;  %v274_v32 = vadd.f32 %v474_v1, %v235_v21  ;;  %v303_v36 = vmax.f32 %v271_v22, 0.0  ;;  %v304_v37 = vmax.f32 %v272_v23, 0.0 }
  0x23   : > { %v305_v38 = vmax.f32 %v273_v24, 0.0  ;;  %v275_v39 = vadd.f32 %v474_v1, %v236_v25  ;;  %332 = vst [vmem:[%s497_s25 + $0x80] sm:$0xff] %v300_v29  ;;  %333 = vst [vmem:[%s497_s25 + $0x88] sm:$0xff] %v301_v30  ;;  %v237_v42 = vmul.f32 %v464_v0, %v198_v26  ;;  %v238_v43 = vmul.f32 %v464_v0, %v199_v27 }
  0x24   : > { %334 = vst [vmem:[%s497_s25 + $0x90] sm:$0xff] %v302_v31  ;;  %v306_v41 = vmax.f32 %v274_v32, 0.0  ;;  %v239_v44 = vmul.f32 %v464_v0, %v200_v28  ;;  %335 = vst [vmem:[%s497_s25 + $0x98] sm:$0xff] %v303_v36  ;;  %v240_v47 = vmul.f32 %v464_v0, %v201_v33  ;;  %v241_v48 = vmul.f32 %v464_v0, %v202_v34 }
  0x25   : > { %336 = vst [vmem:[%s497_s25 + $0xa0] sm:$0xff] %v304_v37  ;;  %337 = vst [vmem:[%s497_s25 + $0xa8] sm:$0xff] %v305_v38  ;;  %v307_v46 = vmax.f32 %v275_v39, 0.0  ;;  %v242_v49 = vmul.f32 %v464_v0, %v203_v35  ;;  %v276_v50 = vadd.f32 %v474_v1, %v237_v42  ;;  %v277_v51 = vadd.f32 %v474_v1, %v238_v43 }
  0x26   : > { %338 = vst [vmem:[%s497_s25 + $0xb0] sm:$0xff] %v306_v41  ;;  %v278_v52 = vadd.f32 %v474_v1, %v239_v44  ;;  %v243_v53 = vmul.f32 %v464_v0, %v204_v40  ;;  %v279_v54 = vadd.f32 %v474_v1, %v240_v47  ;;  %v280_v55 = vadd.f32 %v474_v1, %v241_v48 }
  0x27   : > { %339 = vst [vmem:[%s497_s25 + $0xb8] sm:$0xff] %v307_v46  ;;  %v281_v56 = vadd.f32 %v474_v1, %v242_v49  ;;  %v244_v57 = vmul.f32 %v464_v0, %v205_v45  ;;  %v308_v58 = vmax.f32 %v276_v50, 0.0  ;;  %v309_v59 = vmax.f32 %v277_v51, 0.0 }
  0x28   : > { %v310_v60 = vmax.f32 %v278_v52, 0.0  ;;  %v282_v61 = vadd.f32 %v474_v1, %v243_v53  ;;  %v311_v62 = vmax.f32 %v279_v54, 0.0  ;;  %v312_v63 = vmax.f32 %v280_v55, 0.0 }
  0x29   : > { %v313_v2 = vmax.f32 %v281_v56, 0.0  ;;  %v283_v3 = vadd.f32 %v474_v1, %v244_v57  ;;  %340 = vst [vmem:[%s497_s25 + $0xc0] sm:$0xff] %v308_v58  ;;  %341 = vst [vmem:[%s497_s25 + $0xc8] sm:$0xff] %v309_v59 }
  0x2a   : > { %342 = vst [vmem:[%s497_s25 + $0xd0] sm:$0xff] %v310_v60  ;;  %v314_v4 = vmax.f32 %v282_v61, 0.0  ;;  %343 = vst [vmem:[%s497_s25 + $0xd8] sm:$0xff] %v311_v62 }
  0x2b   : > { %344 = vst [vmem:[%s497_s25 + $0xe0] sm:$0xff] %v312_v63  ;;  %345 = vst [vmem:[%s497_s25 + $0xe8] sm:$0xff] %v313_v2  ;;  %v315_v0 = vmax.f32 %v283_v3, 0.0 }
  0x2c   : > { %346 = vst [vmem:[%s497_s25 + $0xf0] sm:$0xff] %v314_v4 }
  0x2d   : > { %347 = vst [vmem:[%s497_s25 + $0xf8] sm:$0xff] %v315_v0 }
  0x2e PF: > { %s13_s12 = sadd.s32 1, %s431_s12  }
  0x2f   : > { %p10_p4 = scmp.ge.s32.totalorder %s13_s12, 4  }
  0x31   :  { %12 = sbr.rel (!%p10_p4) target bundleno = 1 (0x1), region = 62 }

// kernel: conv_block_deformconv.10
= control target key start
LH: loop header
LB: loop body
LE: loop exit
PB: predicated region body
PF: predicated region fallthrough
CT: control target
= control target key end

     0   :  { %s1012_s15 = smov 0   ;;  %s1205_s0 = inlined_call_operand.vmem [shape: bf16[512,72], index: 0, kind: input, shape index: {}]   ;;  %s1206_s1 = inlined_call_operand.vmem [shape: bf16[72,128], index: 1, kind: input, shape index: {}]   ;;  %s1207_s2 = inlined_call_operand.vmem [shape: f32[512,128], index: 2, kind: output, shape index: {0}]   ;;  %s1208_s3 = inlined_call_operand.vmem [shape: f32[2,1,128], index: 3, kind: output, shape index: {1}]   ;;  %s1209_s4 = inlined_call_operand.vmem [shape: f32[2,1,128], index: 4, kind: output, shape index: {2}]  }
   0x1 LB: > { %s1018_s16 = sadd.s32 4294967295, %s985_s15   ;;  %p831_p0 = scmp.ge.s32.totalorder %s985_s15, 1  ;;  %s985_s15 = sphi %s1012_s15, %s15_s15  }
   0x2   : > { %p168_p1 = scmp.lt.s32.totalorder %s985_s15, 3 }
   0x4   : > { %p169_p2 = pnand %p831_p0, %p168_p1 }
   0x5   : > { %v958_v0 = vld [vmem:[%s1206_s1] sm:$0xff] (!%p169_p2)   ;;  %v959_v1 = vld [vmem:[%s1206_s1 + $0x8] sm:$0xff] (!%p169_p2)   ;;  %s832_s21 = sshll.u32 (!%p169_p2), %s1018_s16, 5  ;;  %v960_v2 = vld [vmem:[%s1206_s1 + $0x10] sm:$0xff] (!%p169_p2)   ;;  %vm367_vm0 = vcmask (!%p169_p2), 588800   ;;  %vm416_vm1 = vcmask (!%p169_p2), 1043456  }
   0x6   : > { %172 = sbr.rel (%p169_p2) target bundleno = 318 (0x13e), region = 28  ;;  %896 = vmatprep.subr.bf16.mxu0 (!%p169_p2), %v958_v0  ;;  %p201_p3 = scmp.lt.s32.totalorder (!%p169_p2), %s832_s21, 63  ;;  %938 = vmatprep.subr.bf16.mxu1 (!%p169_p2), %v958_v0  ;;  %v961_v3 = vld [vmem:[%s1206_s1 + $0x18] sm:$0xff] (!%p169_p2)   ;;  %v962_v5 = vld [vmem:[%s1206_s1 + $0x20] ss:$0 sps:$4 sm:$0xff] (!%p169_p2)  }
   0x7   : > { %897 = vmatpush3.bf16.msra.mxu0 (!%p169_p2), %v958_v0  ;;  %943 = vmatpush3.bf16.msra.mxu1 (!%p169_p2), %v958_v0  ;;  %v418_v6 = vsel (!%p169_p2), %vm416_vm1, %v962_v5, 0  ;;  %p212_p4 = scmp.lt.s32.totalorder (!%p169_p2), %s1018_s16, 1 }
   0x8   : > { %898 = vmatprep.subr.bf16.mxu0 (!%p169_p2), %v959_v1  ;;  %939 = vmatprep.subr.bf16.mxu1 (!%p169_p2), %v959_v1 }
   0xb   : > { %899 = vmatpush3.bf16.msra.mxu0 (!%p169_p2), %v959_v1  ;;  %944 = vmatpush3.bf16.msra.mxu1 (!%p169_p2), %v959_v1 }
   0xc   : > { %900 = vmatprep.subr.bf16.mxu0 (!%p169_p2), %v960_v2  ;;  %940 = vmatprep.subr.bf16.mxu1 (!%p169_p2), %v960_v2 }
   0xd   : > { %s1211_s21 = smov (!%p201_p3, %s832_s21), 63  ;;  %s1213_s16 = smov (!%p212_p4, %s1018_s16), 1 }
   0xe   : > { %s833_s24 = sshll.u32 %s1211_s21, 2  ;;  %s835_s6 = sshll.u32 %s1211_s21, 3 }
   0xf   : > { %s1041_s29 = scalar_lea.vmem %s1205_s0, %s833_s24  ;;  %901 = vmatpush3.bf16.msra.mxu0 %v960_v2  ;;  %945 = vmatpush3.bf16.msra.mxu1 %v960_v2  ;;  %s1082_s9 = scalar_lea.vmem %s1207_s2, %s835_s6 }
  0x10   : > { %v963_v4 = vld [vmem:[%s1041_s29] sm:$0xff]   ;;  %902 = vmatprep.subr.bf16.mxu0 %v961_v3  ;;  %941 = vmatprep.subr.bf16.mxu1 %v961_v3  ;;  %v964_v7 = vld [vmem:[%s1041_s29 + $0x8] sm:$0xff]   ;;  %v965_v9 = vld [vmem:[%s1041_s29 + $0x10] sm:$0xff]   ;;  %s214_s12 = scalar_lea.vmem %s1208_s3, %s1213_s16  ;;  %s217_s17 = scalar_lea.vmem %s1209_s4, %s1213_s16 }
  0x11   : > { %906 = vmatprep.mubr.msk.bf16.mxu0 %vm367_vm0, %v963_v4  ;;  %v971_v8 = vld [vmem:[%s1041_s29 + $0x40] sm:$0xff]   ;;  %v972_v10 = vld [vmem:[%s1041_s29 + $0x48] sm:$0xff]   ;;  %v973_v11 = vld [vmem:[%s1041_s29 + $0x50] sm:$0xff]  }
  0x12   : > { %922 = vmatprep.mubr.msk.bf16.mxu1 %vm367_vm0, %v971_v8  ;;  %v966_v12 = vld [vmem:[%s1041_s29 + $0x18] sm:$0xff]   ;;  %v967_v14 = vld [vmem:[%s1041_s29 + $0x20] sm:$0xff]   ;;  %v968_v16 = vld [vmem:[%s1041_s29 + $0x28] sm:$0xff]  }
  0x13   : > { %903 = vmatpush3.bf16.msra.mxu0 %v961_v3  ;;  %946 = vmatpush3.bf16.msra.mxu1 %v961_v3  ;;  %v974_v13 = vld [vmem:[%s1041_s29 + $0x58] sm:$0xff]   ;;  %v975_v15 = vld [vmem:[%s1041_s29 + $0x60] sm:$0xff]   ;;  %v976_v17 = vld [vmem:[%s1041_s29 + $0x68] sm:$0xff]  }
  0x14   : > { %948 = vmatprep.subr.msk.bf16.mxu0 %vm416_vm1, %v962_v5  ;;  %949 = vmatprep.subr.msk.bf16.mxu1 %vm416_vm1, %v962_v5  ;;  %v969_v18 = vld [vmem:[%s1041_s29 + $0x30] sm:$0xff]   ;;  %v970_v20 = vld [vmem:[%s1041_s29 + $0x38] sm:$0xff]  }
  0x15   : > { %v977_v19 = vld [vmem:[%s1041_s29 + $0x70] sm:$0xff]   ;;  %v978_v21 = vld [vmem:[%s1041_s29 + $0x78] sm:$0xff]  }
  0x17   : > { %905 = vmatpush3.bf16.msra.mxu0 %v418_v6  ;;  %947 = vmatpush3.bf16.msra.mxu1 %v418_v6 }
  0x1a   : > { %907 = vmatmul.mubr.msk.bf16.vlgmr.msra.gmra.mrb[0].mxu0 %vm367_vm0, %v964_v7  ;;  %923 = vmatmul.mubr.msk.bf16.vlgmr.msra.gmra.mrb[0].mxu1 %vm367_vm0, %v972_v10 }
  0x1b   : > { %910 = vmatprep.mubr.msk.bf16.mxu0 %vm367_vm0, %v965_v9  ;;  %926 = vmatprep.mubr.msk.bf16.mxu1 %vm367_vm0, %v973_v11 }
  0x22   : > { %911 = vmatmul.mubr.msk.bf16.gmra.mrb[4].mxu0 %vm367_vm0, %v966_v12  ;;  %927 = vmatmul.mubr.msk.bf16.gmra.mrb[4].mxu1 %vm367_vm0, %v974_v13 }
  0x23   : > { %914 = vmatprep.mubr.msk.bf16.mxu0 %vm367_vm0, %v967_v14  ;;  %930 = vmatprep.mubr.msk.bf16.mxu1 %vm367_vm0, %v975_v15 }
  0x2a   : > { %915 = vmatmul.mubr.msk.bf16.gmra.mrb[8].mxu0 %vm367_vm0, %v968_v16  ;;  %931 = vmatmul.mubr.msk.bf16.gmra.mrb[8].mxu1 %vm367_vm0, %v976_v17 }
  0x2b   : > { %918 = vmatprep.mubr.msk.bf16.mxu0 %vm367_vm0, %v969_v18  ;;  %934 = vmatprep.mubr.msk.bf16.mxu1 %vm367_vm0, %v977_v19 }
  0x32   : > { %919 = vmatmul.mubr.msk.bf16.gmra.mrb[12].mxu0 %vm367_vm0, %v970_v20  ;;  %935 = vmatmul.mubr.msk.bf16.gmra.mrb[12].mxu1 %vm367_vm0, %v978_v21 }
  0xed   : > { %v908_v22 = vpop.f32.mrb[0].mxu0  ;;  %v1084_v23 = vpop.f32.mrb[0].mxu1 }
  0xee   : > { %583 = vst [vmem:[%s1082_s9 + $0x10] sm:$0xff] %v908_v22  ;;  %v454_v24 = vpop.f32.mrb[1].mxu0  ;;  %599 = vst [vmem:[%s1082_s9 + $0x90] sm:$0xff] %v1084_v23  ;;  %v1089_v25 = vpop.f32.mrb[1].mxu1  ;;  %v653_v33 = vmul.f32 %v908_v22, %v908_v22 }
  0xef   : > { %581 = vst [vmem:[%s1082_s9] sm:$0xff] %v454_v24  ;;  %v909_v26 = vpop.f32.mrb[2].mxu0  ;;  %597 = vst [vmem:[%s1082_s9 + $0x80] sm:$0xff] %v1089_v25  ;;  %v1094_v27 = vpop.f32.mrb[2].mxu1  ;;  %v651_v30 = vmul.f32 %v454_v24, %v454_v24 }
  0xf0   : > { %584 = vst [vmem:[%s1082_s9 + $0x18] sm:$0xff] %v909_v26  ;;  %v457_v28 = vpop.f32.mrb[3].mxu0  ;;  %600 = vst [vmem:[%s1082_s9 + $0x98] sm:$0xff] %v1094_v27  ;;  %v1099_v29 = vpop.f32.mrb[3].mxu1  ;;  %v654_v36 = vmul.f32 %v909_v26, %v909_v26 }
  0xf1   : > { %582 = vst [vmem:[%s1082_s9 + $0x8] sm:$0xff] %v457_v28  ;;  %v613_v31 = vadd.f32 %v457_v28, %v454_v24  ;;  %v652_v32 = vmul.f32 %v457_v28, %v457_v28  ;;  %598 = vst [vmem:[%s1082_s9 + $0x88] sm:$0xff] %v1099_v29 }
  0xf3   : > { %v614_v34 = vadd.f32 %v908_v22, %v613_v31  ;;  %v683_v35 = vadd.f32 %v652_v32, %v651_v30 }
  0xf5   : > { %v684_v37 = vadd.f32 %v683_v35, %v653_v33  ;;  %v912_v38 = vpop.f32.mrb[4].mxu0  ;;  %v615_v39 = vadd.f32 %v909_v26, %v614_v34  ;;  %v1104_v40 = vpop.f32.mrb[4].mxu1 }
  0xf6   : > { %587 = vst [vmem:[%s1082_s9 + $0x30] sm:$0xff] %v912_v38  ;;  %v470_v41 = vpop.f32.mrb[5].mxu0  ;;  %603 = vst [vmem:[%s1082_s9 + $0xb0] sm:$0xff] %v1104_v40  ;;  %v1109_v42 = vpop.f32.mrb[5].mxu1  ;;  %v657_v53 = vmul.f32 %v912_v38, %v912_v38 }
  0xf7   : > { %585 = vst [vmem:[%s1082_s9 + $0x20] sm:$0xff] %v470_v41  ;;  %v616_v43 = vadd.f32 %v615_v39, %v470_v41  ;;  %v655_v44 = vmul.f32 %v470_v41, %v470_v41  ;;  %v685_v45 = vadd.f32 %v684_v37, %v654_v36  ;;  %v913_v46 = vpop.f32.mrb[6].mxu0  ;;  %601 = vst [vmem:[%s1082_s9 + $0xa0] sm:$0xff] %v1109_v42  ;;  %v1114_v47 = vpop.f32.mrb[6].mxu1 }
  0xf8   : > { %588 = vst [vmem:[%s1082_s9 + $0x38] sm:$0xff] %v913_v46  ;;  %v473_v48 = vpop.f32.mrb[7].mxu0  ;;  %604 = vst [vmem:[%s1082_s9 + $0xb8] sm:$0xff] %v1114_v47  ;;  %v1119_v49 = vpop.f32.mrb[7].mxu1  ;;  %v658_v56 = vmul.f32 %v913_v46, %v913_v46  ;;  %v667_v39 = vmul.f32 %v1089_v25, %v1089_v25 }
  0xf9   : > { %v686_v50 = vadd.f32 %v685_v45, %v655_v44  ;;  %586 = vst [vmem:[%s1082_s9 + $0x28] sm:$0xff] %v473_v48  ;;  %v617_v51 = vadd.f32 %v616_v43, %v473_v48  ;;  %v656_v52 = vmul.f32 %v473_v48, %v473_v48  ;;  %602 = vst [vmem:[%s1082_s9 + $0xa8] sm:$0xff] %v1119_v49 }
  0xfa   : > { %v669_v48 = vmul.f32 %v1084_v23, %v1084_v23 }
  0xfb   : > { %v618_v54 = vadd.f32 %v912_v38, %v617_v51  ;;  %v687_v55 = vadd.f32 %v686_v50, %v656_v52  ;;  %v670_v52 = vmul.f32 %v1094_v27, %v1094_v27 }
  0xfd   : > { %v688_v57 = vadd.f32 %v687_v55, %v657_v53  ;;  %v916_v58 = vpop.f32.mrb[8].mxu0  ;;  %v619_v59 = vadd.f32 %v913_v46, %v618_v54  ;;  %v1124_v60 = vpop.f32.mrb[8].mxu1  ;;  %v668_v46 = vmul.f32 %v1099_v29, %v1099_v29 }
  0xfe   : > { %591 = vst [vmem:[%s1082_s9 + $0x50] sm:$0xff] %v916_v58  ;;  %v486_v61 = vpop.f32.mrb[9].mxu0  ;;  %607 = vst [vmem:[%s1082_s9 + $0xd0] sm:$0xff] %v1124_v60  ;;  %v1129_v62 = vpop.f32.mrb[9].mxu1  ;;  %v661_v9 = vmul.f32 %v916_v58, %v916_v58 }
  0xff   : > { %589 = vst [vmem:[%s1082_s9 + $0x40] sm:$0xff] %v486_v61  ;;  %v620_v63 = vadd.f32 %v619_v59, %v486_v61  ;;  %v659_v0 = vmul.f32 %v486_v61, %v486_v61  ;;  %v689_v1 = vadd.f32 %v688_v57, %v658_v56  ;;  %v917_v2 = vpop.f32.mrb[10].mxu0  ;;  %605 = vst [vmem:[%s1082_s9 + $0xc0] sm:$0xff] %v1129_v62  ;;  %v1134_v3 = vpop.f32.mrb[10].mxu1 }
 0x100   : > { %592 = vst [vmem:[%s1082_s9 + $0x58] sm:$0xff] %v917_v2  ;;  %v489_v4 = vpop.f32.mrb[11].mxu0  ;;  %608 = vst [vmem:[%s1082_s9 + $0xd8] sm:$0xff] %v1134_v3  ;;  %v1139_v5 = vpop.f32.mrb[11].mxu1  ;;  %v662_v12 = vmul.f32 %v917_v2, %v917_v2 }
 0x101   : > { %v690_v6 = vadd.f32 %v689_v1, %v659_v0  ;;  %590 = vst [vmem:[%s1082_s9 + $0x48] sm:$0xff] %v489_v4  ;;  %v621_v7 = vadd.f32 %v620_v63, %v489_v4  ;;  %v660_v8 = vmul.f32 %v489_v4, %v489_v4  ;;  %606 = vst [vmem:[%s1082_s9 + $0xc8] sm:$0xff] %v1139_v5 }
 0x103   : > { %v622_v10 = vadd.f32 %v916_v58, %v621_v7  ;;  %v691_v11 = vadd.f32 %v690_v6, %v660_v8  ;;  %v672_v58 = vmul.f32 %v1119_v49, %v1119_v49  ;;  %v676_v6 = vmul.f32 %v1139_v5, %v1139_v5 }
 0x105   : > { %v692_v13 = vadd.f32 %v691_v11, %v661_v9  ;;  %v920_v14 = vpop.f32.mrb[12].mxu0  ;;  %v623_v15 = vadd.f32 %v917_v2, %v622_v10  ;;  %v1144_v16 = vpop.f32.mrb[12].mxu1 }
 0x106   : > { %595 = vst [vmem:[%s1082_s9 + $0x70] sm:$0xff] %v920_v14  ;;  %v502_v17 = vpop.f32.mrb[13].mxu0  ;;  %611 = vst [vmem:[%s1082_s9 + $0xf0] sm:$0xff] %v1144_v16  ;;  %v566_v18 = vpop.f32.mrb[13].mxu1  ;;  %v665_v33 = vmul.f32 %v920_v14, %v920_v14 }
 0x107   : > { %593 = vst [vmem:[%s1082_s9 + $0x60] sm:$0xff] %v502_v17  ;;  %v624_v19 = vadd.f32 %v623_v15, %v502_v17  ;;  %v663_v20 = vmul.f32 %v502_v17, %v502_v17  ;;  %v693_v21 = vadd.f32 %v692_v13, %v662_v12  ;;  %v921_v22 = vpop.f32.mrb[14].mxu0  ;;  %609 = vst [vmem:[%s1082_s9 + $0xe0] sm:$0xff] %v566_v18  ;;  %v937_v24 = vpop.f32.mrb[14].mxu1 }
 0x108   : > { %596 = vst [vmem:[%s1082_s9 + $0x78] sm:$0xff] %v921_v22  ;;  %v505_v26 = vpop.f32.mrb[15].mxu0  ;;  %612 = vst [vmem:[%s1082_s9 + $0xf8] sm:$0xff] %v937_v24  ;;  %v569_v28 = vpop.f32.mrb[15].mxu1  ;;  %v666_v36 = vmul.f32 %v921_v22, %v921_v22  ;;  %v679_v10 = vmul.f32 %v566_v18, %v566_v18  ;;  %v681_v15 = vmul.f32 %v1144_v16, %v1144_v16 }
 0x109   : > { %v694_v30 = vadd.f32 %v693_v21, %v663_v20  ;;  %594 = vst [vmem:[%s1082_s9 + $0x68] sm:$0xff] %v505_v26  ;;  %v625_v31 = vadd.f32 %v624_v19, %v505_v26  ;;  %v664_v32 = vmul.f32 %v505_v26, %v505_v26  ;;  %610 = vst [vmem:[%s1082_s9 + $0xe8] sm:$0xff] %v569_v28 }
 0x10a   : > { %v682_v19 = vmul.f32 %v937_v24, %v937_v24 }
 0x10b   : > { %v626_v34 = vadd.f32 %v920_v14, %v625_v31  ;;  %v695_v35 = vadd.f32 %v694_v30, %v664_v32 }
 0x10d   : > { %v696_v37 = vadd.f32 %v695_v35, %v665_v33  ;;  %v627_v38 = vadd.f32 %v921_v22, %v626_v34 }
 0x10f   : > { %v628_v41 = vadd.f32 %v627_v38, %v1089_v25  ;;  %v697_v43 = vadd.f32 %v696_v37, %v666_v36  ;;  %v671_v25 = vmul.f32 %v1109_v42, %v1109_v42 }
 0x111   : > { %v698_v44 = vadd.f32 %v697_v43, %v667_v39  ;;  %v629_v45 = vadd.f32 %v628_v41, %v1099_v29 }
 0x113   : > { %v630_v50 = vadd.f32 %v1084_v23, %v629_v45  ;;  %v699_v51 = vadd.f32 %v698_v44, %v668_v46  ;;  %v673_v23 = vmul.f32 %v1104_v40, %v1104_v40 }
 0x115   : > { %v700_v53 = vadd.f32 %v699_v51, %v669_v48  ;;  %v631_v54 = vadd.f32 %v1094_v27, %v630_v50  ;;  %v674_v27 = vmul.f32 %v1114_v47, %v1114_v47 }
 0x117   : > { %v632_v55 = vadd.f32 %v631_v54, %v1109_v42  ;;  %v701_v56 = vadd.f32 %v700_v53, %v670_v52  ;;  %v675_v42 = vmul.f32 %v1129_v62, %v1129_v62 }
 0x119   : > { %v702_v57 = vadd.f32 %v701_v56, %v671_v25  ;;  %v633_v29 = vadd.f32 %v632_v55, %v1119_v49 }
 0x11b   : > { %v634_v59 = vadd.f32 %v1104_v40, %v633_v29  ;;  %v703_v61 = vadd.f32 %v702_v57, %v672_v58  ;;  %v677_v40 = vmul.f32 %v1124_v60, %v1124_v60 }
 0x11d   : > { %v704_v63 = vadd.f32 %v703_v61, %v673_v23  ;;  %v635_v0 = vadd.f32 %v1114_v47, %v634_v59  ;;  %v678_v47 = vmul.f32 %v1134_v3, %v1134_v3 }
 0x11f   : > { %v636_v1 = vadd.f32 %v635_v0, %v1129_v62  ;;  %v705_v2 = vadd.f32 %v704_v63, %v674_v27 }
 0x121   : > { %v706_v4 = vadd.f32 %v705_v2, %v675_v42  ;;  %v637_v49 = vadd.f32 %v636_v1, %v1139_v5  ;;  %v680_v5 = vmul.f32 %v569_v28, %v569_v28 }
 0x123   : > { %v638_v7 = vadd.f32 %v1124_v60, %v637_v49  ;;  %v707_v8 = vadd.f32 %v706_v4, %v676_v6 }
 0x125   : > { %v708_v9 = vadd.f32 %v707_v8, %v677_v40  ;;  %v639_v62 = vadd.f32 %v1134_v3, %v638_v7 }
 0x127   : > { %v640_v11 = vadd.f32 %v639_v62, %v566_v18  ;;  %v709_v12 = vadd.f32 %v708_v9, %v678_v47 }
 0x129   : > { %v710_v13 = vadd.f32 %v709_v12, %v679_v10  ;;  %v641_v14 = vadd.f32 %v640_v11, %v569_v28 }
 0x12b   : > { %v642_v60 = vadd.f32 %v1144_v16, %v641_v14  ;;  %v711_v17 = vadd.f32 %v710_v13, %v680_v5 }
 0x12d   : > { %v643_v20 = vadd.f32 %v937_v24, %v642_v60  ;;  %v712_v21 = vadd.f32 %v711_v17, %v681_v15 }
 0x12f   : > { %v644_v22 = vrot.slane %v643_v20, 4  ;;  %v713_v26 = vadd.f32 %v712_v21, %v682_v19 }
 0x131   : > { %v645_v3 = vadd.f32 %v644_v22, %v643_v20  ;;  %v714_v30 = vrot.slane %v713_v26, 4 }
 0x133   : > { %v646_v18 = vrot.slane %v645_v3, 2  ;;  %v715_v31 = vadd.f32 %v714_v30, %v713_v26 }
 0x135   : > { %v647_v32 = vadd.f32 %v646_v18, %v645_v3  ;;  %v716_v33 = vrot.slane %v715_v31, 2 }
 0x137   : > { %v648_v28 = vrot.slane %v647_v32, 1  ;;  %v717_v34 = vadd.f32 %v716_v33, %v715_v31 }
 0x139   : > { %v649_v16 = vadd.f32 %v648_v28, %v647_v32  ;;  %v718_v35 = vrot.slane %v717_v34, 1 }
 0x13b   : > { %650 = vst [vmem:[%s214_s12] sm:$0x1] %v649_v16  ;;  %v719_v24 = vadd.f32 %v718_v35, %v717_v34 }
 0x13d   : > { %720 = vst [vmem:[%s217_s17] sm:$0x1] %v719_v24 }
 0x13e PF: > { %s15_s15 = sadd.s32 1, %s985_s15  }
 0x13f   : > { %p12_p5 = scmp.ge.s32.totalorder %s15_s15, 4  }
 0x141   :  { %14 = sbr.rel (!%p12_p5) target bundleno = 1 (0x1), region = 82 }

</bundles_post_ra>
